<compile_context>
chip_gen: v5e
topology: v5e:2x2
jax: 0.10.0
libtpu: 0.0.40
codegen_flags: <defaults>
</compile_context>

<pallas_src>
import numpy as np
import jax
import jax.numpy as jnp
from jax.experimental import pallas as pl
from jax.experimental.pallas import tpu as pltpu

K = 10            # Conv2d kernel_size = (1, 10)
PAD = 2           # Conv2d padding     = (0, 2)
EPS = 1e-5        # BatchNorm2d eps
MIN_MXU_CIN = 8   # below this, use the im2col (K*Cin contraction) path

# TODO(synk): the PyTorch forward casts to float64; TPU/Pallas has no practical f64
# matmul path, so compute here is bf16 x bf16 -> f32 (f32 accumulation / BN stats).


# ------------------------------ fused Pallas kernel ------------------------------

def _conv_bn_relu_kernel(x_ref, w_ref, g_ref, b_ref, o_ref, xp_ref):
    # x_ref : (B, W, Cin)                 input activations, B = N*H
    # w_ref : (K, Cin, Tco) or (K*Cin, Tco)   bf16 conv taps for this Cout tile
    # g_ref : (1, Tco)  f32  BatchNorm gamma
    # b_ref : (1, Tco)  f32  BatchNorm beta
    # o_ref : (B*Wout, Tco)               output tile (stored once, post BN+ReLU)
    # xp_ref: (B, W+2*PAD, Cin) bf16      VMEM scratch: zero-padded activations
    B, W, Cin = x_ref.shape
    Wout = W + 2 * PAD - K + 1
    M = B * Wout

    # Padded activation: one slab copy (cast to bf16 once) + two small zero strips.
    xp_ref[:, :PAD, :] = jnp.zeros((B, PAD, Cin), xp_ref.dtype)
    xp_ref[:, PAD + W:, :] = jnp.zeros((B, PAD, Cin), xp_ref.dtype)
    xp_ref[:, PAD:PAD + W, :] = x_ref[...].astype(xp_ref.dtype)

    if len(w_ref.shape) == 2:
        # Small-Cin path: im2col (contraction dim K*Cin) -> single MXU dot.
        lhs = jnp.concatenate([xp_ref[:, k:k + Wout, :] for k in range(K)],
                              axis=-1).reshape(M, K * Cin)
        acc = jnp.dot(lhs, w_ref[...], preferred_element_type=jnp.float32)
    else:
        # Large-Cin path: one batched (M = B*Wout rows) MXU dot per tap; accumulate
        # in a local f32 value (no per-tap VMEM read-modify-write of the output slab).
        acc = jnp.dot(xp_ref[:, 0:Wout, :].reshape(M, Cin), w_ref[0],
                      preferred_element_type=jnp.float32)
        for k in range(1, K):
            acc = acc + jnp.dot(xp_ref[:, k:k + Wout, :].reshape(M, Cin), w_ref[k],
                                preferred_element_type=jnp.float32)

    # Fused BatchNorm2d (training-mode biased batch stats over N*H*W) + ReLU.
    # Single sweep: sum and sum-of-squares, var = E[x^2] - mean^2.
    inv_n = 1.0 / M
    s = jnp.sum(acc, axis=0, keepdims=True)
    ss = jnp.sum(acc * acc, axis=0, keepdims=True)
    mean = s * inv_n
    var = jnp.maximum(ss * inv_n - mean * mean, 0.0)
    y = (acc - mean) * jax.lax.rsqrt(var + EPS) * g_ref[...] + b_ref[...]
    o_ref[...] = jnp.maximum(y, 0.0).astype(o_ref.dtype)


# --------------------------------- Pallas wrapper ---------------------------------

def conv_bn_relu(x, w_bf16, gamma, beta, out_dtype=jnp.float32):
    """Fused Conv2d((1,10), pad (0,2), bias=False) + BatchNorm2d (batch stats) + ReLU.

    x: (B, W, Cin) with B = N*H; w_bf16: (K, Cin, Cout) bf16.
    Returns (B, Wout, Cout), Wout = W + 2*PAD - K + 1.
    """
    B, W, Cin = x.shape
    Kw, Cin_w, Cout = w_bf16.shape
    assert Kw == K and Cin_w == Cin
    Wout = W + 2 * PAD - K + 1
    assert Wout >= 1, "W too small for the (1,10)/pad-2 convolution"
    M = B * Wout

    # 128-wide output-channel tiles (portable across v5e/v6e/v7x).
    # TODO(synk): on v6e/v7x a 256-wide tile better fills the 2x256^2 MXU; pick per
    # generation via pltpu.get_tpu_info when Cout allows keeping >=2 grid steps.
    tco = 128 if Cout % 128 == 0 else Cout

    g = gamma.reshape(1, Cout).astype(jnp.float32)
    b = beta.reshape(1, Cout).astype(jnp.float32)

    small_cin = Cin < MIN_MXU_CIN
    if small_cin:
        # Pre-reshape weights to (K*Cin, Cout) so the kernel's im2col dot needs no
        # in-kernel weight relayout.
        w_arg = w_bf16.reshape(K * Cin, Cout).astype(jnp.bfloat16)
        w_spec = pl.BlockSpec((K * Cin, tco), lambda j: (0, j))
    else:
        w_arg = w_bf16.astype(jnp.bfloat16)
        w_spec = pl.BlockSpec((K, Cin, tco), lambda j: (0, 0, j))

    # Explicit VMEM budget (double-buffered ins/outs + scratch + headroom).
    x_bytes = B * W * Cin * jnp.dtype(x.dtype).itemsize
    w_bytes = K * Cin * tco * 2
    o_bytes = M * tco * jnp.dtype(out_dtype).itemsize
    xp_bytes = B * (W + 2 * PAD) * Cin * 2
    vmem_limit = int(min(max(2 * (x_bytes + w_bytes + o_bytes) + xp_bytes + (4 << 20),
                             16 << 20), 96 << 20))

    out = pl.pallas_call(
        _conv_bn_relu_kernel,
        out_shape=jax.ShapeDtypeStruct((M, Cout), out_dtype),
        grid=(Cout // tco,),
        in_specs=[
            pl.BlockSpec((B, W, Cin), lambda j: (0, 0, 0)),   # full batch & width
            w_spec,                                           # weight channel tile
            pl.BlockSpec((1, tco), lambda j: (0, j)),         # gamma tile
            pl.BlockSpec((1, tco), lambda j: (0, j)),         # beta tile
        ],
        out_specs=pl.BlockSpec((M, tco), lambda j: (0, j)),   # lane-dense output slab
        scratch_shapes=[pltpu.VMEM((B, W + 2 * PAD, Cin), jnp.bfloat16)],
        compiler_params=pltpu.CompilerParams(
            dimension_semantics=("parallel",),                # Cout tiles split across cores
            vmem_limit_bytes=vmem_limit),
    )(x, w_arg, g, b)
    return out.reshape(B, Wout, Cout)


# --------------------------------- Block forward ----------------------------------

def block_forward(x_nchw, params):
    """Pallas version of Block.forward: conv1 -> bn -> relu -> conv2 -> bn -> relu."""
    # TODO(synk): BatchNorm running_mean/var updates (done twice per forward in PyTorch
    # since the module is reused) are not modeled; training-mode batch-stat output only.
    N, C, H, W = x_nchw.shape
    x = jnp.transpose(x_nchw, (0, 2, 3, 1)).astype(jnp.float32)   # NCHW -> NHWC
    x = x.reshape(N * H, W, C)                                    # fold H into batch
    # Intermediate activation kept in bf16 (conv2 casts to bf16 anyway): half HBM traffic.
    x = conv_bn_relu(x, params["w1"], params["gamma"], params["beta"],
                     out_dtype=jnp.bfloat16)
    x = conv_bn_relu(x, params["w2"], params["gamma"], params["beta"],
                     out_dtype=jnp.float32)
    x = x.reshape(N, H, x.shape[1], x.shape[2])
    return jnp.transpose(x, (0, 3, 1, 2))                         # back to NCHW


# ------------------------ pure-JAX reference (for checking) -----------------------
# The reference mirrors the kernel's numeric contract (bf16 activations x bf16 weights
# with f32 accumulation), since the PyTorch float64 path has no TPU equivalent.

def _conv_ref(x, w):
    B, W, Cin = x.shape
    Wout = W + 2 * PAD - K + 1
    xp = jnp.pad(x.astype(jnp.bfloat16).astype(jnp.float32),
                 ((0, 0), (PAD, PAD), (0, 0)))
    out = jnp.zeros((B, Wout, w.shape[2]), jnp.float32)
    for k in range(K):
        out = out + jnp.einsum("bwi,io->bwo", xp[:, k:k + Wout, :],
                               w[k].astype(jnp.float32),
                               precision=jax.lax.Precision.HIGHEST)
    return out


def _bn_relu_ref(x, gamma, beta):
    mean = x.mean(axis=(0, 1), keepdims=True)
    var = ((x - mean) ** 2).mean(axis=(0, 1), keepdims=True)
    y = (x - mean) * jax.lax.rsqrt(var + EPS)
    y = y * gamma.reshape(1, 1, -1) + beta.reshape(1, 1, -1)
    return jnp.maximum(y, 0.0)


def block_forward_ref(x_nchw, params):
    N, C, H, W = x_nchw.shape
    x = jnp.transpose(x_nchw, (0, 2, 3, 1)).astype(jnp.float32).reshape(N * H, W, C)
    x = _bn_relu_ref(_conv_ref(x, params["w1"]), params["gamma"], params["beta"])
    x = _bn_relu_ref(_conv_ref(x, params["w2"]), params["gamma"], params["beta"])
    x = x.reshape(N, H, x.shape[1], x.shape[2])
    return jnp.transpose(x, (0, 3, 1, 2))


# ------------------------------------- driver -------------------------------------

if __name__ == "__main__":
    key = jax.random.PRNGKey(0)
    kx, k1, k2, kg, kb = jax.random.split(key, 5)

    # Small shapes consistent with Block: NCHW input, Conv2d kernel (1, 10), pad (0, 2).
    N, Cin, H, W = 2, 4, 2, 32
    Cout = 256            # two 128-wide output-channel tiles -> exercises the grid
    x = jax.random.normal(kx, (N, Cin, H, W), dtype=jnp.float32)

    params = dict(
        # Conv weights stored as (tap, Cin, Cout), bias=False; pre-converted to bf16 once.
        w1=(0.05 * jax.random.normal(k1, (K, Cin, Cout), jnp.float32)).astype(jnp.bfloat16),
        w2=(0.05 * jax.random.normal(k2, (K, Cout, Cout), jnp.float32)).astype(jnp.bfloat16),
        # BatchNorm2d affine params (non-trivial values to exercise the affine path).
        gamma=1.0 + 0.1 * jax.random.normal(kg, (Cout,), jnp.float32),
        beta=0.1 * jax.random.normal(kb, (Cout,), jnp.float32),
    )

    run = jax.jit(block_forward)
    run_ref = jax.jit(block_forward_ref)

    out = jax.block_until_ready(run(x, params))
    ref = jax.block_until_ready(run_ref(x, params))

    # Each (1,10)/pad-2 conv shrinks W by (K - 1 - 2*PAD) = 5; two convs -> W - 10.
    W1 = W + 2 * PAD - K + 1
    W2 = W1 + 2 * PAD - K + 1
    expected_shape = (N, Cout, H, W2)
    assert out.shape == expected_shape, (out.shape, expected_shape)
    assert ref.shape == expected_shape, (ref.shape, expected_shape)
    np.testing.assert_allclose(np.asarray(out), np.asarray(ref), rtol=2e-2, atol=2e-2)

    print("KERNEL_OK")
</pallas_src>

<mosaic_0001>
module attributes {stable_mosaic.version = 11 : i64} {
  func.func @_conv_bn_relu_kernel(%arg0: i32, %arg1: memref<4x32x4xf32, #tpu.memory_space<vmem>>, %arg2: memref<40x128xbf16, #tpu.memory_space<vmem>>, %arg3: memref<1x128xf32, #tpu.memory_space<vmem>>, %arg4: memref<1x128xf32, #tpu.memory_space<vmem>>, %arg5: memref<108x128xbf16, #tpu.memory_space<vmem>>, %arg6: memref<4x36x4xbf16, #tpu.memory_space<vmem>>) attributes {dimension_semantics = [#tpu.dimension_semantics<parallel>], iteration_bounds = array<i64: 2>, scalar_prefetch = 0 : i64, scratch_operands = 1 : i64, tpu.core_type = #tpu.core_type<tc>, window_params = [{pipeline_mode = #tpu.pipeline_mode<synchronous>, transform_indices = @transform_0, window_bounds = array<i64: 4, 32, 4>}, {transform_indices = @transform_1, window_bounds = array<i64: 40, 128>}, {transform_indices = @transform_2, window_bounds = array<i64: 1, 128>}, {transform_indices = @transform_3, window_bounds = array<i64: 1, 128>}, {transform_indices = @transform_4, window_bounds = array<i64: 108, 128>}]} {
    %cst = arith.constant 0.000000e+00 : bf16
    %0 = vector.broadcast %cst : bf16 to vector<4x2x4xbf16>
    %c0 = arith.constant 0 : index
    %c0_0 = arith.constant 0 : index
    %c0_1 = arith.constant 0 : index
    %1 = vector.load %arg6[%c0, %c0_0, %c0_1] : memref<4x36x4xbf16, #tpu.memory_space<vmem>>, vector<4x2x4xbf16>
    tpu.vector_store %arg6[%c0, %c0_0, %c0_1], %0 {strides = array<i32>} : memref<4x36x4xbf16, #tpu.memory_space<vmem>>, vector<4x2x4xbf16>,
    %cst_2 = arith.constant 0.000000e+00 : bf16
    %2 = vector.broadcast %cst_2 : bf16 to vector<4x2x4xbf16>
    %c0_3 = arith.constant 0 : index
    %c34 = arith.constant 34 : index
    %c0_4 = arith.constant 0 : index
    %3 = vector.load %arg6[%c0_3, %c34, %c0_4] : memref<4x36x4xbf16, #tpu.memory_space<vmem>>, vector<4x2x4xbf16>
    tpu.vector_store %arg6[%c0_3, %c34, %c0_4], %2 {strides = array<i32>} : memref<4x36x4xbf16, #tpu.memory_space<vmem>>, vector<4x2x4xbf16>,
    %c0_5 = arith.constant 0 : index
    %c0_6 = arith.constant 0 : index
    %c0_7 = arith.constant 0 : index
    %4 = vector.load %arg1[%c0_5, %c0_6, %c0_7] : memref<4x32x4xf32, #tpu.memory_space<vmem>>, vector<4x32x4xf32>
    %5 = arith.truncf %4 : vector<4x32x4xf32> to vector<4x32x4xbf16>
    %c0_8 = arith.constant 0 : index
    %c2 = arith.constant 2 : index
    %c0_9 = arith.constant 0 : index
    %6 = vector.load %arg6[%c0_8, %c2, %c0_9] : memref<4x36x4xbf16, #tpu.memory_space<vmem>>, vector<4x32x4xbf16>
    tpu.vector_store %arg6[%c0_8, %c2, %c0_9], %5 {strides = array<i32>} : memref<4x36x4xbf16, #tpu.memory_space<vmem>>, vector<4x32x4xbf16>,
    %c0_10 = arith.constant 0 : index
    %c0_11 = arith.constant 0 : index
    %c0_12 = arith.constant 0 : index
    %7 = vector.load %arg6[%c0_10, %c0_11, %c0_12] : memref<4x36x4xbf16, #tpu.memory_space<vmem>>, vector<4x27x4xbf16>
    %c0_13 = arith.constant 0 : index
    %c1 = arith.constant 1 : index
    %c0_14 = arith.constant 0 : index
    %8 = vector.load %arg6[%c0_13, %c1, %c0_14] : memref<4x36x4xbf16, #tpu.memory_space<vmem>>, vector<4x27x4xbf16>
    %c0_15 = arith.constant 0 : index
    %c2_16 = arith.constant 2 : index
    %c0_17 = arith.constant 0 : index
    %9 = vector.load %arg6[%c0_15, %c2_16, %c0_17] : memref<4x36x4xbf16, #tpu.memory_space<vmem>>, vector<4x27x4xbf16>
    %c0_18 = arith.constant 0 : index
    %c3 = arith.constant 3 : index
    %c0_19 = arith.constant 0 : index
    %10 = vector.load %arg6[%c0_18, %c3, %c0_19] : memref<4x36x4xbf16, #tpu.memory_space<vmem>>, vector<4x27x4xbf16>
    %c0_20 = arith.constant 0 : index
    %c4 = arith.constant 4 : index
    %c0_21 = arith.constant 0 : index
    %11 = vector.load %arg6[%c0_20, %c4, %c0_21] : memref<4x36x4xbf16, #tpu.memory_space<vmem>>, vector<4x27x4xbf16>
    %c0_22 = arith.constant 0 : index
    %c5 = arith.constant 5 : index
    %c0_23 = arith.constant 0 : index
    %12 = vector.load %arg6[%c0_22, %c5, %c0_23] : memref<4x36x4xbf16, #tpu.memory_space<vmem>>, vector<4x27x4xbf16>
    %c0_24 = arith.constant 0 : index
    %c6 = arith.constant 6 : index
    %c0_25 = arith.constant 0 : index
    %13 = vector.load %arg6[%c0_24, %c6, %c0_25] : memref<4x36x4xbf16, #tpu.memory_space<vmem>>, vector<4x27x4xbf16>
    %c0_26 = arith.constant 0 : index
    %c7 = arith.constant 7 : index
    %c0_27 = arith.constant 0 : index
    %14 = vector.load %arg6[%c0_26, %c7, %c0_27] : memref<4x36x4xbf16, #tpu.memory_space<vmem>>, vector<4x27x4xbf16>
    %c0_28 = arith.constant 0 : index
    %c8 = arith.constant 8 : index
    %c0_29 = arith.constant 0 : index
    %15 = vector.load %arg6[%c0_28, %c8, %c0_29] : memref<4x36x4xbf16, #tpu.memory_space<vmem>>, vector<4x27x4xbf16>
    %c0_30 = arith.constant 0 : index
    %c9 = arith.constant 9 : index
    %c0_31 = arith.constant 0 : index
    %16 = vector.load %arg6[%c0_30, %c9, %c0_31] : memref<4x36x4xbf16, #tpu.memory_space<vmem>>, vector<4x27x4xbf16>
    %17 = tpu.concatenate %7, %8, %9, %10, %11, %12, %13, %14, %15, %16 in 2 : vector<4x27x4xbf16>, vector<4x27x4xbf16>, vector<4x27x4xbf16>, vector<4x27x4xbf16>, vector<4x27x4xbf16>, vector<4x27x4xbf16>, vector<4x27x4xbf16>, vector<4x27x4xbf16>, vector<4x27x4xbf16>, vector<4x27x4xbf16> -> vector<4x27x40xbf16>
    %18 = vector.shape_cast %17 : vector<4x27x40xbf16> to vector<108x40xbf16>
    %c0_32 = arith.constant 0 : index
    %c0_33 = arith.constant 0 : index
    %19 = vector.load %arg2[%c0_32, %c0_33] : memref<40x128xbf16, #tpu.memory_space<vmem>>, vector<40x128xbf16>
    %cst_34 = arith.constant dense<0.000000e+00> : vector<108x128xf32>
    %20 = tpu.matmul %18, %19, %cst_34 {dimension_numbers = #tpu.dot_dimension_numbers<[1], [0], [0], [1], [0, 0, 1, 1], [], []>} : vector<108x40xbf16>, vector<40x128xbf16>, vector<108x128xf32> -> vector<108x128xf32>
    %cst_35 = arith.constant dense<0.000000e+00> : vector<128xf32>
    %21 = vector.multi_reduction <add>, %20, %cst_35 [0] : vector<108x128xf32> to vector<128xf32>
    %22 = vector.shape_cast %21 : vector<128xf32> to vector<1x128xf32>
    %23 = arith.mulf %20, %20 : vector<108x128xf32>
    %cst_36 = arith.constant dense<0.000000e+00> : vector<128xf32>
    %24 = vector.multi_reduction <add>, %23, %cst_36 [0] : vector<108x128xf32> to vector<128xf32>
    %25 = vector.shape_cast %24 : vector<128xf32> to vector<1x128xf32>
    %cst_37 = arith.constant 0.00925925932 : f32
    %26 = vector.broadcast %cst_37 : f32 to vector<1x128xf32>
    %27 = arith.mulf %22, %26 : vector<1x128xf32>
    %cst_38 = arith.constant 0.00925925932 : f32
    %28 = vector.broadcast %cst_38 : f32 to vector<1x128xf32>
    %29 = arith.mulf %25, %28 : vector<1x128xf32>
    %30 = arith.mulf %27, %27 : vector<1x128xf32>
    %31 = arith.subf %29, %30 : vector<1x128xf32>
    %cst_39 = arith.constant 0.000000e+00 : f32
    %32 = vector.broadcast %cst_39 : f32 to vector<1x128xf32>
    %33 = arith.maximumf %31, %32 : vector<1x128xf32>
    %34 = vector.broadcast %27 : vector<1x128xf32> to vector<108x128xf32>
    %35 = arith.subf %20, %34 : vector<108x128xf32>
    %cst_40 = arith.constant 9.99999974E-6 : f32
    %36 = vector.broadcast %cst_40 : f32 to vector<1x128xf32>
    %37 = arith.addf %33, %36 : vector<1x128xf32>
    %38 = math.rsqrt %37 : vector<1x128xf32>
    %39 = vector.broadcast %38 : vector<1x128xf32> to vector<108x128xf32>
    %40 = arith.mulf %35, %39 : vector<108x128xf32>
    %c0_41 = arith.constant 0 : index
    %c0_42 = arith.constant 0 : index
    %41 = vector.load %arg3[%c0_41, %c0_42] : memref<1x128xf32, #tpu.memory_space<vmem>>, vector<1x128xf32>
    %42 = vector.broadcast %41 : vector<1x128xf32> to vector<108x128xf32>
    %43 = arith.mulf %40, %42 : vector<108x128xf32>
    %c0_43 = arith.constant 0 : index
    %c0_44 = arith.constant 0 : index
    %44 = vector.load %arg4[%c0_43, %c0_44] : memref<1x128xf32, #tpu.memory_space<vmem>>, vector<1x128xf32>
    %45 = vector.broadcast %44 : vector<1x128xf32> to vector<108x128xf32>
    %46 = arith.addf %43, %45 : vector<108x128xf32>
    %cst_45 = arith.constant 0.000000e+00 : f32
    %47 = vector.broadcast %cst_45 : f32 to vector<108x128xf32>
    %48 = arith.maximumf %46, %47 : vector<108x128xf32>
    %49 = arith.truncf %48 : vector<108x128xf32> to vector<108x128xbf16>
    %c0_46 = arith.constant 0 : index
    %c0_47 = arith.constant 0 : index
    %50 = vector.load %arg5[%c0_46, %c0_47] : memref<108x128xbf16, #tpu.memory_space<vmem>>, vector<108x128xbf16>
    tpu.vector_store %arg5[%c0_46, %c0_47], %49 {strides = array<i32>} : memref<108x128xbf16, #tpu.memory_space<vmem>>, vector<108x128xbf16>,
    return
  }
  func.func @transform_0(%arg0: i32) -> (i32, i32, i32) {
    %c0_i32 = arith.constant 0 : i32
    %c0_i32_0 = arith.constant 0 : i32
    %c0_i32_1 = arith.constant 0 : i32
    %c0_i32_2 = arith.constant 0 : i32
    return %c0_i32, %c0_i32_0, %c0_i32_1 : i32, i32, i32
  }
  func.func @transform_1(%arg0: i32) -> (i32, i32) {
    %c0_i32 = arith.constant 0 : i32
    %c0_i32_0 = arith.constant 0 : i32
    return %c0_i32, %arg0 : i32, i32
  }
  func.func @transform_2(%arg0: i32) -> (i32, i32) {
    %c0_i32 = arith.constant 0 : i32
    %c0_i32_0 = arith.constant 0 : i32
    return %c0_i32, %arg0 : i32, i32
  }
  func.func @transform_3(%arg0: i32) -> (i32, i32) {
    %c0_i32 = arith.constant 0 : i32
    %c0_i32_0 = arith.constant 0 : i32
    return %c0_i32, %arg0 : i32, i32
  }
  func.func @transform_4(%arg0: i32) -> (i32, i32) {
    %c0_i32 = arith.constant 0 : i32
    %c0_i32_0 = arith.constant 0 : i32
    return %c0_i32, %arg0 : i32, i32
  }
}

module attributes {stable_mosaic.version = 11 : i64} {
  func.func @_conv_bn_relu_kernel(%arg0: i32, %arg1: memref<4x27x256xbf16, #tpu.memory_space<vmem>>, %arg2: memref<10x256x128xbf16, #tpu.memory_space<vmem>>, %arg3: memref<1x128xf32, #tpu.memory_space<vmem>>, %arg4: memref<1x128xf32, #tpu.memory_space<vmem>>, %arg5: memref<88x128xf32, #tpu.memory_space<vmem>>, %arg6: memref<4x31x256xbf16, #tpu.memory_space<vmem>>) attributes {dimension_semantics = [#tpu.dimension_semantics<parallel>], iteration_bounds = array<i64: 2>, scalar_prefetch = 0 : i64, scratch_operands = 1 : i64, tpu.core_type = #tpu.core_type<tc>, window_params = [{pipeline_mode = #tpu.pipeline_mode<synchronous>, transform_indices = @transform_0, window_bounds = array<i64: 4, 27, 256>}, {transform_indices = @transform_1, window_bounds = array<i64: 10, 256, 128>}, {transform_indices = @transform_2, window_bounds = array<i64: 1, 128>}, {transform_indices = @transform_3, window_bounds = array<i64: 1, 128>}, {transform_indices = @transform_4, window_bounds = array<i64: 88, 128>}]} {
    %cst = arith.constant 0.000000e+00 : bf16
    %0 = vector.broadcast %cst : bf16 to vector<4x2x256xbf16>
    %c0 = arith.constant 0 : index
    %c0_0 = arith.constant 0 : index
    %c0_1 = arith.constant 0 : index
    %1 = vector.load %arg6[%c0, %c0_0, %c0_1] : memref<4x31x256xbf16, #tpu.memory_space<vmem>>, vector<4x2x256xbf16>
    tpu.vector_store %arg6[%c0, %c0_0, %c0_1], %0 {strides = array<i32>} : memref<4x31x256xbf16, #tpu.memory_space<vmem>>, vector<4x2x256xbf16>,
    %cst_2 = arith.constant 0.000000e+00 : bf16
    %2 = vector.broadcast %cst_2 : bf16 to vector<4x2x256xbf16>
    %c0_3 = arith.constant 0 : index
    %c29 = arith.constant 29 : index
    %c0_4 = arith.constant 0 : index
    %3 = vector.load %arg6[%c0_3, %c29, %c0_4] : memref<4x31x256xbf16, #tpu.memory_space<vmem>>, vector<4x2x256xbf16>
    tpu.vector_store %arg6[%c0_3, %c29, %c0_4], %2 {strides = array<i32>} : memref<4x31x256xbf16, #tpu.memory_space<vmem>>, vector<4x2x256xbf16>,
    %c0_5 = arith.constant 0 : index
    %c0_6 = arith.constant 0 : index
    %c0_7 = arith.constant 0 : index
    %4 = vector.load %arg1[%c0_5, %c0_6, %c0_7] : memref<4x27x256xbf16, #tpu.memory_space<vmem>>, vector<4x27x256xbf16>
    %c0_8 = arith.constant 0 : index
    %c2 = arith.constant 2 : index
    %c0_9 = arith.constant 0 : index
    %5 = vector.load %arg6[%c0_8, %c2, %c0_9] : memref<4x31x256xbf16, #tpu.memory_space<vmem>>, vector<4x27x256xbf16>
    tpu.vector_store %arg6[%c0_8, %c2, %c0_9], %4 {strides = array<i32>} : memref<4x31x256xbf16, #tpu.memory_space<vmem>>, vector<4x27x256xbf16>,
    %c0_10 = arith.constant 0 : index
    %c0_11 = arith.constant 0 : index
    %c0_12 = arith.constant 0 : index
    %6 = vector.load %arg6[%c0_10, %c0_11, %c0_12] : memref<4x31x256xbf16, #tpu.memory_space<vmem>>, vector<4x22x256xbf16>
    %7 = vector.shape_cast %6 : vector<4x22x256xbf16> to vector<88x256xbf16>
    %c0_13 = arith.constant 0 : index
    %c0_14 = arith.constant 0 : index
    %c0_15 = arith.constant 0 : index
    %8 = vector.load %arg2[%c0_13, %c0_14, %c0_15] : memref<10x256x128xbf16, #tpu.memory_space<vmem>>, vector<1x256x128xbf16>
    %9 = vector.shape_cast %8 : vector<1x256x128xbf16> to vector<256x128xbf16>
    %cst_16 = arith.constant dense<0.000000e+00> : vector<88x128xf32>
    %10 = tpu.matmul %7, %9, %cst_16 {dimension_numbers = #tpu.dot_dimension_numbers<[1], [0], [0], [1], [0, 0, 1, 1], [], []>} : vector<88x256xbf16>, vector<256x128xbf16>, vector<88x128xf32> -> vector<88x128xf32>
    %c0_17 = arith.constant 0 : index
    %c1 = arith.constant 1 : index
    %c0_18 = arith.constant 0 : index
    %11 = vector.load %arg6[%c0_17, %c1, %c0_18] : memref<4x31x256xbf16, #tpu.memory_space<vmem>>, vector<4x22x256xbf16>
    %12 = vector.shape_cast %11 : vector<4x22x256xbf16> to vector<88x256xbf16>
    %c1_19 = arith.constant 1 : index
    %c0_20 = arith.constant 0 : index
    %c0_21 = arith.constant 0 : index
    %13 = vector.load %arg2[%c1_19, %c0_20, %c0_21] : memref<10x256x128xbf16, #tpu.memory_space<vmem>>, vector<1x256x128xbf16>
    %14 = vector.shape_cast %13 : vector<1x256x128xbf16> to vector<256x128xbf16>
    %cst_22 = arith.constant dense<0.000000e+00> : vector<88x128xf32>
    %15 = tpu.matmul %12, %14, %cst_22 {dimension_numbers = #tpu.dot_dimension_numbers<[1], [0], [0], [1], [0, 0, 1, 1], [], []>} : vector<88x256xbf16>, vector<256x128xbf16>, vector<88x128xf32> -> vector<88x128xf32>
    %16 = arith.addf %10, %15 : vector<88x128xf32>
    %c0_23 = arith.constant 0 : index
    %c2_24 = arith.constant 2 : index
    %c0_25 = arith.constant 0 : index
    %17 = vector.load %arg6[%c0_23, %c2_24, %c0_25] : memref<4x31x256xbf16, #tpu.memory_space<vmem>>, vector<4x22x256xbf16>
    %18 = vector.shape_cast %17 : vector<4x22x256xbf16> to vector<88x256xbf16>
    %c2_26 = arith.constant 2 : index
    %c0_27 = arith.constant 0 : index
    %c0_28 = arith.constant 0 : index
    %19 = vector.load %arg2[%c2_26, %c0_27, %c0_28] : memref<10x256x128xbf16, #tpu.memory_space<vmem>>, vector<1x256x128xbf16>
    %20 = vector.shape_cast %19 : vector<1x256x128xbf16> to vector<256x128xbf16>
    %cst_29 = arith.constant dense<0.000000e+00> : vector<88x128xf32>
    %21 = tpu.matmul %18, %20, %cst_29 {dimension_numbers = #tpu.dot_dimension_numbers<[1], [0], [0], [1], [0, 0, 1, 1], [], []>} : vector<88x256xbf16>, vector<256x128xbf16>, vector<88x128xf32> -> vector<88x128xf32>
    %22 = arith.addf %16, %21 : vector<88x128xf32>
    %c0_30 = arith.constant 0 : index
    %c3 = arith.constant 3 : index
    %c0_31 = arith.constant 0 : index
    %23 = vector.load %arg6[%c0_30, %c3, %c0_31] : memref<4x31x256xbf16, #tpu.memory_space<vmem>>, vector<4x22x256xbf16>
    %24 = vector.shape_cast %23 : vector<4x22x256xbf16> to vector<88x256xbf16>
    %c3_32 = arith.constant 3 : index
    %c0_33 = arith.constant 0 : index
    %c0_34 = arith.constant 0 : index
    %25 = vector.load %arg2[%c3_32, %c0_33, %c0_34] : memref<10x256x128xbf16, #tpu.memory_space<vmem>>, vector<1x256x128xbf16>
    %26 = vector.shape_cast %25 : vector<1x256x128xbf16> to vector<256x128xbf16>
    %cst_35 = arith.constant dense<0.000000e+00> : vector<88x128xf32>
    %27 = tpu.matmul %24, %26, %cst_35 {dimension_numbers = #tpu.dot_dimension_numbers<[1], [0], [0], [1], [0, 0, 1, 1], [], []>} : vector<88x256xbf16>, vector<256x128xbf16>, vector<88x128xf32> -> vector<88x128xf32>
    %28 = arith.addf %22, %27 : vector<88x128xf32>
    %c0_36 = arith.constant 0 : index
    %c4 = arith.constant 4 : index
    %c0_37 = arith.constant 0 : index
    %29 = vector.load %arg6[%c0_36, %c4, %c0_37] : memref<4x31x256xbf16, #tpu.memory_space<vmem>>, vector<4x22x256xbf16>
    %30 = vector.shape_cast %29 : vector<4x22x256xbf16> to vector<88x256xbf16>
    %c4_38 = arith.constant 4 : index
    %c0_39 = arith.constant 0 : index
    %c0_40 = arith.constant 0 : index
    %31 = vector.load %arg2[%c4_38, %c0_39, %c0_40] : memref<10x256x128xbf16, #tpu.memory_space<vmem>>, vector<1x256x128xbf16>
    %32 = vector.shape_cast %31 : vector<1x256x128xbf16> to vector<256x128xbf16>
    %cst_41 = arith.constant dense<0.000000e+00> : vector<88x128xf32>
    %33 = tpu.matmul %30, %32, %cst_41 {dimension_numbers = #tpu.dot_dimension_numbers<[1], [0], [0], [1], [0, 0, 1, 1], [], []>} : vector<88x256xbf16>, vector<256x128xbf16>, vector<88x128xf32> -> vector<88x128xf32>
    %34 = arith.addf %28, %33 : vector<88x128xf32>
    %c0_42 = arith.constant 0 : index
    %c5 = arith.constant 5 : index
    %c0_43 = arith.constant 0 : index
    %35 = vector.load %arg6[%c0_42, %c5, %c0_43] : memref<4x31x256xbf16, #tpu.memory_space<vmem>>, vector<4x22x256xbf16>
    %36 = vector.shape_cast %35 : vector<4x22x256xbf16> to vector<88x256xbf16>
    %c5_44 = arith.constant 5 : index
    %c0_45 = arith.constant 0 : index
    %c0_46 = arith.constant 0 : index
    %37 = vector.load %arg2[%c5_44, %c0_45, %c0_46] : memref<10x256x128xbf16, #tpu.memory_space<vmem>>, vector<1x256x128xbf16>
    %38 = vector.shape_cast %37 : vector<1x256x128xbf16> to vector<256x128xbf16>
    %cst_47 = arith.constant dense<0.000000e+00> : vector<88x128xf32>
    %39 = tpu.matmul %36, %38, %cst_47 {dimension_numbers = #tpu.dot_dimension_numbers<[1], [0], [0], [1], [0, 0, 1, 1], [], []>} : vector<88x256xbf16>, vector<256x128xbf16>, vector<88x128xf32> -> vector<88x128xf32>
    %40 = arith.addf %34, %39 : vector<88x128xf32>
    %c0_48 = arith.constant 0 : index
    %c6 = arith.constant 6 : index
    %c0_49 = arith.constant 0 : index
    %41 = vector.load %arg6[%c0_48, %c6, %c0_49] : memref<4x31x256xbf16, #tpu.memory_space<vmem>>, vector<4x22x256xbf16>
    %42 = vector.shape_cast %41 : vector<4x22x256xbf16> to vector<88x256xbf16>
    %c6_50 = arith.constant 6 : index
    %c0_51 = arith.constant 0 : index
    %c0_52 = arith.constant 0 : index
    %43 = vector.load %arg2[%c6_50, %c0_51, %c0_52] : memref<10x256x128xbf16, #tpu.memory_space<vmem>>, vector<1x256x128xbf16>
    %44 = vector.shape_cast %43 : vector<1x256x128xbf16> to vector<256x128xbf16>
    %cst_53 = arith.constant dense<0.000000e+00> : vector<88x128xf32>
    %45 = tpu.matmul %42, %44, %cst_53 {dimension_numbers = #tpu.dot_dimension_numbers<[1], [0], [0], [1], [0, 0, 1, 1], [], []>} : vector<88x256xbf16>, vector<256x128xbf16>, vector<88x128xf32> -> vector<88x128xf32>
    %46 = arith.addf %40, %45 : vector<88x128xf32>
    %c0_54 = arith.constant 0 : index
    %c7 = arith.constant 7 : index
    %c0_55 = arith.constant 0 : index
    %47 = vector.load %arg6[%c0_54, %c7, %c0_55] : memref<4x31x256xbf16, #tpu.memory_space<vmem>>, vector<4x22x256xbf16>
    %48 = vector.shape_cast %47 : vector<4x22x256xbf16> to vector<88x256xbf16>
    %c7_56 = arith.constant 7 : index
    %c0_57 = arith.constant 0 : index
    %c0_58 = arith.constant 0 : index
    %49 = vector.load %arg2[%c7_56, %c0_57, %c0_58] : memref<10x256x128xbf16, #tpu.memory_space<vmem>>, vector<1x256x128xbf16>
    %50 = vector.shape_cast %49 : vector<1x256x128xbf16> to vector<256x128xbf16>
    %cst_59 = arith.constant dense<0.000000e+00> : vector<88x128xf32>
    %51 = tpu.matmul %48, %50, %cst_59 {dimension_numbers = #tpu.dot_dimension_numbers<[1], [0], [0], [1], [0, 0, 1, 1], [], []>} : vector<88x256xbf16>, vector<256x128xbf16>, vector<88x128xf32> -> vector<88x128xf32>
    %52 = arith.addf %46, %51 : vector<88x128xf32>
    %c0_60 = arith.constant 0 : index
    %c8 = arith.constant 8 : index
    %c0_61 = arith.constant 0 : index
    %53 = vector.load %arg6[%c0_60, %c8, %c0_61] : memref<4x31x256xbf16, #tpu.memory_space<vmem>>, vector<4x22x256xbf16>
    %54 = vector.shape_cast %53 : vector<4x22x256xbf16> to vector<88x256xbf16>
    %c8_62 = arith.constant 8 : index
    %c0_63 = arith.constant 0 : index
    %c0_64 = arith.constant 0 : index
    %55 = vector.load %arg2[%c8_62, %c0_63, %c0_64] : memref<10x256x128xbf16, #tpu.memory_space<vmem>>, vector<1x256x128xbf16>
    %56 = vector.shape_cast %55 : vector<1x256x128xbf16> to vector<256x128xbf16>
    %cst_65 = arith.constant dense<0.000000e+00> : vector<88x128xf32>
    %57 = tpu.matmul %54, %56, %cst_65 {dimension_numbers = #tpu.dot_dimension_numbers<[1], [0], [0], [1], [0, 0, 1, 1], [], []>} : vector<88x256xbf16>, vector<256x128xbf16>, vector<88x128xf32> -> vector<88x128xf32>
    %58 = arith.addf %52, %57 : vector<88x128xf32>
    %c0_66 = arith.constant 0 : index
    %c9 = arith.constant 9 : index
    %c0_67 = arith.constant 0 : index
    %59 = vector.load %arg6[%c0_66, %c9, %c0_67] : memref<4x31x256xbf16, #tpu.memory_space<vmem>>, vector<4x22x256xbf16>
    %60 = vector.shape_cast %59 : vector<4x22x256xbf16> to vector<88x256xbf16>
    %c9_68 = arith.constant 9 : index
    %c0_69 = arith.constant 0 : index
    %c0_70 = arith.constant 0 : index
    %61 = vector.load %arg2[%c9_68, %c0_69, %c0_70] : memref<10x256x128xbf16, #tpu.memory_space<vmem>>, vector<1x256x128xbf16>
    %62 = vector.shape_cast %61 : vector<1x256x128xbf16> to vector<256x128xbf16>
    %cst_71 = arith.constant dense<0.000000e+00> : vector<88x128xf32>
    %63 = tpu.matmul %60, %62, %cst_71 {dimension_numbers = #tpu.dot_dimension_numbers<[1], [0], [0], [1], [0, 0, 1, 1], [], []>} : vector<88x256xbf16>, vector<256x128xbf16>, vector<88x128xf32> -> vector<88x128xf32>
    %64 = arith.addf %58, %63 : vector<88x128xf32>
    %cst_72 = arith.constant dense<0.000000e+00> : vector<128xf32>
    %65 = vector.multi_reduction <add>, %64, %cst_72 [0] : vector<88x128xf32> to vector<128xf32>
    %66 = vector.shape_cast %65 : vector<128xf32> to vector<1x128xf32>
    %67 = arith.mulf %64, %64 : vector<88x128xf32>
    %cst_73 = arith.constant dense<0.000000e+00> : vector<128xf32>
    %68 = vector.multi_reduction <add>, %67, %cst_73 [0] : vector<88x128xf32> to vector<128xf32>
    %69 = vector.shape_cast %68 : vector<128xf32> to vector<1x128xf32>
    %cst_74 = arith.constant 0.0113636367 : f32
    %70 = vector.broadcast %cst_74 : f32 to vector<1x128xf32>
    %71 = arith.mulf %66, %70 : vector<1x128xf32>
    %cst_75 = arith.constant 0.0113636367 : f32
    %72 = vector.broadcast %cst_75 : f32 to vector<1x128xf32>
    %73 = arith.mulf %69, %72 : vector<1x128xf32>
    %74 = arith.mulf %71, %71 : vector<1x128xf32>
    %75 = arith.subf %73, %74 : vector<1x128xf32>
    %cst_76 = arith.constant 0.000000e+00 : f32
    %76 = vector.broadcast %cst_76 : f32 to vector<1x128xf32>
    %77 = arith.maximumf %75, %76 : vector<1x128xf32>
    %78 = vector.broadcast %71 : vector<1x128xf32> to vector<88x128xf32>
    %79 = arith.subf %64, %78 : vector<88x128xf32>
    %cst_77 = arith.constant 9.99999974E-6 : f32
    %80 = vector.broadcast %cst_77 : f32 to vector<1x128xf32>
    %81 = arith.addf %77, %80 : vector<1x128xf32>
    %82 = math.rsqrt %81 : vector<1x128xf32>
    %83 = vector.broadcast %82 : vector<1x128xf32> to vector<88x128xf32>
    %84 = arith.mulf %79, %83 : vector<88x128xf32>
    %c0_78 = arith.constant 0 : index
    %c0_79 = arith.constant 0 : index
    %85 = vector.load %arg3[%c0_78, %c0_79] : memref<1x128xf32, #tpu.memory_space<vmem>>, vector<1x128xf32>
    %86 = vector.broadcast %85 : vector<1x128xf32> to vector<88x128xf32>
    %87 = arith.mulf %84, %86 : vector<88x128xf32>
    %c0_80 = arith.constant 0 : index
    %c0_81 = arith.constant 0 : index
    %88 = vector.load %arg4[%c0_80, %c0_81] : memref<1x128xf32, #tpu.memory_space<vmem>>, vector<1x128xf32>
    %89 = vector.broadcast %88 : vector<1x128xf32> to vector<88x128xf32>
    %90 = arith.addf %87, %89 : vector<88x128xf32>
    %cst_82 = arith.constant 0.000000e+00 : f32
    %91 = vector.broadcast %cst_82 : f32 to vector<88x128xf32>
    %92 = arith.maximumf %90, %91 : vector<88x128xf32>
    %c0_83 = arith.constant 0 : index
    %c0_84 = arith.constant 0 : index
    %93 = vector.load %arg5[%c0_83, %c0_84] : memref<88x128xf32, #tpu.memory_space<vmem>>, vector<88x128xf32>
    tpu.vector_store %arg5[%c0_83, %c0_84], %92 {strides = array<i32>} : memref<88x128xf32, #tpu.memory_space<vmem>>, vector<88x128xf32>,
    return
  }
  func.func @transform_0(%arg0: i32) -> (i32, i32, i32) {
    %c0_i32 = arith.constant 0 : i32
    %c0_i32_0 = arith.constant 0 : i32
    %c0_i32_1 = arith.constant 0 : i32
    %c0_i32_2 = arith.constant 0 : i32
    return %c0_i32, %c0_i32_0, %c0_i32_1 : i32, i32, i32
  }
  func.func @transform_1(%arg0: i32) -> (i32, i32, i32) {
    %c0_i32 = arith.constant 0 : i32
    %c0_i32_0 = arith.constant 0 : i32
    %c0_i32_1 = arith.constant 0 : i32
    return %c0_i32, %c0_i32_0, %arg0 : i32, i32, i32
  }
  func.func @transform_2(%arg0: i32) -> (i32, i32) {
    %c0_i32 = arith.constant 0 : i32
    %c0_i32_0 = arith.constant 0 : i32
    return %c0_i32, %arg0 : i32, i32
  }
  func.func @transform_3(%arg0: i32) -> (i32, i32) {
    %c0_i32 = arith.constant 0 : i32
    %c0_i32_0 = arith.constant 0 : i32
    return %c0_i32, %arg0 : i32, i32
  }
  func.func @transform_4(%arg0: i32) -> (i32, i32) {
    %c0_i32 = arith.constant 0 : i32
    %c0_i32_0 = arith.constant 0 : i32
    return %c0_i32, %arg0 : i32, i32
  }
}

</mosaic_0001>

<bundles_post_ra>
// kernel: block_forward.2
= control target key start
LH: loop header
LB: loop body
LE: loop exit
PB: predicated region body
PF: predicated region fallthrough
CT: control target
= control target key end

     0   :  { %9 = vsyncpa [#allocation5], 0  ;;  %s3371_s0 = inlined_call_operand.vmem [shape: f32[4,32,4], index: 0, kind: input, shape index: {}]   ;;  %s3372_s1 = inlined_call_operand.vmem [shape: bf16[40,256], index: 1, kind: input, shape index: {}]   ;;  %s3373_s2 = inlined_call_operand.hbm [shape: f32[1,256], index: 2, kind: input, shape index: {}]   ;;  %s3374_s3 = inlined_call_operand.hbm [shape: f32[1,256], index: 3, kind: input, shape index: {}]   ;;  %s3375_s4 = inlined_call_operand.vmem [shape: bf16[108,256], index: 4, kind: output, shape index: {}]  }
   0x1   :  { %11 = vsyncpa [#allocation5 + $0x1], 0 }
   0x2   :  { %12 = vsyncpa [#allocation7], 0 }
   0x3   :  { %14 = vsyncpa [#allocation7 + $0x1], 0  ;;  %s2432_s15 = smov 0   ;;  %s2434_s16 = smov 0  }
   0x4   :  { %s2436_s17 = smov 0   ;;  %s2438_s18 = smov 0  }
   0x5 LB: > { %s2451_s19 = sadd.s32 4294967295, %s2395_s18   ;;  %s2454_s20 = sadd.s32 1, %s2395_s18   ;;  %s2395_s18 = sphi %s2438_s18, %s3384_s18   ;;  %s2391_s17 = sphi %s2436_s17, %s3383_s17   ;;  %s2387_s16 = sphi %s2434_s16, %s3382_s16   ;;  %s2383_s15 = sphi %s2432_s15, %s3381_s15  }
   0x6   : > { %s45_s21 = ssub.s32 %s2395_s18, %s2454_s20  ;;  %s48_s22 = sadd.s32 1, %s2391_s17 }
   0x7   : > { %p46_p0 = scmp.eq.s32.totalorder %s45_s21, 0  ;;  %p55_p1 = scmp.ne.s32.totalorder %s2391_s17, %s2387_s16 }
   0x8   : > { %p56_p2 = scmp.eq.s32.totalorder %s2395_s18, 0  ;;  %p87_p3 = scmp.ne.s32.totalorder %s2387_s16, %s2383_s15 }
   0x9   : > { %s2464_s23 = scalar_select %p46_p0, %s2391_s17, %s48_s22  }
   0xa   : > { %p2466_p4 = por %p56_p2, %p55_p1  ;;  %p88_p5 = scmp.eq.s32.totalorder %s2451_s19, 0 }
   0xb   : > { %p137_p6 = scmp.eq.s32.totalorder %s2451_s19, 1  ;;  %p2127_p9 = scmp.ge.s32.totalorder %s2395_s18, 2 }
   0xc   : > { %p2472_p7 = por %p88_p5, %p87_p3 }
   0xd   : > { %p2476_p8 = por %p137_p6, %p55_p1  ;;  %162 = sbr.rel (%p2127_p9) target bundleno = 57 (0x39), region = 20 }
  0x12   : > { %165 = sbr.rel (!%p2466_p4) target bundleno = 28 (0x1c), region = 24  ;;  %s167_s27 = sand.u32 (%p2466_p4), 1, %s2391_s17  }
  0x13   : > { %s2128_s28 = sshll.u32 (%p2466_p4), %s2395_s18, 2  ;;  %s2241_s29 = smul.u32 (%p2466_p4), 20, %s167_s27 }
  0x14   : > { %s171_s6 = scalar_lea.vmem (%p2466_p4), %s3372_s1, %s2128_s28 }
  0x15   : > { %v188_v0 = vld [vmem:[%s171_s6] sm:$0xf] (%p2466_p4)  ;;  %v190_v1 = vld [vmem:[%s171_s6 + $0x8] sm:$0xf] (%p2466_p4)  ;;  %v192_v2 = vld [vmem:[%s171_s6 + $0x10] sm:$0xf] (%p2466_p4) }
  0x16   : > { %s169_s7 = scalar_lea.vmem (%p2466_p4), [#allocation3], %s2241_s29  ;;  %v194_v3 = vld [vmem:[%s171_s6 + $0x18] sm:$0xf] (%p2466_p4)  ;;  %v196_v4 = vld [vmem:[%s171_s6 + $0x20] sm:$0xf] (%p2466_p4) }
  0x17   : > { %189 = vst [vmem:[%s169_s7] sm:$0xf] %v188_v0 }
  0x18   : > { %191 = vst [vmem:[%s169_s7 + $0x4] sm:$0xf] %v190_v1 }
  0x19   : > { %193 = vst [vmem:[%s169_s7 + $0x8] sm:$0xf] %v192_v2 }
  0x1a   : > { %195 = vst [vmem:[%s169_s7 + $0xc] sm:$0xf] %v194_v3 }
  0x1b   : > { %197 = vst [vmem:[%s169_s7 + $0x10] sm:$0xf] %v196_v4 }
  0x1c PF: > { %s2489_s8 = sand.u32 1, %s2391_s17   ;;  %s238_s11 = scalar_lea.hbm %s3373_s2, %s2395_s18 }
  0x1d   : > { %s240_s12 = sshll.u32 %s238_s11, 4  ;;  %s235_s13 = scalar_lea.vmem [#allocation4], %s2489_s8  ;;  %s241_s12 = int_to_ptr.hbm [resolvable:$true] %s240_s12 }
  0x1e   : > { %s242_s14 = sshll.u32 %s235_s13, 4  ;;  %s233_s15 = scalar_lea.sflag [#allocation5], %s2489_s8  ;;  %s243_s14 = int_to_ptr.vmem [resolvable:$true] %s242_s14 }
  0x1f   : > { %s2299_s21 = sshra.s32 %s241_s12, 4  ;;  %s2305_s29 = scalar_lea.hbm %s3373_s2, 2  ;;  %s2300_s21 = int_to_ptr.hbm [resolvable:$true] %s2299_s21 }
  0x20   : > { %s2301_s22 = scalar_lea.hbm %s2300_s21, 1  ;;  %p2306_p13 = scmp.lt.s32.totalorder %s2300_s21, %s3373_s2 }
  0x21   : > { %p2302_p10 = scmp.ne.s32.totalorder %s2300_s21, %s2301_s22  ;;  %p2307_p0 = scmp.lt.s32.totalorder %s2305_s29, %s2301_s22 }
  0x23   : > { %p2303_p11 = pnand %p2302_p10, %p2466_p4  ;;  %p2308_p1 = por %p2307_p0, %p2306_p13 }
  0x25   : > { %p2304_p12 = pneg %p2303_p11 }
  0x27   : > { %p2309_p2 = pnand %p2308_p1, %p2304_p12 }
  0x29   : > { %2312 = shalt.err (!%p2309_p2)
}
  0x2a   : > { %2244 = dma.hbm_to_vmem [thread:$0]  (%p2466_p4), %s241_s12, 16, %s243_s14, %s233_s15  }
  0x2b   : > { %s255_s9 = scalar_lea.hbm %s3374_s3, %s2395_s18  ;;  %s252_s10 = scalar_lea.vmem [#allocation6], %s2489_s8 }
  0x2c   : > { %s259_s11 = sshll.u32 %s252_s10, 4  ;;  %s257_s13 = sshll.u32 %s255_s9, 4  ;;  %s260_s11 = int_to_ptr.vmem [resolvable:$true] %s259_s11  ;;  %s258_s13 = int_to_ptr.hbm [resolvable:$true] %s257_s13 }
  0x2d   : > { %s250_s21 = scalar_lea.sflag [#allocation7], %s2489_s8  ;;  %s2327_s22 = sshra.s32 %s258_s13, 4  ;;  %s2328_s22 = int_to_ptr.hbm [resolvable:$true] %s2327_s22 }
  0x2e   : > { %s2329_s27 = scalar_lea.hbm %s2328_s22, 1  ;;  %s2333_s12 = scalar_lea.hbm %s3374_s3, 2 }
  0x2f   : > { %p2330_p3 = scmp.ne.s32.totalorder %s2328_s22, %s2329_s27  ;;  %p2334_p9 = scmp.lt.s32.totalorder %s2328_s22, %s3374_s3 }
  0x30   : > { %p2335_p10 = scmp.lt.s32.totalorder %s2333_s12, %s2329_s27 }
  0x31   : > { %p2331_p5 = pnand %p2330_p3, %p2466_p4 }
  0x32   : > { %p2336_p11 = por %p2335_p10, %p2334_p9 }
  0x33   : > { %p2332_p6 = pneg %p2331_p5 }
  0x35   : > { %p2337_p12 = pnand %p2336_p11, %p2332_p6 }
  0x37   : > { %2340 = shalt.err (!%p2337_p12)
}
  0x38   : > { %2245 = dma.hbm_to_vmem [thread:$0]  (%p2466_p4), %s258_s13, 16, %s260_s11, %s250_s21  }
  0x39 PF: > { %p2129_p13 = scmp.ge.s32.totalorder %s2395_s18, 1  ;;  %p264_p0 = scmp.lt.s32.totalorder %s2395_s18, 3 }
  0x3b   : > { %p265_p1 = pnand %p2129_p13, %p264_p0 }
  0x3c   : > { %s2526_s8 = sand.u32 (!%p265_p1), 1, %s2387_s16  }
  0x3d   : > { %268 = sbr.rel (%p265_p1) target bundleno = 633 (0x279), region = 73  ;;  %s278_s6 = scalar_lea.sflag (!%p265_p1), [#allocation5], %s2526_s8 }
  0x3e   : > { %s2242_s30 = smul.u32 (!%p265_p1), 20, %s2526_s8  ;;  %s280_s24 = scalar_lea.vmem (!%p265_p1), [#allocation4], %s2526_s8 }
  0x40   : > { %s2529_s5 = scalar_lea.vmem (!%p265_p1), [#allocation3], %s2242_s30 }
  0x42   : > { %2372 = dma.done.wait (%p2472_p7), %s278_s6, 16  }
  0x43   : > { %2374 = vsyncadd (%p2472_p7), %s278_s6, 4294967280  ;;  %s287_s18 = scalar_lea.sflag [#allocation7], %s2526_s8  ;;  %s289_s7 = scalar_lea.vmem [#allocation6], %s2526_s8 }
  0x44   : > { %2376 = dma.done.wait (%p2472_p7), %s287_s18, 16  }
  0x45   : > { %2378 = vsyncadd (%p2472_p7), %s287_s18, 4294967280  ;;  %vm322_vm0 = vcmask 24576   ;;  %v2397_v5 = vmov 0   ;;  %v332_v6 = vld [vmem:[%s3371_s0] sm:$0xff]  ;;  %v333_v7 = vld [vmem:[%s3371_s0 + $0x8] sm:$0xff]  ;;  %vm380_vm1 = vcmask 1040384  }
  0x46   : > { %323 = vst.msk [vmem:[#allocation2] sm:$0x1] %vm322_vm0, %v2397_v5  ;;  %v334_v8 = vld [vmem:[%s3371_s0 + $0x10] sm:$0xff]  ;;  %vm381_vm2 = vcmask 1044484   ;;  %v348_v9 = vpack.c.bf16 %v332_v6, %v332_v6  ;;  %v349_v10 = vpack.c.bf16 %v333_v7, %v333_v7  ;;  %vm447_vm3 = vcmask 27649   ;;  %v335_v12 = vld [vmem:[%s3371_s0 + $0x18] sm:$0xff] }
  0x47   : > { %324 = vst.msk [vmem:[#allocation2 + $0x14] sm:$0x1] %vm322_vm0, %v2397_v5  ;;  %v350_v11 = vpack.c.bf16 %v334_v8, %v334_v8  ;;  %v336_v13 = vld [vmem:[%s3371_s0 + $0x20] sm:$0xff]  ;;  %v337_v14 = vld [vmem:[%s3371_s0 + $0x28] sm:$0xff]  ;;  %vm449_vm4 = vcmask 27648   ;;  %v351_v15 = vpack.c.bf16 %v335_v12, %v335_v12  ;;  %v338_v16 = vld [vmem:[%s3371_s0 + $0x30] sm:$0xff] }
  0x48   : > { %325 = vst.msk [vmem:[#allocation2 + $0x28] sm:$0x1] %vm322_vm0, %v2397_v5  ;;  %v339_v17 = vld [vmem:[%s3371_s0 + $0x38] sm:$0xff]  ;;  %v352_v18 = vpack.c.bf16 %v336_v13, %v336_v13  ;;  %v353_v19 = vpack.c.bf16 %v337_v14, %v337_v14  ;;  %v383_v20 = vrot.slane %v348_v9, 7  ;;  %v385_v21 = vrot.slane %v349_v10, 7  ;;  %vm2577_vm5 = vmor %vm380_vm1, %vm381_vm2  ;;  %s2398_s9 = smov 32  }
  0x49   : > { %326 = vst.msk [vmem:[#allocation2 + $0x3c] sm:$0x1] %vm322_vm0, %v2397_v5  ;;  %v388_v22 = vrot.slane %v350_v11, 7  ;;  %v354_v23 = vpack.c.bf16 %v338_v16, %v338_v16  ;;  %v391_v25 = vrot.slane %v351_v15, 7  ;;  %v355_v26 = vpack.c.bf16 %v339_v17, %v339_v17  ;;  %s2399_s10 = smov 8   ;;  %s2400_s25 = smov 16  }
  0x4a   : > { %v394_v27 = vrot.slane %v352_v18, 7  ;;  %v396_v28 = vrot.slane %v353_v19, 7  ;;  %v384_v29 = vrot.slane %v383_v20, 4  ;;  %v387_v30 = vrot.slane %v385_v21, 4  ;;  %448 = vst.msk [vmem:[#allocation2] sm:$0xe] %vm447_vm3, %v383_v20 }
  0x4b   : > { %v390_v31 = vrot.slane %v388_v22, 4  ;;  %v399_v32 = vrot.slane %v354_v23, 7  ;;  %v393_v33 = vrot.slane %v391_v25, 4  ;;  %v2582_v36 = vrot.slane %v355_v26, 7  ;;  %s2401_s11 = smov 4   ;;  %s2402_s13 = smov 24  }
  0x4c   : > { %v395_v34 = vrot.slane %v394_v27, 4  ;;  %v398_v35 = vrot.slane %v396_v28, 4  ;;  %454 = vst.msk [vmem:[#allocation2 + $0x14] sm:$0xe] %vm447_vm3, %v394_v27  ;;  %v386_v37 = vsel %vm2577_vm5, %v384_v29, %v385_v21  ;;  %v389_v38 = vsel %vm2577_vm5, %v387_v30, %v388_v22  ;;  %s2403_s21 = smov 12   ;;  %s2404_s22 = smov 28  }
  0x4d   : > { %v392_v39 = vsel %vm2577_vm5, %v390_v31, %v391_v25  ;;  %v401_v40 = vrot.slane %v399_v32, 4  ;;  %450 = vst.msk [vmem:[#allocation2 + $0x4] sm:$0xf] %vm449_vm4, %v386_v37  ;;  %vm327_vm6 = vcmask 25601   ;;  %vm654_vm7 = vcmask 1046528   ;;  %s2405_s27 = smov 20  }
  0x4e   : > { %451 = vst.msk [vmem:[#allocation2 + $0x8] sm:$0xf] %vm449_vm4, %v389_v38  ;;  %v397_v41 = vsel %vm2577_vm5, %v395_v34, %v396_v28  ;;  %v400_v42 = vsel %vm2577_vm5, %v398_v35, %v399_v32  ;;  %vm792_vm8 = vcmask 1045504   ;;  %vm930_vm9 = vcmask 1044480   ;;  %s2406_s28 = smov 36  }
  0x4f   : > { %452 = vst.msk [vmem:[#allocation2 + $0xc] sm:$0xf] %vm449_vm4, %v392_v39  ;;  %v403_v43 = vsel %vm2577_vm5, %v401_v40, %v2582_v36  ;;  %vm683_vm10 = vsmask.f32 6400  ;;  %vm553_vm11 = vsmask.f32 7424 }
  0x50   : > { %453 = vst.msk [vmem:[#allocation2 + $0x10] sm:$0x1] %vm322_vm0, %v393_v33  ;;  %vm967_vm12 = vsmask.f32 4352  ;;  %vm821_vm13 = vsmask.f32 5376 }
  0x51   : > { %v485_v44 = vld [vmem:[#allocation2] sm:$0xe]  ;;  %455 = vst.msk [vmem:[#allocation2 + $0x18] sm:$0xf] %vm449_vm4, %v397_v41  ;;  %vm1704_vm14 = vcmask 1043456   ;;  %vm1176_vm15 = vcmask 31744  }
  0x52   : > { %v493_v45 = vld [vmem:[#allocation2] sm:$0xc]  ;;  %456 = vst.msk [vmem:[#allocation2 + $0x1c] sm:$0xf] %vm449_vm4, %v400_v42  ;;  %v638_v46 = vunpack.c.l.b16 %v485_v44  ;;  %vm1193_vm1 = vcmask 64512   ;;  %vm1210_vm2 = vcmask 97280  }
  0x53   : > { %v776_v47 = vunpack.c.l.b16 %v493_v45  ;;  %457 = vst.msk [vmem:[#allocation2 + $0x20] sm:$0xf] %vm449_vm4, %v403_v43  ;;  %v487_v49 = vld [vmem:[#allocation2 + $0x14] sm:$0xe]  ;;  %v501_v52 = vld [vmem:[#allocation2] sm:$0x8] }
  0x54   : > { %v2605_v48 = vld [vmem:[#allocation2] sm:$0xff]   ;;  %328 = vst.msk [vmem:[#allocation2 + $0x10] sm:$0x2] %vm327_vm6, %v2397_v5  ;;  %v640_v63 = vunpack.c.l.b16 %v487_v49  ;;  %v914_v4 = vunpack.c.l.b16 %v501_v52  ;;  %v495_v10 = vld [vmem:[#allocation2 + $0x14] sm:$0xc] }
  0x55   : > { %v2181_v50 = vunpack.c.h.b16 %v2605_v48  ;;  %v471_v51 = vld [vmem:[#allocation2 + $0x8] sm:$0xf]  ;;  %329 = vst.msk [vmem:[#allocation2 + $0x24] sm:$0x2] %vm327_vm6, %v2397_v5  ;;  %v473_v14 = vld [vmem:[#allocation2 + $0x14] sm:$0xf]  ;;  %v778_v23 = vunpack.c.l.b16 %v495_v10 }
  0x56   : > { %v531_v53 = vunpack.c.l.b16 %v471_v51  ;;  %v486_v54 = vld [vmem:[#allocation2 + $0xc] sm:$0x7]  ;;  %330 = vst.msk [vmem:[#allocation2 + $0x38] sm:$0x2] %vm327_vm6, %v2397_v5  ;;  %v533_v25 = vunpack.c.l.b16 %v473_v14  ;;  %v557_v44 = vshll.u32 %v2605_v48, 16 }
  0x57   : > { %v2610_v55 = vld [vmem:[#allocation2 + $0xc] sm:$0xf]  ;;  %v639_v57 = vunpack.c.l.b16 %v486_v54  ;;  %v2612_v58 = vpack.c.b16 %v2181_v50, %v638_v46  ;;  %v2615_v60 = vpack.c.b16 %v2181_v50, %v776_v47  ;;  %331 = vst.msk [vmem:[#allocation2 + $0x4c] sm:$0x2] %vm327_vm6, %v2397_v5  ;;  %v922_v21 = vpack.c.b16 %v2181_v50, %v914_v4 }
  0x58   : > { %v472_v56 = vld [vmem:[#allocation2 + $0xc] sm:$0x3]  ;;  %v777_v59 = vunpack.c.l.b16 %v2610_v55  ;;  %v2619_v61 = vpack.c.b16 %v531_v53, %v2181_v50  ;;  %vm1295_vm6 = vcmask 261120  }
  0x59   : > { %v532_v62 = vunpack.c.l.b16 %v472_v56  ;;  %v647_v0 = vpack.c.b16 %v639_v57, %v531_v53  ;;  %v655_v1 = vrot.slane %v2612_v58, 1  ;;  %v2628_v3 = vld [vmem:[#allocation2 + $0x18] sm:$0xff]   ;;  %v793_v12 = vrot.slane %v2615_v60, 2 }
  0x5a   : > { %v2626_v2 = vpack.c.b16 %v777_v59, %v531_v53  ;;  %1084 = vrot.lane.b32.xlu1 %v2619_v61, %s2398_s9  ;;  %v2637_v7 = vunpack.c.l.b16 %v2628_v3  ;;  %v2185_v8 = vunpack.c.h.b16 %v2628_v3  ;;  %v488_v9 = vld [vmem:[#allocation2 + $0x20] sm:$0x7]  ;;  %v931_v32 = vrot.slane %v922_v21, 3 }
  0x5b   : > { %v2634_v6 = vpack.c.b16 %v532_v62, %v531_v53  ;;  %v656_v11 = vrot.slane %v647_v0, 1  ;;  %v641_v5 = vunpack.c.l.b16 %v488_v9  ;;  %v2646_v17 = vld [vmem:[#allocation2 + $0x20] sm:$0xf]  ;;  %v693_v33 = vshrl.u32 %v647_v0, 16 }
  0x5c   : > { %v794_v13 = vrot.slane %v2626_v2, 2  ;;  %v2644_v16 = vpack.c.b16 %v2637_v7, %v640_v63  ;;  %v779_v29 = vunpack.c.l.b16 %v2646_v17  ;;  %v476_v30 = vld [vmem:[#allocation2 + $0x20] sm:$0x3]  ;;  %v696_v34 = vshll.u32 %v647_v0, 16 }
  0x5d   : > { %v562_v15 = vshll.u32 %v2634_v6, 16  ;;  %669 = vrot.lane.b32.xlu2 %v656_v11, %s2399_s10  ;;  %v657_v18 = vsel %vm654_vm7, %v655_v1, %v656_v11  ;;  %v566_v19 = vshrl.u32 %v2634_v6, 16  ;;  %v2651_v20 = vpack.c.b16 %v641_v5, %v2185_v8 }
  0x5e   : > { %667 = vrot.lane.b32.xlu0 %v657_v18, %s2399_s10  ;;  %v795_v26 = vsel %vm792_vm8, %v793_v12, %v794_v13  ;;  %v658_v27 = vrot.slane %v2644_v16, 1  ;;  %v932_v35 = vrot.slane %v2626_v2, 3  ;;  %v2666_v37 = vpack.c.b16 %v2637_v7, %v778_v23 }
  0x5f   : > { %v2654_v22 = vrot.slane %v562_v15, 1  ;;  %v659_v28 = vrot.slane %v2651_v20, 1  ;;  %v536_v38 = vunpack.c.l.b16 %v476_v30  ;;  %v2669_v39 = vpack.c.b16 %v2637_v7, %v533_v25  ;;  %v509_v15 = vld [vmem:[#allocation2 + $0x10] sm:$0x3] }
  0x60   : > { %v2676_v41 = vpack.c.b16 %v779_v29, %v2185_v8  ;;  %v685_v42 = vshrl.u32 %v2612_v58, 16  ;;  %v688_v43 = vshll.u32 %v2612_v58, 16  ;;  %v695_v45 = vrot.slane %v693_v33, 1 }
  0x61   : > { %v568_v31 = vor.u32 %v566_v19, %v2654_v22  ;;  %v660_v40 = vsel %vm654_vm7, %v658_v27, %v659_v28  ;;  %v698_v46 = vrot.slane %v696_v34, 2  ;;  %v933_v47 = vsel %vm930_vm9, %v931_v32, %v932_v35 }
  0x62   : > { %805 = vrot.lane.b32.xlu1 %v795_v26, %s2400_s25  ;;  %v2686_v49 = vpack.c.b16 %v536_v38, %v2185_v8  ;;  %v572_v50 = vshll.u32 %v2669_v39, 16  ;;  %v796_v51 = vrot.slane %v2666_v37, 2  ;;  %v797_v52 = vrot.slane %v2676_v41, 2 }
  0x63   : > { %v687_v53 = vrot.slane %v685_v42, 1  ;;  %v690_v54 = vrot.slane %v688_v43, 2  ;;  %v555_v56 = vshrl.u32 %v2605_v48, 16  ;;  %v559_v57 = vrot.slane %v557_v44, 1 }
  0x64   : > { %v831_v58 = vshrl.u32 %v2626_v2, 16  ;;  %v834_v62 = vshll.u32 %v2626_v2, 16  ;;  %v699_v63 = vor.u32 %v698_v46, %v695_v45  ;;  %v969_v0 = vshrl.u32 %v922_v21, 16 }
  0x65   : > { %616 = vrot.lane.b32.xlu2 %v568_v31, %s2401_s11  ;;  %v972_v1 = vshll.u32 %v922_v21, 16  ;;  %v570_v4 = vshrl.u32 %v2669_v39, 16  ;;  %v574_v8 = vrot.slane %v572_v50, 1  ;;  %v577_v9 = vshll.u32 %v2686_v49, 16 }
  0x66   : > { %671 = vrot.lane.b32.xlu0 %v660_v40, %s2399_s10  ;;  %v798_v10 = vsel %vm792_vm8, %v796_v51, %v797_v52  ;;  %v691_v11 = vor.u32 %v690_v54, %v687_v53  ;;  %v560_v12 = vor.u32 %v559_v57, %v555_v56  ;;  %v976_v5 = vrot.slane %v831_v58, 3 }
  0x67   : > { %v977_v14 = vrot.slane %v834_v62, 4  ;;  %v971_v18 = vrot.slane %v969_v0, 3  ;;  %v974_v19 = vrot.slane %v972_v1, 4  ;;  %v823_v21 = vshrl.u32 %v2615_v60, 16 }
  0x68   : > { %v826_v23 = vshll.u32 %v2615_v60, 16  ;;  %v575_v25 = vor.u32 %v574_v8, %v570_v4  ;;  %v2704_v26 = vrot.slane %v577_v9, 1  ;;  %v702_v27 = vshrl.u32 %v2644_v16, 16 }
  0x69   : > { %v705_v30 = vshll.u32 %v2644_v16, 16  ;;  %v700_v31 = vsel %vm683_vm10, %v691_v11, %v699_v63  ;;  %v710_v32 = vshrl.u32 %v2651_v20, 16  ;;  %v713_v33 = vshll.u32 %v2651_v20, 16 }
  0x6a   : > { %951 = vrot.lane.b32.xlu1 %v933_v47, %s2402_s13  ;;  %v1072_v34 = vunpack.c.l.b16 %v509_v15  ;;  %v1103_v38 = vshll.u32 %v2619_v61, 16  ;;  %v565_v60 = vsel %vm553_vm11, %v560_v12, %v2654_v22  ;;  %v2714_v40 = vor.u32 %v977_v14, %v976_v5 }
  0x6b   : > { %v833_v42 = vrot.slane %v831_v58, 2  ;;  %v975_v43 = vor.u32 %v974_v19, %v971_v18  ;;  %v825_v44 = vrot.slane %v823_v21, 2  ;;  %v828_v45 = vrot.slane %v826_v23, 3 }
  0x6c   : > { %v836_v46 = vrot.slane %v834_v62, 3  ;;  %v580_v16 = vsel %vm553_vm11, %v575_v25, %v2704_v26  ;;  %v704_v47 = vrot.slane %v702_v27, 1  ;;  %v707_v50 = vrot.slane %v705_v30, 2 }
  0x6d   : > { %754 = vrot.lane.b32.xlu2 %v699_v63, %s2403_s21  ;;  %v712_v51 = vrot.slane %v710_v32, 1  ;;  %v715_v53 = vrot.slane %v713_v33, 2  ;;  %v2721_v22 = vpack.c.b16 %v1072_v34, %v777_v59  ;;  %v404_v54 = vrot.slane %v2582_v36, 4  ;;  %v503_v63 = vld [vmem:[#allocation2 + $0x14] sm:$0x8] }
  0x6e   : > { %809 = vrot.lane.b32.xlu0 %v798_v10, %s2400_s25  ;;  %v979_v56 = vsel %vm967_vm12, %v975_v43, %v2714_v40  ;;  %v829_v57 = vor.u32 %v828_v45, %v825_v44  ;;  %v2727_v58 = vor.u32 %v836_v46, %v833_v42  ;;  %v1101_v62 = vshrl.u32 %v2619_v61, 16  ;;  %v340_v42 = vld [vmem:[%s3371_s0 + $0x40] sm:$0xff]  ;;  %v341_v43 = vld [vmem:[%s3371_s0 + $0x48] sm:$0xff]  ;;  %v342_v44 = vld [vmem:[%s3371_s0 + $0x50] sm:$0xff] }
  0x6f   : > { %458 = vst.msk [vmem:[#allocation2 + $0x24] sm:$0x1] %vm322_vm0, %v404_v54  ;;  %v708_v55 = vor.u32 %v707_v50, %v704_v47  ;;  %v1105_v59 = vrot.slane %v1103_v38, 1  ;;  %v840_v36 = vshrl.u32 %v2666_v37, 16  ;;  %v843_v0 = vshll.u32 %v2666_v37, 16  ;;  %v343_v54 = vld [vmem:[%s3371_s0 + $0x58] sm:$0xff] }
  0x70   : > { %v2734_v1 = vor.u32 %v715_v53, %v712_v51  ;;  %v1108_v4 = vshll.u32 %v2721_v22, 16  ;;  %v848_v8 = vshrl.u32 %v2676_v41, 16  ;;  %v851_v9 = vshll.u32 %v2676_v41, 16 }
  0x71   : > { %v916_v61 = vunpack.c.l.b16 %v503_v63  ;;  %v838_v10 = vsel %vm821_vm13, %v829_v57, %v2727_v58  ;;  %v1106_v11 = vor.u32 %v1105_v59, %v1101_v62  ;;  %v842_v12 = vrot.slane %v840_v36, 2 }
  0x72   : > { %752 = vrot.lane.b32.xlu1 %v700_v31, %s2403_s21  ;;  %v845_v5 = vrot.slane %v843_v0, 3  ;;  %v717_v37 = vsel %vm683_vm10, %v708_v55, %v2734_v1  ;;  %v2744_v14 = vrot.slane %v1108_v4, 1  ;;  %v850_v15 = vrot.slane %v848_v8, 2  ;;  %v502_v31 = vld [vmem:[#allocation2 + $0x10] sm:$0x1] }
  0x73   : > { %v853_v18 = vrot.slane %v851_v9, 3  ;;  %v924_v19 = vpack.c.b16 %v2637_v7, %v916_v61  ;;  %v997_v7 = vrot.slane %v848_v8, 3  ;;  %v998_v34 = vrot.slane %v851_v9, 4 }
  0x74   : > { %v1111_v25 = vsel %vm553_vm11, %v1106_v11, %v2744_v14  ;;  %v846_v27 = vor.u32 %v845_v5, %v842_v12  ;;  %v937_v45 = vrot.slane %v2676_v41, 3  ;;  %v915_v46 = vunpack.c.l.b16 %v502_v31 }
  0x75   : > { %618 = vrot.lane.b32.xlu2 %v580_v16, %s2401_s11  ;;  %v990_v21 = vshrl.u32 %v924_v19, 16  ;;  %v993_v23 = vshll.u32 %v924_v19, 16  ;;  %v2751_v30 = vor.u32 %v853_v18, %v850_v15  ;;  %v356_v16 = vpack.c.bf16 %v340_v42, %v340_v42  ;;  %v345_v42 = vld [vmem:[%s3371_s0 + $0x68] sm:$0xff] }
  0x76   : > { %614 = vrot.lane.b32.xlu0 %v565_v60, %s2401_s11  ;;  %v510_v60 = vld [vmem:[#allocation2 + $0x24] sm:$0x3]  ;;  %v357_v47 = vpack.c.bf16 %v341_v43, %v341_v43  ;;  %v936_v50 = vrot.slane %v924_v19, 3  ;;  %v2770_v53 = vor.u32 %v998_v34, %v997_v7  ;;  %v359_v62 = vpack.c.bf16 %v343_v54, %v343_v54 }
  0x77   : > { %v992_v32 = vrot.slane %v990_v21, 3  ;;  %v995_v33 = vrot.slane %v993_v23, 4  ;;  %v855_v38 = vsel %vm821_vm13, %v846_v27, %v2751_v30  ;;  %v1073_v57 = vunpack.c.l.b16 %v510_v60  ;;  %v504_v34 = vld [vmem:[#allocation2 + $0x24] sm:$0x1]  ;;  %v344_v60 = vld [vmem:[%s3371_s0 + $0x60] sm:$0xff] }
  0x78   : > { %v405_v63 = vrot.slane %v356_v16, 7  ;;  %v2775_v0 = vrot.slane %v359_v62, 7  ;;  %v923_v4 = vpack.c.b16 %v915_v46, %v915_v46  ;;  %v1118_v8 = vshll.u32 %v2628_v3, 16 }
  0x79   : > { %v996_v51 = vor.u32 %v995_v33, %v992_v32  ;;  %v2788_v11 = vpack.c.b16 %v1073_v57, %v779_v29  ;;  %v1116_v29 = vshrl.u32 %v2628_v3, 16 }
  0x7a   : > { %1052 = vrot.lane.b32.xlu1 %v979_v56, %s2404_s22  ;;  %v358_v56 = vpack.c.bf16 %v342_v44, %v342_v44  ;;  %v406_v59 = vrot.slane %v405_v63, 4  ;;  %459 = vst.msk [vmem:[#allocation2 + $0x28] sm:$0xe] %vm447_vm3, %v405_v63  ;;  %v934_v17 = vrot.slane %v923_v4, 3  ;;  %v1120_v15 = vrot.slane %v1118_v8, 1 }
  0x7b   : > { %v1000_v9 = vsel %vm967_vm12, %v996_v51, %v2770_v53  ;;  %v1123_v18 = vshll.u32 %v2788_v11, 16  ;;  %v981_v19 = vshrl.u32 %v923_v4, 16  ;;  %v984_v21 = vshll.u32 %v923_v4, 16 }
  0x7c   : > { %v410_v55 = vrot.slane %v358_v56, 7  ;;  %v1121_v27 = vor.u32 %v1120_v15, %v1116_v29  ;;  %v361_v44 = vpack.c.bf16 %v345_v42, %v345_v42 }
  0x7d   : > { %890 = vrot.lane.b32.xlu2 %v838_v10, %s2405_s27  ;;  %v938_v10 = vsel %vm930_vm9, %v936_v50, %v937_v45  ;;  %v2811_v31 = vrot.slane %v1123_v18, 1  ;;  %v983_v32 = vrot.slane %v981_v19, 3  ;;  %v986_v33 = vrot.slane %v984_v21, 4 }
  0x7e   : > { %756 = vrot.lane.b32.xlu0 %v717_v37, %s2403_s21  ;;  %v412_v61 = vrot.slane %v410_v55, 4  ;;  %v581_v37 = vshrl.u32 %v2686_v49, 16  ;;  %v418_v57 = vrot.slane %v361_v44, 7 }
  0x7f   : > { %v1126_v7 = vsel %vm553_vm11, %v1121_v27, %v2811_v31  ;;  %v1127_v27 = vshrl.u32 %v2788_v11, 16 }
  0x80   : > { %v414_v5 = vsel %vm2577_vm5, %v412_v61, %v2775_v0  ;;  %v583_v23 = vor.u32 %v581_v37, %v2704_v26  ;;  %v987_v26 = vor.u32 %v986_v33, %v983_v32 }
  0x81   : > { %462 = vst.msk [vmem:[#allocation2 + $0x34] sm:$0xf] %vm449_vm4, %v414_v5 }
  0x82   : > { %1160 = vrot.lane.b32.xlu1 %v1111_v25, %s2406_s28  ;;  %v935_v25 = vsel %vm930_vm9, %v932_v35, %v934_v17  ;;  %v988_v2 = vsel %vm967_vm12, %v2714_v40, %v987_v26  ;;  %v1112_v35 = vshrl.u32 %v2721_v22, 16  ;;  %v360_v40 = vpack.c.bf16 %v344_v60, %v344_v60  ;;  %v505_v60 = vld [vmem:[#allocation2 + $0x28] sm:$0x8] }
  0x84   : > { %v1114_v43 = vor.u32 %v1112_v35, %v2744_v14  ;;  %v489_v14 = vld [vmem:[#allocation2 + $0x28] sm:$0xe]  ;;  %v416_v56 = vrot.slane %v360_v40, 7 }
  0x85   : > { %807 = vrot.lane.b32.xlu2 %v794_v13, %s2400_s25  ;;  %v407_v13 = vrot.slane %v357_v47, 7  ;;  %v415_v47 = vrot.slane %v2775_v0, 4  ;;  %v420_v0 = vrot.slane %v418_v57, 4 }
  0x86   : > { %894 = vrot.lane.b32.xlu0 %v855_v38, %s2405_s27  ;;  %464 = vst.msk [vmem:[#allocation2 + $0x3c] sm:$0xe] %vm447_vm3, %v416_v56  ;;  %vm1244_vm3 = vcmask 162816  }
  0x87   : > { %v409_v36 = vrot.slane %v407_v13, 4  ;;  %v408_v12 = vsel %vm2577_vm5, %v406_v59, %v407_v13  ;;  %463 = vst.msk [vmem:[#allocation2 + $0x38] sm:$0x1] %vm322_vm0, %v415_v47 }
  0x88   : > { %460 = vst.msk [vmem:[#allocation2 + $0x2c] sm:$0xf] %vm449_vm4, %v408_v12  ;;  %v2842_v51 = vld [vmem:[#allocation2 + $0x34] sm:$0xf] }
  0x89   : > { %v490_v62 = vld [vmem:[#allocation2 + $0x34] sm:$0x7] }
  0x8a   : > { %892 = vrot.lane.b32.xlu1 %v2727_v58, %s2405_s27  ;;  %v411_v58 = vsel %vm2577_vm5, %v409_v36, %v410_v55  ;;  %v480_v63 = vld [vmem:[#allocation2 + $0x34] sm:$0x3]  ;;  %v417_v36 = vrot.slane %v416_v56, 4  ;;  %v643_v12 = vunpack.c.l.b16 %v490_v62 }
  0x8b   : > { %461 = vst.msk [vmem:[#allocation2 + $0x30] sm:$0xf] %vm449_vm4, %v411_v58  ;;  %v497_v58 = vld [vmem:[#allocation2 + $0x28] sm:$0xc]  ;;  %v540_v37 = vunpack.c.l.b16 %v480_v63 }
  0x8c   : > { %v780_v18 = vunpack.c.l.b16 %v497_v58 }
  0x8d   : > { %1056 = vrot.lane.b32.xlu2 %v1000_v9, %s2404_s22  ;;  %v642_v9 = vunpack.c.l.b16 %v489_v14  ;;  %v918_v14 = vunpack.c.l.b16 %v505_v60 }
  0x8e   : > { %955 = vrot.lane.b32.xlu0 %v938_v10, %s2402_s13 }
  0x8f   : > { %v2837_v16 = vld [vmem:[#allocation2 + $0x28] sm:$0xff]  }
  0x90   : > { %v2853_v8 = vunpack.c.h.b16 %v2837_v16 }
  0x92   : > { %1088 = vrot.lane.b32.xlu1 %v2628_v3, %s2398_s9  ;;  %v917_v3 = vunpack.c.l.b16 %v504_v34  ;;  %v2840_v50 = vld [vmem:[#allocation2 + $0x30] sm:$0xff]   ;;  %v650_v21 = vpack.c.b16 %v2853_v8, %v642_v9  ;;  %v788_v26 = vpack.c.b16 %v2853_v8, %v780_v18  ;;  %v481_v18 = vld [vmem:[#allocation2 + $0x3c] sm:$0xf] }
  0x93   : > { %v2856_v10 = vunpack.c.l.b16 %v2840_v50  ;;  %v865_v44 = vshrl.u32 %v2840_v50, 16  ;;  %v942_v58 = vrot.slane %v2840_v50, 3 }
  0x94   : > { %v925_v38 = vpack.c.b16 %v917_v3, %v917_v3  ;;  %v719_v32 = vshrl.u32 %v650_v21, 16  ;;  %v722_v33 = vshll.u32 %v650_v21, 16  ;;  %v661_v3 = vrot.slane %v650_v21, 1 }
  0x95   : > { %620 = vrot.lane.b32.xlu2 %v583_v23, %s2401_s11  ;;  %v2873_v23 = vpack.c.b16 %v643_v12, %v2856_v10  ;;  %v867_v63 = vrot.slane %v865_v44, 2 }
  0x96   : > { %953 = vrot.lane.b32.xlu0 %v935_v25, %s2402_s13  ;;  %v1002_v20 = vshrl.u32 %v925_v38, 16  ;;  %v1005_v46 = vshll.u32 %v925_v38, 16  ;;  %v939_v59 = vrot.slane %v925_v38, 3  ;;  %v2879_v25 = vpack.c.b16 %v540_v37, %v2856_v10 }
  0x97   : > { %v727_v24 = vshrl.u32 %v2873_v23, 16  ;;  %v662_v35 = vrot.slane %v2873_v23, 1  ;;  %v721_v42 = vrot.slane %v719_v32, 1 }
  0x98   : > { %v1004_v55 = vrot.slane %v1002_v20, 3  ;;  %v1007_v4 = vrot.slane %v1005_v46, 4  ;;  %v940_v17 = vsel %vm930_vm9, %v937_v45, %v939_v59  ;;  %v587_v45 = vshll.u32 %v2837_v16, 16 }
  0x99   : > { %v592_v41 = vshll.u32 %v2879_v25, 16  ;;  %v729_v40 = vrot.slane %v727_v24, 1  ;;  %v868_v46 = vshll.u32 %v2840_v50, 16 }
  0x9a   : > { %1164 = vrot.lane.b32.xlu1 %v1126_v7, %s2406_s28  ;;  %v1008_v19 = vor.u32 %v1007_v4, %v1004_v55  ;;  %v730_v7 = vshll.u32 %v2873_v23, 16  ;;  %v589_v38 = vrot.slane %v587_v45, 1  ;;  %v926_v55 = vpack.c.b16 %v2853_v8, %v918_v14 }
  0x9b   : > { %v1018_v45 = vrot.slane %v865_v44, 3 }
  0x9c   : > { %v1009_v34 = vsel %vm967_vm12, %v2770_v53, %v1008_v19  ;;  %v732_v20 = vrot.slane %v730_v7, 2  ;;  %v860_v53 = vshll.u32 %v788_v26, 16  ;;  %v1011_v9 = vshrl.u32 %v926_v55, 16 }
  0x9d   : > { %673 = vrot.lane.b32.xlu2 %v659_v28, %s2399_s10  ;;  %v346_v28 = vld [vmem:[%s3371_s0 + $0x70] sm:$0xff]  ;;  %v941_v12 = vrot.slane %v926_v55, 3  ;;  %v541_v7 = vunpack.c.l.b16 %v481_v18 }
  0x9e   : > { %1054 = vrot.lane.b32.xlu0 %v988_v2, %s2404_s22  ;;  %v362_v54 = vpack.c.bf16 %v346_v28, %v346_v28  ;;  %v585_v2 = vshrl.u32 %v2837_v16, 16  ;;  %v857_v28 = vshrl.u32 %v788_v26, 16  ;;  %v862_v62 = vrot.slane %v860_v53, 3 }
  0x9f   : > { %v1013_v21 = vrot.slane %v1011_v9, 3  ;;  %v943_v32 = vsel %vm930_vm9, %v941_v12, %v942_v58 }
  0xa0   : > { %v421_v61 = vrot.slane %v362_v54, 7  ;;  %v590_v47 = vor.u32 %v589_v38, %v585_v2  ;;  %v2906_v54 = vor.u32 %v732_v20, %v729_v40 }
  0xa2   : > { %758 = vrot.lane.b32.xlu1 %v2734_v1, %s2403_s21  ;;  %v347_v1 = vld [vmem:[%s3371_s0 + $0x78] sm:$0xff]  ;;  %v422_v29 = vsel %vm2577_vm5, %v420_v0, %v421_v61  ;;  %v423_v15 = vrot.slane %v421_v61, 4  ;;  %v1014_v61 = vshll.u32 %v926_v55, 16  ;;  %v491_v55 = vld [vmem:[#allocation2 + $0x3c] sm:$0xe] }
  0xa3   : > { %v363_v13 = vpack.c.bf16 %v347_v1, %v347_v1  ;;  %466 = vst.msk [vmem:[#allocation2 + $0x44] sm:$0xf] %vm449_vm4, %v422_v29  ;;  %v800_v29 = vrot.slane %v2840_v50, 2 }
  0xa5   : > { %1162 = vrot.lane.b32.xlu2 %v1114_v43, %s2406_s28  ;;  %v2860_v5 = vrot.slane %v363_v13, 7  ;;  %v724_v43 = vrot.slane %v722_v33, 2  ;;  %v870_v13 = vrot.slane %v868_v46, 3 }
  0xa6   : > { %1086 = vrot.lane.b32.xlu0 %v2721_v22, %s2398_s9  ;;  %v419_v22 = vsel %vm2577_vm5, %v417_v36, %v418_v57  ;;  %v859_v57 = vrot.slane %v857_v28, 2 }
  0xa7   : > { %465 = vst.msk [vmem:[#allocation2 + $0x40] sm:$0xf] %vm449_vm4, %v419_v22  ;;  %v725_v1 = vor.u32 %v724_v43, %v721_v42  ;;  %v2915_v4 = vor.u32 %v870_v13, %v867_v63 }
  0xa8   : > { %v863_v0 = vor.u32 %v862_v62, %v859_v57 }
  0xa9   : > { %v734_v59 = vsel %vm683_vm10, %v725_v1, %v2906_v54 }
  0xaa   : > { %896 = vrot.lane.b32.xlu1 %v2751_v30, %s2405_s27  ;;  %v425_v30 = vsel %vm2577_vm5, %v423_v15, %v2860_v5  ;;  %v872_v37 = vsel %vm821_vm13, %v863_v0, %v2915_v4  ;;  %v2380_v15 = vld [vmem:[#allocation2 + $0x34] sm:$0x30]  ;;  %vm1278_vm5 = vcmask 228352  }
  0xab   : > { %467 = vst.msk [vmem:[#allocation2 + $0x48] sm:$0xf] %vm449_vm4, %v425_v30  ;;  %v1016_v30 = vrot.slane %v1014_v61, 4  ;;  %v2947_v60 = vor.u32 %v2380_v15, %v2842_v51  ;;  %v1497_v15 = vld [vmem:[%s2529_s5 + $0x10] sm:$0xf]  ;;  %vm1227_vm4 = vcmask 130048  }
  0xac   : > { %v1683_v18 = vunpack.c.l.b16 %v1497_v15 }
  0xad   : > { %957 = vrot.lane.b32.xlu2 %v940_v17, %s2402_s13  ;;  %v799_v17 = vrot.slane %v788_v26, 2  ;;  %v1080_v26 = vpack.c.b16 %v2856_v10, %v2853_v8  ;;  %v1017_v38 = vor.u32 %v1016_v30, %v1013_v21  ;;  %v1138_v53 = vshll.u32 %v2947_v60, 16  ;;  %v499_v21 = vld [vmem:[#allocation2 + $0x3c] sm:$0xc] }
  0xae   : > { %811 = vrot.lane.b32.xlu0 %v797_v52, %s2400_s25  ;;  %v1129_v52 = vor.u32 %v1127_v27, %v2811_v31  ;;  %v594_v31 = vrot.slane %v592_v41, 1  ;;  %v2925_v19 = vld [vmem:[#allocation2 + $0x40] sm:$0xff]   ;;  %v1019_v27 = vrot.slane %v868_v46, 4 }
  0xaf   : > { %v801_v33 = vsel %vm792_vm8, %v799_v17, %v800_v29  ;;  %v2935_v24 = vunpack.c.l.b16 %v2925_v19  ;;  %v1133_v2 = vshll.u32 %v1080_v26, 16  ;;  %v2950_v42 = vunpack.c.h.b16 %v2925_v19 }
  0xb0   : > { %v595_v36 = vsel %vm553_vm11, %v590_v47, %v594_v31  ;;  %v2942_v41 = vor.u32 %v1019_v27, %v1018_v45  ;;  %v1131_v40 = vshrl.u32 %v1080_v26, 16  ;;  %v506_v47 = vld [vmem:[#allocation2 + $0x38] sm:$0x1] }
  0xb1   : > { %v2953_v10 = vpack.c.b16 %v2935_v24, %v541_v7  ;;  %v1135_v20 = vrot.slane %v1133_v2, 1  ;;  %v919_v13 = vunpack.c.l.b16 %v506_v47  ;;  %v782_v7 = vunpack.c.l.b16 %v499_v21 }
  0xb2   : > { %1090 = vrot.lane.b32.xlu1 %v2788_v11, %s2398_s9  ;;  %v663_v11 = vsel %vm654_vm7, %v661_v3, %v662_v35  ;;  %v596_v3 = vshrl.u32 %v2879_v25, 16  ;;  %v1021_v28 = vsel %vm967_vm12, %v1017_v38, %v2942_v41  ;;  %v2992_v30 = vld [vmem:[#allocation2 + $0x48] sm:$0xf] }
  0xb3   : > { %v602_v44 = vshll.u32 %v2953_v10, 16  ;;  %v1136_v14 = vor.u32 %v1135_v20, %v1131_v40  ;;  %v600_v1 = vshrl.u32 %v2953_v10, 16  ;;  %v927_v12 = vpack.c.b16 %v919_v13, %v919_v13 }
  0xb4   : > { %v598_v43 = vor.u32 %v596_v3, %v594_v31  ;;  %v2969_v31 = vrot.slane %v1138_v53, 1 }
  0xb5   : > { %1166 = vrot.lane.b32.xlu2 %v1129_v52, %s2406_s28  ;;  %v604_v57 = vrot.slane %v602_v44, 1  ;;  %v944_v27 = vrot.slane %v927_v12, 3  ;;  %v1026_v47 = vshll.u32 %v927_v12, 16 }
  0xb6   : > { %1058 = vrot.lane.b32.xlu0 %v1009_v34, %s2404_s22  ;;  %v484_v34 = vld [vmem:[#allocation2 + $0x48] sm:$0x3] }
  0xb7   : > { %v2908_v56 = vpop.permute.xlu2 %669  ;;  %v544_v8 = vunpack.c.l.b16 %v484_v34  ;;  %v605_v0 = vor.u32 %v604_v57, %v600_v1  ;;  %v945_v2 = vsel %vm930_vm9, %v942_v58, %v944_v27  ;;  %v790_v58 = vpack.c.b16 %v2935_v24, %v782_v7 }
  0xb8   : > { %v426_v7 = vrot.slane %v2860_v5, 4 }
  0xb9   : > { %v2960_v51 = vpack.c.b16 %v544_v8, %v2950_v42  ;;  %v877_v21 = vshll.u32 %v790_v58, 16 }
  0xba   : > { %675 = vrot.lane.b32.xlu1 %v663_v11, %s2399_s10  ;;  %468 = vst.msk [vmem:[#allocation2 + $0x4c] sm:$0x1] %vm322_vm0, %v426_v7  ;;  %vm1261_vm0 = vcmask 195584  }
  0xbb   : > { %v607_v62 = vshll.u32 %v2960_v51, 16 }
  0xbd   : > { %760 = vrot.lane.b32.xlu2 %v734_v59, %s2403_s21  ;;  %v492_v59 = vld [vmem:[#allocation2 + $0x48] sm:$0x7]  ;;  %v2980_v9 = vrot.slane %v607_v62, 1 }
  0xbe   : > { %622 = vrot.lane.b32.xlu0 %v595_v36, %s2401_s11  ;;  %v1141_v36 = vsel %vm553_vm11, %v1136_v14, %v2969_v31  ;;  %v645_v17 = vunpack.c.l.b16 %v492_v59 }
  0xbf   : > { %v2920_v22 = vpop.permute.xlu2 %616 }
  0xc2   : > { %898 = vrot.lane.b32.xlu1 %v872_v37, %s2405_s27  ;;  %v644_v37 = vunpack.c.l.b16 %v491_v55 }
  0xc5   : > { %959 = vrot.lane.b32.xlu2 %v943_v32, %s2402_s13  ;;  %v652_v32 = vpack.c.b16 %v2935_v24, %v644_v37  ;;  %v1028_v37 = vrot.slane %v1026_v47, 4 }
  0xc6   : > { %813 = vrot.lane.b32.xlu0 %v801_v33, %s2400_s25  ;;  %v2998_v33 = vpack.c.b16 %v645_v17, %v2950_v42  ;;  %v507_v17 = vld [vmem:[#allocation2 + $0x3c] sm:$0x8] }
  0xc7   : > { %v2944_v52 = vpop.permute.xlu2 %754  ;;  %v664_v38 = vrot.slane %v652_v32, 1  ;;  %v736_v40 = vshrl.u32 %v652_v32, 16  ;;  %v739_v20 = vshll.u32 %v652_v32, 16 }
  0xc8   : > { %v665_v8 = vrot.slane %v2998_v33, 1  ;;  %v747_v53 = vshll.u32 %v2998_v33, 16 }
  0xc9   : > { %v738_v1 = vrot.slane %v736_v40, 1  ;;  %v741_v57 = vrot.slane %v739_v20, 2  ;;  %v1142_v20 = vshrl.u32 %v2947_v60, 16 }
  0xca   : > { %1092 = vrot.lane.b32.xlu1 %v1080_v26, %s2398_s9  ;;  %v783_v26 = vunpack.c.l.b16 %v2992_v30  ;;  %v749_v13 = vrot.slane %v747_v53, 2 }
  0xcb   : > { %v742_v55 = vor.u32 %v741_v57, %v738_v1 }
  0xcc   : > { %v2963_v46 = vpop.permute.xlu1 %1084  ;;  %v3021_v44 = vpack.c.b16 %v783_v26, %v2950_v42  ;;  %v666_v42 = vsel %vm654_vm7, %v664_v38, %v665_v8  ;;  %vm1312_vm7 = vcmask 293888  }
  0xcd   : > { %624 = vrot.lane.b32.xlu2 %v598_v43, %s2401_s11  ;;  %v2177_v43 = vld [vmem:[%s2529_s5 + $0x8] sm:$0xff] }
  0xce   : > { %1060 = vrot.lane.b32.xlu0 %v1021_v28, %s2404_s22  ;;  %v744_v28 = vshrl.u32 %v2998_v33, 16  ;;  %v882_v27 = vshrl.u32 %v3021_v44, 16  ;;  %v885_v32 = vshll.u32 %v3021_v44, 16 }
  0xcf   : > { %v2967_v11 = vpop.permute.xlu2 %618 }
  0xd0   : > { %v2973_v63 = vpop.permute.xlu0 %667  ;;  %v746_v62 = vrot.slane %v744_v28, 1  ;;  %v879_v28 = vrot.slane %v877_v21, 3 }
  0xd2   : > { %677 = vrot.lane.b32.xlu1 %v662_v35, %s2399_s10  ;;  %v610_v35 = vsel %vm553_vm11, %v605_v0, %v2980_v9  ;;  %v3028_v59 = vor.u32 %v749_v13, %v746_v62  ;;  %v803_v0 = vrot.slane %v3021_v44, 2  ;;  %v1144_v13 = vor.u32 %v1142_v20, %v2969_v31 }
  0xd4   : > { %v2982_v61 = vpop.permute.xlu1 %805  ;;  %v751_v15 = vsel %vm683_vm10, %v742_v55, %v3028_v59 }
  0xd5   : > { %762 = vrot.lane.b32.xlu2 %v2906_v54, %s2403_s21  ;;  %v1686_v54 = vpack.c.b16 %v1683_v18, %v1683_v18 }
  0xd6   : > { %1168 = vrot.lane.b32.xlu0 %v1141_v36, %s2406_s28  ;;  %v802_v36 = vrot.slane %v790_v58, 2 }
  0xd7   : > { %v2988_v23 = vpop.permute.xlu2 %890  ;;  %v1706_v34 = vsel %vm1704_vm14, %v1686_v54, 0  ;;  %v920_v54 = vunpack.c.l.b16 %v507_v17  ;;  %v1039_v17 = vrot.slane %v882_v27, 3 }
  0xd8   : > { %v2994_v45 = vpop.permute.xlu0 %671  ;;  %1713 = vmatpush.bf16.msra.mxu0 %v1706_v34  ;;  %2232 = vmatpush.bf16.msra.mxu1 %v1706_v34 }
  0xd9   : > { %2233 = vmatpush.bf16.msra.mxu2 %v1706_v34  ;;  %2234 = vmatpush.bf16.msra.mxu3 %v1706_v34  ;;  %v804_v34 = vsel %vm792_vm8, %v802_v36, %v803_v0  ;;  %v928_v47 = vpack.c.b16 %v2935_v24, %v920_v54  ;;  %vm1689_vm8 = vcmask 326656  }
  0xda   : > { %626 = vrot.lane.b32.xlu1 %v610_v35, %s2401_s11  ;;  %v874_v35 = vshrl.u32 %v790_v58, 16  ;;  %v884_v58 = vrot.slane %v882_v27, 2 }
  0xdb   : > { %v1032_v55 = vshrl.u32 %v928_v47, 16  ;;  %v946_v31 = vrot.slane %v928_v47, 3 }
  0xdc   : > { %v3003_v3 = vpop.permute.xlu1 %951  ;;  %1714 = vmatpush.bf16.msra.mxu0 %v2177_v43  ;;  %2235 = vmatpush.bf16.msra.mxu1 %v2177_v43  ;;  %v876_v5 = vrot.slane %v874_v35, 2  ;;  %v512_v35 = vld [vmem:[#allocation2 + $0x4c] sm:$0x3] }
  0xdd   : > { %900 = vrot.lane.b32.xlu2 %v2915_v4, %s2405_s27  ;;  %v1023_v4 = vshrl.u32 %v927_v12, 16  ;;  %2236 = vmatpush.bf16.msra.mxu2 %v2177_v43  ;;  %v1075_v7 = vunpack.c.l.b16 %v512_v35 }
  0xde   : > { %815 = vrot.lane.b32.xlu0 %v800_v29, %s2400_s25  ;;  %2237 = vmatpush.bf16.msra.mxu3 %v2177_v43  ;;  %v2176_v29 = vld [vmem:[%s2529_s5] sm:$0xff]  ;;  %s2243_s5 = smul.u32 56, %s2526_s8 }
  0xdf   : > { %v3023_v14 = vpop.permute.xlu2 %807  ;;  %v1025_v12 = vrot.slane %v1023_v4, 3  ;;  %v887_v4 = vrot.slane %v885_v32, 3 }
  0xe0   : > { %v3025_v50 = vpop.permute.xlu0 %809  ;;  %1715 = vmatpush.bf16.msra.mxu0 %v2176_v29  ;;  %2238 = vmatpush.bf16.msra.mxu1 %v2176_v29  ;;  %s3328_s8 = scalar_lea.vmem [#allocation8], %s2243_s5 }
  0xe1   : > { %2239 = vmatpush.bf16.msra.mxu2 %v2176_v29 }
  0xe2   : > { %961 = vrot.lane.b32.xlu1 %v945_v2, %s2402_s13  ;;  %2240 = vmatpush.bf16.msra.mxu3 %v2176_v29  ;;  %v1029_v2 = vor.u32 %v1028_v37, %v1025_v12  ;;  %v880_v29 = vor.u32 %v879_v28, %v876_v5  ;;  %v947_v12 = vrot.slane %v3021_v44, 3 }
  0xe4   : > { %v753_v18 = vpop.permute.xlu1 %752 }
  0xe5   : > { %764 = vrot.lane.b32.xlu2 %v751_v15, %s2403_s21  ;;  %v1040_v15 = vrot.slane %v885_v32, 4 }
  0xe6   : > { %679 = vrot.lane.b32.xlu0 %v666_v42, %s2399_s10  ;;  %v1035_v42 = vshll.u32 %v928_v47, 16  ;;  %v1148_v47 = vshll.u32 %v2925_v19, 16 }
  0xe7   : > { %v3045_v38 = vpop.permute.xlu2 %1056  ;;  %v3085_v20 = vor.u32 %v1040_v15, %v1039_v17 }
  0xe8   : > { %v615_v43 = vpop.permute.xlu0 %614  ;;  %v1037_v37 = vrot.slane %v1035_v42, 4  ;;  %v1150_v30 = vrot.slane %v1148_v47, 1 }
  0xe9   : > { %v1178_v40 = vsel %vm1176_vm15, %v2605_v48, %v615_v43  ;;  %v1030_v48 = vsel %vm967_vm12, %v2942_v41, %v1029_v2  ;;  %v3068_v41 = vor.u32 %v887_v4, %v884_v58  ;;  %v1146_v4 = vshrl.u32 %v2925_v19, 16 }
  0xea   : > { %v1195_v53 = vsel %vm1193_vm1, %v1178_v40, %v2973_v63  ;;  %817 = vrot.lane.b32.xlu1 %v804_v34, %s2400_s25 }
  0xeb   : > { %v1212_v1 = vsel %vm1210_vm2, %v1195_v53, %v753_v18  ;;  %v948_v18 = vsel %vm930_vm9, %v946_v31, %v947_v12  ;;  %v3091_v53 = vpack.c.b16 %v1075_v7, %v783_v26 }
  0xec   : > { %v1053_v57 = vpop.permute.xlu1 %1052  ;;  %v1229_v62 = vsel %vm1227_vm4, %v1212_v1, %v2982_v61 }
  0xed   : > { %v1246_v63 = vsel %vm1244_vm3, %v1229_v62, %v2988_v23  ;;  %1094 = vrot.lane.b32.xlu2 %v2947_v60, %s2398_s9  ;;  %v889_v60 = vsel %vm821_vm13, %v880_v29, %v3068_v41  ;;  %v508_v62 = vld [vmem:[#allocation2 + $0x4c] sm:$0x1] }
  0xee   : > { %v1263_v24 = vsel %vm1261_vm0, %v1246_v63, %v3003_v3  ;;  %1062 = vrot.lane.b32.xlu0 %v1030_v48, %s2404_s22  ;;  %v1034_v3 = vrot.slane %v1032_v55, 3  ;;  %v1153_v48 = vshll.u32 %v3091_v53, 16  ;;  %v921_v55 = vunpack.c.l.b16 %v508_v62 }
  0xef   : > { %v3070_v61 = vpop.permute.xlu2 %620  ;;  %v1280_v23 = vsel %vm1278_vm5, %v1263_v24, %v1053_v57  ;;  %v611_v24 = vshrl.u32 %v2960_v51, 16 }
  0xf0   : > { %v757_v36 = vpop.permute.xlu0 %756  ;;  %v1297_v54 = vsel %vm1295_vm6, %v1280_v23, %v2963_v46  ;;  %v1038_v32 = vor.u32 %v1037_v37, %v1034_v3  ;;  %v1155_v63 = vrot.slane %v1153_v48, 1 }
  0xf2   : > { %1170 = vrot.lane.b32.xlu1 %v1144_v13, %s2406_s28  ;;  %v1042_v57 = vsel %vm967_vm12, %v1038_v32, %v3085_v20  ;;  %v1151_v13 = vor.u32 %v1150_v30, %v1146_v4 }
  0xf4   : > { %v1161_v21 = vpop.permute.xlu1 %1160  ;;  %v1156_v42 = vsel %vm553_vm11, %v1151_v13, %v1155_v63 }
  0xf5   : > { %v1314_v34 = vsel %vm1312_vm7, %v1297_v54, %v1161_v21  ;;  %963 = vrot.lane.b32.xlu2 %v948_v18, %s2402_s13 }
  0xf6   : > { %v1337_v2 = vrot.slane %v1314_v34, 1  ;;  %v1338_v43 = vrot.slane %v1314_v34, 2  ;;  %v1339_v40 = vrot.slane %v1314_v34, 3  ;;  %1553 = vst [vmem:[#allocation1] ss:$9 sm:$0xff] %v1314_v34  ;;  %902 = vrot.lane.b32.xlu0 %v889_v60, %s2405_s27  ;;  %v1340_v27 = vrot.slane %v1314_v34, 4 }
  0xf7   : > { %v3087_v5 = vpop.permute.xlu2 %673  ;;  %v1341_v28 = vrot.slane %v1314_v34, 5  ;;  %v1342_v58 = vrot.slane %v1314_v34, 6  ;;  %v1343_v1 = vrot.slane %v1314_v34, 7  ;;  %v613_v60 = vor.u32 %v611_v24, %v2980_v9 }
  0xf8   : > { %1556 = vst [vmem:[#allocation1 + $0x1] ss:$9 sm:$0xff] %v1337_v2  ;;  %v895_v46 = vpop.permute.xlu0 %894  ;;  %v1184_v24 = vsel %vm1176_vm15, %v2686_v49, %v3070_v61 }
  0xf9   : > { %1559 = vst [vmem:[#allocation1 + $0x2] ss:$9 sm:$0xff] %v1338_v43 }
  0xfa   : > { %1562 = vst [vmem:[#allocation1 + $0x3] ss:$9 sm:$0xff] %v1339_v40  ;;  %1096 = vrot.lane.b32.xlu1 %v2925_v19, %s2398_s9  ;;  %v1182_v19 = vsel %vm1176_vm15, %v2669_v39, %v2967_v11  ;;  %v929_v39 = vpack.c.b16 %v921_v55, %v921_v55 }
  0xfb   : > { %1565 = vst [vmem:[#allocation1 + $0x4] ss:$9 sm:$0xff] %v1340_v27  ;;  %v1199_v31 = vsel %vm1193_vm1, %v1182_v19, %v2994_v45 }
  0xfc   : > { %1568 = vst [vmem:[#allocation1 + $0x5] ss:$9 sm:$0xff] %v1341_v28  ;;  %v3100_v26 = vpop.permute.xlu1 %892  ;;  %v1216_v3 = vsel %vm1210_vm2, %v1199_v31, %v757_v36  ;;  %v1044_v9 = vshrl.u32 %v929_v39, 16  ;;  %v1047_v15 = vshll.u32 %v929_v39, 16  ;;  %v949_v21 = vrot.slane %v929_v39, 3 }
  0xfd   : > { %1571 = vst [vmem:[#allocation1 + $0x6] ss:$9 sm:$0xff] %v1342_v58  ;;  %1172 = vrot.lane.b32.xlu2 %v1156_v42, %s2406_s28  ;;  %v1233_v17 = vsel %vm1227_vm4, %v1216_v3, %v3025_v50 }
  0xfe   : > { %1574 = vst [vmem:[#allocation1 + $0x7] ss:$9 sm:$0xff] %v1343_v1  ;;  %1064 = vrot.lane.b32.xlu0 %v1042_v57, %s2404_s22  ;;  %v1250_v45 = vsel %vm1244_vm3, %v1233_v17, %v895_v46  ;;  %v1046_v36 = vrot.slane %v1044_v9, 3  ;;  %v1049_v35 = vrot.slane %v1047_v15, 4  ;;  %v950_v2 = vsel %vm930_vm9, %v947_v12, %v949_v21 }
  0xff   : > { %v1163_v29 = vpop.permute.xlu2 %1162 }
 0x100   : > { %v956_v23 = vpop.permute.xlu0 %955  ;;  %v1050_v43 = vor.u32 %v1049_v35, %v1046_v36 }
 0x101   : > { %v1267_v33 = vsel %vm1261_vm0, %v1250_v45, %v956_v23 }
 0x102   : > { %681 = vrot.lane.b32.xlu1 %v665_v8, %s2399_s10  ;;  %v1284_v50 = vsel %vm1278_vm5, %v1267_v33, %v3045_v38  ;;  %v1051_v44 = vsel %vm967_vm12, %v3085_v20, %v1050_v43 }
 0x104   : > { %v1089_v11 = vpop.permute.xlu1 %1088 }
 0x105   : > { %v1575_v37 = vld [vmem:[#allocation1] sm:$0xff]  ;;  %766 = vrot.lane.b32.xlu2 %v3028_v59, %s2403_s21  ;;  %v1301_v54 = vsel %vm1295_vm6, %v1284_v50, %v1089_v11  ;;  %v1180_v59 = vsel %vm1176_vm15, %v2634_v6, %v2920_v22 }
 0x106   : > { %2166 = vmatmul.msk.bf16.vlgmr.msra.gmra.mxu0 %vm1689_vm8, %v1575_v37  ;;  %628 = vrot.lane.b32.xlu0 %v613_v60, %s2401_s11  ;;  %v1197_v12 = vsel %vm1193_vm1, %v1180_v59, %v2908_v56 }
 0x107   : > { %v3122_v18 = vpop.permute.xlu2 %957  ;;  %v1214_v46 = vsel %vm1210_vm2, %v1197_v12, %v2944_v52 }
 0x108   : > { %v954_v8 = vpop.permute.xlu0 %953  ;;  %v1231_v56 = vsel %vm1227_vm4, %v1214_v46, %v3023_v14 }
 0x109   : > { %v1248_v47 = vsel %vm1244_vm3, %v1231_v56, %v3100_v26 }
 0x10a   : > { %904 = vrot.lane.b32.xlu1 %v3068_v41, %s2405_s27  ;;  %v1265_v1 = vsel %vm1261_vm0, %v1248_v47, %v954_v8 }
 0x10c   : > { %v1165_v7 = vpop.permute.xlu1 %1164 }
 0x10d   : > { %v3132_v34 = vsel %vm1312_vm7, %v1301_v54, %v1165_v7  ;;  %965 = vrot.lane.b32.xlu2 %v950_v2, %s2402_s13 }
 0x10e   : > { %v1349_v41 = vrot.slane %v3132_v34, 1  ;;  %819 = vrot.lane.b32.xlu0 %v803_v0, %s2400_s25  ;;  %v1413_v38 = vunpack.i.h.s16 %v3132_v34  ;;  %v1350_v40 = vrot.slane %v3132_v34, 2  ;;  %v1157_v0 = vshrl.u32 %v3091_v53, 16 }
 0x10f   : > { %v3151_v22 = vpop.permute.xlu2 %1166  ;;  %v1351_v55 = vrot.slane %v3132_v34, 3  ;;  %v1352_v23 = vrot.slane %v3132_v34, 4  ;;  %v1353_v60 = vrot.slane %v3132_v34, 5  ;;  %v1354_v61 = vrot.slane %v3132_v34, 6 }
 0x110   : > { %v1415_v27 = vunpack.i.h.s16 %v1349_v41  ;;  %v1055_v32 = vpop.permute.xlu0 %1054  ;;  %v2131_v28 = vpack.i.b16 %v1349_v41, %v1413_v38  ;;  %v1159_v4 = vor.u32 %v1157_v0, %v1155_v63  ;;  %v1417_v3 = vunpack.i.h.s16 %v1350_v40 }
 0x111   : > { %v1282_v20 = vsel %vm1278_vm5, %v1265_v1, %v1055_v32  ;;  %v1419_v39 = vunpack.i.h.s16 %v1351_v55  ;;  %v1421_v37 = vunpack.i.h.s16 %v1352_v23  ;;  %v1423_v17 = vunpack.i.h.s16 %v1353_v60 }
 0x112   : > { %v2132_v6 = vpack.i.b16 %v1350_v40, %v1415_v27  ;;  %1098 = vrot.lane.b32.xlu1 %v3091_v53, %s2398_s9  ;;  %1589 = vst [vmem:[#allocation1 + $0x6] ss:$9 sm:$0xff] %v2131_v28  ;;  %v1355_v9 = vrot.slane %v3132_v34, 7  ;;  %v1425_v15 = vunpack.i.h.s16 %v1354_v61  ;;  %v2133_v33 = vpack.i.b16 %v1351_v55, %v1417_v3 }
 0x113   : > { %v2134_v8 = vpack.i.b16 %v1352_v23, %v1419_v39  ;;  %v2135_v21 = vpack.i.b16 %v1353_v60, %v1421_v37  ;;  %v2136_v7 = vpack.i.b16 %v1354_v61, %v1423_v17 }
 0x114   : > { %1591 = vst [vmem:[#allocation1 + $0x7] ss:$9 sm:$0xff] %v2132_v6  ;;  %v759_v58 = vpop.permute.xlu1 %758  ;;  %v2137_v59 = vpack.i.b16 %v1355_v9, %v1425_v15 }
 0x115   : > { %1174 = vrot.lane.b32.xlu2 %v1159_v4, %s2406_s28 }
 0x116   : > { %1066 = vrot.lane.b32.xlu0 %v1051_v44, %s2404_s22 }
 0x117   : > { %v3168_v13 = vpop.permute.xlu2 %760 }
 0x118   : > { %v1087_v48 = vpop.permute.xlu0 %1086 }
 0x119   : > { %v1299_v52 = vsel %vm1295_vm6, %v1282_v20, %v1087_v48 }
 0x11a   : > { %v1316_v53 = vsel %vm1312_vm7, %v1299_v52, %v1163_v29  ;;  %v1201_v29 = vsel %vm1193_vm1, %v1184_v24, %v3087_v5 }
 0x11b   : > { %v1344_v57 = vrot.slane %v1316_v53, 1  ;;  %v1345_v30 = vrot.slane %v1316_v53, 2  ;;  %v1346_v14 = vrot.slane %v1316_v53, 3  ;;  %1577 = vst [vmem:[#allocation1] ss:$9 sm:$0xff] %v1316_v53  ;;  %v1347_v62 = vrot.slane %v1316_v53, 4 }
 0x11c   : > { %v1348_v63 = vrot.slane %v1316_v53, 5  ;;  %v897_v26 = vpop.permute.xlu1 %896  ;;  %v1218_v31 = vsel %vm1210_vm2, %v1201_v29, %v759_v58 }
 0x11d   : > { %1579 = vst [vmem:[#allocation1 + $0x1] ss:$9 sm:$0xff] %v1344_v57 }
 0x11e   : > { %v2130_v19 = vpack.i.b16 %v3132_v34, %v1348_v63  ;;  %1581 = vst [vmem:[#allocation1 + $0x2] ss:$9 sm:$0xff] %v1345_v30  ;;  %v1427_v34 = vunpack.i.h.s16 %v1355_v9 }
 0x11f   : > { %1583 = vst [vmem:[#allocation1 + $0x3] ss:$9 sm:$0xff] %v1346_v14  ;;  %v960_v45 = vpop.permute.xlu2 %959 }
 0x120   : > { %1585 = vst [vmem:[#allocation1 + $0x4] ss:$9 sm:$0xff] %v1347_v62  ;;  %v812_v42 = vpop.permute.xlu0 %811 }
 0x121   : > { %1587 = vst [vmem:[#allocation1 + $0x5] ss:$9 sm:$0xff] %v2130_v19  ;;  %v1235_v49 = vsel %vm1227_vm4, %v1218_v31, %v812_v42 }
 0x122   : > { %v1252_v5 = vsel %vm1244_vm3, %v1235_v49, %v897_v26 }
 0x123   : > { %v1269_v36 = vsel %vm1261_vm0, %v1252_v5, %v3122_v18 }
 0x124   : > { %v1091_v11 = vpop.permute.xlu1 %1090 }
 0x127   : > { %v625_v44 = vpop.permute.xlu2 %624 }
 0x128   : > { %v1592_v50 = vld [vmem:[#allocation1] sm:$0xff]  ;;  %v1059_v35 = vpop.permute.xlu0 %1058 }
 0x129   : > { %1594 = vst [vmem:[#allocation1] ss:$9 sm:$0xff] %v2133_v33  ;;  %2167 = vmatmul.msk.bf16.gmra.mxu0 %vm1689_vm8, %v1592_v50  ;;  %v1286_v54 = vsel %vm1278_vm5, %v1269_v36, %v1059_v35  ;;  %v1188_v33 = vsel %vm1176_vm15, %v2879_v25, %v625_v44 }
 0x12a   : > { %1596 = vst [vmem:[#allocation1 + $0x1] ss:$9 sm:$0xff] %v2134_v8  ;;  %v1303_v2 = vsel %vm1295_vm6, %v1286_v54, %v1091_v11 }
 0x12b   : > { %1598 = vst [vmem:[#allocation1 + $0x2] ss:$9 sm:$0xff] %v2135_v21  ;;  %v1320_v41 = vsel %vm1312_vm7, %v1303_v2, %v3151_v22 }
 0x12c   : > { %1600 = vst [vmem:[#allocation1 + $0x3] ss:$9 sm:$0xff] %v2136_v7  ;;  %v1356_v38 = vrot.slane %v1320_v41, 1  ;;  %v676_v18 = vpop.permute.xlu1 %675  ;;  %v1429_v43 = vunpack.i.h.s16 %v1320_v41  ;;  %v2138_v40 = vpack.i.b16 %v1320_v41, %v1427_v34  ;;  %v1357_v27 = vrot.slane %v1320_v41, 2 }
 0x12d   : > { %1602 = vst [vmem:[#allocation1 + $0x4] ss:$9 sm:$0xff] %v2137_v59  ;;  %v1358_v0 = vrot.slane %v1320_v41, 3  ;;  %v1359_v46 = vrot.slane %v1320_v41, 4  ;;  %v1360_v1 = vrot.slane %v1320_v41, 5 }
 0x12e   : > { %v1431_v32 = vunpack.i.h.s16 %v1356_v38  ;;  %v2139_v12 = vpack.i.b16 %v1356_v38, %v1429_v43  ;;  %1604 = vst [vmem:[#allocation1 + $0x5] ss:$9 sm:$0xff] %v2138_v40  ;;  %v1433_v58 = vunpack.i.h.s16 %v1357_v27 }
 0x12f   : > { %v1435_v22 = vunpack.i.h.s16 %v1358_v0  ;;  %v1437_v4 = vunpack.i.h.s16 %v1359_v46  ;;  %v763_v14 = vpop.permute.xlu2 %762 }
 0x130   : > { %v2140_v28 = vpack.i.b16 %v1357_v27, %v1431_v32  ;;  %v623_v6 = vpop.permute.xlu0 %622  ;;  %1606 = vst [vmem:[#allocation1 + $0x6] ss:$9 sm:$0xff] %v2139_v12  ;;  %v2141_v20 = vpack.i.b16 %v1358_v0, %v1433_v58 }
 0x131   : > { %v1186_v47 = vsel %vm1176_vm15, %v2837_v16, %v623_v6  ;;  %v2142_v52 = vpack.i.b16 %v1359_v46, %v1435_v22  ;;  %v2143_v57 = vpack.i.b16 %v1360_v1, %v1437_v4 }
 0x132   : > { %1608 = vst [vmem:[#allocation1 + $0x7] ss:$9 sm:$0xff] %v2140_v28  ;;  %v1203_v30 = vsel %vm1193_vm1, %v1186_v47, %v676_v18 }
 0x133   : > { %v1220_v63 = vsel %vm1210_vm2, %v1203_v30, %v3168_v13 }
 0x134   : > { %v899_v56 = vpop.permute.xlu1 %898 }
 0x137   : > { %v901_v19 = vpop.permute.xlu2 %900 }
 0x138   : > { %v814_v48 = vpop.permute.xlu0 %813 }
 0x139   : > { %v1609_v53 = vld [vmem:[#allocation1] sm:$0xff]  ;;  %v1237_v16 = vsel %vm1227_vm4, %v1220_v63, %v814_v48 }
 0x13a   : > { %1611 = vst [vmem:[#allocation1] ss:$9 sm:$0xff] %v2141_v20  ;;  %2168 = vmatmul.msk.bf16.vlgmr.msra.gmra.mxu1 %vm1689_vm8, %v1609_v53  ;;  %v1254_v24 = vsel %vm1244_vm3, %v1237_v16, %v899_v56 }
 0x13b   : > { %1613 = vst [vmem:[#allocation1 + $0x1] ss:$9 sm:$0xff] %v2142_v52  ;;  %v1271_v29 = vsel %vm1261_vm0, %v1254_v24, %v960_v45 }
 0x13c   : > { %1615 = vst [vmem:[#allocation1 + $0x2] ss:$9 sm:$0xff] %v2143_v57  ;;  %v1093_v62 = vpop.permute.xlu1 %1092 }
 0x13f   : > { %v765_v11 = vpop.permute.xlu2 %764 }
 0x140   : > { %v1061_v26 = vpop.permute.xlu0 %1060 }
 0x141   : > { %v1288_v42 = vsel %vm1278_vm5, %v1271_v29, %v1061_v26 }
 0x142   : > { %v1305_v23 = vsel %vm1295_vm6, %v1288_v42, %v1093_v62 }
 0x144   : > { %v678_v55 = vpop.permute.xlu1 %677 }
 0x145   : > { %v1205_v50 = vsel %vm1193_vm1, %v1188_v33, %v678_v55 }
 0x146   : > { %v1222_v35 = vsel %vm1210_vm2, %v1205_v50, %v763_v14 }
 0x147   : > { %v1095_v15 = vpop.permute.xlu2 %1094 }
 0x148   : > { %v1169_v31 = vpop.permute.xlu0 %1168 }
 0x149   : > { %v1322_v60 = vsel %vm1312_vm7, %v1305_v23, %v1169_v31 }
 0x14a   : > { %v1361_v49 = vrot.slane %v1322_v60, 1  ;;  %v1362_v61 = vrot.slane %v1322_v60, 2  ;;  %v1363_v3 = vrot.slane %v1322_v60, 3  ;;  %1617 = vst [vmem:[#allocation1 + $0x3] ss:$9 sm:$0xff] %v1322_v60  ;;  %v1364_v13 = vrot.slane %v1322_v60, 4 }
 0x14b   : > { %v1365_v17 = vrot.slane %v1322_v60, 5  ;;  %v1366_v45 = vrot.slane %v1322_v60, 6  ;;  %v1367_v8 = vrot.slane %v1322_v60, 7 }
 0x14c   : > { %1619 = vst [vmem:[#allocation1 + $0x4] ss:$9 sm:$0xff] %v1361_v49  ;;  %v627_v39 = vpop.permute.xlu1 %626 }
 0x14d   : > { %1621 = vst [vmem:[#allocation1 + $0x5] ss:$9 sm:$0xff] %v1362_v61  ;;  %v1190_v32 = vsel %vm1176_vm15, %v2953_v10, %v627_v39 }
 0x14e   : > { %1623 = vst [vmem:[#allocation1 + $0x6] ss:$9 sm:$0xff] %v1363_v3 }
 0x14f   : > { %1625 = vst [vmem:[#allocation1 + $0x7] ss:$9 sm:$0xff] %v1364_v13  ;;  %v964_v25 = vpop.permute.xlu2 %963 }
 0x150   : > { %v816_v37 = vpop.permute.xlu0 %815 }
 0x151   : > { %v1239_v21 = vsel %vm1227_vm4, %v1222_v35, %v816_v37 }
 0x152   : > { %v1256_v7 = vsel %vm1244_vm3, %v1239_v21, %v901_v19 }
 0x154   : > { %v962_v5 = vpop.permute.xlu1 %961 }
 0x155   : > { %v1273_v2 = vsel %vm1261_vm0, %v1256_v7, %v962_v5 }
 0x156   : > { %v1626_v9 = vld [vmem:[#allocation1] sm:$0xff] }
 0x157   : > { %1628 = vst [vmem:[#allocation1] ss:$9 sm:$0xff] %v1365_v17  ;;  %2169 = vmatmul.msk.bf16.gmra.mxu1 %vm1689_vm8, %v1626_v9  ;;  %v1173_v44 = vpop.permute.xlu2 %1172 }
 0x158   : > { %1630 = vst [vmem:[#allocation1 + $0x1] ss:$9 sm:$0xff] %v1366_v45  ;;  %v680_v36 = vpop.permute.xlu0 %679 }
 0x159   : > { %1632 = vst [vmem:[#allocation1 + $0x2] ss:$9 sm:$0xff] %v1367_v8  ;;  %v1207_v28 = vsel %vm1193_vm1, %v1190_v32, %v680_v36 }
 0x15a   : > { %v1224_v0 = vsel %vm1210_vm2, %v1207_v28, %v765_v11 }
 0x15c   : > { %v818_v54 = vpop.permute.xlu1 %817 }
 0x15d   : > { %v1241_v46 = vsel %vm1227_vm4, %v1224_v0, %v818_v54 }
 0x15f   : > { %v767_v14 = vpop.permute.xlu2 %766 }
 0x160   : > { %v1063_v59 = vpop.permute.xlu0 %1062 }
 0x161   : > { %v1290_v34 = vsel %vm1278_vm5, %v1273_v2, %v1063_v59 }
 0x162   : > { %v1307_v41 = vsel %vm1295_vm6, %v1290_v34, %v1095_v15 }
 0x164   : > { %v1171_v38 = vpop.permute.xlu1 %1170 }
 0x165   : > { %v1324_v18 = vsel %vm1312_vm7, %v1307_v41, %v1171_v38 }
 0x166   : > { %v1368_v43 = vrot.slane %v1324_v18, 1  ;;  %v1369_v40 = vrot.slane %v1324_v18, 2  ;;  %v1370_v27 = vrot.slane %v1324_v18, 3  ;;  %1634 = vst [vmem:[#allocation1 + $0x3] ss:$9 sm:$0xff] %v1324_v18  ;;  %v1371_v12 = vrot.slane %v1324_v18, 4 }
 0x167   : > { %v1372_v62 = vrot.slane %v1324_v18, 5  ;;  %v966_v15 = vpop.permute.xlu2 %965 }
 0x168   : > { %1636 = vst [vmem:[#allocation1 + $0x4] ss:$9 sm:$0xff] %v1368_v43  ;;  %v903_v6 = vpop.permute.xlu0 %902 }
 0x169   : > { %1638 = vst [vmem:[#allocation1 + $0x5] ss:$9 sm:$0xff] %v1369_v40  ;;  %v1258_v56 = vsel %vm1244_vm3, %v1241_v46, %v903_v6 }
 0x16a   : > { %1640 = vst [vmem:[#allocation1 + $0x6] ss:$9 sm:$0xff] %v1370_v27  ;;  %v1275_v22 = vsel %vm1261_vm0, %v1258_v56, %v964_v25 }
 0x16b   : > { %1642 = vst [vmem:[#allocation1 + $0x7] ss:$9 sm:$0xff] %v1371_v12 }
 0x16c   : > { %v1097_v58 = vpop.permute.xlu1 %1096 }
 0x16f   : > { %v1175_v7 = vpop.permute.xlu2 %1174 }
 0x170   : > { %v1065_v4 = vpop.permute.xlu0 %1064 }
 0x171   : > { %v1292_v10 = vsel %vm1278_vm5, %v1275_v22, %v1065_v4 }
 0x172   : > { %v1643_v47 = vld [vmem:[#allocation1] sm:$0xff]  ;;  %v1309_v1 = vsel %vm1295_vm6, %v1292_v10, %v1097_v58 }
 0x173   : > { %2170 = vmatmul.msk.bf16.vlgmr.msra.gmra.mxu2 %vm1689_vm8, %v1643_v47  ;;  %v1326_v20 = vsel %vm1312_vm7, %v1309_v1, %v1173_v44 }
 0x174   : > { %v1373_v48 = vrot.slane %v1326_v20, 1  ;;  %v1374_v52 = vrot.slane %v1326_v20, 2  ;;  %v1375_v53 = vrot.slane %v1326_v20, 3  ;;  %v1376_v57 = vrot.slane %v1326_v20, 4  ;;  %v682_v30 = vpop.permute.xlu1 %681 }
 0x175   : > { %v1377_v63 = vrot.slane %v1326_v20, 5  ;;  %v1378_v16 = vrot.slane %v1326_v20, 6  ;;  %v1467_v26 = vunpack.i.h.s16 %v1326_v20  ;;  %v2144_v23 = vpack.i.b16 %v1326_v20, %v1372_v62 }
 0x176   : > { %v1469_v24 = vunpack.i.h.s16 %v1373_v48  ;;  %v1471_v19 = vunpack.i.h.s16 %v1374_v52  ;;  %v1473_v29 = vunpack.i.h.s16 %v1375_v53  ;;  %v1475_v55 = vunpack.i.h.s16 %v1376_v57 }
 0x177   : > { %v1477_v42 = vunpack.i.h.s16 %v1377_v63  ;;  %v2145_v31 = vpack.i.b16 %v1373_v48, %v1467_v26  ;;  %v1479_v60 = vunpack.i.h.s16 %v1378_v16  ;;  %1645 = vst [vmem:[#allocation1] ss:$9 sm:$0xff] %v2144_v23  ;;  %v1379_v39 = vrot.slane %v1326_v20, 7 }
 0x178   : > { %v2146_v49 = vpack.i.b16 %v1374_v52, %v1469_v24  ;;  %v2147_v61 = vpack.i.b16 %v1375_v53, %v1471_v19  ;;  %v629_v3 = vpop.permute.xlu0 %628  ;;  %v2148_v13 = vpack.i.b16 %v1376_v57, %v1473_v29  ;;  %v2149_v11 = vpack.i.b16 %v1377_v63, %v1475_v55 }
 0x179   : > { %1647 = vst [vmem:[#allocation1 + $0x1] ss:$9 sm:$0xff] %v2145_v31  ;;  %v2150_v37 = vpack.i.b16 %v1378_v16, %v1477_v42  ;;  %v1192_v5 = vsel %vm1176_vm15, %v2960_v51, %v629_v3  ;;  %v2151_v17 = vpack.i.b16 %v1379_v39, %v1479_v60  ;;  %v1481_v38 = vunpack.i.h.s16 %v1379_v39 }
 0x17a   : > { %1649 = vst [vmem:[#allocation1 + $0x2] ss:$9 sm:$0xff] %v2146_v49  ;;  %v1209_v9 = vsel %vm1193_vm1, %v1192_v5, %v682_v30 }
 0x17b   : > { %1651 = vst [vmem:[#allocation1 + $0x3] ss:$9 sm:$0xff] %v2147_v61  ;;  %v1226_v8 = vsel %vm1210_vm2, %v1209_v9, %v767_v14 }
 0x17c   : > { %1653 = vst [vmem:[#allocation1 + $0x4] ss:$9 sm:$0xff] %v2148_v13  ;;  %v905_v45 = vpop.permute.xlu1 %904 }
 0x17d   : > { %1655 = vst [vmem:[#allocation1 + $0x5] ss:$9 sm:$0xff] %v2149_v11 }
 0x17e   : > { %1657 = vst [vmem:[#allocation1 + $0x6] ss:$9 sm:$0xff] %v2150_v37 }
 0x17f   : > { %1659 = vst [vmem:[#allocation1 + $0x7] ss:$9 sm:$0xff] %v2151_v17 }
 0x180   : > { %v820_v33 = vpop.permute.xlu0 %819 }
 0x181   : > { %v1243_v50 = vsel %vm1227_vm4, %v1226_v8, %v820_v33 }
 0x182   : > { %v1260_v36 = vsel %vm1244_vm3, %v1243_v50, %v905_v45 }
 0x183   : > { %v1277_v51 = vsel %vm1261_vm0, %v1260_v36, %v966_v15  ;;  %v3237_v10 = vpop.f32.mrf.mxu0 }
 0x184   : > { %v1099_v21 = vpop.permute.xlu1 %1098  ;;  %v1772_v14 = vmul.f32 %v3237_v10, %v3237_v10 }
 0x186   : > { %v1660_v35 = vld [vmem:[#allocation1] sm:$0xff] }
 0x187   : > { %2171 = vmatmul.msk.bf16.vlgmr.msra.gmra.mxu3 %vm1689_vm8, %v1660_v35 }
 0x188   : > { %v1067_v54 = vpop.permute.xlu0 %1066 }
 0x189   : > { %v1294_v2 = vsel %vm1278_vm5, %v1277_v51, %v1067_v54 }
 0x18a   : > { %v1311_v59 = vsel %vm1295_vm6, %v1294_v2, %v1099_v21 }
 0x18b   : > { %v1328_v25 = vsel %vm1312_vm7, %v1311_v59, %v1175_v7  ;;  %v3241_v1 = vpop.f32.mrf.mxu0 }
 0x18c   : > { %v1380_v34 = vrot.slane %v1328_v25, 1  ;;  %v1381_v41 = vrot.slane %v1328_v25, 2  ;;  %v1382_v18 = vrot.slane %v1328_v25, 3  ;;  %v1383_v43 = vrot.slane %v1328_v25, 4 }
 0x18d   : > { %v1483_v40 = vunpack.i.h.s16 %v1328_v25  ;;  %v2152_v12 = vpack.i.b16 %v1328_v25, %v1481_v38  ;;  %v1384_v28 = vrot.slane %v1328_v25, 5  ;;  %v1773_v57 = vmul.f32 %v3241_v1, %v3241_v1 }
 0x18e   : > { %v1485_v27 = vunpack.i.h.s16 %v1380_v34  ;;  %v1487_v32 = vunpack.i.h.s16 %v1381_v41  ;;  %v1489_v6 = vunpack.i.h.s16 %v1382_v18  ;;  %v1491_v44 = vunpack.i.h.s16 %v1383_v43 }
 0x18f   : > { %v2153_v0 = vpack.i.b16 %v1380_v34, %v1483_v40  ;;  %1662 = vst [vmem:[#allocation1] ss:$9 sm:$0xff] %v2152_v12  ;;  %v1752_v62 = vadd.f32 %v3241_v1, %v3237_v10  ;;  %v1786_v26 = vadd.f32 %v1773_v57, %v1772_v14 }
 0x190   : > { %v2154_v46 = vpack.i.b16 %v1381_v41, %v1485_v27  ;;  %v2155_v58 = vpack.i.b16 %v1382_v18, %v1487_v32  ;;  %v2156_v56 = vpack.i.b16 %v1383_v43, %v1489_v6  ;;  %v2157_v22 = vpack.i.b16 %v1384_v28, %v1491_v44 }
 0x191   : > { %1664 = vst [vmem:[#allocation1 + $0x1] ss:$9 sm:$0xff] %v2153_v0 }
 0x192   : > { %1666 = vst [vmem:[#allocation1 + $0x2] ss:$9 sm:$0xff] %v2154_v46 }
 0x193   : > { %1668 = vst [vmem:[#allocation1 + $0x3] ss:$9 sm:$0xff] %v2155_v58 }
 0x194   : > { %1670 = vst [vmem:[#allocation1 + $0x4] ss:$9 sm:$0xff] %v2156_v56 }
 0x195   : > { %1672 = vst [vmem:[#allocation1 + $0x5] ss:$9 sm:$0xff] %v2157_v22 }
 0x19c   : > { %v1673_v4 = vld [vmem:[#allocation1] sm:$0xff] }
 0x19d   : > { %2172 = vmatmul.msk.bf16.gmra.mxu3 %vm1689_vm8, %v1673_v4 }
 0x1a6   : > { %v3243_v20 = vpop.f32.mrf.mxu0 }
 0x1a7   : > { %v1774_v63 = vmul.f32 %v3243_v20, %v3243_v20  ;;  %v1753_v24 = vadd.f32 %v1752_v62, %v3243_v20 }
 0x1a9   : > { %v1787_v29 = vadd.f32 %v1786_v26, %v1774_v63 }
 0x1ae   : > { %v3253_v30 = vpop.f32.mrf.mxu0 }
 0x1af   : > { %v1775_v19 = vmul.f32 %v3253_v30, %v3253_v30  ;;  %v1754_v55 = vadd.f32 %v1753_v24, %v3253_v30 }
 0x1b1   : > { %v1788_v23 = vadd.f32 %v1787_v29, %v1775_v19 }
 0x1b7   : > { %v3239_v47 = vpop.f32.mrf.mxu1 }
 0x1b8   : > { %v1776_v42 = vmul.f32 %v3239_v47, %v3239_v47  ;;  %v1755_v31 = vadd.f32 %v1754_v55, %v3239_v47 }
 0x1ba   : > { %v1789_v3 = vadd.f32 %v1788_v23, %v1776_v42 }
 0x1bf   : > { %v3245_v48 = vpop.f32.mrf.mxu1 }
 0x1c0   : > { %v1777_v60 = vmul.f32 %v3245_v48, %v3245_v48  ;;  %v1756_v13 = vadd.f32 %v1755_v31, %v3245_v48 }
 0x1c2   : > { %v1790_v11 = vadd.f32 %v1789_v3, %v1777_v60 }
 0x1d4   : > { %v3249_v53 = vpop.f32.mrf.mxu1 }
 0x1d5   : > { %v1778_v39 = vmul.f32 %v3249_v53, %v3249_v53  ;;  %v1757_v37 = vadd.f32 %v1756_v13, %v3249_v53 }
 0x1d7   : > { %v1791_v45 = vadd.f32 %v1790_v11, %v1778_v39 }
 0x1dc   : > { %v3274_v61 = vpop.f32.mrf.mxu1 }
 0x1dd   : > { %v1779_v5 = vmul.f32 %v3274_v61, %v3274_v61  ;;  %v1758_v9 = vadd.f32 %v1757_v37, %v3274_v61 }
 0x1df   : > { %v1792_v33 = vadd.f32 %v1791_v45, %v1779_v5 }
 0x1f6   : > { %v3261_v16 = vpop.f32.mrf.mxu2 }
 0x1f7   : > { %v1780_v15 = vmul.f32 %v3261_v16, %v3261_v16  ;;  %v1759_v8 = vadd.f32 %v1758_v9, %v3261_v16 }
 0x1f9   : > { %v1793_v35 = vadd.f32 %v1792_v33, %v1780_v15 }
 0x1fe   : > { %v3282_v17 = vpop.f32.mrf.mxu2 }
 0x1ff   : > { %v1781_v50 = vmul.f32 %v3282_v17, %v3282_v17  ;;  %v1760_v21 = vadd.f32 %v1759_v8, %v3282_v17 }
 0x201   : > { %v1794_v54 = vadd.f32 %v1793_v35, %v1781_v50 }
 0x20a   : > { %v3247_v52 = vpop.f32.mrf.mxu3 }
 0x20b   : > { %v1782_v51 = vmul.f32 %v3247_v52, %v3247_v52  ;;  %v1761_v7 = vadd.f32 %v1760_v21, %v3247_v52 }
 0x20d   : > { %v1795_v59 = vadd.f32 %v1794_v54, %v1782_v51 }
 0x212   : > { %v3272_v49 = vpop.f32.mrf.mxu3 }
 0x213   : > { %v1783_v2 = vmul.f32 %v3272_v49, %v3272_v49  ;;  %v1762_v25 = vadd.f32 %v1761_v7, %v3272_v49 }
 0x215   : > { %v1796_v41 = vadd.f32 %v1795_v59, %v1783_v2 }
 0x220   : > { %v3290_v36 = vpop.f32.mrf.mxu3 }
 0x221   : > { %v1784_v34 = vmul.f32 %v3290_v36, %v3290_v36  ;;  %v1763_v38 = vadd.f32 %v1762_v25, %v3290_v36 }
 0x223   : > { %v1797_v27 = vadd.f32 %v1796_v41, %v1784_v34 }
 0x228   : > { %v3302_v18 = vpop.f32.mrf.mxu3 }
 0x229   : > { %v1764_v43 = vsel %vm1704_vm14, %v3302_v18, 0.0  ;;  %v1785_v40 = vmul.f32 %v3302_v18, %v3302_v18 }
 0x22a   : > { %v1765_v32 = vadd.f32 %v1764_v43, %v1763_v38  ;;  %v2291_v38 = vld [vmem:[%s289_s7] ss:$0 sm:$0xff] }
 0x22b   : > { %v1798_v12 = vsel %vm1704_vm14, %v1785_v40, 0.0 }
 0x22c   : > { %v1766_v28 = vrot.slane %v1765_v32, 4  ;;  %v1799_v6 = vadd.f32 %v1798_v12, %v1797_v27 }
 0x22e   : > { %v1767_v44 = vadd.f32 %v1766_v28, %v1765_v32  ;;  %v1800_v0 = vrot.slane %v1799_v6, 4 }
 0x230   : > { %v1768_v46 = vrot.slane %v1767_v44, 2  ;;  %v1801_v58 = vadd.f32 %v1800_v0, %v1799_v6 }
 0x232   : > { %v1769_v56 = vadd.f32 %v1768_v46, %v1767_v44  ;;  %v1802_v22 = vrot.slane %v1801_v58, 2 }
 0x234   : > { %v1770_v4 = vrot.slane %v1769_v56, 1  ;;  %v1803_v57 = vadd.f32 %v1802_v22, %v1801_v58 }
 0x236   : > { %v1771_v14 = vadd.f32 %v1770_v4, %v1769_v56  ;;  %v1804_v62 = vrot.slane %v1803_v57, 1 }
 0x238   : > { %v1805_v63 = vadd.f32 %v1804_v62, %v1803_v57  ;;  %v1806_v26 = vmul.f32 0.009259259, %v1771_v14 }
 0x23a   : > { %v1807_v24 = vmul.f32 0.009259259, %v1805_v63  ;;  %v1808_v19 = vmul.f32 %v1806_v26, %v1806_v26  ;;  %v1811_v13 = vsub.f32 %v3237_v10, %v1806_v26  ;;  %v1812_v11 = vsub.f32 %v3241_v1, %v1806_v26 }
 0x23b   : > { %v1813_v37 = vsub.f32 %v3243_v20, %v1806_v26  ;;  %v1814_v5 = vsub.f32 %v3253_v30, %v1806_v26  ;;  %v1815_v45 = vsub.f32 %v3239_v47, %v1806_v26  ;;  %v1816_v9 = vsub.f32 %v3245_v48, %v1806_v26 }
 0x23c   : > { %v1809_v29 = vsub.f32 %v1807_v24, %v1808_v19  ;;  %v1817_v15 = vsub.f32 %v3249_v53, %v1806_v26  ;;  %v1818_v8 = vsub.f32 %v3274_v61, %v1806_v26  ;;  %v1819_v10 = vsub.f32 %v3261_v16, %v1806_v26  ;;  %v2290_v53 = vld [vmem:[%s280_s24] ss:$0 sm:$0xff]  ;;  %s2173_s24 = sshll.u32 (%p2476_p8), %s2451_s19, 2 }
 0x23d   : > { %v1820_v50 = vsub.f32 %v3282_v17, %v1806_v26  ;;  %v1821_v1 = vsub.f32 %v3247_v52, %v1806_v26  ;;  %v1822_v20 = vsub.f32 %v3272_v49, %v1806_v26  ;;  %v1823_v30 = vsub.f32 %v3290_v36, %v1806_v26  ;;  %s1936_s10 = scalar_lea.vmem (%p2476_p8), %s3375_s4, %s2173_s24 }
 0x23e   : > { %v1810_v55 = vmax.f32 %v1809_v29, 0.0  ;;  %v1824_v47 = vsub.f32 %v3302_v18, %v1806_v26 }
 0x240   : > { %v1825_v42 = vadd.f32 1e-05, %v1810_v55 }
 0x242   : > { %2292 = vrsqrt.f32 %v1825_v42  ;;  %vm1832_vm10 = vweird.f32 %v1825_v42 }
 0x248   : > { %v2293_v23 = vpop.eup %2292 }
 0x249   : > { %v1827_v31 = vmul.f32 %v2293_v23, %v1825_v42  ;;  %vm1833_vm9 = vweird.f32 %v2293_v23 }
 0x24a   : > { %vm1834_vm11 = vmor %vm1832_vm10, %vm1833_vm9 }
 0x24b   : > { %v1828_v60 = vmul.f32 %v2293_v23, %v1827_v31 }
 0x24d   : > { %v1829_v3 = vmul.f32 0.5, %v1828_v60 }
 0x24f   : > { %v1830_v39 = vsub.f32 1.5, %v1829_v3 }
 0x251   : > { %v1831_v33 = vmul.f32 %v2293_v23, %v1830_v39 }
 0x253   : > { %v1835_v48 = vsel %vm1834_vm11, %v2293_v23, %v1831_v33 }
 0x254   : > { %v1836_v35 = vmul.f32 %v1835_v48, %v1811_v13  ;;  %v1837_v21 = vmul.f32 %v1835_v48, %v1812_v11  ;;  %v1838_v61 = vmul.f32 %v1835_v48, %v1813_v37  ;;  %v1839_v51 = vmul.f32 %v1835_v48, %v1814_v5 }
 0x255   : > { %v1840_v16 = vmul.f32 %v1835_v48, %v1815_v45  ;;  %v1841_v54 = vmul.f32 %v1835_v48, %v1816_v9  ;;  %v1842_v17 = vmul.f32 %v1835_v48, %v1817_v15  ;;  %v1843_v7 = vmul.f32 %v1835_v48, %v1818_v8 }
 0x256   : > { %v1844_v52 = vmul.f32 %v1835_v48, %v1819_v10  ;;  %v1845_v2 = vmul.f32 %v1835_v48, %v1820_v50  ;;  %v1846_v59 = vmul.f32 %v1835_v48, %v1821_v1  ;;  %v1847_v49 = vmul.f32 %v1835_v48, %v1822_v20 }
 0x257   : > { %v1848_v25 = vmul.f32 %v1835_v48, %v1823_v30  ;;  %v1849_v36 = vmul.f32 %v1835_v48, %v1824_v47  ;;  %v1854_v34 = vmul.f32 %v2290_v53, %v1836_v35  ;;  %v1855_v41 = vmul.f32 %v2290_v53, %v1837_v21 }
 0x258   : > { %v1856_v18 = vmul.f32 %v2290_v53, %v1838_v61  ;;  %v1857_v43 = vmul.f32 %v2290_v53, %v1839_v51  ;;  %v1858_v40 = vmul.f32 %v2290_v53, %v1840_v16  ;;  %v1859_v27 = vmul.f32 %v2290_v53, %v1841_v54 }
 0x259   : > { %v1860_v32 = vmul.f32 %v2290_v53, %v1842_v17  ;;  %v1861_v12 = vmul.f32 %v2290_v53, %v1843_v7  ;;  %v1862_v28 = vmul.f32 %v2290_v53, %v1844_v52  ;;  %v1863_v6 = vmul.f32 %v2290_v53, %v1845_v2 }
 0x25a   : > { %v1864_v44 = vmul.f32 %v2290_v53, %v1846_v59  ;;  %v1865_v0 = vmul.f32 %v2290_v53, %v1847_v49  ;;  %v1866_v46 = vmul.f32 %v2290_v53, %v1848_v25  ;;  %v1867_v58 = vmul.f32 %v2290_v53, %v1849_v36 }
 0x25b   : > { %v1872_v56 = vadd.f32 %v2291_v38, %v1854_v34  ;;  %v1873_v22 = vadd.f32 %v2291_v38, %v1855_v41  ;;  %v1874_v4 = vadd.f32 %v2291_v38, %v1856_v18  ;;  %v1875_v57 = vadd.f32 %v2291_v38, %v1857_v43 }
 0x25c   : > { %v1876_v14 = vadd.f32 %v2291_v38, %v1858_v40  ;;  %v1877_v62 = vadd.f32 %v2291_v38, %v1859_v27  ;;  %v1878_v63 = vadd.f32 %v2291_v38, %v1860_v32  ;;  %v1879_v26 = vadd.f32 %v2291_v38, %v1861_v12 }
 0x25d   : > { %v1880_v24 = vadd.f32 %v2291_v38, %v1862_v28  ;;  %v1881_v19 = vadd.f32 %v2291_v38, %v1863_v6  ;;  %v1882_v29 = vadd.f32 %v2291_v38, %v1864_v44  ;;  %v1883_v55 = vadd.f32 %v2291_v38, %v1865_v0 }
 0x25e   : > { %v1884_v42 = vadd.f32 %v2291_v38, %v1866_v46  ;;  %v1885_v23 = vadd.f32 %v2291_v38, %v1867_v58  ;;  %v1886_v31 = vmax.f32 %v1872_v56, 0.0  ;;  %v1887_v60 = vmax.f32 %v1873_v22, 0.0 }
 0x25f   : > { %v1888_v3 = vmax.f32 %v1874_v4, 0.0  ;;  %v1889_v13 = vmax.f32 %v1875_v57, 0.0  ;;  %v1890_v39 = vmax.f32 %v1876_v14, 0.0  ;;  %v1891_v11 = vmax.f32 %v1877_v62, 0.0 }
 0x260   : > { %v1892_v37 = vmax.f32 %v1878_v63, 0.0  ;;  %v1893_v5 = vmax.f32 %v1879_v26, 0.0  ;;  %v1894_v45 = vmax.f32 %v1880_v24, 0.0  ;;  %v1895_v9 = vmax.f32 %v1881_v19, 0.0 }
 0x261   : > { %v1896_v15 = vmax.f32 %v1882_v29, 0.0  ;;  %v1897_v33 = vmax.f32 %v1883_v55, 0.0  ;;  %v1898_v8 = vmax.f32 %v1884_v42, 0.0  ;;  %v2197_v10 = vpack.c.bf16 %v1887_v60, %v1886_v31 }
 0x262   : > { %v2202_v50 = vpack.c.bf16 %v1889_v13, %v1888_v3  ;;  %v2207_v1 = vpack.c.bf16 %v1891_v11, %v1890_v39  ;;  %v1899_v20 = vmax.f32 %v1885_v23, 0.0  ;;  %v2212_v30 = vpack.c.bf16 %v1893_v5, %v1892_v37 }
 0x263   : > { %2198 = vst [vmem:[%s3328_s8] sm:$0xff] %v2197_v10   ;;  %v2217_v47 = vpack.c.bf16 %v1895_v9, %v1894_v45  ;;  %v2222_v48 = vpack.c.bf16 %v1897_v33, %v1896_v15  ;;  %v1912_v53 = vpack.c.bf16 %v1898_v8, %v1898_v8 }
 0x264   : > { %2227 = vst [vmem:[%s3328_s8 + $0x8] sm:$0xff] %v2202_v50   ;;  %v1913_v35 = vpack.c.bf16 %v1899_v20, %v1899_v20 }
 0x265   : > { %2228 = vst [vmem:[%s3328_s8 + $0x10] sm:$0xff] %v2207_v1  }
 0x266   : > { %2229 = vst [vmem:[%s3328_s8 + $0x18] sm:$0xff] %v2212_v30   ;;  %1934 = sbr.rel (!%p2476_p8) target bundleno = 633 (0x279), region = 89 }
 0x267   : > { %2230 = vst [vmem:[%s3328_s8 + $0x20] sm:$0xff] %v2217_v47  }
 0x268   : > { %2231 = vst [vmem:[%s3328_s8 + $0x28] sm:$0xff] %v2222_v48  }
 0x269   : > { %1926 = vst [vmem:[%s3328_s8 + $0x30] sm:$0xf] %v1912_v53 }
 0x26a   : > { %1927 = vst [vmem:[%s3328_s8 + $0x34] sm:$0x3] %v1913_v35  ;;  %v1953_v21 = vld [vmem:[%s3328_s8] sm:$0xf] (%p2476_p8)  ;;  %v1955_v61 = vld [vmem:[%s3328_s8 + $0x4] sm:$0xf] (%p2476_p8) }
 0x26b   : > { %v1957_v51 = vld [vmem:[%s3328_s8 + $0x8] sm:$0xf]  ;;  %1954 = vst [vmem:[%s1936_s10] sm:$0xf] %v1953_v21  ;;  %v1959_v16 = vld [vmem:[%s3328_s8 + $0xc] sm:$0xf] }
 0x26c   : > { %1956 = vst [vmem:[%s1936_s10 + $0x8] sm:$0xf] %v1955_v61  ;;  %v1961_v54 = vld [vmem:[%s3328_s8 + $0x10] sm:$0xf]  ;;  %v1963_v17 = vld [vmem:[%s3328_s8 + $0x14] sm:$0xf] }
 0x26d   : > { %1958 = vst [vmem:[%s1936_s10 + $0x10] sm:$0xf] %v1957_v51  ;;  %v1965_v7 = vld [vmem:[%s3328_s8 + $0x18] sm:$0xf]  ;;  %v1967_v52 = vld [vmem:[%s3328_s8 + $0x1c] sm:$0xf] }
 0x26e   : > { %1960 = vst [vmem:[%s1936_s10 + $0x18] sm:$0xf] %v1959_v16  ;;  %v1969_v2 = vld [vmem:[%s3328_s8 + $0x20] sm:$0xf]  ;;  %v1971_v59 = vld [vmem:[%s3328_s8 + $0x24] sm:$0xf] }
 0x26f   : > { %1962 = vst [vmem:[%s1936_s10 + $0x20] sm:$0xf] %v1961_v54  ;;  %v1973_v49 = vld [vmem:[%s3328_s8 + $0x28] sm:$0xf]  ;;  %v1975_v25 = vld [vmem:[%s3328_s8 + $0x2c] sm:$0xf] }
 0x270   : > { %1964 = vst [vmem:[%s1936_s10 + $0x28] sm:$0xf] %v1963_v17  ;;  %v1977_v36 = vld [vmem:[%s3328_s8 + $0x30] sm:$0xf] }
 0x271   : > { %1966 = vst [vmem:[%s1936_s10 + $0x30] sm:$0xf] %v1965_v7  ;;  %v1979_v34 = vld [vmem:[%s3328_s8 + $0x34] sm:$0xf] }
 0x272   : > { %1968 = vst [vmem:[%s1936_s10 + $0x38] sm:$0xf] %v1967_v52 }
 0x273   : > { %1970 = vst [vmem:[%s1936_s10 + $0x40] sm:$0xf] %v1969_v2 }
 0x274   : > { %1972 = vst [vmem:[%s1936_s10 + $0x48] sm:$0xf] %v1971_v59 }
 0x275   : > { %1974 = vst [vmem:[%s1936_s10 + $0x50] sm:$0xf] %v1973_v49 }
 0x276   : > { %1976 = vst [vmem:[%s1936_s10 + $0x58] sm:$0xf] %v1975_v25 }
 0x277   : > { %1978 = vst [vmem:[%s1936_s10 + $0x60] sm:$0xf] %v1977_v36 }
 0x278   : > { %1980 = vst [vmem:[%s1936_s10 + $0x68] sm:$0xf] %v1979_v34 }
 0x279 PF: > { %p17_p4 = scmp.ge.s32.totalorder %s2454_s20, 4   ;;  %s3381_s15 = smov %s2387_s16 }
 0x27a   : > { %s3382_s16 = smov %s2391_s17  ;;  %s3383_s17 = smov %s2464_s23 }
 0x27b   : > { %s3384_s18 = smov %s2454_s20  ;;  %19 = sbr.rel (!%p17_p4) target bundleno = 5 (0x5), region = 186 }
 0x280   :  { %2042 = vsyncpa [#allocation5], 1 }
 0x281   :  { %2044 = vsyncpa [#allocation5 + $0x1], 1 }
 0x282   :  { %2045 = vsyncpa [#allocation7], 1 }
 0x283   :  { %2047 = vsyncpa [#allocation7 + $0x1], 1 }

// kernel: block_forward.3
= control target key start
LH: loop header
LB: loop body
LE: loop exit
PB: predicated region body
PF: predicated region fallthrough
CT: control target
= control target key end

     0   :  { %s11266_s0 = inlined_call_operand.vmem [shape: bf16[4,27,256], index: 0, kind: input, shape index: {}]   ;;  %s11267_s1 = inlined_call_operand.hbm [shape: bf16[10,256,256], index: 1, kind: input, shape index: {}]   ;;  %s11268_s2 = inlined_call_operand.hbm [shape: f32[1,256], index: 2, kind: input, shape index: {}]   ;;  %s11269_s3 = inlined_call_operand.hbm [shape: f32[1,256], index: 3, kind: input, shape index: {}]   ;;  %s11270_s4 = inlined_call_operand.vmem [shape: f32[88,256], index: 4, kind: output, shape index: {}]  }
   0x1   :  { %11326 = sst [smem:[#allocation109_spill]] %s11267_s1 }
   0x2   :  { %11327 = sst [smem:[#allocation110_spill]] %s11268_s2 }
   0x3   :  { %9 = vsyncpa [#allocation4], 0 }
   0x4   :  { %11 = vsyncpa [#allocation4 + $0x1], 0 }
   0x5   :  { %12 = vsyncpa [#allocation6], 0 }
   0x6   :  { %14 = vsyncpa [#allocation6 + $0x1], 0  ;;  %s8234_s15 = smov 0   ;;  %s8236_s16 = smov 0  }
   0x7   :  { %s8238_s17 = smov 0   ;;  %s8240_s18 = smov 0  }
   0x8 LB: > { %s8253_s19 = sadd.s32 4294967295, %s8203_s18   ;;  %s8256_s20 = sadd.s32 1, %s8203_s18   ;;  %s8203_s18 = sphi %s8240_s18, %s11670_s18   ;;  %s8199_s17 = sphi %s8238_s17, %s11669_s17   ;;  %s8195_s16 = sphi %s8236_s16, %s11668_s16   ;;  %s8191_s15 = sphi %s8234_s15, %s11667_s15  }
   0x9   : > { %s45_s21 = ssub.s32 %s8203_s18, %s8256_s20  ;;  %s48_s22 = sadd.s32 1, %s8199_s17 }
   0xa   : > { %p46_p0 = scmp.eq.s32.totalorder %s45_s21, 0  ;;  %p55_p1 = scmp.ne.s32.totalorder %s8199_s17, %s8195_s16 }
   0xb   : > { %p56_p2 = scmp.eq.s32.totalorder %s8203_s18, 0  ;;  %p61_p3 = scmp.ne.s32.totalorder %s8195_s16, %s8191_s15 }
   0xc   : > { %s8266_s23 = scalar_select %p46_p0, %s8199_s17, %s48_s22  }
   0xd   : > { %p57_p4 = por %p56_p2, %p55_p1  ;;  %p62_p5 = scmp.eq.s32.totalorder %s8253_s19, 0 }
   0xe   : > { %p137_p6 = scmp.eq.s32.totalorder %s8253_s19, 1  ;;  %p8021_p8 = scmp.lt.s32.totalorder %s8203_s18, 2 }
   0xf   : > { %p8270_p7 = por %p62_p5, %p61_p3  ;;  %s8280_s26 = sand.u32 1, %s8199_s17  }
  0x10   : > { %p8275_p9 = por %p137_p6, %p55_p1  ;;  %s8002_s27 = smul.u32 1280, %s8280_s26 }
  0x11   : > { %p8283_p10 = pnand %p8021_p8, %p57_p4  ;;  %s187_s29 = sand.u32 1, %s8203_s18  }
  0x12   : > { %s11331_s2 = sld [smem:[#allocation110_spill]]  ;;  %s190_s7 = scalar_lea.vmem [#allocation5], %s8280_s26 }
  0x13   : > { %s197_s8 = sshll.u32 %s190_s7, 4  ;;  %p6690_p11 = scmp.ge.s32.totalorder %s8203_s18, 1  ;;  %s198_s8 = int_to_ptr.vmem [resolvable:$true] %s197_s8 }
  0x14   : > { %s8294_s10 = scalar_lea.sflag [#allocation6], %s187_s29  ;;  %p8079_p13 = pneg %p8283_p10 }
  0x18   : > { %s193_s6 = scalar_lea.hbm %s11331_s2, %s8203_s18  ;;  %s8082_s15 = scalar_lea.hbm %s11331_s2, 2 }
  0x19   : > { %s195_s9 = sshll.u32 %s193_s6, 4  ;;  %s196_s9 = int_to_ptr.hbm [resolvable:$true] %s195_s9 }
  0x1a   : > { %s8075_s11 = sshra.s32 %s196_s9, 4  ;;  %s8076_s11 = int_to_ptr.hbm [resolvable:$true] %s8075_s11 }
  0x1b   : > { %s8077_s12 = scalar_lea.hbm %s8076_s11, 1  ;;  %p8083_p2 = scmp.lt.s32.totalorder %s8076_s11, %s11331_s2 }
  0x1c   : > { %p8078_p12 = scmp.ne.s32.totalorder %s8076_s11, %s8077_s12  ;;  %p8084_p3 = scmp.lt.s32.totalorder %s8082_s15, %s8077_s12 }
  0x1e   : > { %p8080_p0 = pnand %p8079_p13, %p8078_p12  ;;  %p8085_p4 = por %p8084_p3, %p8083_p2 }
  0x20   : > { %p8081_p1 = pneg %p8080_p0 }
  0x22   : > { %p8086_p5 = pnand %p8085_p4, %p8081_p1 }
  0x24   : > { %8089 = shalt.err (!%p8086_p5)
}
  0x25   : > { %8017 = dma.hbm_to_vmem [thread:$0]  (!%p8283_p10), %s196_s9, 16, %s198_s8, %s8294_s10  }
  0x26   : > { %p219_p6 = scmp.lt.s32.totalorder %s8203_s18, 3  ;;  %s6689_s29 = sshll.u32 %s8203_s18, 2 }
  0x27   : > { %s11333_s1 = sld [smem:[#allocation109_spill]]  ;;  %s170_s12 = scalar_lea.vmem [#allocation3], %s8002_s27 }
  0x28   : > { %p8314_p8 = pnand %p6690_p11, %p219_p6  ;;  %s177_s13 = sshll.u32 %s170_s12, 4  ;;  %s178_s13 = int_to_ptr.vmem [resolvable:$true] %s177_s13 }
  0x29   : > { %s167_s14 = scalar_lea.sflag [#allocation4], %s8280_s26 }
  0x2d   : > { %s174_s7 = scalar_lea.hbm %s11333_s1, %s6689_s29  ;;  %s8112_s22 = scalar_lea.hbm %s11333_s1, 2560 }
  0x2e   : > { %s175_s11 = sshll.u32 %s174_s7, 4  ;;  %s176_s11 = int_to_ptr.hbm [resolvable:$true] %s175_s11 }
  0x2f   : > { %s8105_s15 = sshra.s32 %s176_s11, 4  ;;  %s8106_s15 = int_to_ptr.hbm [resolvable:$true] %s8105_s15 }
  0x30   : > { %s8107_s8 = scalar_lea.hbm %s8106_s15, 1280  ;;  %p8113_p1 = scmp.lt.s32.totalorder %s8106_s15, %s11333_s1 }
  0x31   : > { %p8108_p12 = scmp.ne.s32.totalorder %s8106_s15, %s8107_s8  ;;  %p8114_p2 = scmp.lt.s32.totalorder %s8112_s22, %s8107_s8 }
  0x33   : > { %p8110_p11 = pnand %p8108_p12, %p8079_p13  ;;  %p8115_p3 = por %p8114_p2, %p8113_p1 }
  0x35   : > { %p8111_p0 = pneg %p8110_p11 }
  0x37   : > { %p8116_p4 = pnand %p8115_p3, %p8111_p0 }
  0x39   : > { %8119 = shalt.err (!%p8116_p4)
}
  0x3a   : > { %s8205_s27 = smov 128   ;;  %s8206_s6 = smov 64  }
  0x3b   : > { %s8207_s7 = smov 4   ;;  %s210_s21 = scalar_lea.hbm %s11269_s3, %s8203_s18 }
  0x3c   : > { %8014 = dma.hbm_to_vmem [thread:$0]  (!%p8283_p10), %s176_s11, 20480, %s178_s13, %s167_s14, %s8205_s27, %s8206_s6, %s8207_s7  }
  0x3d   : > { %s207_s2 = scalar_lea.vmem [#allocation7], %s8280_s26  ;;  %s212_s15 = sshll.u32 %s210_s21, 4  ;;  %s213_s15 = int_to_ptr.hbm [resolvable:$true] %s212_s15 }
  0x3e   : > { %s214_s29 = sshll.u32 %s207_s2, 4  ;;  %s8135_s8 = sshra.s32 %s213_s15, 4  ;;  %s215_s29 = int_to_ptr.vmem [resolvable:$true] %s214_s29  ;;  %s8136_s8 = int_to_ptr.hbm [resolvable:$true] %s8135_s8 }
  0x3f   : > { %s8137_s22 = scalar_lea.hbm %s8136_s8, 1  ;;  %s8142_s11 = scalar_lea.hbm %s11269_s3, 2 }
  0x40   : > { %p8138_p5 = scmp.ne.s32.totalorder %s8136_s8, %s8137_s22  ;;  %p8143_p11 = scmp.lt.s32.totalorder %s8136_s8, %s11269_s3 }
  0x41   : > { %p8144_p0 = scmp.lt.s32.totalorder %s8142_s11, %s8137_s22 }
  0x42   : > { %p8140_p6 = pnand %p8138_p5, %p8079_p13 }
  0x43   : > { %p8145_p1 = por %p8144_p0, %p8143_p11 }
  0x44   : > { %p8141_p12 = pneg %p8140_p6 }
  0x46   : > { %p8146_p2 = pnand %p8145_p1, %p8141_p12 }
  0x48   : > { %8149 = shalt.err (!%p8146_p2)
}
  0x49   : > { %8020 = dma.hbm_to_vmem [thread:$0]  (!%p8283_p10), %s213_s15, 16, %s215_s29, %s8294_s10  }
  0x4a   : > { %223 = sbr.rel (%p8314_p8) target bundleno = 1617 (0x651), region = 36 }
  0x4f   : > { %s8355_s2 = sand.u32 1, %s8195_s16  }
  0x50   : > { %s8003_s1 = smul.u32 1280, %s8355_s2  ;;  %s226_s18 = scalar_lea.sflag [#allocation4], %s8355_s2 }
  0x52   : > { %s8359_s26 = scalar_lea.vmem [#allocation3], %s8003_s1 }
  0x53   : > { %8182 = dma.done.wait (%p8270_p7), %s226_s18, 20480  }
  0x54   : > { %8184 = vsyncadd (%p8270_p7), %s226_s18, 4294946816  ;;  %s235_s28 = sand.u32 1, %s8253_s19   ;;  %s238_s30 = scalar_lea.vmem [#allocation5], %s8355_s2 }
  0x55   : > { %s236_s10 = scalar_lea.sflag [#allocation6], %s235_s28 }
  0x56   : > { %8186 = dma.done.wait (%p8270_p7), %s236_s10, 32  }
  0x57   : > { %8188 = vsyncadd (%p8270_p7), %s236_s10, 4294967264  ;;  %v8208_v0 = vmov 0   ;;  %vm690_vm0 = vsmask.f32 256  ;;  %vm691_vm1 = vsmask.f32 1284 }
  0x58   : > { %281 = vst [vmem:[#allocation2 + $0x58] sm:$0x11] %v8208_v0  ;;  %vm692_vm2 = vmor %vm690_vm0, %vm691_vm1  ;;  %vm693_vm3 = vsmask.f32 2312  ;;  %v7865_v1 = vld [vmem:[%s8359_s26 + $0xb8] sm:$0xff]  ;;  %v7864_v3 = vld [vmem:[%s8359_s26 + $0xb0] sm:$0xff] }
  0x59   : > { %282 = vst [vmem:[#allocation2] sm:$0x11] %v8208_v0  ;;  %v7873_v2 = vld [vmem:[%s8359_s26 + $0xf8] sm:$0xff]  ;;  %vm694_vm4 = vmor %vm692_vm2, %vm693_vm3  ;;  %vm695_vm5 = vsmask.f32 3340  ;;  %1297 = vmatpush.bf16.msra.mxu0 %v7865_v1  ;;  %v7872_v4 = vld [vmem:[%s8359_s26 + $0xf0] sm:$0xff] }
  0x5a   : > { %283 = vst [vmem:[#allocation2 + $0x30] sm:$0x11] %v8208_v0  ;;  %1335 = vmatpush.bf16.msra.mxu1 %v7873_v2  ;;  %vm336_vm6 = vcmask 1040384   ;;  %vm337_vm7 = vcmask 1044484   ;;  %vm8375_vm8 = vmor %vm694_vm4, %vm695_vm5  ;;  %v7863_v6 = vld [vmem:[%s8359_s26 + $0xa8] sm:$0xff]  ;;  %v304_v7 = vld [vmem:[%s11266_s0] sm:$0xff] }
  0x5b   : > { %284 = vst [vmem:[#allocation2 + $0x60] sm:$0x11] %v8208_v0  ;;  %v305_v8 = vld [vmem:[%s11266_s0 + $0x8] sm:$0xff]  ;;  %vm697_vm9 = vsmask.f32 4368  ;;  %v7871_v9 = vld [vmem:[%s8359_s26 + $0xe8] sm:$0xff]  ;;  %vm8396_vm10 = vmor %vm336_vm6, %vm337_vm7 }
  0x5c   : > { %v8390_v10 = vld [vmem:[%s11266_s0 + $0x10] sm:$0xff]  ;;  %v339_v11 = vrot.slane %v304_v7, 7  ;;  %v341_v12 = vrot.slane %v305_v8, 7  ;;  %v308_v13 = vld [vmem:[%s11266_s0 + $0x20] sm:$0xff]  ;;  %vm699_vm11 = vsmask.f32 5396  ;;  %vm8412_vm12 = vmor %vm8375_vm8, %vm697_vm9 }
  0x5d   : > { %1298 = vmatpush.bf16.msra.mxu0 %v7864_v3  ;;  %v11275_v15 = vrot.slane %v8390_v10, 7  ;;  %v309_v16 = vld [vmem:[%s11266_s0 + $0x28] sm:$0xff]  ;;  %v349_v17 = vrot.slane %v308_v13, 7  ;;  %v8407_v18 = vld [vmem:[%s11266_s0 + $0x30] sm:$0xff]  ;;  %vm466_vm13 = vcmask 1041409   ;;  %vm470_vm14 = vcmask 1042434   ;;  %vm8433_vm0 = vmor %vm8412_vm12, %vm699_vm11 }
  0x5e   : > { %1336 = vmatpush.bf16.msra.mxu1 %v7872_v4  ;;  %v340_v19 = vrot.slane %v339_v11, 4  ;;  %v343_v20 = vrot.slane %v341_v12, 4  ;;  %395 = vst [vmem:[#allocation2 + $0x58] sm:$0xee] %v339_v11  ;;  %v351_v22 = vrot.slane %v309_v16, 7  ;;  %v11274_v24 = vrot.slane %v8407_v18, 7 }
  0x5f   : > { %v350_v23 = vrot.slane %v349_v17, 4  ;;  %408 = vst [vmem:[#allocation2] sm:$0xee] %v349_v17  ;;  %v7862_v25 = vld [vmem:[%s8359_s26 + $0xa0] sm:$0xff]  ;;  %vm474_vm15 = vcmask 1043459   ;;  %v8445_v34 = vld [vmem:[%s11266_s0 + $0x40] sm:$0xff] }
  0x60   : > { %v7870_v26 = vld [vmem:[%s8359_s26 + $0xe0] sm:$0xff]  ;;  %v342_v27 = vsel %vm8396_vm10, %v340_v19, %v341_v12  ;;  %v8425_v28 = vsel %vm8396_vm10, %v343_v20, %v11275_v15  ;;  %v353_v29 = vrot.slane %v351_v22, 4  ;;  %vm701_vm1 = vsmask.f32 6424  ;;  %v7861_v40 = vld [vmem:[%s8359_s26 + $0x98] sm:$0xff]  ;;  %v7860_v59 = vld [vmem:[%s8359_s26 + $0x90] sm:$0xff] }
  0x61   : > { %1299 = vmatpush.bf16.msra.mxu0 %v7863_v6  ;;  %396 = vst [vmem:[#allocation2 + $0x8] sm:$0xff] %v342_v27  ;;  %v451_v30 = vrot.slane %v342_v27, 3  ;;  %v8428_v31 = vrot.slane %v8425_v28, 3  ;;  %vm703_vm2 = vsmask.f32 7452  ;;  %v8440_v33 = vsel %vm8396_vm10, %v350_v23, %v351_v22  ;;  %v7869_v41 = vld [vmem:[%s8359_s26 + $0xd8] sm:$0xff]  ;;  %vm702_vm3 = vmor %vm8433_vm0, %vm701_vm1 }
  0x62   : > { %1337 = vmatpush.bf16.msra.mxu1 %v7871_v9  ;;  %397 = vst [vmem:[#allocation2 + $0x18] sm:$0xff] %v8425_v28  ;;  %v8451_v35 = vsel %vm8396_vm10, %v353_v29, %v11274_v24  ;;  %v359_v49 = vrot.slane %v8445_v34, 7  ;;  %vm8484_vm4 = vmor %vm702_vm3, %vm703_vm2  ;;  %v11347_v54 = vmov 0  ;;  %v7868_v60 = vld [vmem:[%s8359_s26 + $0xd0] sm:$0xff]  ;;  %v7859_v5 = vld [vmem:[%s8359_s26 + $0x88] sm:$0xff]  ;;  %vm285_vm5 = vcmask 1043458  }
  0x63   : > { %v8454_v36 = vsel %vm336_vm6, %v342_v27, %v451_v30  ;;  %v481_v37 = vsel %vm466_vm13, %v342_v27, %v451_v30  ;;  %v484_v38 = vsel %vm470_vm14, %v342_v27, %v451_v30  ;;  %v487_v39 = vsel %vm474_vm15, %v342_v27, %v451_v30  ;;  %409 = vst [vmem:[#allocation2 + $0x40] sm:$0xff] %v8440_v33  ;;  %v7849_v12 = vld [vmem:[%s8359_s26 + $0x38] sm:$0xff]  ;;  %v7867_v20 = vld [vmem:[%s8359_s26 + $0xc8] sm:$0xff]  ;;  %v7854_v34 = vld [vmem:[%s8359_s26 + $0x60] sm:$0xff]  ;;  %s8004_s13 = smul.u32 88, %s8355_s2 }
  0x64   : > { %11342 = vst [vmem:[#allocation11_spill] sm:$0xff] %v8454_v36  ;;  %v8462_v42 = vrot.slane %v481_v37, 1  ;;  %v8464_v43 = vrot.slane %v484_v38, 2  ;;  %v8466_v44 = vrot.slane %v487_v39, 3  ;;  %v8471_v45 = vsel %vm336_vm6, %v8425_v28, %v8428_v31  ;;  %1552 = vmatpush.bf16.msra.mxu2 %v7849_v12  ;;  %v7857_v32 = vld [vmem:[%s8359_s26 + $0x78] sm:$0xff]  ;;  %v7844_v24 = vld [vmem:[%s8359_s26 + $0x10] sm:$0xff] }
  0x65   : > { %1300 = vmatpush.bf16.msra.mxu0 %v7862_v25  ;;  %11346 = vst [vmem:[#allocation15_spill] sm:$0xff] %v8471_v45  ;;  %v426_v46 = vld [vmem:[#allocation2 + $0x58] sm:$0xff]  ;;  %v733_v47 = vshll.u32 %v8454_v36, 16  ;;  %v736_v48 = vshrl.u32 %v8454_v36, 16  ;;  %v11348_v54 = vsel %vm8484_vm4, 4294967295, %v11347_v54  ;;  %v764_v57 = vshll.u32 %v8471_v45, 16  ;;  %1590 = vmatpush.bf16.msra.mxu3 %v7857_v32 }
  0x66   : > { %1338 = vmatpush.bf16.msra.mxu1 %v7870_v26  ;;  %11343 = vst [vmem:[#allocation12_spill] sm:$0xff] %v8462_v42  ;;  %v450_v50 = vrot.slane %v426_v46, 3  ;;  %v741_v51 = vshll.u32 %v8462_v42, 16  ;;  %v744_v52 = vshrl.u32 %v8462_v42, 16  ;;  %v749_v53 = vshll.u32 %v8464_v43, 16  ;;  %v429_v11 = vld [vmem:[#allocation2] sm:$0xff] }
  0x67   : > { %11344 = vst [vmem:[#allocation13_spill] sm:$0xff] %v8464_v43  ;;  %v752_v55 = vshrl.u32 %v8464_v43, 16  ;;  %v757_v56 = vshll.u32 %v8466_v44, 16  ;;  %v5075_v58 = vsel %vm466_vm13, %v8425_v28, %v8428_v31  ;;  %v760_v0 = vshrl.u32 %v8466_v44, 16 }
  0x68   : > { %11345 = vst [vmem:[#allocation14_spill] sm:$0xff] %v8466_v44  ;;  %v8497_v61 = vsel %vm336_vm6, %v426_v46, %v450_v50  ;;  %v467_v62 = vsel %vm466_vm13, %v426_v46, %v450_v50  ;;  %v471_v63 = vsel %vm470_vm14, %v426_v46, %v450_v50  ;;  %v475_v3 = vsel %vm474_vm15, %v426_v46, %v450_v50 }
  0x69   : > { %410 = vst [vmem:[#allocation2 + $0x78] sm:$0xff] %v8451_v35  ;;  %1301 = vmatpush.bf16.msra.mxu0 %v7861_v40  ;;  %v8502_v1 = vrot.slane %v467_v62, 1  ;;  %v8504_v2 = vrot.slane %v471_v63, 2  ;;  %v705_v4 = vshrl.u32 %v8497_v61, 16  ;;  %v8511_v6 = vrot.slane %v475_v3, 3 }
  0x6a   : > { %11349 = vst [vmem:[#allocation16_spill] sm:$0xff] %v11348_v54  ;;  %1339 = vmatpush.bf16.msra.mxu1 %v7869_v41  ;;  %v743_v7 = vsel %vm8484_vm4, %v736_v48, %v741_v51  ;;  %v751_v8 = vsel %vm8484_vm4, %v744_v52, %v749_v53  ;;  %v759_v9 = vsel %vm8484_vm4, %v752_v55, %v757_v56  ;;  %v454_v25 = vrot.slane %v8440_v33, 3 }
  0x6b   : > { %414 = vst [vmem:[#allocation2 + $0x30] sm:$0xee] %v359_v49  ;;  %v710_v13 = vshll.u32 %v8502_v1, 16  ;;  %v713_v16 = vshrl.u32 %v8502_v1, 16  ;;  %v718_v17 = vshll.u32 %v8504_v2, 16  ;;  %v721_v19 = vshrl.u32 %v8504_v2, 16 }
  0x6c   : > { %1095 = vst [vmem:[#allocation1 + $0x4] ss:$9 sm:$0xff] %v743_v7  ;;  %v726_v21 = vshll.u32 %v8511_v6, 16  ;;  %v729_v22 = vshrl.u32 %v8511_v6, 16  ;;  %v5078_v23 = vsel %vm470_vm14, %v8425_v28, %v8428_v31  ;;  %v8535_v29 = vrot.slane %v5075_v58, 1 }
  0x6d   : > { %1302 = vmatpush.bf16.msra.mxu0 %v7860_v59  ;;  %1098 = vst [vmem:[#allocation1 + $0x5] ss:$9 sm:$0xff] %v751_v8  ;;  %v712_v26 = vsel %vm8484_vm4, %v705_v4, %v710_v13  ;;  %v720_v27 = vsel %vm8484_vm4, %v713_v16, %v718_v17  ;;  %v8540_v30 = vsel %vm474_vm15, %v8425_v28, %v8428_v31  ;;  %v8547_v39 = vrot.slane %v5078_v23, 2  ;;  %v7858_v28 = vld [vmem:[%s8359_s26 + $0x80] sm:$0xff] }
  0x6e   : > { %1340 = vmatpush.bf16.msra.mxu1 %v7868_v60  ;;  %1101 = vst [vmem:[#allocation1 + $0x6] ss:$9 sm:$0xff] %v759_v9  ;;  %v728_v37 = vsel %vm8484_vm4, %v721_v19, %v726_v21  ;;  %v735_v38 = vsel %vm8484_vm4, %v729_v22, %v733_v47  ;;  %v453_v40 = vrot.slane %v429_v11, 3  ;;  %v766_v41 = vsel %vm8484_vm4, %v760_v0, %v764_v57  ;;  %v7866_v31 = vld [vmem:[%s8359_s26 + $0xc0] sm:$0xff] }
  0x6f   : > { %11350 = vst [vmem:[#allocation17_spill] sm:$0xff] %v8535_v29  ;;  %v11272_v46 = vrot.slane %v8540_v30, 3  ;;  %v767_v50 = vshrl.u32 %v8471_v45, 16  ;;  %v514_v52 = vsel %vm466_vm13, %v8440_v33, %v454_v25  ;;  %v772_v53 = vshll.u32 %v8535_v29, 16 }
  0x70   : > { %11351 = vst [vmem:[#allocation18_spill] sm:$0xff] %v8540_v30  ;;  %v502_v48 = vsel %vm466_vm13, %v429_v11, %v453_v40  ;;  %v505_v47 = vsel %vm470_vm14, %v429_v11, %v453_v40  ;;  %v508_v51 = vsel %vm474_vm15, %v429_v11, %v453_v40  ;;  %v775_v55 = vshrl.u32 %v8535_v29, 16 }
  0x71   : > { %1083 = vst [vmem:[#allocation1] ss:$9 sm:$0xff] %v712_v26  ;;  %1303 = vmatpush.bf16.msra.mxu0 %v7859_v5  ;;  %v8563_v56 = vsel %vm336_vm6, %v429_v11, %v453_v40  ;;  %v8565_v57 = vrot.slane %v502_v48, 1  ;;  %v8567_v58 = vrot.slane %v505_v47, 2  ;;  %v780_v59 = vshll.u32 %v8547_v39, 16 }
  0x72   : > { %11352 = vst [vmem:[#allocation19_spill] sm:$0xff] %v8547_v39  ;;  %1341 = vmatpush.bf16.msra.mxu1 %v7867_v20  ;;  %v8570_v60 = vrot.slane %v508_v51, 3  ;;  %v8574_v62 = vsel %vm336_vm6, %v8440_v33, %v454_v25  ;;  %v8576_v63 = vrot.slane %v514_v52, 1  ;;  %v774_v0 = vsel %vm8484_vm4, %v767_v50, %v772_v53  ;;  %v8584_v7 = vld [vmem:[#allocation2 + $0x30] sm:$0xff] }
  0x73   : > { %1086 = vst [vmem:[#allocation1 + $0x1] ss:$9 sm:$0xff] %v720_v27  ;;  %v783_v3 = vshrl.u32 %v8547_v39, 16  ;;  %v788_v4 = vshll.u32 %v11272_v46, 16  ;;  %v791_v5 = vshrl.u32 %v8563_v56, 16  ;;  %v782_v8 = vsel %vm8484_vm4, %v775_v55, %v780_v59  ;;  %v7850_v39 = vld [vmem:[%s8359_s26 + $0x40] sm:$0xff] }
  0x74   : > { %1089 = vst [vmem:[#allocation1 + $0x2] ss:$9 sm:$0xff] %v728_v37  ;;  %v796_v9 = vshll.u32 %v8565_v57, 16  ;;  %v799_v11 = vshrl.u32 %v8565_v57, 16  ;;  %v804_v12 = vshll.u32 %v8567_v58, 16  ;;  %v807_v13 = vshrl.u32 %v8567_v58, 16 }
  0x75   : > { %1092 = vst [vmem:[#allocation1 + $0x3] ss:$9 sm:$0xff] %v735_v38  ;;  %1304 = vmatpush.bf16.msra.mxu0 %v7858_v28  ;;  %v812_v16 = vshll.u32 %v8570_v60, 16  ;;  %v815_v17 = vshrl.u32 %v8570_v60, 16  ;;  %v5099_v19 = vsel %vm470_vm14, %v8440_v33, %v454_v25  ;;  %v819_v20 = vshll.u32 %v8574_v62, 16 }
  0x76   : > { %1104 = vst [vmem:[#allocation1 + $0x7] ss:$9 sm:$0xff] %v766_v41  ;;  %1342 = vmatpush.bf16.msra.mxu1 %v7866_v31  ;;  %v5102_v21 = vsel %vm474_vm15, %v8440_v33, %v454_v25  ;;  %v8600_v22 = vrot.slane %v8584_v7, 3  ;;  %v639_v23 = vrot.slane %v8451_v35, 3  ;;  %v790_v32 = vsel %vm8484_vm4, %v783_v3, %v788_v4 }
  0x77   : > { %11353 = vst [vmem:[#allocation20_spill] sm:$0xff] %v8574_v62  ;;  %v8605_v37 = vrot.slane %v5099_v19, 2  ;;  %v798_v38 = vsel %vm8484_vm4, %v791_v5, %v796_v9  ;;  %v822_v40 = vshrl.u32 %v8574_v62, 16  ;;  %v827_v33 = vshll.u32 %v8576_v63, 16  ;;  %v313_v9 = vld [vmem:[%s11266_s0 + $0x48] sm:$0xff] }
  0x78   : > { %11354 = vst [vmem:[#allocation21_spill] sm:$0xff] %v8576_v63  ;;  %v657_v25 = vsel %vm466_vm13, %v8451_v35, %v639_v23  ;;  %v806_v41 = vsel %vm8484_vm4, %v799_v11, %v804_v12  ;;  %v8615_v28 = vrot.slane %v5102_v21, 3  ;;  %v660_v31 = vsel %vm470_vm14, %v8451_v35, %v639_v23  ;;  %v8653_v11 = vld [vmem:[%s11266_s0 + $0x50] sm:$0xff] }
  0x79   : > { %11355 = vst [vmem:[#allocation22_spill] sm:$0xff] %v8605_v37  ;;  %v814_v48 = vsel %vm8484_vm4, %v807_v13, %v812_v16  ;;  %v821_v47 = vsel %vm8484_vm4, %v815_v17, %v819_v20  ;;  %v535_v50 = vsel %vm466_vm13, %v8584_v7, %v8600_v22  ;;  %v538_v51 = vsel %vm470_vm14, %v8584_v7, %v8600_v22  ;;  %v7847_v16 = vld [vmem:[%s8359_s26 + $0x28] sm:$0xff]  ;;  %v8666_v17 = vld [vmem:[%s11266_s0 + $0x60] sm:$0xff] }
  0x7a   : > { %11356 = vst [vmem:[#allocation23_spill] sm:$0xff] %v8615_v28  ;;  %v8629_v52 = vrot.slane %v657_v25, 1  ;;  %v8633_v53 = vsel %vm474_vm15, %v8451_v35, %v639_v23  ;;  %v830_v55 = vshrl.u32 %v8576_v63, 16  ;;  %v835_v59 = vshll.u32 %v8605_v37, 16 }
  0x7b   : > { %11358 = vst [vmem:[#allocation25_spill] sm:$0xff] %v8633_v53  ;;  %v829_v3 = vsel %vm8484_vm4, %v822_v40, %v827_v33  ;;  %v8642_v4 = vsel %vm336_vm6, %v8451_v35, %v639_v23  ;;  %v8644_v5 = vrot.slane %v660_v31, 2  ;;  %v8658_v12 = vsel %vm336_vm6, %v8584_v7, %v8600_v22  ;;  %v7855_v40 = vld [vmem:[%s8359_s26 + $0x68] sm:$0xff] }
  0x7c   : > { %11357 = vst [vmem:[#allocation24_spill] sm:$0xff] %v8629_v52  ;;  %v838_v35 = vshrl.u32 %v8605_v37, 16  ;;  %v843_v13 = vshll.u32 %v8615_v28, 16  ;;  %v8668_v19 = vrot.slane %v535_v50, 1  ;;  %v8670_v20 = vrot.slane %v538_v51, 2  ;;  %v7846_v50 = vld [vmem:[%s8359_s26 + $0x20] sm:$0xff] }
  0x7d   : > { %v1105_v26 = vld [vmem:[#allocation1] sm:$0xff]  ;;  %v1106_v27 = vld [vmem:[#allocation1 + $0x9] sm:$0xff]  ;;  %11359 = vst [vmem:[#allocation26_spill] sm:$0xff] %v8642_v4  ;;  %v11271_v21 = vrot.slane %v8633_v53, 3  ;;  %v846_v23 = vshrl.u32 %v8615_v28, 16  ;;  %v861_v33 = vshrl.u32 %v8629_v52, 16 }
  0x7e   : > { %1305 = vmatmul.bf16.vlgmr.msra.gmra.mxu0 %v1105_v26  ;;  %1343 = vmatmul.bf16.vlgmr.msra.gmra.mxu1 %v1106_v27  ;;  %1108 = vst [vmem:[#allocation1] ss:$9 sm:$0xff] %v774_v0  ;;  %v7848_v0 = vld [vmem:[%s8359_s26 + $0x30] sm:$0xff]  ;;  %v837_v26 = vsel %vm8484_vm4, %v830_v55, %v835_v59  ;;  %v850_v27 = vshll.u32 %v8642_v4, 16  ;;  %v866_v25 = vshll.u32 %v8644_v5, 16  ;;  %v361_v31 = vrot.slane %v313_v9, 7 }
  0x7f   : > { %1110 = vst [vmem:[#allocation1 + $0x1] ss:$9 sm:$0xff] %v782_v8  ;;  %v7856_v8 = vld [vmem:[%s8359_s26 + $0x70] sm:$0xff]  ;;  %1553 = vmatpush.bf16.msra.mxu2 %v7848_v0  ;;  %v11273_v51 = vrot.slane %v8653_v11, 7  ;;  %v541_v55 = vsel %vm474_vm15, %v8584_v7, %v8600_v22  ;;  %v874_v59 = vshll.u32 %v11271_v21, 16  ;;  %v877_v7 = vshrl.u32 %v8658_v12, 16 }
  0x80   : > { %1112 = vst [vmem:[#allocation1 + $0x2] ss:$9 sm:$0xff] %v790_v32  ;;  %1591 = vmatpush.bf16.msra.mxu3 %v7856_v8  ;;  %v853_v32 = vshrl.u32 %v8642_v4, 16  ;;  %v363_v0 = vrot.slane %v361_v31, 4  ;;  %v852_v8 = vsel %vm8484_vm4, %v846_v23, %v850_v27  ;;  %v885_v23 = vshrl.u32 %v8668_v19, 16  ;;  %v7845_v27 = vld [vmem:[%s8359_s26 + $0x18] sm:$0xff] }
  0x81   : > { %1114 = vst [vmem:[#allocation1 + $0x3] ss:$9 sm:$0xff] %v798_v38  ;;  %v858_v38 = vshll.u32 %v8629_v52, 16  ;;  %vm286_vm7 = vsmask.f32 3338  ;;  %vm288_vm9 = vcmask 1047558  }
  0x82   : > { %1116 = vst [vmem:[#allocation1 + $0x4] ss:$9 sm:$0xff] %v806_v41  ;;  %v360_v41 = vrot.slane %v359_v49, 4  ;;  %vm287_vm8 = vmand %vm285_vm5, %vm286_vm7  ;;  %vm289_vm11 = vsmask.f32 7450  ;;  %v11372_v29 = vrot.slane %v8407_v18, 7 }
  0x83   : > { %11360 = vst [vmem:[#allocation27_spill] sm:$0xff] %v8644_v5  ;;  %1554 = vmatpush.bf16.msra.mxu2 %v7847_v16  ;;  %v860_v9 = vsel %vm8484_vm4, %v853_v32, %v858_v38  ;;  %v8714_v16 = vsel %vm8396_vm10, %v363_v0, %v11273_v51  ;;  %vm290_vm12 = vmand %vm288_vm9, %vm289_vm11  ;;  %v295_v53 = vld [vmem:[#allocation2 + $0x50] sm:$0xcc]  ;;  %vm398_vm1 = vcmask 1042432   ;;  %vm401_vm2 = vcmask 1046532  }
  0x84   : > { %1118 = vst [vmem:[#allocation1 + $0x5] ss:$9 sm:$0xff] %v814_v48  ;;  %v845_v48 = vsel %vm8484_vm4, %v838_v35, %v843_v13  ;;  %1592 = vmatpush.bf16.msra.mxu3 %v7855_v40  ;;  %v8697_v49 = vsel %vm8396_vm10, %v360_v41, %v361_v31  ;;  %v868_v35 = vsel %vm8484_vm4, %v861_v33, %v866_v25  ;;  %v882_v13 = vshll.u32 %v8668_v19, 16  ;;  %v8731_v33 = vld [vmem:[%s11266_s0 + $0x68] sm:$0xff]  ;;  %vm8791_vm0 = vmor %vm290_vm12, %vm287_vm8 }
  0x85   : > { %1120 = vst [vmem:[#allocation1 + $0x6] ss:$9 sm:$0xff] %v821_v47  ;;  %v869_v47 = vshrl.u32 %v8644_v5, 16  ;;  %v457_v22 = vrot.slane %v8697_v49, 3  ;;  %v8726_v40 = vrot.slane %v8714_v16, 3  ;;  %v7842_v5 = vld [vmem:[%s8359_s26] sm:$0xff] }
  0x86   : > { %1122 = vst [vmem:[#allocation1 + $0x7] ss:$9 sm:$0xff] %v829_v3  ;;  %v369_v3 = vrot.slane %v8666_v17, 7  ;;  %v8716_v17 = vrot.slane %v541_v55, 3  ;;  %v7853_v55 = vld [vmem:[%s8359_s26 + $0x58] sm:$0xff]  ;;  %v296_v4 = vsel %vm8791_vm0, 0, %v295_v53 }
  0x87   : > { %11361 = vst [vmem:[#allocation28_spill] sm:$0xff] %v8697_v49  ;;  %1555 = vmatpush.bf16.msra.mxu2 %v7846_v50  ;;  %v547_v32 = vsel %vm466_vm13, %v8697_v49, %v457_v22  ;;  %v550_v38 = vsel %vm470_vm14, %v8697_v49, %v457_v22  ;;  %v876_v31 = vsel %vm8484_vm4, %v869_v47, %v874_v59  ;;  %v890_v50 = vshll.u32 %v8670_v20, 16  ;;  %v8814_v53 = vld [vmem:[%s11266_s0 + $0x70] sm:$0xff] }
  0x88   : > { %415 = vst [vmem:[#allocation2 + $0x48] sm:$0xff] %v8697_v49  ;;  %1593 = vmatpush.bf16.msra.mxu3 %v7854_v34  ;;  %v8739_v0 = vsel %vm336_vm6, %v8697_v49, %v457_v22  ;;  %v553_v21 = vsel %vm474_vm15, %v8697_v49, %v457_v22  ;;  %v8743_v46 = vrot.slane %v547_v32, 1  ;;  %v8745_v51 = vrot.slane %v550_v38, 2  ;;  %v319_v49 = vld [vmem:[%s11266_s0 + $0x78] sm:$0x33] }
  0x89   : > { %420 = vst [vmem:[#allocation2 + $0x60] sm:$0xee] %v369_v3  ;;  %v669_v47 = vsel %vm466_vm13, %v8714_v16, %v8726_v40  ;;  %v672_v59 = vsel %vm470_vm14, %v8714_v16, %v8726_v40  ;;  %v8753_v34 = vrot.slane %v553_v21, 3  ;;  %v898_v22 = vshll.u32 %v8716_v17, 16 }
  0x8a   : > { %416 = vst [vmem:[#allocation2 + $0x68] sm:$0xff] %v8714_v16  ;;  %v8761_v38 = vsel %vm336_vm6, %v8714_v16, %v8726_v40  ;;  %v901_v21 = vshrl.u32 %v8716_v17, 16  ;;  %v8770_v32 = vrot.slane %v672_v59, 2  ;;  %v916_v15 = vshrl.u32 %v8743_v46, 16  ;;  %v292_v59 = vld [vmem:[#allocation2 + $0x28] sm:$0xcc] }
  0x8b   : > { %11362 = vst [vmem:[#allocation29_spill] sm:$0xff] %v8739_v0  ;;  %1556 = vmatpush.bf16.msra.mxu2 %v7845_v27  ;;  %v908_v27 = vshrl.u32 %v8739_v0, 16  ;;  %v293_v52 = vsel %vm8791_vm0, 0, %v292_v59  ;;  %v311_v59 = vld [vmem:[%s11266_s0 + $0x38] sm:$0x33]  ;;  %v356_v45 = vrot.slane %v11372_v29, 4 }
  0x8c   : > { %11363 = vst [vmem:[#allocation30_spill] sm:$0xff] %v8743_v46  ;;  %1594 = vmatpush.bf16.msra.mxu3 %v7853_v55  ;;  %v929_v55 = vshll.u32 %v8753_v34, 16  ;;  %vm399_vm3 = vsmask.f32 2304  ;;  %v11373_v18 = vrot.slane %v8653_v11, 7 }
  0x8d   : > { %v1123_v25 = vld [vmem:[#allocation1] sm:$0xff]  ;;  %v1124_v41 = vld [vmem:[#allocation1 + $0x9] sm:$0xff]  ;;  %11364 = vst [vmem:[#allocation31_spill] sm:$0xff] %v8745_v51  ;;  %vm400_vm5 = vmand %vm398_vm1, %vm399_vm3  ;;  %vm402_vm7 = vsmask.f32 6400 }
  0x8e   : > { %1126 = vst [vmem:[#allocation1] ss:$9 sm:$0xff] %v837_v26  ;;  %1310 = vmatmul.bf16.gmra.mxu0 %v1123_v25  ;;  %1348 = vmatmul.bf16.gmra.mxu1 %v1124_v41  ;;  %v893_v26 = vshrl.u32 %v8670_v20, 16  ;;  %v8763_v25 = vrot.slane %v669_v47, 1  ;;  %v884_v41 = vsel %vm8484_vm4, %v877_v7, %v882_v13  ;;  %v892_v47 = vsel %vm8484_vm4, %v885_v23, %v890_v50  ;;  %v7852_v7 = vld [vmem:[%s8359_s26 + $0x50] sm:$0xff]  ;;  %v7851_v23 = vld [vmem:[%s8359_s26 + $0x48] sm:$0xff]  ;;  %vm403_vm8 = vmand %vm401_vm2, %vm402_vm7 }
  0x8f   : > { %1128 = vst [vmem:[#allocation1 + $0x1] ss:$9 sm:$0xff] %v845_v48  ;;  %v8766_v48 = vrot.slane %v369_v3, 4  ;;  %v913_v3 = vshll.u32 %v8743_v46, 16  ;;  %1557 = vmatpush.bf16.msra.mxu2 %v7844_v24  ;;  %v301_v13 = vld [vmem:[#allocation2 + $0x10] sm:$0xcc]  ;;  %vm8852_vm9 = vmor %vm403_vm8, %vm400_vm5 }
  0x90   : > { %11365 = vst [vmem:[#allocation32_spill] sm:$0xff] %v8753_v34  ;;  %1595 = vmatpush.bf16.msra.mxu3 %v7852_v7  ;;  %v944_v50 = vshll.u32 %v8763_v25, 16  ;;  %v947_v24 = vshrl.u32 %v8763_v25, 16  ;;  %v298_v7 = vld [vmem:[#allocation2 + $0x20] sm:$0xcc]  ;;  %v366_v29 = vrot.slane %v11373_v18, 4 }
  0x91   : > { %1130 = vst [vmem:[#allocation1 + $0x2] ss:$9 sm:$0xff] %v852_v8  ;;  %v905_v8 = vshll.u32 %v8739_v0, 16  ;;  %v299_v30 = vsel %vm8791_vm0, 0, %v298_v7  ;;  %v900_v7 = vsel %vm8484_vm4, %v893_v26, %v898_v22  ;;  %v357_v22 = vrot.slane %v311_v59, 7 }
  0x92   : > { %11366 = vst [vmem:[#allocation33_spill] sm:$0xff] %v8761_v38 }
  0x93   : > { %11367 = vst [vmem:[#allocation34_spill] sm:$0xff] %v8763_v25  ;;  %v307_v25 = vld [vmem:[%s11266_s0 + $0x18] sm:$0x33] }
  0x94   : > { %1132 = vst [vmem:[#allocation1 + $0x3] ss:$9 sm:$0xff] %v860_v9  ;;  %v921_v9 = vshll.u32 %v8745_v51, 16  ;;  %1596 = vmatpush.bf16.msra.mxu3 %v7851_v23  ;;  %v907_v23 = vsel %vm8484_vm4, %v901_v21, %v905_v8  ;;  %v347_v26 = vrot.slane %v307_v25, 7  ;;  %v915_v8 = vsel %vm8484_vm4, %v908_v27, %v913_v3 }
  0x95   : > { %11368 = vst [vmem:[#allocation35_spill] sm:$0xff] %v8770_v32  ;;  %v11374_v25 = vshrl.u32 %v8745_v51, 16 }
  0x96   : > { %1134 = vst [vmem:[#allocation1 + $0x4] ss:$9 sm:$0xff] %v868_v35  ;;  %v7843_v35 = vld [vmem:[%s8359_s26 + $0x8] sm:$0xff] }
  0x97   : > { %1136 = vst [vmem:[#allocation1 + $0x5] ss:$9 sm:$0xff] %v876_v31  ;;  %v939_v31 = vshrl.u32 %v8761_v38, 16  ;;  %1558 = vmatpush.bf16.msra.mxu2 %v7843_v35  ;;  %v302_v35 = vsel %vm8791_vm0, 0, %v301_v13  ;;  %v11371_v13 = vrot.slane %v8390_v10, 7  ;;  %v923_v10 = vsel %vm8484_vm4, %v916_v15, %v921_v9 }
  0x98   : > { %1138 = vst [vmem:[#allocation1 + $0x6] ss:$9 sm:$0xff] %v884_v41  ;;  %v952_v41 = vshll.u32 %v8770_v32, 16  ;;  %1597 = vmatpush.bf16.msra.mxu3 %v7850_v39  ;;  %v931_v59 = vsel %vm8484_vm4, %v11374_v25, %v929_v55  ;;  %v11375_v15 = vshll.u32 %v8761_v38, 16  ;;  %v11376_v39 = vshrl.u32 %v8753_v34, 16  ;;  %v435_v55 = vld [vmem:[#allocation2 + $0x60] sm:$0xff] }
  0x99   : > { %1140 = vst [vmem:[#allocation1 + $0x7] ss:$9 sm:$0xff] %v892_v47  ;;  %v346_v47 = vrot.slane %v11371_v13, 4  ;;  %v946_v27 = vsel %vm8484_vm4, %v939_v31, %v944_v50  ;;  %v377_v50 = vrot.slane %v319_v49, 7 }
  0x9a   : > { %294 = vst [vmem:[#allocation2 + $0x28] sm:$0xcc] %v293_v52  ;;  %v315_v52 = vld [vmem:[%s11266_s0 + $0x58] sm:$0x33]  ;;  %v938_v11 = vsel %vm8484_vm4, %v11376_v39, %v11375_v15 }
  0x9b   : > { %297 = vst [vmem:[#allocation2 + $0x50] sm:$0xcc] %v296_v4  ;;  %1559 = vmatpush.bf16.msra.mxu2 %v7842_v5  ;;  %v374_v5 = vrot.slane %v8814_v53, 7  ;;  %v348_v3 = vsel %vm8396_vm10, %v346_v47, %v347_v26  ;;  %v11379_v53 = vrot.slane %v8731_v33, 7  ;;  %v459_v26 = vrot.slane %v435_v55, 3 }
  0x9c   : > { %300 = vst [vmem:[#allocation2 + $0x20] sm:$0xcc] %v299_v30  ;;  %v367_v30 = vrot.slane %v315_v52, 7  ;;  %v954_v52 = vsel %vm8484_vm4, %v947_v24, %v952_v41 }
  0x9d   : > { %303 = vst [vmem:[#allocation2 + $0x10] sm:$0xcc] %v302_v35  ;;  %v358_v35 = vsel %vm8396_vm10, %v356_v45, %v357_v22  ;;  %v376_v31 = vrot.slane %v374_v5, 4  ;;  %v8872_v45 = vsel %vm474_vm15, %v8714_v16, %v8726_v40  ;;  %v11381_v22 = vmov %v11379_v53 }
  0x9e   : > { %v368_v13 = vsel %vm8396_vm10, %v366_v29, %v367_v30  ;;  %11380 = vst [vmem:[#allocation36_spill] sm:$0xff] %v8872_v45  ;;  %v373_v24 = vrot.slane %v11381_v22, 4  ;;  %v568_v18 = vsel %vm466_vm13, %v435_v55, %v459_v26  ;;  %v571_v33 = vsel %vm470_vm14, %v435_v55, %v459_v26 }
  0x9f   : > { %v574_v29 = vsel %vm474_vm15, %v435_v55, %v459_v26  ;;  %v8898_v15 = vrot.slane %v568_v18, 1  ;;  %v8900_v39 = vrot.slane %v571_v33, 2 }
  0xa0   : > { %v1141_v4 = vld [vmem:[#allocation1] sm:$0xff]  ;;  %v1142_v21 = vld [vmem:[#allocation1 + $0x9] sm:$0xff]  ;;  %v8891_v30 = vsel %vm8396_vm10, %v373_v24, %v374_v5  ;;  %v8908_v5 = vsel %vm336_vm6, %v435_v55, %v459_v26 }
  0xa1   : > { %1144 = vst [vmem:[#allocation1] ss:$9 sm:$0xff] %v900_v7  ;;  %1315 = vmatmul.bf16.gmra.mxu0 %v1141_v4  ;;  %1353 = vmatmul.bf16.gmra.mxu1 %v1142_v21  ;;  %v8863_v7 = vsel %vm8396_vm10, %v8766_v48, %v11379_v53  ;;  %v378_v21 = vsel %vm8396_vm10, %v376_v31, %v377_v50  ;;  %v968_v26 = vshll.u32 %v8898_v15, 16  ;;  %v979_v22 = vshrl.u32 %v8900_v39, 16 }
  0xa2   : > { %1146 = vst [vmem:[#allocation1 + $0x1] ss:$9 sm:$0xff] %v907_v23  ;;  %v405_v23 = vld [vmem:[#allocation2 + $0x28] sm:$0x77]  ;;  %v411_v47 = vld [vmem:[#allocation2 + $0x50] sm:$0x77] }
  0xa3   : > { %1148 = vst [vmem:[#allocation1 + $0x2] ss:$9 sm:$0xff] %v915_v8  ;;  %v406_v48 = vsel %vm8852_vm9, %v348_v3, %v405_v23  ;;  %v417_v49 = vld [vmem:[#allocation2 + $0x20] sm:$0x77]  ;;  %v412_v41 = vsel %vm8852_vm9, %v358_v35, %v411_v47  ;;  %v460_v4 = vrot.slane %v8863_v7, 3  ;;  %v955_v3 = vshrl.u32 %v8770_v32, 16 }
  0xa4   : > { %1150 = vst [vmem:[#allocation1 + $0x3] ss:$9 sm:$0xff] %v923_v10  ;;  %v418_v40 = vsel %vm8852_vm9, %v368_v13, %v417_v49  ;;  %v423_v8 = vld [vmem:[#allocation2 + $0x10] sm:$0x77]  ;;  %v11287_v10 = vrot.slane %v8872_v45, 3  ;;  %v963_v47 = vshrl.u32 %v8908_v5, 16 }
  0xa5   : > { %1152 = vst [vmem:[#allocation1 + $0x4] ss:$9 sm:$0xff] %v931_v59  ;;  %v424_v25 = vsel %vm8852_vm9, %v378_v21, %v423_v8  ;;  %v580_v59 = vsel %vm466_vm13, %v8863_v7, %v460_v4  ;;  %v586_v14 = vsel %vm474_vm15, %v8863_v7, %v460_v4  ;;  %v8917_v35 = vsel %vm336_vm6, %v8863_v7, %v460_v4 }
  0xa6   : > { %1154 = vst [vmem:[#allocation1 + $0x5] ss:$9 sm:$0xff] %v938_v11  ;;  %v583_v11 = vsel %vm470_vm14, %v8863_v7, %v460_v4  ;;  %v960_v9 = vshll.u32 %v11287_v10, 16  ;;  %v8919_v53 = vrot.slane %v580_v59, 1  ;;  %v8923_v55 = vrot.slane %v586_v14, 3 }
  0xa7   : > { %1156 = vst [vmem:[#allocation1 + $0x6] ss:$9 sm:$0xff] %v946_v27  ;;  %v8910_v27 = vrot.slane %v574_v29, 3  ;;  %v8921_v23 = vrot.slane %v583_v11, 2  ;;  %v976_v49 = vshll.u32 %v8900_v39, 16  ;;  %v991_v4 = vshll.u32 %v8917_v35, 16 }
  0xa8   : > { %1158 = vst [vmem:[#allocation1 + $0x7] ss:$9 sm:$0xff] %v954_v52  ;;  %v641_v52 = vrot.slane %v8891_v30, 3  ;;  %v962_v13 = vsel %vm8484_vm4, %v955_v3, %v960_v9  ;;  %v970_v21 = vsel %vm8484_vm4, %v963_v47, %v968_v26  ;;  %v994_v8 = vshrl.u32 %v8917_v35, 16 }
  0xa9   : > { %407 = vst [vmem:[#allocation2 + $0x28] sm:$0x77] %v406_v48  ;;  %v971_v48 = vshrl.u32 %v8898_v15, 16  ;;  %v984_v24 = vshll.u32 %v8910_v27, 16  ;;  %v999_v18 = vshll.u32 %v8919_v53, 16  ;;  %v1002_v29 = vshrl.u32 %v8919_v53, 16 }
  0xaa   : > { %413 = vst [vmem:[#allocation2 + $0x50] sm:$0x77] %v412_v41  ;;  %v987_v41 = vshrl.u32 %v8910_v27, 16  ;;  %v1010_v11 = vshrl.u32 %v8921_v23, 16  ;;  %v1015_v14 = vshll.u32 %v8923_v55, 16  ;;  %v681_v3 = vsel %vm466_vm13, %v8891_v30, %v641_v52 }
  0xab   : > { %419 = vst [vmem:[#allocation2 + $0x20] sm:$0x77] %v418_v40  ;;  %v978_v40 = vsel %vm8484_vm4, %v971_v48, %v976_v49  ;;  %v986_v33 = vsel %vm8484_vm4, %v979_v22, %v984_v24  ;;  %v1001_v9 = vsel %vm8484_vm4, %v994_v8, %v999_v18  ;;  %v680_v26 = vsel %vm336_vm6, %v8891_v30, %v641_v52 }
  0xac   : > { %421 = vst [vmem:[#allocation2 + $0x70] sm:$0xff] %v8863_v7  ;;  %v993_v59 = vsel %vm8484_vm4, %v987_v41, %v991_v4  ;;  %v1017_v47 = vsel %vm8484_vm4, %v1010_v11, %v1015_v14  ;;  %v683_v48 = vrot.slane %v681_v3, 1  ;;  %v1018_v24 = vshrl.u32 %v8923_v55, 16 }
  0xad   : > { %422 = vst [vmem:[#allocation2 + $0x38] sm:$0xff] %v8891_v30  ;;  %v1022_v41 = vshll.u32 %v680_v26, 16  ;;  %v1025_v4 = vshrl.u32 %v680_v26, 16 }
  0xae   : > { %425 = vst [vmem:[#allocation2 + $0x10] sm:$0x77] %v424_v25  ;;  %v1007_v25 = vshll.u32 %v8921_v23, 16 }
  0xaf   : > { %v1159_v31 = vld [vmem:[#allocation1] sm:$0xff]  ;;  %v1160_v50 = vld [vmem:[#allocation1 + $0x9] sm:$0xff] }
  0xb0   : > { %1162 = vst [vmem:[#allocation1] ss:$9 sm:$0xff] %v962_v13  ;;  %v687_v13 = vsel %vm474_vm15, %v8891_v30, %v641_v52 }
  0xb1   : > { %1320 = vmatmul.bf16.gmra.mxu0 %v1159_v31  ;;  %1358 = vmatmul.bf16.gmra.mxu1 %v1160_v50  ;;  %1164 = vst [vmem:[#allocation1 + $0x1] ss:$9 sm:$0xff] %v970_v21  ;;  %v684_v31 = vsel %vm470_vm14, %v8891_v30, %v641_v52  ;;  %v1009_v50 = vsel %vm8484_vm4, %v1002_v29, %v1007_v25  ;;  %v689_v22 = vrot.slane %v687_v13, 3  ;;  %v1030_v21 = vshll.u32 %v683_v48, 16 }
  0xb2   : > { %1166 = vst [vmem:[#allocation1 + $0x2] ss:$9 sm:$0xff] %v978_v40  ;;  %v686_v49 = vrot.slane %v684_v31, 2  ;;  %v1033_v40 = vshrl.u32 %v683_v48, 16  ;;  %v1024_v29 = vsel %vm8484_vm4, %v1018_v24, %v1022_v41  ;;  %v428_v31 = vld [vmem:[#allocation2 + $0x18] sm:$0x77] }
  0xb3   : > { %1168 = vst [vmem:[#allocation1 + $0x3] ss:$9 sm:$0xff] %v986_v33  ;;  %v1046_v33 = vshll.u32 %v689_v22, 16  ;;  %v1032_v52 = vsel %vm8484_vm4, %v1025_v4, %v1030_v21  ;;  %v431_v48 = vld [vmem:[#allocation2 + $0x78] sm:$0x77] }
  0xb4   : > { %1170 = vst [vmem:[#allocation1 + $0x4] ss:$9 sm:$0xff] %v993_v59  ;;  %v1038_v8 = vshll.u32 %v686_v49, 16  ;;  %v1041_v18 = vshrl.u32 %v686_v49, 16  ;;  %v455_v49 = vrot.slane %v431_v48, 3 }
  0xb5   : > { %1172 = vst [vmem:[#allocation1 + $0x5] ss:$9 sm:$0xff] %v1001_v9 }
  0xb6   : > { %1174 = vst [vmem:[#allocation1 + $0x6] ss:$9 sm:$0xff] %v1009_v50  ;;  %v1040_v25 = vsel %vm8484_vm4, %v1033_v40, %v1038_v8  ;;  %v1048_v14 = vsel %vm8484_vm4, %v1041_v18, %v1046_v33  ;;  %v452_v50 = vrot.slane %v428_v31, 3  ;;  %v526_v22 = vsel %vm466_vm13, %v431_v48, %v455_v49 }
  0xb7   : > { %1176 = vst [vmem:[#allocation1 + $0x7] ss:$9 sm:$0xff] %v1017_v47  ;;  %v529_v24 = vsel %vm470_vm14, %v431_v48, %v455_v49  ;;  %v525_v21 = vsel %vm336_vm6, %v431_v48, %v455_v49  ;;  %v528_v40 = vrot.slane %v526_v22, 1  ;;  %v9037_v49 = vld [vmem:[#allocation2 + $0x78] sm:$0xff]  ;;  %v9040_v22 = vld [vmem:[#allocation2 + $0x40] sm:$0xff] }
  0xb8   : > { %v492_v13 = vsel %vm336_vm6, %v428_v31, %v452_v50 }
  0xbe   : > { %v1177_v59 = vld [vmem:[#allocation1] sm:$0xff]  ;;  %v1178_v11 = vld [vmem:[#allocation1 + $0x9] sm:$0xff] }
  0xbf   : > { %1180 = vst [vmem:[#allocation1] ss:$9 sm:$0xff] %v1024_v29 }
  0xc0   : > { %1182 = vst [vmem:[#allocation1 + $0x1] ss:$9 sm:$0xff] %v1032_v52  ;;  %v437_v52 = vld [vmem:[#allocation2 + $0x38] sm:$0x77] }
  0xc1   : > { %1325 = vmatmul.bf16.gmra.mxu0 %v1177_v59  ;;  %1363 = vmatmul.bf16.gmra.mxu1 %v1178_v11  ;;  %1184 = vst [vmem:[#allocation1 + $0x2] ss:$9 sm:$0xff] %v1040_v25  ;;  %v461_v25 = vrot.slane %v437_v52, 3 }
  0xc2   : > { %1186 = vst [vmem:[#allocation1 + $0x3] ss:$9 sm:$0xff] %v1048_v14 }
  0xc3   : > { %v592_v59 = vsel %vm466_vm13, %v437_v52, %v461_v25 }
  0xc4   : > { %v594_v11 = vrot.slane %v592_v59, 1 }
  0xc9   : > { %v1187_v3 = vld [vmem:[#allocation1] sm:$0xff]  ;;  %v1188_v9 = vld [vmem:[#allocation1 + $0x9] sm:$0xff] }
  0xca   : > { %1373 = vst [vmem:[#allocation1] ss:$9 sm:$0xff] %v8497_v61  ;;  %v493_v61 = vsel %vm466_vm13, %v428_v31, %v452_v50 }
  0xcb   : > { %1375 = vst [vmem:[#allocation1 + $0x1] ss:$9 sm:$0xff] %v8502_v1  ;;  %v496_v1 = vsel %vm470_vm14, %v428_v31, %v452_v50 }
  0xcc   : > { %1377 = vst [vmem:[#allocation1 + $0x2] ss:$9 sm:$0xff] %v8504_v2  ;;  %v495_v2 = vrot.slane %v493_v61, 1  ;;  %v498_v47 = vrot.slane %v496_v1, 2  ;;  %v9028_v61 = vld [vmem:[#allocation2 + $0x18] sm:$0xff] }
  0xcd   : > { %1379 = vst [vmem:[#allocation1 + $0x3] ss:$9 sm:$0xff] %v8511_v6 }
  0xce   : > { %1381 = vst [vmem:[#allocation1 + $0x4] ss:$9 sm:$0xff] %v8454_v36 }
  0xcf   : > { %1383 = vst [vmem:[#allocation1 + $0x5] ss:$9 sm:$0xff] %v8462_v42 }
  0xd0   : > { %1385 = vst [vmem:[#allocation1 + $0x6] ss:$9 sm:$0xff] %v8464_v43 }
  0xd1   : > { %1330 = vmatmul.bf16.gmra.mxu0 %v1187_v3  ;;  %1368 = vmatmul.bf16.gmra.mxu1 %v1188_v9  ;;  %1387 = vst [vmem:[#allocation1 + $0x7] ss:$9 sm:$0xff] %v8466_v44 }
  0xd8   : > { %v1388_v6 = vld [vmem:[#allocation1] sm:$0xff]  ;;  %v1389_v26 = vld [vmem:[#allocation1 + $0x9] sm:$0xff] }
  0xd9   : > { %1390 = vst [vmem:[#allocation1] ss:$9 sm:$0xff] %v492_v13  ;;  %1560 = vmatmul.bf16.vlgmr.msra.gmra.mxu2 %v1388_v6  ;;  %1598 = vmatmul.bf16.vlgmr.msra.gmra.mxu3 %v1389_v26 }
  0xda   : > { %1392 = vst [vmem:[#allocation1 + $0x1] ss:$9 sm:$0xff] %v495_v2 }
  0xdb   : > { %1394 = vst [vmem:[#allocation1 + $0x2] ss:$9 sm:$0xff] %v498_v47 }
  0xdc   : > { %1395 = vst [vmem:[#allocation1 + $0x3] ss:$9 sm:$0xff] %v8563_v56  ;;  %v531_v56 = vrot.slane %v529_v24, 2 }
  0xdd   : > { %1396 = vst [vmem:[#allocation1 + $0x4] ss:$9 sm:$0xff] %v8565_v57  ;;  %v434_v57 = vld [vmem:[#allocation2 + $0x68] sm:$0x77] }
  0xde   : > { %1397 = vst [vmem:[#allocation1 + $0x5] ss:$9 sm:$0xff] %v8567_v58  ;;  %v458_v58 = vrot.slane %v434_v57, 3 }
  0xdf   : > { %1398 = vst [vmem:[#allocation1 + $0x6] ss:$9 sm:$0xff] %v8570_v60 }
  0xe0   : > { %1399 = vst [vmem:[#allocation1 + $0x7] ss:$9 sm:$0xff] %v8574_v62  ;;  %v559_v18 = vsel %vm466_vm13, %v434_v57, %v458_v58  ;;  %v558_v33 = vsel %vm336_vm6, %v434_v57, %v458_v58 }
  0xe1   : > { %v561_v29 = vrot.slane %v559_v18, 1 }
  0xe7   : > { %v1400_v41 = vld [vmem:[#allocation1] sm:$0xff]  ;;  %v1401_v4 = vld [vmem:[#allocation1 + $0x9] sm:$0xff] }
  0xe8   : > { %1402 = vst [vmem:[#allocation1] ss:$9 sm:$0xff] %v8576_v63 }
  0xe9   : > { %1403 = vst [vmem:[#allocation1 + $0x1] ss:$9 sm:$0xff] %v8605_v37  ;;  %1565 = vmatmul.bf16.gmra.mxu2 %v1400_v41  ;;  %1603 = vmatmul.bf16.gmra.mxu3 %v1401_v4 }
  0xea   : > { %1404 = vst [vmem:[#allocation1 + $0x2] ss:$9 sm:$0xff] %v8615_v28 }
  0xeb   : > { %1405 = vst [vmem:[#allocation1 + $0x3] ss:$9 sm:$0xff] %v525_v21 }
  0xec   : > { %1407 = vst [vmem:[#allocation1 + $0x4] ss:$9 sm:$0xff] %v528_v40 }
  0xed   : > { %1409 = vst [vmem:[#allocation1 + $0x5] ss:$9 sm:$0xff] %v531_v56 }
  0xee   : > { %1410 = vst [vmem:[#allocation1 + $0x6] ss:$9 sm:$0xff] %v8658_v12  ;;  %v562_v12 = vsel %vm470_vm14, %v434_v57, %v458_v58 }
  0xef   : > { %1411 = vst [vmem:[#allocation1 + $0x7] ss:$9 sm:$0xff] %v8668_v19  ;;  %v564_v19 = vrot.slane %v562_v12, 2  ;;  %v1637_v12 = vld [vmem:[#allocation2 + $0x60] sm:$0xee] }
  0xf6   : > { %v1412_v60 = vld [vmem:[#allocation1] sm:$0xff]  ;;  %v1413_v8 = vld [vmem:[#allocation1 + $0x9] sm:$0xff] }
  0xf7   : > { %1414 = vst [vmem:[#allocation1] ss:$9 sm:$0xff] %v8670_v20 }
  0xf8   : > { %1415 = vst [vmem:[#allocation1 + $0x1] ss:$9 sm:$0xff] %v8716_v17 }
  0xf9   : > { %1416 = vst [vmem:[#allocation1 + $0x2] ss:$9 sm:$0xff] %v8739_v0  ;;  %1570 = vmatmul.bf16.gmra.mxu2 %v1412_v60  ;;  %1608 = vmatmul.bf16.gmra.mxu3 %v1413_v8  ;;  %v11382_v60 = vld [vmem:[#allocation28_spill] sm:$0xff]  ;;  %v1634_v8 = vld [vmem:[#allocation2 + $0x30] sm:$0xee] }
  0xfa   : > { %1417 = vst [vmem:[#allocation1 + $0x3] ss:$9 sm:$0xff] %v8743_v46 }
  0xfb   : > { %1418 = vst [vmem:[#allocation1 + $0x4] ss:$9 sm:$0xff] %v8745_v51 }
  0xfc   : > { %1419 = vst [vmem:[#allocation1 + $0x5] ss:$9 sm:$0xff] %v8753_v34 }
  0xfd   : > { %1420 = vst [vmem:[#allocation1 + $0x6] ss:$9 sm:$0xff] %v558_v33 }
  0xfe   : > { %1422 = vst [vmem:[#allocation1 + $0x7] ss:$9 sm:$0xff] %v561_v29 }
 0x105   : > { %v1423_v20 = vld [vmem:[#allocation1] sm:$0xff]  ;;  %v1424_v17 = vld [vmem:[#allocation1 + $0x9] sm:$0xff] }
 0x106   : > { %1426 = vst [vmem:[#allocation1] ss:$9 sm:$0xff] %v564_v19 }
 0x107   : > { %1427 = vst [vmem:[#allocation1 + $0x1] ss:$9 sm:$0xff] %v8908_v5  ;;  %v595_v5 = vsel %vm470_vm14, %v437_v52, %v461_v25 }
 0x108   : > { %1428 = vst [vmem:[#allocation1 + $0x2] ss:$9 sm:$0xff] %v8898_v15  ;;  %v591_v15 = vsel %vm336_vm6, %v437_v52, %v461_v25  ;;  %v597_v14 = vrot.slane %v595_v5, 2 }
 0x109   : > { %1429 = vst [vmem:[#allocation1 + $0x3] ss:$9 sm:$0xff] %v8900_v39  ;;  %1575 = vmatmul.bf16.gmra.mxu2 %v1423_v20  ;;  %1613 = vmatmul.bf16.gmra.mxu3 %v1424_v17 }
 0x10a   : > { %1430 = vst [vmem:[#allocation1 + $0x4] ss:$9 sm:$0xff] %v8910_v27  ;;  %v9017_v27 = vld [vmem:[#allocation2 + $0x8] sm:$0xff] }
 0x10b   : > { %1431 = vst [vmem:[#allocation1 + $0x5] ss:$9 sm:$0xff] %v8917_v35  ;;  %v1628_v35 = vld [vmem:[#allocation2 + $0x58] sm:$0xee] }
 0x10c   : > { %1432 = vst [vmem:[#allocation1 + $0x6] ss:$9 sm:$0xff] %v8919_v53 }
 0x10d   : > { %1433 = vst [vmem:[#allocation1 + $0x7] ss:$9 sm:$0xff] %v8921_v23  ;;  %v1631_v23 = vld [vmem:[#allocation2] sm:$0xee] }
 0x114   : > { %v1434_v39 = vld [vmem:[#allocation1] sm:$0xff]  ;;  %v1435_v3 = vld [vmem:[#allocation1 + $0x9] sm:$0xff] }
 0x115   : > { %1436 = vst [vmem:[#allocation1] ss:$9 sm:$0xff] %v8923_v55 }
 0x116   : > { %1437 = vst [vmem:[#allocation1 + $0x1] ss:$9 sm:$0xff] %v591_v15 }
 0x117   : > { %1439 = vst [vmem:[#allocation1 + $0x2] ss:$9 sm:$0xff] %v594_v11 }
 0x118   : > { %1441 = vst [vmem:[#allocation1 + $0x3] ss:$9 sm:$0xff] %v597_v14 }
 0x119   : > { %1643 = vst [vmem:[#allocation1 + $0x20] sm:$0xff] %v9017_v27  ;;  %1580 = vmatmul.bf16.gmra.mxu2 %v1434_v39  ;;  %1618 = vmatmul.bf16.gmra.mxu3 %v1435_v3 }
 0x11f   : > { %v1442_v53 = vld [vmem:[#allocation1] sm:$0xff]  ;;  %v1443_v47 = vld [vmem:[#allocation1 + $0x9] sm:$0xff] }
 0x120   : > { %1641 = vst [vmem:[#allocation1] sm:$0xff] %v1628_v35  ;;  %v9020_v9 = vld [vmem:[#allocation1 + $0x20] ss:$4 sm:$0xff]  ;;  %v9022_v31 = vld [vmem:[#allocation1 + $0x21] ss:$4 sm:$0xff] }
 0x121   : > { %v9024_v50 = vld [vmem:[#allocation1 + $0x22] ss:$4 sm:$0xff]  ;;  %v9026_v55 = vld [vmem:[#allocation1 + $0x23] ss:$4 sm:$0xff] }
 0x122   : > { %1665 = vst [vmem:[#allocation1 + $0x20] sm:$0xff] %v1631_v23 }
 0x127   : > { %v1645_v1 = vld [vmem:[#allocation1 + $0x1] ss:$4 sm:$0xff]  ;;  %v1647_v13 = vld [vmem:[#allocation1 + $0x2] ss:$4 sm:$0xff]  ;;  %v1649_v2 = vld [vmem:[#allocation1 + $0x3] ss:$4 sm:$0xff] }
 0x128   : > { %1659 = vst [vmem:[#allocation1] sm:$0xff] %v9028_v61 }
 0x129   : > { %v9031_v6 = vld [vmem:[#allocation1 + $0x21] ss:$4 sm:$0xff]  ;;  %v9033_v26 = vld [vmem:[#allocation1 + $0x22] ss:$4 sm:$0xff]  ;;  %v9035_v48 = vld [vmem:[#allocation1 + $0x23] ss:$4 sm:$0xff]  ;;  %1585 = vmatmul.bf16.gmra.mxu2 %v1442_v53  ;;  %1623 = vmatmul.bf16.gmra.mxu3 %v1443_v47 }
 0x12a   : > { %1672 = vst [vmem:[#allocation1 + $0x20] sm:$0xff] %v9037_v49 }
 0x12f   : > { %v1660_v24 = vld [vmem:[#allocation1] ss:$4 sm:$0xff]  ;;  %v1661_v41 = vld [vmem:[#allocation1 + $0x1] ss:$4 sm:$0xff]  ;;  %v1662_v4 = vld [vmem:[#allocation1 + $0x2] ss:$4 sm:$0xff] }
 0x130   : > { %v1663_v21 = vld [vmem:[#allocation1 + $0x3] ss:$4 sm:$0xff] }
 0x131   : > { %1670 = vst [vmem:[#allocation1] sm:$0xff] %v9040_v22  ;;  %v1677_v40 = vld [vmem:[#allocation1 + $0x20] ss:$4 sm:$0xff]  ;;  %v1678_v56 = vld [vmem:[#allocation1 + $0x21] ss:$4 sm:$0xff] }
 0x132   : > { %v1679_v57 = vld [vmem:[#allocation1 + $0x22] ss:$4 sm:$0xff]  ;;  %v1680_v58 = vld [vmem:[#allocation1 + $0x23] ss:$4 sm:$0xff] }
 0x133   : > { %1684 = vst [vmem:[#allocation1 + $0x20] sm:$0xff] %v11382_v60 }
 0x138   : > { %v1673_v18 = vld [vmem:[#allocation1] ss:$4 sm:$0xff]  ;;  %v1674_v33 = vld [vmem:[#allocation1 + $0x1] ss:$4 sm:$0xff]  ;;  %v1675_v29 = vld [vmem:[#allocation1 + $0x2] ss:$4 sm:$0xff] }
 0x139   : > { %v1676_v19 = vld [vmem:[#allocation1 + $0x3] ss:$4 sm:$0xff] }
 0x13a   : > { %1682 = vst [vmem:[#allocation1] sm:$0xff] %v1634_v8  ;;  %v1688_v20 = vld [vmem:[#allocation1 + $0x20] ss:$4 sm:$0xff]  ;;  %v1689_v17 = vld [vmem:[#allocation1 + $0x21] ss:$4 sm:$0xff] }
 0x13b   : > { %v1690_v52 = vld [vmem:[#allocation1 + $0x22] ss:$4 sm:$0xff]  ;;  %v1691_v25 = vld [vmem:[#allocation1 + $0x23] ss:$4 sm:$0xff] }
 0x13c   : > { %1699 = vst [vmem:[#allocation1 + $0x20] sm:$0xff] %v1637_v12 }
 0x141   : > { %v1685_v59 = vld [vmem:[#allocation1 + $0x1] ss:$4 sm:$0xff]  ;;  %v1686_v5 = vld [vmem:[#allocation1 + $0x2] ss:$4 sm:$0xff]  ;;  %v1687_v15 = vld [vmem:[#allocation1 + $0x3] ss:$4 sm:$0xff] }
 0x142   : > { %1693 = vst [vmem:[#allocation1] sm:$0xff] %v8714_v16 }
 0x143   : > { %v1700_v11 = vld [vmem:[#allocation1 + $0x21] ss:$4 sm:$0xff]  ;;  %v1701_v14 = vld [vmem:[#allocation1 + $0x22] ss:$4 sm:$0xff]  ;;  %v1702_v39 = vld [vmem:[#allocation1 + $0x23] ss:$4 sm:$0xff] }
 0x144   : > { %1706 = vst [vmem:[#allocation1 + $0x20] sm:$0xff] %v8891_v30 }
 0x149   : > { %v1694_v3 = vld [vmem:[#allocation1] ss:$4 sm:$0xff]  ;;  %v1695_v35 = vld [vmem:[#allocation1 + $0x1] ss:$4 sm:$0xff]  ;;  %v1696_v53 = vld [vmem:[#allocation1 + $0x2] ss:$4 sm:$0xff] }
 0x14a   : > { %v1697_v23 = vld [vmem:[#allocation1 + $0x3] ss:$4 sm:$0xff] }
 0x14b   : > { %1704 = vst [vmem:[#allocation1] sm:$0xff] %v8863_v7  ;;  %v1711_v47 = vld [vmem:[#allocation1 + $0x20] ss:$4 sm:$0xff]  ;;  %v1712_v8 = vld [vmem:[#allocation1 + $0x21] ss:$4 sm:$0xff] }
 0x14c   : > { %v1713_v10 = vld [vmem:[#allocation1 + $0x22] ss:$4 sm:$0xff]  ;;  %v1714_v12 = vld [vmem:[#allocation1 + $0x23] ss:$4 sm:$0xff] }
 0x152   : > { %v1707_v45 = vld [vmem:[#allocation1] ss:$4 sm:$0xff]  ;;  %v1708_v32 = vld [vmem:[#allocation1 + $0x1] ss:$4 sm:$0xff]  ;;  %v1709_v38 = vld [vmem:[#allocation1 + $0x2] ss:$4 sm:$0xff] }
 0x153   : > { %v1710_v34 = vld [vmem:[#allocation1 + $0x3] ss:$4 sm:$0xff] }
 0x154   : > { %1748 = vst [vmem:[#allocation1] ss:$9 sm:$0xff] %v1645_v1 }
 0x155   : > { %1750 = vst [vmem:[#allocation1 + $0x1] ss:$9 sm:$0xff] %v1647_v13 }
 0x156   : > { %1752 = vst [vmem:[#allocation1 + $0x2] ss:$9 sm:$0xff] %v1649_v2 }
 0x157   : > { %1754 = vst [vmem:[#allocation1 + $0x3] ss:$9 sm:$0xff] %v9020_v9 }
 0x158   : > { %1756 = vst [vmem:[#allocation1 + $0x4] ss:$9 sm:$0xff] %v9022_v31 }
 0x159   : > { %1758 = vst [vmem:[#allocation1 + $0x5] ss:$9 sm:$0xff] %v9024_v50 }
 0x15a   : > { %1760 = vst [vmem:[#allocation1 + $0x6] ss:$9 sm:$0xff] %v9026_v55 }
 0x15b   : > { %1762 = vst [vmem:[#allocation1 + $0x7] ss:$9 sm:$0xff] %v1660_v24  ;;  %v2009_v24 = vld [vmem:[#allocation2 + $0x28] sm:$0x11] }
 0x162   : > { %v9051_v51 = vld [vmem:[#allocation1] sm:$0xff]  ;;  %v9053_v46 = vld [vmem:[#allocation1 + $0x9] sm:$0xff] }
 0x163   : > { %1765 = vst [vmem:[#allocation1] ss:$9 sm:$0xff] %v1661_v41 }
 0x164   : > { %1766 = vst [vmem:[#allocation1 + $0x1] ss:$9 sm:$0xff] %v1662_v4 }
 0x165   : > { %1767 = vst [vmem:[#allocation1 + $0x2] ss:$9 sm:$0xff] %v1663_v21  ;;  %v2010_v21 = vld [vmem:[#allocation2] sm:$0xee] }
 0x166   : > { %1768 = vst [vmem:[#allocation1 + $0x3] ss:$9 sm:$0xff] %v9031_v6 }
 0x167   : > { %1769 = vst [vmem:[#allocation1 + $0x4] ss:$9 sm:$0xff] %v9033_v26  ;;  %v2006_v26 = vld [vmem:[#allocation2 + $0x58] sm:$0xee] }
 0x168   : > { %1770 = vst [vmem:[#allocation1 + $0x5] ss:$9 sm:$0xff] %v9035_v48 }
 0x169   : > { %1771 = vst [vmem:[#allocation1 + $0x6] ss:$9 sm:$0xff] %v1673_v18 }
 0x16a   : > { %1772 = vst [vmem:[#allocation1 + $0x7] ss:$9 sm:$0xff] %v1674_v33 }
 0x171   : > { %v9058_v9 = vld [vmem:[#allocation1] sm:$0xff]  ;;  %v9060_v31 = vld [vmem:[#allocation1 + $0x9] sm:$0xff] }
 0x172   : > { %11383 = vst [vmem:[#allocation28_spill] sm:$0xff] %v9058_v9 }
 0x173   : > { %11384 = vst [vmem:[#allocation37_spill] sm:$0xff] %v9060_v31 }
 0x174   : > { %1775 = vst [vmem:[#allocation1] ss:$9 sm:$0xff] %v1675_v29 }
 0x175   : > { %1776 = vst [vmem:[#allocation1 + $0x1] ss:$9 sm:$0xff] %v1676_v19 }
 0x176   : > { %1777 = vst [vmem:[#allocation1 + $0x2] ss:$9 sm:$0xff] %v1677_v40 }
 0x177   : > { %1778 = vst [vmem:[#allocation1 + $0x3] ss:$9 sm:$0xff] %v1678_v56 }
 0x178   : > { %1779 = vst [vmem:[#allocation1 + $0x4] ss:$9 sm:$0xff] %v1679_v57 }
 0x179   : > { %1780 = vst [vmem:[#allocation1 + $0x5] ss:$9 sm:$0xff] %v1680_v58  ;;  %v2013_v58 = vld [vmem:[#allocation2 + $0x50] sm:$0x11] }
 0x17a   : > { %1781 = vst [vmem:[#allocation1 + $0x6] ss:$9 sm:$0xff] %v1685_v59 }
 0x17b   : > { %1782 = vst [vmem:[#allocation1 + $0x7] ss:$9 sm:$0xff] %v1686_v5 }
 0x182   : > { %v9062_v50 = vld [vmem:[#allocation1] sm:$0xff]  ;;  %v9064_v55 = vld [vmem:[#allocation1 + $0x9] sm:$0xff] }
 0x183   : > { %11385 = vst [vmem:[#allocation38_spill] sm:$0xff] %v9062_v50 }
 0x184   : > { %11386 = vst [vmem:[#allocation39_spill] sm:$0xff] %v9064_v55 }
 0x185   : > { %1785 = vst [vmem:[#allocation1] ss:$9 sm:$0xff] %v1687_v15 }
 0x186   : > { %1786 = vst [vmem:[#allocation1 + $0x1] ss:$9 sm:$0xff] %v1688_v20 }
 0x187   : > { %1787 = vst [vmem:[#allocation1 + $0x2] ss:$9 sm:$0xff] %v1689_v17 }
 0x188   : > { %1788 = vst [vmem:[#allocation1 + $0x3] ss:$9 sm:$0xff] %v1690_v52 }
 0x189   : > { %1789 = vst [vmem:[#allocation1 + $0x4] ss:$9 sm:$0xff] %v1691_v25  ;;  %v2014_v25 = vld [vmem:[#allocation2 + $0x30] sm:$0xee] }
 0x18a   : > { %1790 = vst [vmem:[#allocation1 + $0x5] ss:$9 sm:$0xff] %v1694_v3 }
 0x18b   : > { %1791 = vst [vmem:[#allocation1 + $0x6] ss:$9 sm:$0xff] %v1695_v35 }
 0x18c   : > { %1792 = vst [vmem:[#allocation1 + $0x7] ss:$9 sm:$0xff] %v1696_v53 }
 0x193   : > { %v9066_v1 = vld [vmem:[#allocation1] sm:$0xff]  ;;  %v9068_v13 = vld [vmem:[#allocation1 + $0x9] sm:$0xff] }
 0x194   : > { %11387 = vst [vmem:[#allocation40_spill] sm:$0xff] %v9066_v1 }
 0x195   : > { %11388 = vst [vmem:[#allocation41_spill] sm:$0xff] %v9068_v13 }
 0x196   : > { %1795 = vst [vmem:[#allocation1] ss:$9 sm:$0xff] %v1697_v23 }
 0x197   : > { %1796 = vst [vmem:[#allocation1 + $0x1] ss:$9 sm:$0xff] %v1700_v11  ;;  %v2017_v11 = vld [vmem:[#allocation2 + $0x20] sm:$0x11] }
 0x198   : > { %1797 = vst [vmem:[#allocation1 + $0x2] ss:$9 sm:$0xff] %v1701_v14 }
 0x199   : > { %1798 = vst [vmem:[#allocation1 + $0x3] ss:$9 sm:$0xff] %v1702_v39 }
 0x19a   : > { %1799 = vst [vmem:[#allocation1 + $0x4] ss:$9 sm:$0xff] %v1707_v45 }
 0x19b   : > { %1800 = vst [vmem:[#allocation1 + $0x5] ss:$9 sm:$0xff] %v1708_v32 }
 0x19c   : > { %1801 = vst [vmem:[#allocation1 + $0x6] ss:$9 sm:$0xff] %v1709_v38 }
 0x19d   : > { %1802 = vst [vmem:[#allocation1 + $0x7] ss:$9 sm:$0xff] %v1710_v34 }
 0x1a4   : > { %v9070_v2 = vld [vmem:[#allocation1] sm:$0xff]  ;;  %v9072_v6 = vld [vmem:[#allocation1 + $0x9] sm:$0xff] }
 0x1a5   : > { %11389 = vst [vmem:[#allocation42_spill] sm:$0xff] %v9070_v2 }
 0x1a6   : > { %11390 = vst [vmem:[#allocation43_spill] sm:$0xff] %v9072_v6 }
 0x1a7   : > { %1805 = vst [vmem:[#allocation1] ss:$9 sm:$0xff] %v1711_v47 }
 0x1a8   : > { %1806 = vst [vmem:[#allocation1 + $0x1] ss:$9 sm:$0xff] %v1712_v8 }
 0x1a9   : > { %1807 = vst [vmem:[#allocation1 + $0x2] ss:$9 sm:$0xff] %v1713_v10 }
 0x1aa   : > { %1808 = vst [vmem:[#allocation1 + $0x3] ss:$9 sm:$0xff] %v1714_v12  ;;  %v2018_v12 = vld [vmem:[#allocation2 + $0x60] sm:$0xee] }
 0x1ab   : > { %2025 = vst [vmem:[#allocation1 + $0x20] sm:$0xff] %v9017_v27 }
 0x1b1   : > { %v9075_v48 = vld [vmem:[#allocation1] sm:$0xff]  ;;  %v9176_v36 = vld [vmem:[#allocation1 + $0x9] sm:$0xff] }
 0x1b2   : > { %11391 = vst [vmem:[#allocation44_spill] sm:$0xff] %v9075_v48  ;;  %v9077_v41 = vld [vmem:[#allocation1 + $0x20] ss:$4 sm:$0xff]  ;;  %v9079_v32 = vld [vmem:[#allocation1 + $0x21] ss:$4 sm:$0xff] }
 0x1b3   : > { %2023 = vst [vmem:[#allocation1] sm:$0xff] %v2006_v26  ;;  %v9081_v34 = vld [vmem:[#allocation1 + $0x22] ss:$4 sm:$0xff]  ;;  %v9083_v38 = vld [vmem:[#allocation1 + $0x23] ss:$4 sm:$0xff]  ;;  %v2130_v6 = vshrl.u32 %v9077_v41, 16 }
 0x1b4   : > { %2043 = vst [vmem:[#allocation1 + $0x20] sm:$0xff] %v2009_v24  ;;  %v2137_v2 = vshrl.u32 %v9079_v32, 16  ;;  %v2144_v13 = vshrl.u32 %v9081_v34, 16 }
 0x1b5   : > { %11392 = vst [vmem:[#allocation45_spill] sm:$0xff] %v9176_v36 }
 0x1ba   : > { %v9085_v45 = vld [vmem:[#allocation1 + $0x1] ss:$4 sm:$0xff]  ;;  %v9087_v10 = vld [vmem:[#allocation1 + $0x2] ss:$4 sm:$0xff]  ;;  %v9089_v4 = vld [vmem:[#allocation1 + $0x3] ss:$4 sm:$0xff] }
 0x1bb   : > { %2041 = vst [vmem:[#allocation1] sm:$0xff] %v9028_v61  ;;  %v9092_v27 = vld [vmem:[#allocation1 + $0x20] ss:$4 sm:$0xff]  ;;  %v2109_v62 = vshrl.u32 %v9085_v45, 16  ;;  %v2116_v44 = vshrl.u32 %v9087_v10, 16  ;;  %v2120_v43 = vshll.u32 %v9089_v4, 16 }
 0x1bc   : > { %2052 = vst [vmem:[#allocation1 + $0x20] sm:$0xff] %v9040_v22  ;;  %v2123_v42 = vshrl.u32 %v9089_v4, 16  ;;  %v2148_v4 = vshll.u32 %v9083_v38, 16 }
 0x1c2   : > { %v9095_v40 = vld [vmem:[#allocation1] ss:$4 sm:$0xff]  ;;  %v9097_v56 = vld [vmem:[#allocation1 + $0x1] ss:$4 sm:$0xff]  ;;  %v9099_v57 = vld [vmem:[#allocation1 + $0x2] ss:$4 sm:$0xff] }
 0x1c3   : > { %v9101_v18 = vld [vmem:[#allocation1 + $0x3] ss:$4 sm:$0xff]  ;;  %v9103_v33 = vld [vmem:[#allocation1 + $0x20] ss:$4 sm:$0xff]  ;;  %v9105_v29 = vld [vmem:[#allocation1 + $0x21] ss:$4 sm:$0xff] }
 0x1c4   : > { %2050 = vst [vmem:[#allocation1] sm:$0xff] %v2010_v21  ;;  %v9107_v61 = vld [vmem:[#allocation1 + $0x22] ss:$4 sm:$0xff]  ;;  %v9109_v19 = vld [vmem:[#allocation1 + $0x23] ss:$4 sm:$0xff]  ;;  %v2158_v31 = vshrl.u32 %v9095_v40, 16 }
 0x1c5   : > { %2063 = vst [vmem:[#allocation1 + $0x20] sm:$0xff] %v2013_v58  ;;  %v2021_v58 = vld [vmem:[#allocation2 + $0x10] sm:$0x11]  ;;  %v2162_v9 = vshll.u32 %v9097_v56, 16 }
 0x1cb   : > { %v9111_v22 = vld [vmem:[#allocation1 + $0x1] ss:$4 sm:$0xff]  ;;  %v9113_v20 = vld [vmem:[#allocation1 + $0x2] ss:$4 sm:$0xff]  ;;  %v9115_v17 = vld [vmem:[#allocation1 + $0x3] ss:$4 sm:$0xff] }
 0x1cc   : > { %2061 = vst [vmem:[#allocation1] sm:$0xff] %v9037_v49  ;;  %v9118_v52 = vld [vmem:[#allocation1 + $0x20] ss:$4 sm:$0xff] }
 0x1cd   : > { %2072 = vst [vmem:[#allocation1 + $0x20] sm:$0xff] %v11382_v60 }
 0x1d3   : > { %v9121_v59 = vld [vmem:[#allocation1] ss:$4 sm:$0xff]  ;;  %v9123_v5 = vld [vmem:[#allocation1 + $0x1] ss:$4 sm:$0xff]  ;;  %v9125_v15 = vld [vmem:[#allocation1 + $0x2] ss:$4 sm:$0xff] }
 0x1d4   : > { %v9127_v14 = vld [vmem:[#allocation1 + $0x3] ss:$4 sm:$0xff]  ;;  %v9129_v39 = vld [vmem:[#allocation1 + $0x20] ss:$4 sm:$0xff]  ;;  %v9131_v3 = vld [vmem:[#allocation1 + $0x21] ss:$4 sm:$0xff] }
 0x1d5   : > { %2070 = vst [vmem:[#allocation1] sm:$0xff] %v2014_v25  ;;  %v9133_v35 = vld [vmem:[#allocation1 + $0x22] ss:$4 sm:$0xff]  ;;  %v9135_v53 = vld [vmem:[#allocation1 + $0x23] ss:$4 sm:$0xff] }
 0x1d6   : > { %2083 = vst [vmem:[#allocation1 + $0x20] sm:$0xff] %v2017_v11 }
 0x1dc   : > { %v9137_v60 = vld [vmem:[#allocation1 + $0x1] ss:$4 sm:$0xff]  ;;  %v9139_v23 = vld [vmem:[#allocation1 + $0x2] ss:$4 sm:$0xff]  ;;  %v9141_v47 = vld [vmem:[#allocation1 + $0x3] ss:$4 sm:$0xff] }
 0x1dd   : > { %2081 = vst [vmem:[#allocation1] sm:$0xff] %v8714_v16  ;;  %v9144_v8 = vld [vmem:[#allocation1 + $0x20] ss:$4 sm:$0xff] }
 0x1de   : > { %2092 = vst [vmem:[#allocation1 + $0x20] sm:$0xff] %v8863_v7 }
 0x1e4   : > { %v9147_v26 = vld [vmem:[#allocation1] ss:$4 sm:$0xff]  ;;  %v9149_v24 = vld [vmem:[#allocation1 + $0x1] ss:$4 sm:$0xff]  ;;  %v9151_v21 = vld [vmem:[#allocation1 + $0x2] ss:$4 sm:$0xff] }
 0x1e5   : > { %v9153_v25 = vld [vmem:[#allocation1 + $0x3] ss:$4 sm:$0xff]  ;;  %v9155_v11 = vld [vmem:[#allocation1 + $0x20] ss:$4 sm:$0xff]  ;;  %v9157_v0 = vld [vmem:[#allocation1 + $0x21] ss:$4 sm:$0xff] }
 0x1e6   : > { %2090 = vst [vmem:[#allocation1] sm:$0xff] %v2018_v12  ;;  %v9159_v16 = vld [vmem:[#allocation1 + $0x22] ss:$4 sm:$0xff]  ;;  %v9161_v28 = vld [vmem:[#allocation1 + $0x23] ss:$4 sm:$0xff]  ;;  %v2113_v12 = vshll.u32 %v9087_v10, 16 }
 0x1e7   : > { %2103 = vst [vmem:[#allocation1 + $0x20] sm:$0xff] %v2021_v58  ;;  %v2127_v58 = vshll.u32 %v9077_v41, 16  ;;  %v2141_v10 = vshll.u32 %v9081_v34, 16  ;;  %v2155_v34 = vshll.u32 %v9095_v40, 16  ;;  %v2179_v40 = vshrl.u32 %v9101_v18, 16 }
 0x1e8   : > { %v2115_v48 = vsel %vm8484_vm4, %v2109_v62, %v2113_v12  ;;  %v2122_v62 = vsel %vm8484_vm4, %v2116_v44, %v2120_v43  ;;  %v2151_v12 = vshrl.u32 %v9083_v38, 16  ;;  %v2150_v44 = vsel %vm8484_vm4, %v2144_v13, %v2148_v4 }
 0x1e9   : > { %v2143_v43 = vsel %vm8484_vm4, %v2137_v2, %v2141_v10  ;;  %v2169_v2 = vshll.u32 %v9099_v57, 16  ;;  %v2172_v38 = vshrl.u32 %v9099_v57, 16  ;;  %v2176_v13 = vshll.u32 %v9101_v18, 16 }
 0x1ea   : > { %v2200_v10 = vshrl.u32 %v9115_v17, 16  ;;  %v2204_v18 = vshll.u32 %v9103_v33, 16  ;;  %v2211_v4 = vshll.u32 %v9105_v29, 16 }
 0x1eb   : > { %v2178_v57 = vsel %vm8484_vm4, %v2172_v38, %v2176_v13  ;;  %v2239_v38 = vshll.u32 %v9123_v5, 16  ;;  %v2242_v13 = vshrl.u32 %v9123_v5, 16  ;;  %v2263_v5 = vshrl.u32 %v9137_v60, 16 }
 0x1ed   : > { %v9163_v7 = vld [vmem:[#allocation1 + $0x1] ss:$4 sm:$0xff]  ;;  %v9165_v37 = vld [vmem:[#allocation1 + $0x2] ss:$4 sm:$0xff]  ;;  %v9167_v63 = vld [vmem:[#allocation1 + $0x3] ss:$4 sm:$0xff] }
 0x1ee   : > { %2101 = vst [vmem:[#allocation1] sm:$0xff] %v8891_v30  ;;  %v2134_v30 = vshll.u32 %v9079_v32, 16  ;;  %v9182_v45 = vld [vmem:[#allocation1 + $0x20] ss:$4 sm:$0xff]  ;;  %v2129_v32 = vsel %vm8484_vm4, %v2123_v42, %v2127_v58  ;;  %v2157_v42 = vsel %vm8484_vm4, %v2151_v12, %v2155_v34  ;;  %v2183_v58 = vshll.u32 %v9092_v27, 16 }
 0x1ef   : > { %v2214_v12 = vshrl.u32 %v9105_v29, 16  ;;  %v2221_v29 = vshrl.u32 %v9107_v61, 16 }
 0x1f0   : > { %v2136_v50 = vsel %vm8484_vm4, %v2130_v6, %v2134_v30  ;;  %v2164_v6 = vsel %vm8484_vm4, %v2158_v31, %v2162_v9  ;;  %v2190_v9 = vshll.u32 %v9113_v20, 16  ;;  %v2193_v30 = vshrl.u32 %v9113_v20, 16 }
 0x1f1   : > { %v2185_v27 = vsel %vm8484_vm4, %v2179_v40, %v2183_v58  ;;  %v2246_v40 = vshll.u32 %v9125_v15, 16 }
 0x1f5   : > { %v9188_v1 = vld [vmem:[#allocation1] ss:$4 sm:$0xff]  ;;  %v9190_v36 = vld [vmem:[#allocation1 + $0x1] ss:$4 sm:$0xff]  ;;  %v9192_v55 = vld [vmem:[#allocation1 + $0x2] ss:$4 sm:$0xff] }
 0x1f6   : > { %v9196_v41 = vld [vmem:[#allocation1 + $0x3] ss:$4 sm:$0xff] }
 0x1f7   : > { %2451 = vst [vmem:[#allocation1] ss:$9 sm:$0xff] %v2115_v48  ;;  %v2165_v48 = vshrl.u32 %v9097_v56, 16  ;;  %v2197_v56 = vshll.u32 %v9115_v17, 16  ;;  %v2218_v17 = vshll.u32 %v9107_v61, 16  ;;  %v2253_v61 = vshll.u32 %v9127_v14, 16 }
 0x1f8   : > { %2454 = vst [vmem:[#allocation1 + $0x1] ss:$9 sm:$0xff] %v2122_v62 }
 0x1f9   : > { %2457 = vst [vmem:[#allocation1 + $0x2] ss:$9 sm:$0xff] %v2129_v32  ;;  %v2171_v31 = vsel %vm8484_vm4, %v2165_v48, %v2169_v2  ;;  %v2199_v34 = vsel %vm8484_vm4, %v2193_v30, %v2197_v56  ;;  %v2232_v48 = vshll.u32 %v9121_v59, 16  ;;  %v2235_v2 = vshrl.u32 %v9121_v59, 16 }
 0x1fa   : > { %2460 = vst [vmem:[#allocation1 + $0x3] ss:$9 sm:$0xff] %v2136_v50  ;;  %v2186_v50 = vshrl.u32 %v9111_v22, 16  ;;  %v2207_v22 = vshrl.u32 %v9103_v33, 16  ;;  %v2206_v33 = vsel %vm8484_vm4, %v2200_v10, %v2204_v18  ;;  %v2260_v59 = vshll.u32 %v9118_v52, 16 }
 0x1fb   : > { %2463 = vst [vmem:[#allocation1 + $0x4] ss:$9 sm:$0xff] %v2143_v43  ;;  %v2267_v30 = vshll.u32 %v9139_v23, 16  ;;  %v2270_v10 = vshrl.u32 %v9139_v23, 16  ;;  %v2277_v23 = vshrl.u32 %v9141_v47, 16 }
 0x1fc   : > { %2466 = vst [vmem:[#allocation1 + $0x5] ss:$9 sm:$0xff] %v2150_v44  ;;  %v2192_v20 = vsel %vm8484_vm4, %v2186_v50, %v2190_v9  ;;  %v2213_v43 = vsel %vm8484_vm4, %v2207_v22, %v2211_v4  ;;  %v2220_v44 = vsel %vm8484_vm4, %v2214_v12, %v2218_v17  ;;  %v2249_v50 = vshrl.u32 %v9125_v15, 16 }
 0x1fd   : > { %2469 = vst [vmem:[#allocation1 + $0x6] ss:$9 sm:$0xff] %v2157_v42  ;;  %v2225_v42 = vshll.u32 %v9109_v19, 16  ;;  %v2256_v9 = vshrl.u32 %v9127_v14, 16  ;;  %v2248_v15 = vsel %vm8484_vm4, %v2242_v13, %v2246_v40  ;;  %v2274_v14 = vshll.u32 %v9141_v47, 16 }
 0x1fe   : > { %2472 = vst [vmem:[#allocation1 + $0x7] ss:$9 sm:$0xff] %v2164_v6  ;;  %v2228_v6 = vshrl.u32 %v9109_v19, 16  ;;  %v2255_v52 = vsel %vm8484_vm4, %v2249_v50, %v2253_v61  ;;  %v2269_v18 = vsel %vm8484_vm4, %v2263_v5, %v2267_v30  ;;  %v2281_v22 = vshll.u32 %v9129_v39, 16 }
 0x1ff   : > { %v2227_v58 = vsel %vm8484_vm4, %v2221_v29, %v2225_v42  ;;  %v2262_v60 = vsel %vm8484_vm4, %v2256_v9, %v2260_v59  ;;  %v2284_v4 = vshrl.u32 %v9129_v39, 16  ;;  %v2291_v12 = vshrl.u32 %v9131_v3, 16 }
 0x200   : > { %v2234_v19 = vsel %vm8484_vm4, %v2228_v6, %v2232_v48  ;;  %v2295_v17 = vshll.u32 %v9133_v35, 16  ;;  %v2309_v47 = vshll.u32 %v9147_v26, 16  ;;  %v2312_v29 = vshrl.u32 %v9147_v26, 16 }
 0x201   : > { %v2323_v6 = vshll.u32 %v9151_v21, 16  ;;  %v2330_v26 = vshll.u32 %v9153_v25, 16  ;;  %v2337_v50 = vshll.u32 %v9144_v8, 16  ;;  %v2340_v61 = vshrl.u32 %v9163_v7, 16 }
 0x202   : > { %v2297_v42 = vsel %vm8484_vm4, %v2291_v12, %v2295_v17  ;;  %v2347_v9 = vshrl.u32 %v9165_v37, 16  ;;  %v2351_v59 = vshll.u32 %v9167_v63, 16  ;;  %v2358_v5 = vshll.u32 %v9155_v11, 16 }
 0x203   : > { %v2368_v7 = vshrl.u32 %v9157_v0, 16  ;;  %v2400_v12 = vshll.u32 %v9192_v55, 16  ;;  %v2403_v17 = vshrl.u32 %v9192_v55, 16 }
 0x205   : > { %v9234_v62 = vld [vmem:[#allocation1] sm:$0xff]  ;;  %v9236_v32 = vld [vmem:[#allocation1 + $0x9] sm:$0xff] }
 0x206   : > { %2476 = vst [vmem:[#allocation1] ss:$9 sm:$0xff] %v2171_v31  ;;  %v2241_v31 = vsel %vm8484_vm4, %v2235_v2, %v2239_v38  ;;  %v2326_v38 = vshrl.u32 %v9151_v21, 16  ;;  %v2333_v21 = vshrl.u32 %v9153_v25, 16  ;;  %v2365_v25 = vshll.u32 %v9157_v0, 16 }
 0x207   : > { %2478 = vst [vmem:[#allocation1 + $0x1] ss:$9 sm:$0xff] %v2178_v57  ;;  %v2386_v0 = vshll.u32 %v9188_v1, 16 }
 0x208   : > { %2480 = vst [vmem:[#allocation1 + $0x2] ss:$9 sm:$0xff] %v2185_v27  ;;  %v2276_v27 = vsel %vm8484_vm4, %v2270_v10, %v2274_v14  ;;  %v2339_v30 = vsel %vm8484_vm4, %v2333_v21, %v2337_v50  ;;  %v2353_v10 = vsel %vm8484_vm4, %v2347_v9, %v2351_v59  ;;  %v2379_v14 = vshll.u32 %v9161_v28, 16 }
 0x209   : > { %2482 = vst [vmem:[#allocation1 + $0x3] ss:$9 sm:$0xff] %v2192_v20  ;;  %v2288_v20 = vshll.u32 %v9131_v3, 16  ;;  %v2316_v3 = vshll.u32 %v9149_v24, 16 }
 0x20a   : > { %2484 = vst [vmem:[#allocation1 + $0x4] ss:$9 sm:$0xff] %v2199_v34  ;;  %v2298_v34 = vshrl.u32 %v9133_v35, 16  ;;  %v2319_v35 = vshrl.u32 %v9149_v24, 16 }
 0x20b   : > { %2486 = vst [vmem:[#allocation1 + $0x5] ss:$9 sm:$0xff] %v2206_v33  ;;  %v2302_v33 = vshll.u32 %v9135_v53, 16  ;;  %v2290_v39 = vsel %vm8484_vm4, %v2284_v4, %v2288_v20  ;;  %v2318_v24 = vsel %vm8484_vm4, %v2312_v29, %v2316_v3  ;;  %v2393_v4 = vshll.u32 %v9190_v36, 16  ;;  %v2755_v3 = vld [vmem:[#allocation2 + $0x28] sm:$0x11] }
 0x20c   : > { %2488 = vst [vmem:[#allocation1 + $0x6] ss:$9 sm:$0xff] %v2213_v43  ;;  %v2283_v43 = vsel %vm8484_vm4, %v2277_v23, %v2281_v22  ;;  %v2325_v40 = vsel %vm8484_vm4, %v2319_v35, %v2323_v6  ;;  %v2396_v20 = vshrl.u32 %v9190_v36, 16 }
 0x20d   : > { %2490 = vst [vmem:[#allocation1 + $0x7] ss:$9 sm:$0xff] %v2220_v44  ;;  %v2305_v44 = vshrl.u32 %v9135_v53, 16  ;;  %v2304_v53 = vsel %vm8484_vm4, %v2298_v34, %v2302_v33  ;;  %v2407_v34 = vshll.u32 %v9196_v41, 16  ;;  %v2410_v33 = vshrl.u32 %v9196_v41, 16 }
 0x20e   : > { %v2752_v41 = vld [vmem:[#allocation2 + $0x58] sm:$0xcc] }
 0x20f   : > { %v2311_v13 = vsel %vm8484_vm4, %v2305_v44, %v2309_v47  ;;  %v2409_v47 = vsel %vm8484_vm4, %v2403_v17, %v2407_v34 }
 0x214   : > { %v9270_v56 = vld [vmem:[#allocation1] sm:$0xff]  ;;  %v9272_v57 = vld [vmem:[#allocation1 + $0x9] sm:$0xff] }
 0x215   : > { %2494 = vst [vmem:[#allocation1] ss:$9 sm:$0xff] %v2227_v58  ;;  %v2332_v58 = vsel %vm8484_vm4, %v2326_v38, %v2330_v26 }
 0x216   : > { %2496 = vst [vmem:[#allocation1 + $0x1] ss:$9 sm:$0xff] %v2234_v19  ;;  %v2344_v19 = vshll.u32 %v9165_v37, 16  ;;  %v2372_v37 = vshll.u32 %v9159_v16, 16 }
 0x217   : > { %2498 = vst [vmem:[#allocation1 + $0x2] ss:$9 sm:$0xff] %v2241_v31  ;;  %v2354_v31 = vshrl.u32 %v9167_v63, 16  ;;  %v2375_v63 = vshrl.u32 %v9159_v16, 16 }
 0x218   : > { %2500 = vst [vmem:[#allocation1 + $0x3] ss:$9 sm:$0xff] %v2248_v15  ;;  %v2361_v15 = vshrl.u32 %v9155_v11, 16  ;;  %v2346_v8 = vsel %vm8484_vm4, %v2340_v61, %v2344_v19  ;;  %v2374_v16 = vsel %vm8484_vm4, %v2368_v7, %v2372_v37  ;;  %v2759_v19 = vld [vmem:[#allocation2 + $0x50] sm:$0x11]  ;;  %v9422_v7 = vld [vmem:[#allocation2 + $0x48] sm:$0xff] }
 0x219   : > { %2502 = vst [vmem:[#allocation1 + $0x4] ss:$9 sm:$0xff] %v2255_v52  ;;  %v2360_v11 = vsel %vm8484_vm4, %v2354_v31, %v2358_v5  ;;  %v2381_v23 = vsel %vm8484_vm4, %v2375_v63, %v2379_v14  ;;  %v2760_v37 = vld [vmem:[#allocation2 + $0x30] sm:$0xcc] }
 0x21a   : > { %2504 = vst [vmem:[#allocation1 + $0x5] ss:$9 sm:$0xff] %v2262_v60 }
 0x21b   : > { %2506 = vst [vmem:[#allocation1 + $0x6] ss:$9 sm:$0xff] %v2269_v18  ;;  %v2382_v18 = vshrl.u32 %v9161_v28, 16  ;;  %v2389_v28 = vshrl.u32 %v9188_v1, 16  ;;  %v2402_v1 = vsel %vm8484_vm4, %v2396_v20, %v2400_v12  ;;  %v2764_v12 = vld [vmem:[#allocation2 + $0x60] sm:$0xcc] }
 0x21c   : > { %2508 = vst [vmem:[#allocation1 + $0x7] ss:$9 sm:$0xff] %v2276_v27  ;;  %v2367_v27 = vsel %vm8484_vm4, %v2361_v15, %v2365_v25 }
 0x21d   : > { %v2388_v22 = vsel %vm8484_vm4, %v2382_v18, %v2386_v0  ;;  %v2395_v44 = vsel %vm8484_vm4, %v2389_v28, %v2393_v4  ;;  %v9447_v4 = vld [vmem:[#allocation2 + $0x68] sm:$0xff] }
 0x223   : > { %v9306_v48 = vld [vmem:[#allocation1] sm:$0xff]  ;;  %v9308_v2 = vld [vmem:[#allocation1 + $0x9] sm:$0xff] }
 0x224   : > { %2512 = vst [vmem:[#allocation1] ss:$9 sm:$0xff] %v2283_v43  ;;  %v2414_v43 = vshll.u32 %v9182_v45, 16  ;;  %v9378_v45 = vld [vmem:[#allocation2 + $0x8] sm:$0xff] }
 0x225   : > { %2514 = vst [vmem:[#allocation1 + $0x1] ss:$9 sm:$0xff] %v2290_v39 }
 0x226   : > { %2516 = vst [vmem:[#allocation1 + $0x2] ss:$9 sm:$0xff] %v2297_v42  ;;  %v2416_v55 = vsel %vm8484_vm4, %v2410_v33, %v2414_v43  ;;  %v2767_v43 = vld [vmem:[#allocation2 + $0x10] sm:$0x11] }
 0x227   : > { %2518 = vst [vmem:[#allocation1 + $0x3] ss:$9 sm:$0xff] %v2304_v53 }
 0x228   : > { %2520 = vst [vmem:[#allocation1 + $0x4] ss:$9 sm:$0xff] %v2311_v13  ;;  %v9395_v13 = vld [vmem:[#allocation2 + $0x18] sm:$0xff] }
 0x229   : > { %2522 = vst [vmem:[#allocation1 + $0x5] ss:$9 sm:$0xff] %v2318_v24 }
 0x22a   : > { %2524 = vst [vmem:[#allocation1 + $0x6] ss:$9 sm:$0xff] %v2325_v40  ;;  %v9400_v40 = vld [vmem:[#allocation2 + $0x40] sm:$0xff] }
 0x22b   : > { %2526 = vst [vmem:[#allocation1 + $0x7] ss:$9 sm:$0xff] %v2332_v58  ;;  %v2756_v58 = vld [vmem:[#allocation2] sm:$0xcc] }
 0x232   : > { %v9342_v52 = vld [vmem:[#allocation1] sm:$0xff]  ;;  %v9344_v60 = vld [vmem:[#allocation1 + $0x9] sm:$0xff] }
 0x233   : > { %2530 = vst [vmem:[#allocation1] ss:$9 sm:$0xff] %v2339_v30 }
 0x234   : > { %2532 = vst [vmem:[#allocation1 + $0x1] ss:$9 sm:$0xff] %v2346_v8 }
 0x235   : > { %2534 = vst [vmem:[#allocation1 + $0x2] ss:$9 sm:$0xff] %v2353_v10 }
 0x236   : > { %2536 = vst [vmem:[#allocation1 + $0x3] ss:$9 sm:$0xff] %v2360_v11  ;;  %v2763_v11 = vld [vmem:[#allocation2 + $0x20] sm:$0x11] }
 0x237   : > { %2538 = vst [vmem:[#allocation1 + $0x4] ss:$9 sm:$0xff] %v2367_v27 }
 0x238   : > { %2540 = vst [vmem:[#allocation1 + $0x5] ss:$9 sm:$0xff] %v2374_v16 }
 0x239   : > { %2542 = vst [vmem:[#allocation1 + $0x6] ss:$9 sm:$0xff] %v2381_v23  ;;  %v9441_v23 = vld [vmem:[#allocation2 + $0x70] sm:$0xff] }
 0x23a   : > { %2544 = vst [vmem:[#allocation1 + $0x7] ss:$9 sm:$0xff] %v2388_v22 }
 0x23b   : > { %11396 = vst [vmem:[#allocation49_spill] sm:$0xff] %v9441_v23 }
 0x241   : > { %v9372_v36 = vld [vmem:[#allocation1] sm:$0xff]  ;;  %v9374_v39 = vld [vmem:[#allocation1 + $0x9] sm:$0xff] }
 0x242   : > { %11393 = vst [vmem:[#allocation46_spill] sm:$0xff] %v9372_v36 }
 0x243   : > { %11394 = vst [vmem:[#allocation47_spill] sm:$0xff] %v9374_v39 }
 0x244   : > { %2548 = vst [vmem:[#allocation1] ss:$9 sm:$0xff] %v2395_v44 }
 0x245   : > { %2550 = vst [vmem:[#allocation1 + $0x1] ss:$9 sm:$0xff] %v2402_v1 }
 0x246   : > { %2552 = vst [vmem:[#allocation1 + $0x2] ss:$9 sm:$0xff] %v2409_v47 }
 0x247   : > { %2554 = vst [vmem:[#allocation1 + $0x3] ss:$9 sm:$0xff] %v2416_v55 }
 0x248   : > { %2771 = vst [vmem:[#allocation1 + $0x20] sm:$0xff] %v9378_v45 }
 0x24e   : > { %v9381_v29 = vld [vmem:[#allocation1] sm:$0xff] }
 0x24f   : > { %11395 = vst [vmem:[#allocation48_spill] sm:$0xff] %v9381_v29  ;;  %v9383_v42 = vld [vmem:[#allocation1 + $0x20] ss:$4 sm:$0xff]  ;;  %v9385_v35 = vld [vmem:[#allocation1 + $0x21] ss:$4 sm:$0xff] }
 0x250   : > { %2769 = vst [vmem:[#allocation1] sm:$0xff] %v2752_v41  ;;  %v9387_v6 = vld [vmem:[#allocation1 + $0x22] ss:$4 sm:$0xff]  ;;  %v9389_v53 = vld [vmem:[#allocation1 + $0x23] ss:$4 sm:$0xff] }
 0x251   : > { %2787 = vst [vmem:[#allocation1 + $0x20] sm:$0xff] %v2755_v3  ;;  %v9469_v3 = vld [vmem:[#allocation2 + $0x38] sm:$0xff] }
 0x252   : > { %11397 = vst [vmem:[#allocation50_spill] sm:$0xff] %v9469_v3 }
 0x257   : > { %v9391_v38 = vld [vmem:[#allocation1 + $0x2] ss:$4 sm:$0xff]  ;;  %v9393_v26 = vld [vmem:[#allocation1 + $0x3] ss:$4 sm:$0xff] }
 0x258   : > { %2785 = vst [vmem:[#allocation1] sm:$0xff] %v9395_v13  ;;  %v9398_v24 = vld [vmem:[#allocation1 + $0x20] ss:$4 sm:$0xff] }
 0x259   : > { %2797 = vst [vmem:[#allocation1 + $0x20] sm:$0xff] %v9400_v40 }
 0x25f   : > { %v9403_v21 = vld [vmem:[#allocation1] ss:$4 sm:$0xff]  ;;  %v9405_v50 = vld [vmem:[#allocation1 + $0x1] ss:$4 sm:$0xff]  ;;  %v9407_v61 = vld [vmem:[#allocation1 + $0x2] ss:$4 sm:$0xff] }
 0x260   : > { %v9409_v9 = vld [vmem:[#allocation1 + $0x3] ss:$4 sm:$0xff]  ;;  %v9411_v59 = vld [vmem:[#allocation1 + $0x20] ss:$4 sm:$0xff]  ;;  %v9413_v31 = vld [vmem:[#allocation1 + $0x21] ss:$4 sm:$0xff] }
 0x261   : > { %2795 = vst [vmem:[#allocation1] sm:$0xff] %v2756_v58  ;;  %v9415_v5 = vld [vmem:[#allocation1 + $0x22] ss:$4 sm:$0xff]  ;;  %v9417_v30 = vld [vmem:[#allocation1 + $0x23] ss:$4 sm:$0xff] }
 0x262   : > { %2807 = vst [vmem:[#allocation1 + $0x20] sm:$0xff] %v2759_v19 }
 0x268   : > { %v2798_v15 = vld [vmem:[#allocation1 + $0x2] ss:$4 sm:$0xff]  ;;  %v2799_v25 = vld [vmem:[#allocation1 + $0x3] ss:$4 sm:$0xff] }
 0x269   : > { %2805 = vst [vmem:[#allocation1] sm:$0xff] %v9037_v49  ;;  %v9420_v8 = vld [vmem:[#allocation1 + $0x20] ss:$4 sm:$0xff] }
 0x26a   : > { %2816 = vst [vmem:[#allocation1 + $0x20] sm:$0xff] %v9422_v7 }
 0x270   : > { %v9425_v10 = vld [vmem:[#allocation1] ss:$4 sm:$0xff]  ;;  %v9427_v63 = vld [vmem:[#allocation1 + $0x1] ss:$4 sm:$0xff]  ;;  %v9429_v14 = vld [vmem:[#allocation1 + $0x2] ss:$4 sm:$0xff] }
 0x271   : > { %v9431_v18 = vld [vmem:[#allocation1 + $0x3] ss:$4 sm:$0xff]  ;;  %v9433_v0 = vld [vmem:[#allocation1 + $0x20] ss:$4 sm:$0xff]  ;;  %v9435_v49 = vld [vmem:[#allocation1 + $0x21] ss:$4 sm:$0xff] }
 0x272   : > { %2814 = vst [vmem:[#allocation1] sm:$0xff] %v2760_v37  ;;  %v9437_v27 = vld [vmem:[#allocation1 + $0x22] ss:$4 sm:$0xff]  ;;  %v9439_v16 = vld [vmem:[#allocation1 + $0x23] ss:$4 sm:$0xff] }
 0x273   : > { %2826 = vst [vmem:[#allocation1 + $0x20] sm:$0xff] %v2763_v11  ;;  %v9476_v37 = vld [vmem:[#allocation1 + $0x9] sm:$0xff] }
 0x279   : > { %v9443_v22 = vld [vmem:[#allocation1 + $0x2] ss:$4 sm:$0xff]  ;;  %v9445_v28 = vld [vmem:[#allocation1 + $0x3] ss:$4 sm:$0xff] }
 0x27a   : > { %2824 = vst [vmem:[#allocation1] sm:$0xff] %v9447_v4  ;;  %v9450_v20 = vld [vmem:[#allocation1 + $0x20] ss:$4 sm:$0xff] }
 0x27b   : > { %2835 = vst [vmem:[#allocation1 + $0x20] sm:$0xff] %v9441_v23 }
 0x281   : > { %v9453_v17 = vld [vmem:[#allocation1] ss:$4 sm:$0xff]  ;;  %v9455_v34 = vld [vmem:[#allocation1 + $0x1] ss:$4 sm:$0xff]  ;;  %v9457_v33 = vld [vmem:[#allocation1 + $0x2] ss:$4 sm:$0xff] }
 0x282   : > { %v9459_v44 = vld [vmem:[#allocation1 + $0x3] ss:$4 sm:$0xff]  ;;  %v9461_v1 = vld [vmem:[#allocation1 + $0x20] ss:$4 sm:$0xff]  ;;  %v9463_v47 = vld [vmem:[#allocation1 + $0x21] ss:$4 sm:$0xff] }
 0x283   : > { %2833 = vst [vmem:[#allocation1] sm:$0xff] %v2764_v12  ;;  %v9465_v55 = vld [vmem:[#allocation1 + $0x22] ss:$4 sm:$0xff]  ;;  %v9467_v41 = vld [vmem:[#allocation1 + $0x23] ss:$4 sm:$0xff] }
 0x284   : > { %2845 = vst [vmem:[#allocation1 + $0x20] sm:$0xff] %v2767_v43 }
 0x28a   : > { %v9471_v58 = vld [vmem:[#allocation1 + $0x2] ss:$4 sm:$0xff]  ;;  %v9473_v19 = vld [vmem:[#allocation1 + $0x3] ss:$4 sm:$0xff] }
 0x28b   : > { %2843 = vst [vmem:[#allocation1] sm:$0xff] %v9469_v3  ;;  %v9478_v11 = vld [vmem:[#allocation1 + $0x20] ss:$4 sm:$0xff] }
 0x292   : > { %v9480_v12 = vld [vmem:[#allocation1] ss:$4 sm:$0xff]  ;;  %v9482_v29 = vld [vmem:[#allocation1 + $0x1] ss:$4 sm:$0xff]  ;;  %v9484_v39 = vld [vmem:[#allocation1 + $0x2] ss:$4 sm:$0xff] }
 0x293   : > { %v9486_v36 = vld [vmem:[#allocation1 + $0x3] ss:$4 sm:$0xff] }
 0x294   : > { %2884 = vst [vmem:[#allocation1] ss:$9 sm:$0xff] %v9391_v38 }
 0x295   : > { %2886 = vst [vmem:[#allocation1 + $0x1] ss:$9 sm:$0xff] %v9393_v26  ;;  %v7879_v26 = vld [vmem:[%s8359_s26 + $0x128] sm:$0xff] }
 0x296   : > { %2888 = vst [vmem:[#allocation1 + $0x2] ss:$9 sm:$0xff] %v9383_v42  ;;  %v7881_v42 = vld [vmem:[%s8359_s26 + $0x138] sm:$0xff] }
 0x297   : > { %2890 = vst [vmem:[#allocation1 + $0x3] ss:$9 sm:$0xff] %v9385_v35  ;;  %v7889_v35 = vld [vmem:[%s8359_s26 + $0x178] sm:$0xff]  ;;  %1919 = vmatpush.bf16.msrb.mxu0 %v7881_v42 }
 0x298   : > { %2892 = vst [vmem:[#allocation1 + $0x4] ss:$9 sm:$0xff] %v9387_v6  ;;  %1957 = vmatpush.bf16.msrb.mxu1 %v7889_v35  ;;  %v7880_v6 = vld [vmem:[%s8359_s26 + $0x130] sm:$0xff]  ;;  %v7894_v35 = vld [vmem:[%s8359_s26 + $0x1a0] sm:$0xff] }
 0x299   : > { %2894 = vst [vmem:[#allocation1 + $0x5] ss:$9 sm:$0xff] %v9389_v53  ;;  %v7888_v53 = vld [vmem:[%s8359_s26 + $0x170] sm:$0xff] }
 0x29a   : > { %2896 = vst [vmem:[#allocation1 + $0x6] ss:$9 sm:$0xff] %v9403_v21 }
 0x29b   : > { %2898 = vst [vmem:[#allocation1 + $0x7] ss:$9 sm:$0xff] %v9405_v50  ;;  %1920 = vmatpush.bf16.msrb.mxu0 %v7880_v6  ;;  %v7902_v6 = vld [vmem:[%s8359_s26 + $0x1e0] sm:$0xff] }
 0x29c   : > { %1958 = vmatpush.bf16.msrb.mxu1 %v7888_v53 }
 0x29f   : > { %1921 = vmatpush.bf16.msrb.mxu0 %v7879_v26 }
 0x2a2   : > { %v9496_v43 = vld [vmem:[#allocation1] sm:$0xff]  ;;  %v9498_v38 = vld [vmem:[#allocation1 + $0x9] sm:$0xff] }
 0x2a3   : > { %2901 = vst [vmem:[#allocation1] ss:$9 sm:$0xff] %v9407_v61  ;;  %v7878_v61 = vld [vmem:[%s8359_s26 + $0x120] sm:$0xff] }
 0x2a4   : > { %2902 = vst [vmem:[#allocation1 + $0x1] ss:$9 sm:$0xff] %v9409_v9  ;;  %v7886_v9 = vld [vmem:[%s8359_s26 + $0x160] sm:$0xff]  ;;  %1922 = vmatpush.bf16.msrb.mxu0 %v7878_v61 }
 0x2a5   : > { %2903 = vst [vmem:[#allocation1 + $0x2] ss:$9 sm:$0xff] %v9398_v24  ;;  %v7887_v24 = vld [vmem:[%s8359_s26 + $0x168] sm:$0xff] }
 0x2a6   : > { %2904 = vst [vmem:[#allocation1 + $0x3] ss:$9 sm:$0xff] %v2798_v15  ;;  %1959 = vmatpush.bf16.msrb.mxu1 %v7887_v24  ;;  %v7875_v15 = vld [vmem:[%s8359_s26 + $0x108] sm:$0xff] }
 0x2a7   : > { %2905 = vst [vmem:[#allocation1 + $0x4] ss:$9 sm:$0xff] %v2799_v25  ;;  %v7883_v25 = vld [vmem:[%s8359_s26 + $0x148] sm:$0xff] }
 0x2a8   : > { %2906 = vst [vmem:[#allocation1 + $0x5] ss:$9 sm:$0xff] %v9411_v59  ;;  %v7877_v59 = vld [vmem:[%s8359_s26 + $0x118] sm:$0xff] }
 0x2a9   : > { %2907 = vst [vmem:[#allocation1 + $0x6] ss:$9 sm:$0xff] %v9413_v31  ;;  %v7885_v31 = vld [vmem:[%s8359_s26 + $0x158] sm:$0xff]  ;;  %1923 = vmatpush.bf16.msrb.mxu0 %v7877_v59 }
 0x2aa   : > { %2908 = vst [vmem:[#allocation1 + $0x7] ss:$9 sm:$0xff] %v9415_v5  ;;  %1960 = vmatpush.bf16.msrb.mxu1 %v7886_v9  ;;  %v7876_v5 = vld [vmem:[%s8359_s26 + $0x110] sm:$0xff]  ;;  %v7893_v9 = vld [vmem:[%s8359_s26 + $0x198] sm:$0xff] }
 0x2ab   : > { %v7901_v59 = vld [vmem:[%s8359_s26 + $0x1d8] sm:$0xff] }
 0x2ad   : > { %1924 = vmatpush.bf16.msrb.mxu0 %v7876_v5  ;;  %v11411_v5 = vld [vmem:[#allocation40_spill] sm:$0xff] }
 0x2ae   : > { %1961 = vmatpush.bf16.msrb.mxu1 %v7885_v31  ;;  %v3146_v31 = vld [vmem:[#allocation2] sm:$0xcc] }
 0x2b1   : > { %v9512_v21 = vld [vmem:[#allocation1] sm:$0xff]  ;;  %v9514_v50 = vld [vmem:[#allocation1 + $0x9] sm:$0xff]  ;;  %1925 = vmatpush.bf16.msrb.mxu0 %v7875_v15 }
 0x2b2   : > { %2911 = vst [vmem:[#allocation1] ss:$9 sm:$0xff] %v9417_v30  ;;  %v7884_v30 = vld [vmem:[%s8359_s26 + $0x150] sm:$0xff] }
 0x2b3   : > { %2912 = vst [vmem:[#allocation1 + $0x1] ss:$9 sm:$0xff] %v9425_v10  ;;  %1962 = vmatpush.bf16.msrb.mxu1 %v7884_v30 }
 0x2b4   : > { %2913 = vst [vmem:[#allocation1 + $0x2] ss:$9 sm:$0xff] %v9427_v63 }
 0x2b5   : > { %2914 = vst [vmem:[#allocation1 + $0x3] ss:$9 sm:$0xff] %v9429_v14  ;;  %v7882_v14 = vld [vmem:[%s8359_s26 + $0x140] sm:$0xff] }
 0x2b6   : > { %2915 = vst [vmem:[#allocation1 + $0x4] ss:$9 sm:$0xff] %v9431_v18 }
 0x2b7   : > { %2916 = vst [vmem:[#allocation1 + $0x5] ss:$9 sm:$0xff] %v9420_v8  ;;  %1963 = vmatpush.bf16.msrb.mxu1 %v7883_v25  ;;  %v7874_v8 = vld [vmem:[%s8359_s26 + $0x100] sm:$0xff] }
 0x2b8   : > { %2917 = vst [vmem:[#allocation1 + $0x6] ss:$9 sm:$0xff] %v9443_v22  ;;  %1926 = vmatpush.bf16.msrb.mxu0 %v7874_v8  ;;  %v9573_v22 = vpop.f32.mrf.mxu1  ;;  %v11412_v25 = vld [vmem:[#allocation41_spill] sm:$0xff] }
 0x2b9   : > { %2918 = vst [vmem:[#allocation1 + $0x7] ss:$9 sm:$0xff] %v9445_v28  ;;  %v7897_v28 = vld [vmem:[%s8359_s26 + $0x1b8] sm:$0xff] }
 0x2ba   : > { %11403 = vst [vmem:[#allocation52_spill] sm:$0xff] %v9573_v22  ;;  %2665 = vmatpush.bf16.msrb.mxu2 %v7897_v28  ;;  %v3154_v22 = vld [vmem:[#allocation2 + $0x60] sm:$0xcc] }
 0x2bb   : > { %1964 = vmatpush.bf16.msrb.mxu1 %v7882_v14  ;;  %1927 = vmatmul.bf16.vlgmr.msrb.gmra.mxu0 %v9051_v51  ;;  %v11399_v51 = vld [vmem:[#allocation37_spill] sm:$0xff]  ;;  %v7892_v14 = vld [vmem:[%s8359_s26 + $0x190] sm:$0xff] }
 0x2be   : > { %1965 = vmatmul.bf16.vlgmr.msrb.gmra.mxu1 %v9053_v46  ;;  %v11398_v46 = vld [vmem:[#allocation28_spill] sm:$0xff] }
 0x2c0   : > { %v9532_v10 = vld [vmem:[#allocation1] sm:$0xff]  ;;  %v9534_v63 = vld [vmem:[#allocation1 + $0x9] sm:$0xff] }
 0x2c1   : > { %2921 = vst [vmem:[#allocation1] ss:$9 sm:$0xff] %v9433_v0 }
 0x2c2   : > { %2922 = vst [vmem:[#allocation1 + $0x1] ss:$9 sm:$0xff] %v9435_v49 }
 0x2c3   : > { %2923 = vst [vmem:[#allocation1 + $0x2] ss:$9 sm:$0xff] %v9437_v27 }
 0x2c4   : > { %2924 = vst [vmem:[#allocation1 + $0x3] ss:$9 sm:$0xff] %v9439_v16  ;;  %v9571_v16 = vpop.f32.mrf.mxu0 }
 0x2c5   : > { %2925 = vst [vmem:[#allocation1 + $0x4] ss:$9 sm:$0xff] %v9453_v17  ;;  %v3142_v17 = vld [vmem:[#allocation2 + $0x58] sm:$0xcc] }
 0x2c6   : > { %2926 = vst [vmem:[#allocation1 + $0x5] ss:$9 sm:$0xff] %v9455_v34  ;;  %v11405_v34 = vld [vmem:[#allocation39_spill] sm:$0xff] }
 0x2c7   : > { %2927 = vst [vmem:[#allocation1 + $0x6] ss:$9 sm:$0xff] %v9457_v33 }
 0x2c8   : > { %2928 = vst [vmem:[#allocation1 + $0x7] ss:$9 sm:$0xff] %v9459_v44 }
 0x2c9   : > { %11402 = vst [vmem:[#allocation51_spill] sm:$0xff] %v9571_v16 }
 0x2cb   : > { %1932 = vmatmul.bf16.gmra.mxu0 %v11398_v46  ;;  %v7900_v46 = vld [vmem:[%s8359_s26 + $0x1d0] sm:$0xff] }
 0x2ce   : > { %1970 = vmatmul.bf16.gmra.mxu1 %v11399_v51 }
 0x2cf   : > { %v9548_v18 = vld [vmem:[#allocation1] sm:$0xff]  ;;  %v9550_v0 = vld [vmem:[#allocation1 + $0x9] sm:$0xff] }
 0x2d0   : > { %2931 = vst [vmem:[#allocation1] ss:$9 sm:$0xff] %v9450_v20  ;;  %v7905_v20 = vld [vmem:[%s8359_s26 + $0x1f8] sm:$0xff] }
 0x2d1   : > { %2932 = vst [vmem:[#allocation1 + $0x1] ss:$9 sm:$0xff] %v9471_v58  ;;  %2703 = vmatpush.bf16.msrb.mxu3 %v7905_v20  ;;  %v9593_v58 = vpop.f32.mrf.mxu1 }
 0x2d2   : > { %2933 = vst [vmem:[#allocation1 + $0x2] ss:$9 sm:$0xff] %v9473_v19  ;;  %v7895_v19 = vld [vmem:[%s8359_s26 + $0x1a8] sm:$0xff] }
 0x2d3   : > { %2934 = vst [vmem:[#allocation1 + $0x3] ss:$9 sm:$0xff] %v9461_v1  ;;  %v7904_v1 = vld [vmem:[%s8359_s26 + $0x1f0] sm:$0xff] }
 0x2d4   : > { %2935 = vst [vmem:[#allocation1 + $0x4] ss:$9 sm:$0xff] %v9463_v47 }
 0x2d5   : > { %2936 = vst [vmem:[#allocation1 + $0x5] ss:$9 sm:$0xff] %v9465_v55  ;;  %2704 = vmatpush.bf16.msrb.mxu3 %v7904_v1  ;;  %v7890_v1 = vld [vmem:[%s8359_s26 + $0x180] sm:$0xff] }
 0x2d6   : > { %2937 = vst [vmem:[#allocation1 + $0x6] ss:$9 sm:$0xff] %v9467_v41  ;;  %v9591_v41 = vpop.f32.mrf.mxu0 }
 0x2d7   : > { %2938 = vst [vmem:[#allocation1 + $0x7] ss:$9 sm:$0xff] %v9480_v12 }
 0x2d8   : > { %11407 = vst [vmem:[#allocation39_spill] sm:$0xff] %v9591_v41  ;;  %v7911_v41 = vld [vmem:[%s8359_s26 + $0x228] sm:$0xff] }
 0x2d9   : > { %11408 = vst [vmem:[#allocation53_spill] sm:$0xff] %v9593_v58  ;;  %v9611_v61 = vpop.f32.mrf.mxu1  ;;  %v7920_v58 = vld [vmem:[%s8359_s26 + $0x270] sm:$0xff] }
 0x2da   : > { %11410 = vst [vmem:[#allocation55_spill] sm:$0xff] %v9611_v61 }
 0x2de   : > { %v9562_v49 = vld [vmem:[#allocation1] sm:$0xff]  ;;  %v9564_v27 = vld [vmem:[#allocation1 + $0x9] sm:$0xff]  ;;  %1975 = vmatmul.bf16.gmra.mxu1 %v11405_v34  ;;  %v9609_v24 = vpop.f32.mrf.mxu0 }
 0x2df   : > { %11400 = vst [vmem:[#allocation28_spill] sm:$0xff] %v9562_v49 }
 0x2e0   : > { %11401 = vst [vmem:[#allocation37_spill] sm:$0xff] %v9564_v27  ;;  %v7916_v27 = vld [vmem:[%s8359_s26 + $0x250] sm:$0xff] }
 0x2e1   : > { %2941 = vst [vmem:[#allocation1] ss:$9 sm:$0xff] %v9482_v29  ;;  %v11404_v29 = vld [vmem:[#allocation38_spill] sm:$0xff]  ;;  %v9637_v34 = vpop.f32.mrf.mxu1 }
 0x2e2   : > { %2942 = vst [vmem:[#allocation1 + $0x1] ss:$9 sm:$0xff] %v9484_v39  ;;  %1937 = vmatmul.bf16.gmra.mxu0 %v11404_v29  ;;  %v3145_v39 = vld [vmem:[#allocation2 + $0x28] sm:$0x33] }
 0x2e3   : > { %2943 = vst [vmem:[#allocation1 + $0x2] ss:$9 sm:$0xff] %v9486_v36 }
 0x2e4   : > { %2944 = vst [vmem:[#allocation1 + $0x3] ss:$9 sm:$0xff] %v9478_v11  ;;  %v7903_v11 = vld [vmem:[%s8359_s26 + $0x1e8] sm:$0xff] }
 0x2e5   : > { %3161 = vst [vmem:[#allocation1 + $0x20] sm:$0xff] %v9378_v45  ;;  %v7896_v45 = vld [vmem:[%s8359_s26 + $0x1b0] sm:$0xff]  ;;  %2705 = vmatpush.bf16.msrb.mxu3 %v7903_v11 }
 0x2e6   : > { %2666 = vmatpush.bf16.msrb.mxu2 %v7896_v45  ;;  %11409 = vst [vmem:[#allocation54_spill] sm:$0xff] %v9609_v24  ;;  %v9635_v29 = vpop.f32.mrf.mxu0  ;;  %v7899_v45 = vld [vmem:[%s8359_s26 + $0x1c8] sm:$0xff]  ;;  %v7917_v24 = vld [vmem:[%s8359_s26 + $0x258] sm:$0xff] }
 0x2e7   : > { %11413 = vst [vmem:[#allocation40_spill] sm:$0xff] %v9635_v29 }
 0x2e8   : > { %11414 = vst [vmem:[#allocation41_spill] sm:$0xff] %v9637_v34 }
 0x2e9   : > { %2706 = vmatpush.bf16.msrb.mxu3 %v7902_v6  ;;  %v9647_v6 = vld [vmem:[#allocation2 + $0x78] sm:$0xff] }
 0x2ea   : > { %2667 = vmatpush.bf16.msrb.mxu2 %v7895_v19  ;;  %v7898_v19 = vld [vmem:[%s8359_s26 + $0x1c0] sm:$0xff]  ;;  %11415 = vst [vmem:[#allocation56_spill] sm:$0xff] %v9647_v6 }
 0x2eb   : > { %v9579_v36 = vld [vmem:[#allocation1] sm:$0xff] }
 0x2ec   : > { %11406 = vst [vmem:[#allocation38_spill] sm:$0xff] %v9579_v36  ;;  %v9582_v33 = vld [vmem:[#allocation1 + $0x20] ss:$4 sm:$0xff]  ;;  %v9584_v44 = vld [vmem:[#allocation1 + $0x21] ss:$4 sm:$0xff] }
 0x2ed   : > { %3159 = vst [vmem:[#allocation1] sm:$0xff] %v3142_v17  ;;  %v9587_v47 = vld [vmem:[#allocation1 + $0x22] ss:$4 sm:$0xff]  ;;  %v9589_v55 = vld [vmem:[#allocation1 + $0x23] ss:$4 sm:$0xff]  ;;  %2707 = vmatpush.bf16.msrb.mxu3 %v7901_v59 }
 0x2ee   : > { %3177 = vst [vmem:[#allocation1 + $0x20] sm:$0xff] %v3145_v39  ;;  %2668 = vmatpush.bf16.msrb.mxu2 %v7894_v35  ;;  %1980 = vmatmul.bf16.gmra.mxu1 %v11412_v25  ;;  %v7891_v39 = vld [vmem:[%s8359_s26 + $0x188] sm:$0xff]  ;;  %v7921_v25 = vld [vmem:[%s8359_s26 + $0x278] sm:$0xff] }
 0x2ef   : > { %3093 = vmatpush.bf16.msra.mxu1 %v7921_v25  ;;  %v7912_v25 = vld [vmem:[%s8359_s26 + $0x230] sm:$0xff] }
 0x2f1   : > { %2708 = vmatpush.bf16.msrb.mxu3 %v7900_v46  ;;  %v3150_v46 = vld [vmem:[#allocation2 + $0x30] sm:$0xcc] }
 0x2f2   : > { %2669 = vmatpush.bf16.msrb.mxu2 %v7893_v9  ;;  %1942 = vmatmul.bf16.gmra.mxu0 %v11411_v5  ;;  %v7913_v5 = vld [vmem:[%s8359_s26 + $0x238] sm:$0xff] }
 0x2f3   : > { %3055 = vmatpush.bf16.msra.mxu0 %v7913_v5  ;;  %3094 = vmatpush.bf16.msra.mxu1 %v7920_v58  ;;  %v7918_v58 = vld [vmem:[%s8359_s26 + $0x260] sm:$0xff] }
 0x2f4   : > { %v9597_v12 = vld [vmem:[#allocation1 + $0x2] ss:$4 sm:$0xff]  ;;  %v9599_v42 = vld [vmem:[#allocation1 + $0x3] ss:$4 sm:$0xff] }
 0x2f5   : > { %3175 = vst [vmem:[#allocation1] sm:$0xff] %v9395_v13  ;;  %v9604_v53 = vld [vmem:[#allocation1 + $0x20] ss:$4 sm:$0xff]  ;;  %v9606_v26 = vld [vmem:[#allocation1 + $0x21] ss:$4 sm:$0xff]  ;;  %2709 = vmatpush.bf16.msrb.mxu3 %v7899_v45 }
 0x2f6   : > { %3188 = vst [vmem:[#allocation1 + $0x20] sm:$0xff] %v9400_v40  ;;  %v3149_v13 = vld [vmem:[#allocation2 + $0x50] sm:$0x33]  ;;  %2670 = vmatpush.bf16.msrb.mxu2 %v7892_v14 }
 0x2f7   : > { %v11418_v14 = vld [vmem:[#allocation42_spill] sm:$0xff]  ;;  %3056 = vmatpush.bf16.msra.mxu0 %v7912_v25 }
 0x2f9   : > { %2710 = vmatpush.bf16.msrb.mxu3 %v7898_v19 }
 0x2fa   : > { %2671 = vmatpush.bf16.msrb.mxu2 %v7891_v39  ;;  %v11419_v39 = vld [vmem:[#allocation43_spill] sm:$0xff] }
 0x2fb   : > { %3057 = vmatpush.bf16.msra.mxu0 %v7911_v41  ;;  %v11424_v41 = vld [vmem:[#allocation44_spill] sm:$0xff] }
 0x2fc   : > { %v9616_v30 = vld [vmem:[#allocation1] ss:$4 sm:$0xff]  ;;  %v9618_v15 = vld [vmem:[#allocation1 + $0x1] ss:$4 sm:$0xff]  ;;  %v9620_v40 = vld [vmem:[#allocation1 + $0x2] ss:$4 sm:$0xff]  ;;  %2711 = vmatmul.bf16.vlgmr.msrb.gmra.mxu3 %v9236_v32 }
 0x2fd   : > { %v9623_v8 = vld [vmem:[#allocation1 + $0x3] ss:$4 sm:$0xff]  ;;  %v9627_v51 = vld [vmem:[#allocation1 + $0x20] ss:$4 sm:$0xff]  ;;  %v9629_v28 = vld [vmem:[#allocation1 + $0x21] ss:$4 sm:$0xff] }
 0x2fe   : > { %3186 = vst [vmem:[#allocation1] sm:$0xff] %v3146_v31  ;;  %v9631_v20 = vld [vmem:[#allocation1 + $0x22] ss:$4 sm:$0xff]  ;;  %v9633_v17 = vld [vmem:[#allocation1 + $0x23] ss:$4 sm:$0xff]  ;;  %2672 = vmatpush.bf16.msrb.mxu2 %v7890_v1  ;;  %v9655_v31 = vpop.f32.mrf.mxu0  ;;  %1985 = vmatmul.bf16.gmra.mxu1 %v11419_v39 }
 0x2ff   : > { %3198 = vst [vmem:[#allocation1 + $0x20] sm:$0xff] %v3149_v13  ;;  %v9657_v13 = vpop.f32.mrf.mxu1 }
 0x300   : > { %11416 = vst [vmem:[#allocation57_spill] sm:$0xff] %v9655_v31 }
 0x301   : > { %11417 = vst [vmem:[#allocation58_spill] sm:$0xff] %v9657_v13  ;;  %2673 = vmatmul.bf16.vlgmr.msrb.gmra.mxu2 %v9234_v62  ;;  %v3153_v62 = vld [vmem:[#allocation2 + $0x20] sm:$0x33] }
 0x302   : > { %1947 = vmatmul.bf16.gmra.mxu0 %v11418_v14 }
 0x305   : > { %v9643_v11 = vld [vmem:[#allocation1 + $0x2] ss:$4 sm:$0xff]  ;;  %v9645_v35 = vld [vmem:[#allocation1 + $0x3] ss:$4 sm:$0xff] }
 0x306   : > { %3196 = vst [vmem:[#allocation1] sm:$0xff] %v9647_v6  ;;  %v9650_v9 = vld [vmem:[#allocation1 + $0x20] ss:$4 sm:$0xff]  ;;  %v9652_v59 = vld [vmem:[#allocation1 + $0x21] ss:$4 sm:$0xff]  ;;  %v9681_v34 = vpop.f32.mrf.mxu0 }
 0x307   : > { %3208 = vst [vmem:[#allocation1 + $0x20] sm:$0xff] %v9422_v7  ;;  %v9683_v29 = vpop.f32.mrf.mxu1 }
 0x308   : > { %11420 = vst [vmem:[#allocation42_spill] sm:$0xff] %v9681_v34  ;;  %v7910_v34 = vld [vmem:[%s8359_s26 + $0x220] sm:$0xff] }
 0x309   : > { %11421 = vst [vmem:[#allocation43_spill] sm:$0xff] %v9683_v29  ;;  %3058 = vmatpush.bf16.msra.mxu0 %v7910_v34 }
 0x30c   : > { %2716 = vmatmul.bf16.gmra.mxu3 %v9272_v57  ;;  %v7908_v57 = vld [vmem:[%s8359_s26 + $0x210] sm:$0xff] }
 0x30d   : > { %v9665_v45 = vld [vmem:[#allocation1] ss:$4 sm:$0xff]  ;;  %v9667_v7 = vld [vmem:[#allocation1 + $0x1] ss:$4 sm:$0xff]  ;;  %v9669_v1 = vld [vmem:[#allocation1 + $0x2] ss:$4 sm:$0xff] }
 0x30e   : > { %v9671_v32 = vld [vmem:[#allocation1 + $0x3] ss:$4 sm:$0xff]  ;;  %v9673_v19 = vld [vmem:[#allocation1 + $0x20] ss:$4 sm:$0xff]  ;;  %v9675_v14 = vld [vmem:[#allocation1 + $0x21] ss:$4 sm:$0xff]  ;;  %v9699_v29 = vpop.f32.mrf.mxu0 }
 0x30f   : > { %3206 = vst [vmem:[#allocation1] sm:$0xff] %v3150_v46  ;;  %v9677_v5 = vld [vmem:[#allocation1 + $0x22] ss:$4 sm:$0xff]  ;;  %v9679_v39 = vld [vmem:[#allocation1 + $0x23] ss:$4 sm:$0xff]  ;;  %v9701_v25 = vpop.f32.mrf.mxu1 }
 0x310   : > { %3218 = vst [vmem:[#allocation1 + $0x20] sm:$0xff] %v3153_v62  ;;  %v7919_v46 = vld [vmem:[%s8359_s26 + $0x268] sm:$0xff] }
 0x311   : > { %3095 = vmatpush.bf16.msra.mxu1 %v7919_v46  ;;  %11422 = vst [vmem:[#allocation59_spill] sm:$0xff] %v9699_v29  ;;  %2678 = vmatmul.bf16.gmra.mxu2 %v9270_v56  ;;  %v11425_v46 = vld [vmem:[#allocation45_spill] sm:$0xff]  ;;  %v3157_v56 = vld [vmem:[#allocation2 + $0x10] sm:$0x33] }
 0x312   : > { %11423 = vst [vmem:[#allocation60_spill] sm:$0xff] %v9701_v25  ;;  %1952 = vmatmul.bf16.gmra.mxu0 %v11424_v41  ;;  %1990 = vmatmul.bf16.gmra.mxu1 %v11425_v46 }
 0x315   : > { %3096 = vmatpush.bf16.msra.mxu1 %v7918_v58 }
 0x316   : > { %v9689_v13 = vld [vmem:[#allocation1 + $0x2] ss:$4 sm:$0xff]  ;;  %v9691_v31 = vld [vmem:[#allocation1 + $0x3] ss:$4 sm:$0xff]  ;;  %v9724_v41 = vpop.f32.mrf.mxu0 }
 0x317   : > { %3216 = vst [vmem:[#allocation1] sm:$0xff] %v9447_v4  ;;  %v9695_v61 = vld [vmem:[#allocation1 + $0x20] ss:$4 sm:$0xff]  ;;  %v9697_v62 = vld [vmem:[#allocation1 + $0x21] ss:$4 sm:$0xff]  ;;  %v9726_v46 = vpop.f32.mrf.mxu1 }
 0x318   : > { %3228 = vst [vmem:[#allocation1 + $0x20] sm:$0xff] %v9441_v23  ;;  %v7909_v4 = vld [vmem:[%s8359_s26 + $0x218] sm:$0xff] }
 0x319   : > { %3059 = vmatpush.bf16.msra.mxu0 %v7909_v4  ;;  %3097 = vmatpush.bf16.msra.mxu1 %v7917_v24  ;;  %11427 = vst [vmem:[#allocation45_spill] sm:$0xff] %v9724_v41  ;;  %v7907_v4 = vld [vmem:[%s8359_s26 + $0x208] sm:$0xff]  ;;  %v7906_v24 = vld [vmem:[%s8359_s26 + $0x200] sm:$0xff] }
 0x31a   : > { %11428 = vst [vmem:[#allocation61_spill] sm:$0xff] %v9726_v46 }
 0x31c   : > { %2721 = vmatmul.bf16.gmra.mxu3 %v9308_v2  ;;  %v3270_v2 = vshll.u32 %v9587_v47, 16 }
 0x31d   : > { %3060 = vmatpush.bf16.msra.mxu0 %v7908_v57  ;;  %3098 = vmatpush.bf16.msra.mxu1 %v7916_v27  ;;  %v3249_v57 = vshll.u32 %v9599_v42, 16  ;;  %v3252_v27 = vshrl.u32 %v9599_v42, 16  ;;  %v3273_v42 = vshrl.u32 %v9587_v47, 16 }
 0x31e   : > { %v9711_v29 = vld [vmem:[#allocation1] ss:$4 sm:$0xff]  ;;  %v9713_v25 = vld [vmem:[#allocation1 + $0x1] ss:$4 sm:$0xff]  ;;  %v9715_v23 = vld [vmem:[#allocation1 + $0x2] ss:$4 sm:$0xff]  ;;  %v9741_v46 = vpop.f32.mrf.mxu0 }
 0x31f   : > { %v9717_v16 = vld [vmem:[#allocation1 + $0x3] ss:$4 sm:$0xff]  ;;  %v9720_v34 = vld [vmem:[#allocation1 + $0x20] ss:$4 sm:$0xff]  ;;  %v9722_v58 = vld [vmem:[#allocation1 + $0x21] ss:$4 sm:$0xff]  ;;  %v9743_v41 = vpop.f32.mrf.mxu1 }
 0x320   : > { %3226 = vst [vmem:[#allocation1] sm:$0xff] %v3154_v22  ;;  %v9728_v6 = vld [vmem:[#allocation1 + $0x22] ss:$4 sm:$0xff]  ;;  %v9730_v36 = vld [vmem:[#allocation1 + $0x23] ss:$4 sm:$0xff] }
 0x321   : > { %11426 = vst [vmem:[#allocation44_spill] sm:$0xff] %v9720_v34  ;;  %v7915_v22 = vld [vmem:[%s8359_s26 + $0x248] sm:$0xff]  ;;  %3061 = vmatpush.bf16.msra.mxu0 %v7907_v4  ;;  %2683 = vmatmul.bf16.gmra.mxu2 %v9306_v48  ;;  %v3256_v4 = vshll.u32 %v9582_v33, 16  ;;  %v3266_v48 = vshrl.u32 %v9584_v44, 16 }
 0x322   : > { %11429 = vst [vmem:[#allocation62_spill] sm:$0xff] %v9728_v6  ;;  %3099 = vmatpush.bf16.msra.mxu1 %v7915_v22  ;;  %v3259_v22 = vshrl.u32 %v9582_v33, 16  ;;  %v3277_v6 = vshll.u32 %v9589_v55, 16 }
 0x323   : > { %11430 = vst [vmem:[#allocation63_spill] sm:$0xff] %v9730_v36  ;;  %v7914_v36 = vld [vmem:[%s8359_s26 + $0x240] sm:$0xff] }
 0x324   : > { %3238 = vst [vmem:[#allocation1 + $0x20] sm:$0xff] %v3157_v56  ;;  %v3245_v56 = vshrl.u32 %v9597_v12, 16  ;;  %v9758_v12 = vld [vmem:[#allocation1 + $0x9] sm:$0xff] }
 0x325   : > { %11431 = vst [vmem:[#allocation64_spill] sm:$0xff] %v9741_v46  ;;  %3062 = vmatpush.bf16.msra.mxu0 %v7906_v24  ;;  %v3263_v46 = vshll.u32 %v9584_v44, 16 }
 0x326   : > { %11432 = vst [vmem:[#allocation65_spill] sm:$0xff] %v9743_v41  ;;  %3100 = vmatpush.bf16.msra.mxu1 %v7914_v36  ;;  %v9754_v41 = vpop.f32.mrf.mxu2  ;;  %v3251_v36 = vsel %vm8484_vm4, %v3245_v56, %v3249_v57  ;;  %v3287_v56 = vshrl.u32 %v9616_v30, 16  ;;  %v9788_v57 = vpop.f32.mrf.mxu0 }
 0x327   : > { %v9735_v49 = vld [vmem:[#allocation1 + $0x2] ss:$4 sm:$0xff]  ;;  %v9737_v34 = vld [vmem:[#allocation1 + $0x3] ss:$4 sm:$0xff]  ;;  %11433 = vst [vmem:[#allocation66_spill] sm:$0xff] %v9754_v41  ;;  %v3280_v41 = vshrl.u32 %v9589_v55, 16  ;;  %v3265_v55 = vsel %vm8484_vm4, %v3259_v22, %v3263_v46 }
 0x328   : > { %3236 = vst [vmem:[#allocation1] sm:$0xff] %v9469_v3  ;;  %v9756_v3 = vpop.f32.mrf.mxu3  ;;  %3063 = vmatmul.bf16.vlgmr.msra.gmra.mxu0 %v9496_v43  ;;  %v3291_v43 = vshll.u32 %v9618_v15, 16 }
 0x329   : > { %11434 = vst [vmem:[#allocation67_spill] sm:$0xff] %v9756_v3  ;;  %v3284_v3 = vshll.u32 %v9616_v30, 16  ;;  %3101 = vmatmul.bf16.vlgmr.msra.gmra.mxu1 %v9498_v38  ;;  %v3298_v38 = vshll.u32 %v9620_v40, 16 }
 0x32a   : > { %11435 = vst [vmem:[#allocation68_spill] sm:$0xff] %v9758_v12  ;;  %v3293_v46 = vsel %vm8484_vm4, %v3287_v56, %v3291_v43  ;;  %v3326_v56 = vshll.u32 %v9645_v35, 16 }
 0x32b   : > { %v9764_v24 = vld [vmem:[#allocation1 + $0x20] ss:$4 sm:$0xff]  ;;  %v9766_v33 = vld [vmem:[#allocation1 + $0x21] ss:$4 sm:$0xff]  ;;  %11440 = vst [vmem:[#allocation73_spill] sm:$0xff] %v9788_v57  ;;  %v3286_v30 = vsel %vm8484_vm4, %v3280_v41, %v3284_v3  ;;  %v3301_v3 = vshrl.u32 %v9620_v40, 16 }
 0x32c   : > { %11436 = vst [vmem:[#allocation69_spill] sm:$0xff] %v9764_v24  ;;  %v3258_v24 = vsel %vm8484_vm4, %v3252_v27, %v3256_v4  ;;  %v3294_v27 = vshrl.u32 %v9618_v15, 16  ;;  %v3279_v4 = vsel %vm8484_vm4, %v3273_v42, %v3277_v6  ;;  %v3305_v41 = vshll.u32 %v9623_v8, 16  ;;  %2726 = vmatmul.bf16.gmra.mxu3 %v9344_v60 }
 0x32d   : > { %11437 = vst [vmem:[#allocation70_spill] sm:$0xff] %v9766_v33  ;;  %v3308_v42 = vshrl.u32 %v9623_v8, 16 }
 0x32e   : > { %v9802_v22 = vpop.f32.mrf.mxu2  ;;  %v3300_v15 = vsel %vm8484_vm4, %v3294_v27, %v3298_v38  ;;  %v9808_v6 = vpop.f32.mrf.mxu0  ;;  %v3307_v8 = vsel %vm8484_vm4, %v3301_v3, %v3305_v41  ;;  %v3329_v27 = vshrl.u32 %v9645_v35, 16  ;;  %v3343_v38 = vshrl.u32 %v9629_v28, 16 }
 0x32f   : > { %v9773_v44 = vld [vmem:[#allocation1] ss:$4 sm:$0xff]  ;;  %v9775_v12 = vld [vmem:[#allocation1 + $0x1] ss:$4 sm:$0xff]  ;;  %v9777_v47 = vld [vmem:[#allocation1 + $0x2] ss:$4 sm:$0xff] }
 0x330   : > { %11438 = vst [vmem:[#allocation71_spill] sm:$0xff] %v9773_v44  ;;  %v9782_v33 = vld [vmem:[#allocation1 + $0x3] ss:$4 sm:$0xff]  ;;  %v9790_v44 = vpop.f32.mrf.mxu1 }
 0x331   : > { %11439 = vst [vmem:[#allocation72_spill] sm:$0xff] %v9777_v47  ;;  %v3272_v47 = vsel %vm8484_vm4, %v3266_v48, %v3270_v2  ;;  %v9804_v48 = vpop.f32.mrf.mxu3  ;;  %2688 = vmatmul.bf16.gmra.mxu2 %v9342_v52  ;;  %v3333_v52 = vshll.u32 %v9627_v51, 16 }
 0x332   : > { %11441 = vst [vmem:[#allocation74_spill] sm:$0xff] %v9790_v44 }
 0x333   : > { %3587 = vst [vmem:[#allocation1] ss:$9 sm:$0xff] %v3251_v36  ;;  %v3315_v36 = vshrl.u32 %v9604_v53, 16 }
 0x334   : > { %3590 = vst [vmem:[#allocation1 + $0x1] ss:$9 sm:$0xff] %v3258_v24  ;;  %v3312_v24 = vshll.u32 %v9604_v53, 16  ;;  %v3336_v53 = vshrl.u32 %v9627_v51, 16 }
 0x335   : > { %3593 = vst [vmem:[#allocation1 + $0x2] ss:$9 sm:$0xff] %v3265_v55  ;;  %v3322_v55 = vshrl.u32 %v9643_v11, 16 }
 0x336   : > { %3596 = vst [vmem:[#allocation1 + $0x3] ss:$9 sm:$0xff] %v3272_v47  ;;  %v3319_v47 = vshll.u32 %v9606_v26, 16  ;;  %v9822_v43 = vpop.f32.mrf.mxu2  ;;  %v3314_v60 = vsel %vm8484_vm4, %v3308_v42, %v3312_v24  ;;  %v3340_v26 = vshll.u32 %v9629_v28, 16  ;;  %v3335_v28 = vsel %vm8484_vm4, %v3329_v27, %v3333_v52  ;;  %v7937_v27 = vld [vmem:[%s8359_s26 + $0x2f8] sm:$0xff] }
 0x337   : > { %11442 = vst [vmem:[#allocation75_spill] sm:$0xff] %v9802_v22  ;;  %v3328_v51 = vsel %vm8484_vm4, %v3322_v55, %v3326_v56  ;;  %v3364_v52 = vshrl.u32 %v9665_v45, 16  ;;  %3839 = vmatpush.bf16.msra.mxu3 %v7937_v27 }
 0x338   : > { %11443 = vst [vmem:[#allocation76_spill] sm:$0xff] %v9804_v48  ;;  %v9810_v2 = vpop.f32.mrf.mxu1  ;;  %3068 = vmatmul.bf16.gmra.mxu0 %v9512_v21  ;;  %v3321_v11 = vsel %vm8484_vm4, %v3315_v36, %v3319_v47  ;;  %v3354_v21 = vshll.u32 %v9633_v17, 16  ;;  %v3342_v41 = vsel %vm8484_vm4, %v3336_v53, %v3340_v26  ;;  %v3357_v36 = vshrl.u32 %v9633_v17, 16  ;;  %v11448_v17 = vld [vmem:[#allocation47_spill] sm:$0xff]  ;;  %v3899_v48 = vld [vmem:[#allocation2 + $0x20] sm:$0x33] }
 0x339   : > { %3599 = vst [vmem:[#allocation1 + $0x4] ss:$9 sm:$0xff] %v3279_v4  ;;  %v9824_v40 = vpop.f32.mrf.mxu3  ;;  %v3347_v4 = vshll.u32 %v9631_v20, 16  ;;  %3106 = vmatmul.bf16.gmra.mxu1 %v9514_v50  ;;  %v3361_v47 = vshll.u32 %v9665_v45, 16  ;;  %v3371_v53 = vshrl.u32 %v9667_v7, 16  ;;  %v3375_v26 = vshll.u32 %v9669_v1, 16 }
 0x33a   : > { %3602 = vst [vmem:[#allocation1 + $0x5] ss:$9 sm:$0xff] %v3286_v30 }
 0x33b   : > { %3605 = vst [vmem:[#allocation1 + $0x6] ss:$9 sm:$0xff] %v3293_v46  ;;  %v3350_v46 = vshrl.u32 %v9631_v20, 16  ;;  %v3349_v50 = vsel %vm8484_vm4, %v3343_v38, %v3347_v4  ;;  %v3378_v38 = vshrl.u32 %v9669_v1, 16  ;;  %v3382_v4 = vshll.u32 %v9671_v32, 16 }
 0x33c   : > { %3608 = vst [vmem:[#allocation1 + $0x7] ss:$9 sm:$0xff] %v3300_v15  ;;  %v1333_v15 = vpop.f32.mrf.mxu0  ;;  %2731 = vmatmul.bf16.gmra.mxu3 %v11448_v17  ;;  %v3363_v45 = vsel %vm8484_vm4, %v3357_v36, %v3361_v47  ;;  %v7926_v17 = vld [vmem:[%s8359_s26 + $0x2a0] sm:$0xff] }
 0x33d   : > { %11444 = vst [vmem:[#allocation77_spill] sm:$0xff] %v9810_v2  ;;  %v3356_v20 = vsel %vm8484_vm4, %v3350_v46, %v3354_v21  ;;  %v3389_v46 = vshll.u32 %v9650_v9, 16  ;;  %v7928_v15 = vld [vmem:[%s8359_s26 + $0x2b0] sm:$0xff] }
 0x33e   : > { %v9856_v42 = vpop.f32.mrf.mxu2 }
 0x33f   : > { %11445 = vst [vmem:[#allocation78_spill] sm:$0xff] %v9856_v42 }
 0x340   : > { %v1371_v3 = vpop.f32.mrf.mxu1 }
 0x341   : > { %v9858_v24 = vpop.f32.mrf.mxu3  ;;  %v7936_v3 = vld [vmem:[%s8359_s26 + $0x2f0] sm:$0xff] }
 0x342   : > { %11446 = vst [vmem:[#allocation79_spill] sm:$0xff] %v9858_v24  ;;  %3840 = vmatpush.bf16.msra.mxu3 %v7936_v3 }
 0x343   : > { %v9839_v30 = vld [vmem:[#allocation1] sm:$0xff]  ;;  %v9841_v35 = vld [vmem:[#allocation1 + $0x9] sm:$0xff] }
 0x344   : > { %3612 = vst [vmem:[#allocation1] ss:$9 sm:$0xff] %v3307_v8  ;;  %v9862_v55 = vpop.f32.mrf.mxu0  ;;  %v7929_v8 = vld [vmem:[%s8359_s26 + $0x2b8] sm:$0xff] }
 0x345   : > { %3614 = vst [vmem:[#allocation1 + $0x1] ss:$9 sm:$0xff] %v3314_v60  ;;  %v3368_v60 = vshll.u32 %v9667_v7, 16  ;;  %3801 = vmatpush.bf16.msra.mxu2 %v7929_v8  ;;  %v3410_v8 = vshll.u32 %v9673_v19, 16 }
 0x346   : > { %3616 = vst [vmem:[#allocation1 + $0x2] ss:$9 sm:$0xff] %v3321_v11  ;;  %v11447_v11 = vld [vmem:[#allocation46_spill] sm:$0xff]  ;;  %v9880_v7 = vpop.f32.mrf.mxu2 }
 0x347   : > { %3618 = vst [vmem:[#allocation1 + $0x3] ss:$9 sm:$0xff] %v3328_v51  ;;  %2693 = vmatmul.bf16.gmra.mxu2 %v11447_v11  ;;  %v3385_v51 = vshrl.u32 %v9671_v32, 16  ;;  %v3370_v1 = vsel %vm8484_vm4, %v3364_v52, %v3368_v60  ;;  %v3399_v32 = vshrl.u32 %v9689_v13, 16  ;;  %v7927_v52 = vld [vmem:[%s8359_s26 + $0x2a8] sm:$0xff] }
 0x348   : > { %3620 = vst [vmem:[#allocation1 + $0x4] ss:$9 sm:$0xff] %v3335_v28  ;;  %v9864_v56 = vpop.f32.mrf.mxu1  ;;  %v3392_v28 = vshrl.u32 %v9650_v9, 16  ;;  %3073 = vmatmul.bf16.gmra.mxu0 %v9532_v10  ;;  %v3384_v9 = vsel %vm8484_vm4, %v3378_v38, %v3382_v4  ;;  %v7935_v60 = vld [vmem:[%s8359_s26 + $0x2e8] sm:$0xff]  ;;  %v7934_v38 = vld [vmem:[%s8359_s26 + $0x2e0] sm:$0xff]  ;;  %v3413_v4 = vshrl.u32 %v9673_v19, 16 }
 0x349   : > { %3622 = vst [vmem:[#allocation1 + $0x5] ss:$9 sm:$0xff] %v3342_v41  ;;  %v9882_v21 = vpop.f32.mrf.mxu3  ;;  %v3396_v41 = vshll.u32 %v9652_v59, 16  ;;  %v3406_v59 = vshrl.u32 %v9691_v31, 16  ;;  %3111 = vmatmul.bf16.gmra.mxu1 %v9534_v63  ;;  %3802 = vmatpush.bf16.msra.mxu2 %v7928_v15  ;;  %v3391_v13 = vsel %vm8484_vm4, %v3385_v51, %v3389_v46  ;;  %v3420_v51 = vshrl.u32 %v9675_v14, 16 }
 0x34a   : > { %3624 = vst [vmem:[#allocation1 + $0x6] ss:$9 sm:$0xff] %v3349_v50  ;;  %v3377_v50 = vsel %vm8484_vm4, %v3371_v53, %v3375_v26  ;;  %3841 = vmatpush.bf16.msra.mxu3 %v7935_v60  ;;  %v3424_v46 = vshll.u32 %v9677_v5, 16  ;;  %v3434_v19 = vshrl.u32 %v9679_v39, 16  ;;  %v7932_v60 = vld [vmem:[%s8359_s26 + $0x2d0] sm:$0xff] }
 0x34b   : > { %3626 = vst [vmem:[#allocation1 + $0x7] ss:$9 sm:$0xff] %v3356_v20  ;;  %v3403_v20 = vshll.u32 %v9691_v31, 16  ;;  %v3398_v31 = vsel %vm8484_vm4, %v3392_v28, %v3396_v41  ;;  %v3412_v53 = vsel %vm8484_vm4, %v3406_v59, %v3410_v8  ;;  %v7933_v28 = vld [vmem:[%s8359_s26 + $0x2d8] sm:$0xff]  ;;  %v3427_v41 = vshrl.u32 %v9677_v5, 16 }
 0x34c   : > { %v9906_v27 = vpop.f32.mrf.mxu0  ;;  %2736 = vmatmul.bf16.gmra.mxu3 %v9476_v37  ;;  %v3445_v59 = vshll.u32 %v9713_v25, 16  ;;  %v3426_v5 = vsel %vm8484_vm4, %v3420_v51, %v3424_v46  ;;  %v3448_v8 = vshrl.u32 %v9713_v25, 16  ;;  %v7924_v37 = vld [vmem:[%s8359_s26 + $0x290] sm:$0xff]  ;;  %v7923_v46 = vld [vmem:[%s8359_s26 + $0x288] sm:$0xff] }
 0x34d   : > { %11449 = vst [vmem:[#allocation46_spill] sm:$0xff] %v9906_v27  ;;  %v3405_v63 = vsel %vm8484_vm4, %v3399_v32, %v3403_v20  ;;  %3803 = vmatpush.bf16.msra.mxu2 %v7927_v52  ;;  %v3438_v32 = vshll.u32 %v9711_v29, 16 }
 0x34e   : > { %v9918_v26 = vpop.f32.mrf.mxu2  ;;  %3842 = vmatpush.bf16.msra.mxu3 %v7934_v38  ;;  %v3462_v38 = vshrl.u32 %v9717_v16, 16 }
 0x34f   : > { %11451 = vst [vmem:[#allocation80_spill] sm:$0xff] %v9918_v26 }
 0x350   : > { %v9908_v10 = vpop.f32.mrf.mxu1 }
 0x351   : > { %11450 = vst [vmem:[#allocation47_spill] sm:$0xff] %v9908_v10  ;;  %v9920_v11 = vpop.f32.mrf.mxu3  ;;  %3804 = vmatpush.bf16.msra.mxu2 %v7926_v17  ;;  %v3440_v17 = vsel %vm8484_vm4, %v3434_v19, %v3438_v32  ;;  %v7930_v19 = vld [vmem:[%s8359_s26 + $0x2c0] sm:$0xff]  ;;  %v3469_v32 = vshrl.u32 %v9695_v61, 16 }
 0x352   : > { %v9894_v36 = vld [vmem:[#allocation1] sm:$0xff]  ;;  %v9896_v47 = vld [vmem:[#allocation1 + $0x9] sm:$0xff]  ;;  %11452 = vst [vmem:[#allocation81_spill] sm:$0xff] %v9920_v11  ;;  %3843 = vmatpush.bf16.msra.mxu3 %v7933_v28 }
 0x353   : > { %3630 = vst [vmem:[#allocation1] ss:$9 sm:$0xff] %v3363_v45  ;;  %v3417_v45 = vshll.u32 %v9675_v14, 16  ;;  %v11453_v14 = vld [vmem:[#allocation48_spill] sm:$0xff] }
 0x354   : > { %3632 = vst [vmem:[#allocation1 + $0x1] ss:$9 sm:$0xff] %v3370_v1  ;;  %v9928_v15 = vpop.f32.mrf.mxu0  ;;  %v7925_v1 = vld [vmem:[%s8359_s26 + $0x298] sm:$0xff] }
 0x355   : > { %3634 = vst [vmem:[#allocation1 + $0x2] ss:$9 sm:$0xff] %v3377_v50  ;;  %v3431_v50 = vshll.u32 %v9679_v39, 16  ;;  %v3419_v20 = vsel %vm8484_vm4, %v3413_v4, %v3417_v45  ;;  %3805 = vmatpush.bf16.msra.mxu2 %v7925_v1  ;;  %v3452_v39 = vshll.u32 %v9715_v23, 16  ;;  %v3466_v4 = vshll.u32 %v9695_v61, 16 }
 0x356   : > { %3636 = vst [vmem:[#allocation1 + $0x3] ss:$9 sm:$0xff] %v3384_v9  ;;  %v3441_v9 = vshrl.u32 %v9711_v29, 16  ;;  %3844 = vmatpush.bf16.msra.mxu3 %v7932_v60  ;;  %v3494_v61 = vshll.u32 %v9722_v58, 16 }
 0x357   : > { %3638 = vst [vmem:[#allocation1 + $0x4] ss:$9 sm:$0xff] %v3391_v13  ;;  %2698 = vmatmul.bf16.gmra.mxu2 %v11453_v14  ;;  %v9948_v13 = vpop.f32.mrf.mxu2  ;;  %v3433_v29 = vsel %vm8484_vm4, %v3427_v41, %v3431_v50  ;;  %v3454_v45 = vsel %vm8484_vm4, %v3448_v8, %v3452_v39  ;;  %v7922_v50 = vld [vmem:[%s8359_s26 + $0x280] sm:$0xff]  ;;  %v3473_v14 = vshll.u32 %v9697_v62, 16 }
 0x358   : > { %3640 = vst [vmem:[#allocation1 + $0x5] ss:$9 sm:$0xff] %v3398_v31  ;;  %v9930_v3 = vpop.f32.mrf.mxu1  ;;  %v3455_v31 = vshrl.u32 %v9715_v23, 16  ;;  %3078 = vmatmul.bf16.gmra.mxu0 %v9548_v18  ;;  %v3447_v23 = vsel %vm8484_vm4, %v3441_v9, %v3445_v59  ;;  %v7931_v18 = vld [vmem:[%s8359_s26 + $0x2c8] sm:$0xff]  ;;  %v3480_v9 = vshll.u32 %v9737_v34, 16  ;;  %v3483_v59 = vshrl.u32 %v9737_v34, 16 }
 0x359   : > { %3642 = vst [vmem:[#allocation1 + $0x6] ss:$9 sm:$0xff] %v3405_v63  ;;  %v9950_v52 = vpop.f32.mrf.mxu3  ;;  %v3459_v63 = vshll.u32 %v9717_v16, 16  ;;  %3116 = vmatmul.bf16.gmra.mxu1 %v9550_v0  ;;  %3806 = vmatpush.bf16.msra.mxu2 %v7924_v37  ;;  %v3468_v0 = vsel %vm8484_vm4, %v3462_v38, %v3466_v4  ;;  %v3475_v62 = vsel %vm8484_vm4, %v3469_v32, %v3473_v14  ;;  %v11462_v32 = vld [vmem:[#allocation28_spill] sm:$0xff] }
 0x35a   : > { %3644 = vst [vmem:[#allocation1 + $0x7] ss:$9 sm:$0xff] %v3412_v53  ;;  %3845 = vmatpush.bf16.msra.mxu3 %v7931_v18 }
 0x35b   : > { %v3461_v1 = vsel %vm8484_vm4, %v3455_v31, %v3459_v63 }
 0x35c   : > { %v9972_v16 = vpop.f32.mrf.mxu0 }
 0x35d   : > { %11454 = vst [vmem:[#allocation48_spill] sm:$0xff] %v9972_v16  ;;  %3807 = vmatpush.bf16.msra.mxu2 %v7923_v46 }
 0x35e   : > { %3846 = vmatpush.bf16.msra.mxu3 %v7930_v19 }
 0x35f   : > { %v9982_v28 = vpop.f32.mrf.mxu2 }
 0x360   : > { %v9974_v51 = vpop.f32.mrf.mxu1  ;;  %11456 = vst [vmem:[#allocation83_spill] sm:$0xff] %v9982_v28 }
 0x361   : > { %v9958_v53 = vld [vmem:[#allocation1] sm:$0xff]  ;;  %v9960_v25 = vld [vmem:[#allocation1 + $0x9] sm:$0xff]  ;;  %11455 = vst [vmem:[#allocation82_spill] sm:$0xff] %v9974_v51  ;;  %v9984_v41 = vpop.f32.mrf.mxu3  ;;  %3808 = vmatpush.bf16.msra.mxu2 %v7922_v50  ;;  %3847 = vmatmul.bf16.vlgmr.msra.gmra.mxu3 %v9841_v35  ;;  %v3522_v50 = vshll.u32 %v9775_v12, 16 }
 0x362   : > { %3648 = vst [vmem:[#allocation1] ss:$9 sm:$0xff] %v3419_v20  ;;  %v3476_v20 = vshrl.u32 %v9735_v49, 16  ;;  %v3497_v49 = vshrl.u32 %v9722_v58, 16  ;;  %v11486_v51 = vld [vmem:[#allocation56_spill] sm:$0xff] }
 0x363   : > { %3650 = vst [vmem:[#allocation1 + $0x1] ss:$9 sm:$0xff] %v3426_v5  ;;  %v11458_v5 = vld [vmem:[#allocation44_spill] sm:$0xff] }
 0x364   : > { %3652 = vst [vmem:[#allocation1 + $0x2] ss:$9 sm:$0xff] %v3433_v29  ;;  %v3487_v8 = vshll.u32 %v11458_v5, 16  ;;  %v9994_v39 = vpop.f32.mrf.mxu0  ;;  %v3490_v60 = vshrl.u32 %v11458_v5, 16  ;;  %v11459_v29 = vld [vmem:[#allocation62_spill] sm:$0xff]  ;;  %v3482_v34 = vsel %vm8484_vm4, %v3476_v20, %v3480_v9  ;;  %v11463_v20 = vld [vmem:[#allocation37_spill] sm:$0xff] }
 0x365   : > { %3654 = vst [vmem:[#allocation1 + $0x3] ss:$9 sm:$0xff] %v3440_v17  ;;  %v3501_v31 = vshll.u32 %v11459_v29, 16  ;;  %v3504_v63 = vshrl.u32 %v11459_v29, 16  ;;  %v11460_v17 = vld [vmem:[#allocation63_spill] sm:$0xff] }
 0x366   : > { %3656 = vst [vmem:[#allocation1 + $0x4] ss:$9 sm:$0xff] %v3447_v23  ;;  %v3508_v38 = vshll.u32 %v11460_v17, 16  ;;  %v3489_v4 = vsel %vm8484_vm4, %v3483_v59, %v3487_v8  ;;  %v3511_v23 = vshrl.u32 %v11460_v17, 16  ;;  %v11469_v17 = vld [vmem:[#allocation69_spill] sm:$0xff] }
 0x367   : > { %3658 = vst [vmem:[#allocation1 + $0x5] ss:$9 sm:$0xff] %v3454_v45  ;;  %3809 = vmatmul.bf16.vlgmr.msra.gmra.mxu2 %v9839_v30  ;;  %v11461_v45 = vld [vmem:[#allocation71_spill] sm:$0xff]  ;;  %v10018_v30 = vpop.f32.mrf.mxu2  ;;  %v3503_v19 = vsel %vm8484_vm4, %v3497_v49, %v3501_v31  ;;  %v11468_v49 = vld [vmem:[#allocation72_spill] sm:$0xff] }
 0x368   : > { %3660 = vst [vmem:[#allocation1 + $0x6] ss:$9 sm:$0xff] %v3461_v1  ;;  %v9996_v37 = vpop.f32.mrf.mxu1  ;;  %v3515_v58 = vshll.u32 %v11461_v45, 16  ;;  %v3518_v35 = vshrl.u32 %v11461_v45, 16  ;;  %3083 = vmatmul.bf16.gmra.mxu0 %v11462_v32  ;;  %v3510_v14 = vsel %vm8484_vm4, %v3504_v63, %v3508_v38  ;;  %v3529_v29 = vshll.u32 %v11468_v49, 16 }
 0x369   : > { %11457 = vst [vmem:[#allocation84_spill] sm:$0xff] %v9984_v41  ;;  %v10020_v1 = vpop.f32.mrf.mxu3  ;;  %3121 = vmatmul.bf16.gmra.mxu1 %v11463_v20  ;;  %v3532_v31 = vshrl.u32 %v11468_v49, 16  ;;  %v3539_v63 = vshrl.u32 %v9782_v33, 16  ;;  %v3543_v38 = vshll.u32 %v11469_v17, 16  ;;  %v3888_v49 = vld [vmem:[#allocation2 + $0x58] sm:$0x88] }
 0x36a   : > { %3662 = vst [vmem:[#allocation1 + $0x7] ss:$9 sm:$0xff] %v3468_v0  ;;  %v3496_v0 = vsel %vm8484_vm4, %v3490_v60, %v3494_v61  ;;  %v3517_v9 = vsel %vm8484_vm4, %v3511_v23, %v3515_v58  ;;  %v3524_v8 = vsel %vm8484_vm4, %v3518_v35, %v3522_v50  ;;  %v11470_v23 = vld [vmem:[#allocation70_spill] sm:$0xff] }
 0x36b   : > { %v3550_v45 = vshll.u32 %v11470_v23, 16 }
 0x36c   : > { %v10034_v59 = vpop.f32.mrf.mxu0 }
 0x36d   : > { %11464 = vst [vmem:[#allocation44_spill] sm:$0xff] %v10034_v59 }
 0x36f   : > { %v10040_v60 = vpop.f32.mrf.mxu2 }
 0x370   : > { %v10036_v5 = vpop.f32.mrf.mxu1  ;;  %11466 = vst [vmem:[#allocation63_spill] sm:$0xff] %v10040_v60 }
 0x371   : > { %v10014_v46 = vld [vmem:[#allocation1] sm:$0xff]  ;;  %v10016_v18 = vld [vmem:[#allocation1 + $0x9] sm:$0xff]  ;;  %11465 = vst [vmem:[#allocation62_spill] sm:$0xff] %v10036_v5  ;;  %v10042_v61 = vpop.f32.mrf.mxu3  ;;  %3852 = vmatmul.bf16.gmra.mxu3 %v9896_v47 }
 0x372   : > { %3666 = vst [vmem:[#allocation1] ss:$9 sm:$0xff] %v3475_v62  ;;  %v3525_v62 = vshrl.u32 %v9775_v12, 16 }
 0x373   : > { %3668 = vst [vmem:[#allocation1 + $0x1] ss:$9 sm:$0xff] %v3482_v34  ;;  %v3536_v34 = vshll.u32 %v9782_v33, 16  ;;  %v3545_v33 = vsel %vm8484_vm4, %v3539_v63, %v3543_v38  ;;  %v3891_v63 = vld [vmem:[#allocation2 + $0x28] sm:$0x33] }
 0x374   : > { %3670 = vst [vmem:[#allocation1 + $0x2] ss:$9 sm:$0xff] %v3489_v4  ;;  %v3546_v4 = vshrl.u32 %v11469_v17, 16  ;;  %v10052_v58 = vpop.f32.mrf.mxu0 }
 0x375   : > { %3672 = vst [vmem:[#allocation1 + $0x3] ss:$9 sm:$0xff] %v3496_v0  ;;  %v3531_v0 = vsel %vm8484_vm4, %v3525_v62, %v3529_v29  ;;  %v3538_v35 = vsel %vm8484_vm4, %v3532_v31, %v3536_v34 }
 0x376   : > { %3674 = vst [vmem:[#allocation1 + $0x4] ss:$9 sm:$0xff] %v3503_v19  ;;  %v3552_v32 = vsel %vm8484_vm4, %v3546_v4, %v3550_v45 }
 0x377   : > { %3676 = vst [vmem:[#allocation1 + $0x5] ss:$9 sm:$0xff] %v3510_v14  ;;  %3814 = vmatmul.bf16.gmra.mxu2 %v9894_v36  ;;  %v10070_v14 = vpop.f32.mrf.mxu2  ;;  %v11473_v36 = vld [vmem:[#allocation38_spill] sm:$0xff] }
 0x378   : > { %3678 = vst [vmem:[#allocation1 + $0x6] ss:$9 sm:$0xff] %v3517_v9  ;;  %v10056_v12 = vpop.f32.mrf.mxu1  ;;  %3088 = vmatmul.bf16.gmra.mxu0 %v11473_v36  ;;  %v11474_v9 = vld [vmem:[#allocation68_spill] sm:$0xff] }
 0x379   : > { %3680 = vst [vmem:[#allocation1 + $0x7] ss:$9 sm:$0xff] %v3524_v8  ;;  %v10072_v20 = vpop.f32.mrf.mxu3  ;;  %3126 = vmatmul.bf16.gmra.mxu1 %v11474_v9  ;;  %v10076_v8 = vld [vmem:[#allocation2 + $0x8] sm:$0xff]  ;;  %v10105_v36 = vld [vmem:[#allocation2 + $0x18] sm:$0xff] }
 0x37a   : > { %11467 = vst [vmem:[#allocation71_spill] sm:$0xff] %v10042_v61 }
 0x37b   : > { %11471 = vst [vmem:[#allocation28_spill] sm:$0xff] %v10070_v14  ;;  %v1967_v14 = vadd.f32 %v9864_v56, %v9862_v55  ;;  %v11497_v56 = vld [vmem:[#allocation49_spill] sm:$0xff] }
 0x37c   : > { %11472 = vst [vmem:[#allocation37_spill] sm:$0xff] %v10072_v20  ;;  %v10079_v47 = vpop.f32.mrf.mxu0 }
 0x37d   : > { %11475 = vst [vmem:[#allocation72_spill] sm:$0xff] %v10076_v8 }
 0x37e   : > { %11476 = vst [vmem:[#allocation69_spill] sm:$0xff] %v10079_v47 }
 0x37f   : > { %v1588_v29 = vpop.f32.mrf.mxu2  ;;  %11478 = vst [vmem:[#allocation38_spill] sm:$0xff] %v10105_v36 }
 0x380   : > { %v10063_v50 = vld [vmem:[#allocation1] sm:$0xff]  ;;  %v10065_v19 = vld [vmem:[#allocation1 + $0x9] sm:$0xff]  ;;  %v10081_v62 = vpop.f32.mrf.mxu1 }
 0x381   : > { %3684 = vst [vmem:[#allocation1] ss:$9 sm:$0xff] %v3531_v0  ;;  %v1626_v31 = vpop.f32.mrf.mxu3  ;;  %3857 = vmatmul.bf16.gmra.mxu3 %v9960_v25  ;;  %v3892_v25 = vld [vmem:[#allocation2] sm:$0x88] }
 0x382   : > { %3686 = vst [vmem:[#allocation1 + $0x1] ss:$9 sm:$0xff] %v3538_v35  ;;  %v10114_v31 = vld [vmem:[#allocation2 + $0x40] sm:$0xff] }
 0x383   : > { %3688 = vst [vmem:[#allocation1 + $0x2] ss:$9 sm:$0xff] %v3545_v33 }
 0x384   : > { %3690 = vst [vmem:[#allocation1 + $0x3] ss:$9 sm:$0xff] %v3552_v32  ;;  %v10093_v45 = vpop.f32.mrf.mxu0 }
 0x385   : > { %3907 = vst [vmem:[#allocation1 + $0x20] sm:$0xff] %v10076_v8 }
 0x386   : > { %11477 = vst [vmem:[#allocation70_spill] sm:$0xff] %v10081_v62  ;;  %v3895_v62 = vld [vmem:[#allocation2 + $0x50] sm:$0x33] }
 0x387   : > { %3819 = vmatmul.bf16.gmra.mxu2 %v9958_v53  ;;  %v10099_v35 = vpop.f32.mrf.mxu2  ;;  %11480 = vst [vmem:[#allocation85_spill] sm:$0xff] %v10114_v31 }
 0x388   : > { %v10095_v0 = vpop.f32.mrf.mxu1 }
 0x389   : > { %v10101_v33 = vpop.f32.mrf.mxu3 }
 0x38b   : > { %v10083_v34 = vld [vmem:[#allocation1] sm:$0xff] }
 0x38c   : > { %3905 = vst [vmem:[#allocation1] sm:$0xff] %v3888_v49  ;;  %v10085_v17 = vld [vmem:[#allocation1 + $0x20] ss:$4 sm:$0xff]  ;;  %v10087_v38 = vld [vmem:[#allocation1 + $0x21] ss:$4 sm:$0xff]  ;;  %v10112_v29 = vpop.f32.mrf.mxu0 }
 0x38d   : > { %v10089_v4 = vld [vmem:[#allocation1 + $0x22] ss:$4 sm:$0xff]  ;;  %v10091_v23 = vld [vmem:[#allocation1 + $0x23] ss:$4 sm:$0xff]  ;;  %11479 = vst [vmem:[#allocation68_spill] sm:$0xff] %v10112_v29 }
 0x38e   : > { %3921 = vst [vmem:[#allocation1 + $0x20] sm:$0xff] %v3891_v63 }
 0x38f   : > { %v10119_v63 = vpop.f32.mrf.mxu2 }
 0x390   : > { %v10117_v53 = vpop.f32.mrf.mxu1  ;;  %11482 = vst [vmem:[#allocation87_spill] sm:$0xff] %v10119_v63  ;;  %v3896_v63 = vld [vmem:[#allocation2 + $0x30] sm:$0x88] }
 0x391   : > { %11481 = vst [vmem:[#allocation86_spill] sm:$0xff] %v10117_v53  ;;  %v10121_v61 = vpop.f32.mrf.mxu3  ;;  %3862 = vmatmul.bf16.gmra.mxu3 %v10016_v18 }
 0x392   : > { %11483 = vst [vmem:[#allocation88_spill] sm:$0xff] %v10121_v61 }
 0x393   : > { %v10103_v32 = vld [vmem:[#allocation1 + $0x3] ss:$4 sm:$0xff] }
 0x394   : > { %3919 = vst [vmem:[#allocation1] sm:$0xff] %v10105_v36  ;;  %v10139_v5 = vpop.f32.mrf.mxu0 }
 0x395   : > { %v10108_v9 = vld [vmem:[#allocation1 + $0x20] ss:$4 sm:$0xff]  ;;  %v10110_v49 = vld [vmem:[#allocation1 + $0x21] ss:$4 sm:$0xff]  ;;  %11484 = vst [vmem:[#allocation89_spill] sm:$0xff] %v10139_v5 }
 0x396   : > { %3933 = vst [vmem:[#allocation1 + $0x20] sm:$0xff] %v10114_v31  ;;  %v11492_v31 = vld [vmem:[#allocation66_spill] sm:$0xff]  ;;  %v11493_v5 = vld [vmem:[#allocation67_spill] sm:$0xff] }
 0x397   : > { %3824 = vmatmul.bf16.gmra.mxu2 %v10014_v46  ;;  %v10145_v11 = vpop.f32.mrf.mxu2 }
 0x398   : > { %v10141_v59 = vpop.f32.mrf.mxu1 }
 0x399   : > { %11485 = vst [vmem:[#allocation90_spill] sm:$0xff] %v10141_v59 }
 0x39b   : > { %v10123_v60 = vld [vmem:[#allocation1] ss:$4 sm:$0xff]  ;;  %v10125_v44 = vld [vmem:[#allocation1 + $0x1] ss:$4 sm:$0xff]  ;;  %v10127_v57 = vld [vmem:[#allocation1 + $0x2] ss:$4 sm:$0xff] }
 0x39c   : > { %v10129_v47 = vld [vmem:[#allocation1 + $0x3] ss:$4 sm:$0xff]  ;;  %v1955_v42 = vpop.f32.mrf.mxu0 }
 0x39d   : > { %3931 = vst [vmem:[#allocation1] sm:$0xff] %v3892_v25  ;;  %v10131_v29 = vld [vmem:[#allocation1 + $0x20] ss:$4 sm:$0xff]  ;;  %v10133_v41 = vld [vmem:[#allocation1 + $0x21] ss:$4 sm:$0xff]  ;;  %v10147_v25 = vpop.f32.mrf.mxu3 }
 0x39e   : > { %v10135_v53 = vld [vmem:[#allocation1 + $0x22] ss:$4 sm:$0xff]  ;;  %v10137_v28 = vld [vmem:[#allocation1 + $0x23] ss:$4 sm:$0xff] }
 0x39f   : > { %3942 = vst [vmem:[#allocation1 + $0x20] sm:$0xff] %v3895_v62  ;;  %v10156_v62 = vld [vmem:[#allocation2 + $0x48] sm:$0xff]  ;;  %v10159_v61 = vpop.f32.mrf.mxu2 }
 0x3a0   : > { %11487 = vst [vmem:[#allocation56_spill] sm:$0xff] %v10156_v62  ;;  %v1993_v46 = vpop.f32.mrf.mxu1 }
 0x3a1   : > { %11488 = vst [vmem:[#allocation91_spill] sm:$0xff] %v10159_v61  ;;  %v11490_v46 = vld [vmem:[#allocation51_spill] sm:$0xff]  ;;  %3867 = vmatmul.bf16.gmra.mxu3 %v10065_v19 }
 0x3a4   : > { %v10149_v26 = vld [vmem:[#allocation1 + $0x3] ss:$4 sm:$0xff] }
 0x3a5   : > { %3940 = vst [vmem:[#allocation1] sm:$0xff] %v11486_v51  ;;  %v10161_v18 = vpop.f32.mrf.mxu3  ;;  %v3064_v59 = vpop.f32.mrf.mxu0 }
 0x3a6   : > { %v10152_v16 = vld [vmem:[#allocation1 + $0x20] ss:$4 sm:$0xff]  ;;  %v10154_v24 = vld [vmem:[#allocation1 + $0x21] ss:$4 sm:$0xff]  ;;  %11489 = vst [vmem:[#allocation92_spill] sm:$0xff] %v10161_v18 }
 0x3a7   : > { %3952 = vst [vmem:[#allocation1 + $0x20] sm:$0xff] %v10156_v62  ;;  %v11491_v62 = vld [vmem:[#allocation52_spill] sm:$0xff]  ;;  %3829 = vmatmul.bf16.gmra.mxu2 %v10063_v50  ;;  %v10187_v2 = vpop.f32.mrf.mxu2  ;;  %v2713_v50 = vadd.f32 %v10101_v33, %v10099_v35 }
 0x3a8   : > { %v1345_v61 = vadd.f32 %v11491_v62, %v11490_v46 }
 0x3aa   : > { %v1562_v8 = vadd.f32 %v11492_v31, %v1345_v61  ;;  %v10195_v61 = vld [vmem:[#allocation2 + $0x68] sm:$0xff] }
 0x3ab   : > { %11494 = vst [vmem:[#allocation51_spill] sm:$0xff] %v10195_v61 }
 0x3ac   : > { %v10163_v10 = vld [vmem:[#allocation1] ss:$4 sm:$0xff]  ;;  %v10165_v27 = vld [vmem:[#allocation1 + $0x1] ss:$4 sm:$0xff]  ;;  %v10167_v51 = vld [vmem:[#allocation1 + $0x2] ss:$4 sm:$0xff]  ;;  %v1600_v20 = vadd.f32 %v11493_v5, %v1562_v8 }
 0x3ad   : > { %v10169_v22 = vld [vmem:[#allocation1 + $0x3] ss:$4 sm:$0xff]  ;;  %v10189_v62 = vpop.f32.mrf.mxu3 }
 0x3ae   : > { %3950 = vst [vmem:[#allocation1] sm:$0xff] %v3896_v63  ;;  %v10171_v42 = vld [vmem:[#allocation1 + $0x20] ss:$4 sm:$0xff]  ;;  %v10173_v54 = vld [vmem:[#allocation1 + $0x21] ss:$4 sm:$0xff]  ;;  %v3102_v63 = vpop.f32.mrf.mxu1  ;;  %v1995_v46 = vadd.f32 %v1967_v14, %v1600_v20  ;;  %v10205_v20 = vpop.f32.mrf.mxu0 }
 0x3af   : > { %v10177_v36 = vld [vmem:[#allocation1 + $0x22] ss:$4 sm:$0xff]  ;;  %v10179_v18 = vld [vmem:[#allocation1 + $0x23] ss:$4 sm:$0xff]  ;;  %v3103_v31 = vadd.f32 %v3102_v63, %v3064_v59  ;;  %11498 = vst [vmem:[#allocation67_spill] sm:$0xff] %v10205_v20  ;;  %v10209_v35 = vpop.f32.mrf.mxu2 }
 0x3b0   : > { %3961 = vst [vmem:[#allocation1 + $0x20] sm:$0xff] %v3899_v48  ;;  %v2741_v19 = vadd.f32 %v2713_v50, %v1995_v46  ;;  %v3692_v46 = vld [vmem:[#allocation1 + $0x9] sm:$0xff]  ;;  %v3903_v63 = vld [vmem:[#allocation2 + $0x10] sm:$0x33] }
 0x3b1   : > { %11500 = vst [vmem:[#allocation94_spill] sm:$0xff] %v10209_v35  ;;  %v3900_v59 = vld [vmem:[#allocation2 + $0x60] sm:$0x88]  ;;  %v7953_v35 = vld [vmem:[%s8359_s26 + $0x378] sm:$0xff]  ;;  %3872 = vmatmul.bf16.gmra.mxu3 %v3692_v46 }
 0x3b2   : > { %v10203_v14 = vadd.f32 %v3103_v31, %v2741_v19  ;;  %v11506_v19 = vld [vmem:[#allocation54_spill] sm:$0xff]  ;;  %v11507_v31 = vld [vmem:[#allocation55_spill] sm:$0xff]  ;;  %4229 = vmatpush.bf16.msrb.mxu1 %v7953_v35 }
 0x3b3   : > { %v1350_v20 = vadd.f32 %v11507_v31, %v11506_v19  ;;  %v7952_v31 = vld [vmem:[%s8359_s26 + $0x370] sm:$0xff]  ;;  %v7951_v35 = vld [vmem:[%s8359_s26 + $0x368] sm:$0xff] }
 0x3b5   : > { %v10193_v48 = vld [vmem:[#allocation1 + $0x3] ss:$4 sm:$0xff]  ;;  %v10211_v33 = vpop.f32.mrf.mxu3 }
 0x3b6   : > { %3959 = vst [vmem:[#allocation1] sm:$0xff] %v10195_v61  ;;  %v10207_v8 = vpop.f32.mrf.mxu1  ;;  %4230 = vmatpush.bf16.msrb.mxu1 %v7952_v31 }
 0x3b7   : > { %v10198_v5 = vld [vmem:[#allocation1 + $0x20] ss:$4 sm:$0xff]  ;;  %v10200_v55 = vld [vmem:[#allocation1 + $0x21] ss:$4 sm:$0xff]  ;;  %11499 = vst [vmem:[#allocation93_spill] sm:$0xff] %v10207_v8  ;;  %3834 = vmatmul.bf16.gmra.mxu2 %v10083_v34  ;;  %v1972_v34 = vadd.f32 %v9930_v3, %v9928_v15 }
 0x3b8   : > { %11495 = vst [vmem:[#allocation52_spill] sm:$0xff] %v10198_v5  ;;  %v7945_v8 = vld [vmem:[%s8359_s26 + $0x338] sm:$0xff]  ;;  %v11511_v15 = vld [vmem:[#allocation50_spill] sm:$0xff] }
 0x3b9   : > { %11496 = vst [vmem:[#allocation66_spill] sm:$0xff] %v10200_v55  ;;  %4191 = vmatpush.bf16.msrb.mxu0 %v7945_v8  ;;  %v7943_v8 = vld [vmem:[%s8359_s26 + $0x328] sm:$0xff] }
 0x3ba   : > { %3971 = vst [vmem:[#allocation1 + $0x20] sm:$0xff] %v11497_v56  ;;  %4231 = vmatpush.bf16.msrb.mxu1 %v7951_v35 }
 0x3bb   : > { %11501 = vst [vmem:[#allocation95_spill] sm:$0xff] %v10211_v33 }
 0x3bd   : > { %v10213_v50 = vld [vmem:[#allocation1] ss:$4 sm:$0xff]  ;;  %v10215_v61 = vld [vmem:[#allocation1 + $0x1] ss:$4 sm:$0xff]  ;;  %v10217_v55 = vld [vmem:[#allocation1 + $0x2] ss:$4 sm:$0xff] }
 0x3be   : > { %11502 = vst [vmem:[#allocation96_spill] sm:$0xff] %v10213_v50  ;;  %v10219_v56 = vld [vmem:[#allocation1 + $0x3] ss:$4 sm:$0xff]  ;;  %v3107_v19 = vpop.f32.mrf.mxu1 }
 0x3bf   : > { %11503 = vst [vmem:[#allocation97_spill] sm:$0xff] %v10215_v61 }
 0x3c0   : > { %11504 = vst [vmem:[#allocation98_spill] sm:$0xff] %v10217_v55  ;;  %v3069_v55 = vpop.f32.mrf.mxu0 }
 0x3c1   : > { %11505 = vst [vmem:[#allocation99_spill] sm:$0xff] %v10219_v56  ;;  %v10225_v33 = vld [vmem:[#allocation1 + $0x20] ss:$4 sm:$0xff]  ;;  %v10227_v5 = vld [vmem:[#allocation1 + $0x21] ss:$4 sm:$0xff]  ;;  %v1567_v56 = vadd.f32 %v9822_v43, %v1350_v20  ;;  %v2718_v20 = vadd.f32 %v10147_v25, %v10145_v11 }
 0x3c2   : > { %3969 = vst [vmem:[#allocation1] sm:$0xff] %v3900_v59  ;;  %v10230_v50 = vld [vmem:[#allocation1 + $0x22] ss:$4 sm:$0xff]  ;;  %v10232_v61 = vld [vmem:[#allocation1 + $0x23] ss:$4 sm:$0xff] }
 0x3c3   : > { %11508 = vst [vmem:[#allocation54_spill] sm:$0xff] %v10227_v5  ;;  %v7944_v59 = vld [vmem:[%s8359_s26 + $0x330] sm:$0xff]  ;;  %v1605_v5 = vadd.f32 %v9824_v40, %v1567_v56  ;;  %v3108_v56 = vadd.f32 %v3107_v19, %v3069_v55  ;;  %v7942_v11 = vld [vmem:[%s8359_s26 + $0x320] sm:$0xff]  ;;  %v7941_v19 = vld [vmem:[%s8359_s26 + $0x318] sm:$0xff] }
 0x3c4   : > { %11509 = vst [vmem:[#allocation55_spill] sm:$0xff] %v10230_v50  ;;  %v10240_v50 = vpop.f32.mrf.mxu2  ;;  %4192 = vmatpush.bf16.msrb.mxu0 %v7944_v59  ;;  %v7950_v25 = vld [vmem:[%s8359_s26 + $0x360] sm:$0xff] }
 0x3c5   : > { %11510 = vst [vmem:[#allocation100_spill] sm:$0xff] %v10232_v61  ;;  %v10242_v61 = vpop.f32.mrf.mxu3  ;;  %v1997_v43 = vadd.f32 %v1972_v34, %v1605_v5  ;;  %4232 = vmatpush.bf16.msrb.mxu1 %v7950_v25 }
 0x3c6   : > { %3980 = vst [vmem:[#allocation1 + $0x20] sm:$0xff] %v3903_v63  ;;  %v10255_v5 = vpop.f32.mrf.mxu1 }
 0x3c7   : > { %v2743_v40 = vadd.f32 %v2718_v20, %v1997_v43  ;;  %11513 = vst [vmem:[#allocation102_spill] sm:$0xff] %v10255_v5  ;;  %v7949_v43 = vld [vmem:[%s8359_s26 + $0x358] sm:$0xff] }
 0x3c8   : > { %v10253_v63 = vpop.f32.mrf.mxu0  ;;  %4193 = vmatpush.bf16.msrb.mxu0 %v7943_v8 }
 0x3c9   : > { %v10248_v46 = vld [vmem:[#allocation1 + $0x3] ss:$4 sm:$0xff]  ;;  %v10251_v3 = vadd.f32 %v3108_v56, %v2743_v40  ;;  %11512 = vst [vmem:[#allocation101_spill] sm:$0xff] %v10253_v63  ;;  %4233 = vmatpush.bf16.msrb.mxu1 %v7949_v43 }
 0x3ca   : > { %3978 = vst [vmem:[#allocation1] sm:$0xff] %v11511_v15  ;;  %v11516_v40 = vld [vmem:[#allocation57_spill] sm:$0xff]  ;;  %v11517_v56 = vld [vmem:[#allocation58_spill] sm:$0xff] }
 0x3cb   : > { %v7940_v63 = vld [vmem:[%s8359_s26 + $0x310] sm:$0xff] }
 0x3cc   : > { %v10259_v59 = vpop.f32.mrf.mxu2  ;;  %4194 = vmatpush.bf16.msrb.mxu0 %v7942_v11  ;;  %v7948_v15 = vld [vmem:[%s8359_s26 + $0x350] sm:$0xff] }
 0x3cd   : > { %11514 = vst [vmem:[#allocation103_spill] sm:$0xff] %v10259_v59  ;;  %v10261_v31 = vpop.f32.mrf.mxu3  ;;  %v10263_v34 = vld [vmem:[#allocation1 + $0x20] ss:$4 sm:$0xff]  ;;  %v10265_v55 = vld [vmem:[#allocation1 + $0x21] ss:$4 sm:$0xff]  ;;  %v1355_v59 = vadd.f32 %v11517_v56, %v11516_v40  ;;  %v1977_v56 = vadd.f32 %v9996_v37, %v9994_v39  ;;  %4234 = vmatpush.bf16.msrb.mxu1 %v7948_v15 }
 0x3ce   : > { %11515 = vst [vmem:[#allocation104_spill] sm:$0xff] %v10261_v31  ;;  %v3112_v25 = vpop.f32.mrf.mxu1  ;;  %v7947_v39 = vld [vmem:[%s8359_s26 + $0x348] sm:$0xff] }
 0x3cf   : > { %v1572_v11 = vadd.f32 %v9880_v7, %v1355_v59  ;;  %v2723_v59 = vadd.f32 %v10189_v62, %v10187_v2  ;;  %v7938_v2 = vld [vmem:[%s8359_s26 + $0x300] sm:$0xff] }
 0x3d0   : > { %v3074_v5 = vpop.f32.mrf.mxu0  ;;  %4195 = vmatpush.bf16.msrb.mxu0 %v7941_v19 }
 0x3d1   : > { %v10269_v20 = vld [vmem:[#allocation1] ss:$4 sm:$0xff]  ;;  %v10271_v8 = vld [vmem:[#allocation1 + $0x1] ss:$4 sm:$0xff]  ;;  %v10273_v35 = vld [vmem:[#allocation1 + $0x2] ss:$4 sm:$0xff]  ;;  %v1610_v40 = vadd.f32 %v9882_v21, %v1572_v11  ;;  %4235 = vmatpush.bf16.msrb.mxu1 %v7947_v39 }
 0x3d2   : > { %v10277_v31 = vld [vmem:[#allocation1 + $0x3] ss:$4 sm:$0xff] }
 0x3d3   : > { %4020 = vst [vmem:[#allocation1] ss:$9 sm:$0xff] %v10103_v32  ;;  %v7939_v21 = vld [vmem:[%s8359_s26 + $0x308] sm:$0xff] }
 0x3d4   : > { %4022 = vst [vmem:[#allocation1 + $0x1] ss:$9 sm:$0xff] %v10085_v17  ;;  %v10288_v32 = vpop.f32.mrf.mxu2  ;;  %v1999_v17 = vadd.f32 %v1977_v56, %v1610_v40  ;;  %4196 = vmatpush.bf16.msrb.mxu0 %v7940_v63 }
 0x3d5   : > { %4024 = vst [vmem:[#allocation1 + $0x2] ss:$9 sm:$0xff] %v10087_v38  ;;  %v10290_v7 = vpop.f32.mrf.mxu3  ;;  %v3113_v38 = vadd.f32 %v3112_v25, %v3074_v5  ;;  %v11522_v5 = vld [vmem:[#allocation59_spill] sm:$0xff] }
 0x3d6   : > { %4026 = vst [vmem:[#allocation1 + $0x3] ss:$9 sm:$0xff] %v10089_v4  ;;  %v2745_v37 = vadd.f32 %v2723_v59, %v1999_v17  ;;  %v10305_v19 = vpop.f32.mrf.mxu1  ;;  %v1982_v17 = vadd.f32 %v10056_v12, %v10052_v58 }
 0x3d7   : > { %4028 = vst [vmem:[#allocation1 + $0x4] ss:$9 sm:$0xff] %v10091_v23 }
 0x3d8   : > { %4030 = vst [vmem:[#allocation1 + $0x5] ss:$9 sm:$0xff] %v10123_v60  ;;  %v10301_v4 = vadd.f32 %v3113_v38, %v2745_v37  ;;  %v10303_v23 = vpop.f32.mrf.mxu0  ;;  %4197 = vmatpush.bf16.msrb.mxu0 %v7939_v21  ;;  %v7946_v60 = vld [vmem:[%s8359_s26 + $0x340] sm:$0xff] }
 0x3d9   : > { %4032 = vst [vmem:[#allocation1 + $0x6] ss:$9 sm:$0xff] %v10125_v44  ;;  %4236 = vmatpush.bf16.msrb.mxu1 %v7946_v60  ;;  %v11526_v37 = vld [vmem:[#allocation64_spill] sm:$0xff] }
 0x3da   : > { %4034 = vst [vmem:[#allocation1 + $0x7] ss:$9 sm:$0xff] %v10127_v57  ;;  %v11523_v57 = vld [vmem:[#allocation60_spill] sm:$0xff] }
 0x3db   : > { %11518 = vst [vmem:[#allocation57_spill] sm:$0xff] %v10303_v23  ;;  %v1360_v43 = vadd.f32 %v11523_v57, %v11522_v5  ;;  %v11534_v57 = vld [vmem:[#allocation28_spill] sm:$0xff]  ;;  %v7992_v23 = vld [vmem:[%s8359_s26 + $0x4b0] sm:$0xff] }
 0x3dc   : > { %11519 = vst [vmem:[#allocation58_spill] sm:$0xff] %v10305_v19  ;;  %v10309_v62 = vpop.f32.mrf.mxu2  ;;  %4198 = vmatpush.bf16.msrb.mxu0 %v7938_v2  ;;  %v7985_v19 = vld [vmem:[%s8359_s26 + $0x478] sm:$0xff] }
 0x3dd   : > { %11520 = vst [vmem:[#allocation105_spill] sm:$0xff] %v10309_v62  ;;  %v10311_v15 = vpop.f32.mrf.mxu3  ;;  %v1577_v11 = vadd.f32 %v9948_v13, %v1360_v43  ;;  %5466 = vmatpush.bf16.msra.mxu1 %v7985_v19 }
 0x3de   : > { %11521 = vst [vmem:[#allocation106_spill] sm:$0xff] %v10311_v15  ;;  %v3117_v40 = vpop.f32.mrf.mxu1  ;;  %v7962_v15 = vld [vmem:[%s8359_s26 + $0x3c0] sm:$0xff] }
 0x3df   : > { %v1615_v56 = vadd.f32 %v9950_v52, %v1577_v11  ;;  %v11535_v11 = vld [vmem:[#allocation97_spill] sm:$0xff] }
 0x3e0   : > { %v3079_v25 = vpop.f32.mrf.mxu0 }
 0x3e1   : > { %v4035_v44 = vld [vmem:[#allocation1] sm:$0xff]  ;;  %v4036_v63 = vld [vmem:[#allocation1 + $0x9] sm:$0xff]  ;;  %v2001_v13 = vadd.f32 %v1982_v17, %v1615_v56  ;;  %v3118_v52 = vadd.f32 %v3117_v40, %v3079_v25  ;;  %v11539_v17 = vld [vmem:[#allocation90_spill] sm:$0xff] }
 0x3e2   : > { %4037 = vst [vmem:[#allocation1] ss:$9 sm:$0xff] %v10129_v47  ;;  %4199 = vmatmul.bf16.vlgmr.msrb.gmra.mxu0 %v4035_v44  ;;  %4237 = vmatmul.bf16.vlgmr.msrb.gmra.mxu1 %v4036_v63  ;;  %v11537_v25 = vld [vmem:[#allocation37_spill] sm:$0xff] }
 0x3e3   : > { %4038 = vst [vmem:[#allocation1 + $0x1] ss:$9 sm:$0xff] %v10108_v9  ;;  %v2728_v9 = vadd.f32 %v10242_v61, %v10240_v50  ;;  %v11527_v61 = vld [vmem:[#allocation65_spill] sm:$0xff] }
 0x3e4   : > { %4039 = vst [vmem:[#allocation1 + $0x2] ss:$9 sm:$0xff] %v10110_v49  ;;  %v10323_v59 = vpop.f32.mrf.mxu2  ;;  %v1365_v50 = vadd.f32 %v11527_v61, %v11526_v37  ;;  %v11538_v56 = vld [vmem:[#allocation89_spill] sm:$0xff] }
 0x3e5   : > { %4040 = vst [vmem:[#allocation1 + $0x3] ss:$9 sm:$0xff] %v10149_v26  ;;  %v10325_v47 = vpop.f32.mrf.mxu3  ;;  %v2747_v26 = vadd.f32 %v2728_v9, %v2001_v13  ;;  %v11540_v9 = vld [vmem:[#allocation99_spill] sm:$0xff] }
 0x3e6   : > { %4041 = vst [vmem:[#allocation1 + $0x4] ss:$9 sm:$0xff] %v10131_v29  ;;  %v10337_v12 = vpop.f32.mrf.mxu1 }
 0x3e7   : > { %4042 = vst [vmem:[#allocation1 + $0x5] ss:$9 sm:$0xff] %v10133_v41  ;;  %v10333_v49 = vadd.f32 %v3118_v52, %v2747_v26  ;;  %v2738_v52 = vadd.f32 %v10325_v47, %v10323_v59 }
 0x3e8   : > { %4043 = vst [vmem:[#allocation1 + $0x6] ss:$9 sm:$0xff] %v10135_v53  ;;  %v10335_v58 = vpop.f32.mrf.mxu0 }
 0x3e9   : > { %4044 = vst [vmem:[#allocation1 + $0x7] ss:$9 sm:$0xff] %v10137_v28  ;;  %v1582_v28 = vadd.f32 %v10018_v30, %v1365_v50 }
 0x3ea   : > { %11524 = vst [vmem:[#allocation59_spill] sm:$0xff] %v10335_v58  ;;  %v7993_v58 = vld [vmem:[%s8359_s26 + $0x4b8] sm:$0xff] }
 0x3eb   : > { %11525 = vst [vmem:[#allocation60_spill] sm:$0xff] %v10337_v12  ;;  %v1620_v53 = vadd.f32 %v10020_v1, %v1582_v28  ;;  %v11562_v12 = vld [vmem:[#allocation50_spill] sm:$0xff] }
 0x3ec   : > { %v2701_v21 = vpop.f32.mrf.mxu2 }
 0x3ed   : > { %v2739_v29 = vpop.f32.mrf.mxu3 }
 0x3f0   : > { %v4045_v39 = vld [vmem:[#allocation1] sm:$0xff]  ;;  %v4046_v41 = vld [vmem:[#allocation1 + $0x9] sm:$0xff]  ;;  %v3084_v38 = vpop.f32.mrf.mxu0 }
 0x3f1   : > { %4047 = vst [vmem:[#allocation1] ss:$9 sm:$0xff] %v10163_v10  ;;  %v1987_v10 = vadd.f32 %v10095_v0, %v10093_v45 }
 0x3f2   : > { %4048 = vst [vmem:[#allocation1 + $0x1] ss:$9 sm:$0xff] %v10165_v27  ;;  %4204 = vmatmul.bf16.gmra.mxu0 %v4045_v39  ;;  %4242 = vmatmul.bf16.gmra.mxu1 %v4046_v41  ;;  %v3122_v27 = vpop.f32.mrf.mxu1 }
 0x3f3   : > { %4049 = vst [vmem:[#allocation1 + $0x2] ss:$9 sm:$0xff] %v10167_v51  ;;  %v2003_v30 = vadd.f32 %v1987_v10, %v1620_v53  ;;  %v2733_v51 = vadd.f32 %v10290_v7, %v10288_v32  ;;  %v3123_v1 = vadd.f32 %v3122_v27, %v3084_v38  ;;  %v11533_v7 = vld [vmem:[#allocation96_spill] sm:$0xff]  ;;  %v11545_v27 = vld [vmem:[#allocation54_spill] sm:$0xff] }
 0x3f4   : > { %4050 = vst [vmem:[#allocation1 + $0x3] ss:$9 sm:$0xff] %v10169_v22  ;;  %v3810_v2 = vpop.f32.mrf.mxu2 }
 0x3f5   : > { %4051 = vst [vmem:[#allocation1 + $0x4] ss:$9 sm:$0xff] %v10152_v16  ;;  %v3848_v60 = vpop.f32.mrf.mxu3  ;;  %v2749_v16 = vadd.f32 %v2733_v51, %v2003_v30 }
 0x3f6   : > { %4052 = vst [vmem:[#allocation1 + $0x5] ss:$9 sm:$0xff] %v10154_v24  ;;  %v3849_v22 = vadd.f32 %v3848_v60, %v3810_v2  ;;  %v11544_v2 = vld [vmem:[#allocation66_spill] sm:$0xff]  ;;  %v11547_v60 = vld [vmem:[#allocation100_spill] sm:$0xff] }
 0x3f7   : > { %4053 = vst [vmem:[#allocation1 + $0x6] ss:$9 sm:$0xff] %v10193_v48  ;;  %v10358_v45 = vadd.f32 %v3123_v1, %v2749_v16 }
 0x3f8   : > { %4054 = vst [vmem:[#allocation1 + $0x7] ss:$9 sm:$0xff] %v10171_v42  ;;  %v10356_v44 = vadd.f32 %v3849_v22, %v10203_v14  ;;  %v10365_v5 = vpop.f32.mrf.mxu0  ;;  %v11532_v42 = vld [vmem:[#allocation77_spill] sm:$0xff] }
 0x3f9   : > { %11530 = vst [vmem:[#allocation107_spill] sm:$0xff] %v10365_v5  ;;  %v1370_v14 = vadd.f32 %v11532_v42, %v9808_v6  ;;  %v7954_v5 = vld [vmem:[%s8359_s26 + $0x380] sm:$0xff] }
 0x3fa   : > { %v10367_v32 = vpop.f32.mrf.mxu1 }
 0x3fb   : > { %11531 = vst [vmem:[#allocation108_spill] sm:$0xff] %v10367_v32  ;;  %v1587_v43 = vadd.f32 %v11534_v57, %v1370_v14  ;;  %v4281_v14 = vld [vmem:[#allocation2 + $0x28] sm:$0x77] }
 0x3fc   : > { %v10360_v0 = vpop.f32.mrf.mxu2 }
 0x3fd   : > { %11528 = vst [vmem:[#allocation64_spill] sm:$0xff] %v10360_v0  ;;  %v10362_v24 = vpop.f32.mrf.mxu3  ;;  %v1625_v40 = vadd.f32 %v11537_v25, %v1587_v43  ;;  %v7961_v43 = vld [vmem:[%s8359_s26 + $0x3b8] sm:$0xff] }
 0x3fe   : > { %11529 = vst [vmem:[#allocation65_spill] sm:$0xff] %v10362_v24  ;;  %4937 = vmatpush.bf16.msrb.mxu2 %v7961_v43 }
 0x3ff   : > { %v4055_v63 = vld [vmem:[#allocation1] sm:$0xff]  ;;  %v4056_v48 = vld [vmem:[#allocation1 + $0x9] sm:$0xff] }
 0x400   : > { %4057 = vst [vmem:[#allocation1] ss:$9 sm:$0xff] %v10173_v54  ;;  %v11536_v54 = vld [vmem:[#allocation98_spill] sm:$0xff]  ;;  %v3089_v29 = vpop.f32.mrf.mxu0 }
 0x401   : > { %4058 = vst [vmem:[#allocation1 + $0x1] ss:$9 sm:$0xff] %v10177_v36  ;;  %v1992_v36 = vadd.f32 %v11539_v17, %v11538_v56  ;;  %v7960_v17 = vld [vmem:[%s8359_s26 + $0x3b0] sm:$0xff] }
 0x402   : > { %4059 = vst [vmem:[#allocation1 + $0x2] ss:$9 sm:$0xff] %v10179_v18  ;;  %4209 = vmatmul.bf16.gmra.mxu0 %v4055_v63  ;;  %4247 = vmatmul.bf16.gmra.mxu1 %v4056_v48  ;;  %v11541_v18 = vld [vmem:[#allocation52_spill] sm:$0xff]  ;;  %v3127_v39 = vpop.f32.mrf.mxu1 }
 0x403   : > { %4060 = vst [vmem:[#allocation1 + $0x3] ss:$9 sm:$0xff] %v11533_v7  ;;  %v2005_v26 = vadd.f32 %v1992_v36, %v1625_v40  ;;  %v3128_v61 = vadd.f32 %v3127_v39, %v3089_v29  ;;  %v4278_v48 = vld [vmem:[#allocation2 + $0x58] sm:$0x88]  ;;  %v7968_v36 = vld [vmem:[%s8359_s26 + $0x3f0] sm:$0xff]  ;;  %4938 = vmatpush.bf16.msrb.mxu2 %v7960_v17 }
 0x404   : > { %4061 = vst [vmem:[#allocation1 + $0x4] ss:$9 sm:$0xff] %v11535_v11  ;;  %v3815_v13 = vpop.f32.mrf.mxu2  ;;  %v7969_v11 = vld [vmem:[%s8359_s26 + $0x3f8] sm:$0xff] }
 0x405   : > { %4062 = vst [vmem:[#allocation1 + $0x5] ss:$9 sm:$0xff] %v11536_v54  ;;  %v3853_v6 = vpop.f32.mrf.mxu3  ;;  %v2751_v41 = vadd.f32 %v2738_v52, %v2005_v26  ;;  %4975 = vmatpush.bf16.msrb.mxu3 %v7969_v11  ;;  %v4285_v26 = vld [vmem:[#allocation2 + $0x50] sm:$0x77] }
 0x406   : > { %4063 = vst [vmem:[#allocation1 + $0x6] ss:$9 sm:$0xff] %v11540_v9  ;;  %v3854_v21 = vadd.f32 %v3853_v6, %v3815_v13  ;;  %v11553_v13 = vld [vmem:[#allocation38_spill] sm:$0xff] }
 0x407   : > { %4064 = vst [vmem:[#allocation1 + $0x7] ss:$9 sm:$0xff] %v11541_v18  ;;  %v10387_v50 = vadd.f32 %v3128_v61, %v2751_v41  ;;  %v7959_v9 = vld [vmem:[%s8359_s26 + $0x3a8] sm:$0xff]  ;;  %v4282_v18 = vld [vmem:[#allocation2] sm:$0x88] }
 0x408   : > { %v10385_v37 = vadd.f32 %v3854_v21, %v10251_v3  ;;  %v3091_v59 = vpop.f32.mrf.mxu0  ;;  %v11546_v3 = vld [vmem:[#allocation55_spill] sm:$0xff]  ;;  %v7967_v6 = vld [vmem:[%s8359_s26 + $0x3e8] sm:$0xff]  ;;  %4939 = vmatpush.bf16.msrb.mxu2 %v7959_v9 }
 0x409   : > { %4976 = vmatpush.bf16.msrb.mxu3 %v7968_v36  ;;  %v7966_v59 = vld [vmem:[%s8359_s26 + $0x3e0] sm:$0xff] }
 0x40a   : > { %v3129_v47 = vpop.f32.mrf.mxu1 }
 0x40c   : > { %v10389_v28 = vpop.f32.mrf.mxu2 }
 0x40d   : > { %11542 = vst [vmem:[#allocation77_spill] sm:$0xff] %v10389_v28  ;;  %v10391_v38 = vpop.f32.mrf.mxu3  ;;  %4977 = vmatpush.bf16.msrb.mxu3 %v7967_v6 }
 0x40e   : > { %v4065_v53 = vld [vmem:[#allocation1] sm:$0xff]  ;;  %v4066_v10 = vld [vmem:[#allocation1 + $0x9] sm:$0xff]  ;;  %11543 = vst [vmem:[#allocation96_spill] sm:$0xff] %v10391_v38 }
 0x40f   : > { %4067 = vst [vmem:[#allocation1] ss:$9 sm:$0xff] %v11544_v2  ;;  %v7958_v2 = vld [vmem:[%s8359_s26 + $0x3a0] sm:$0xff] }
 0x410   : > { %4068 = vst [vmem:[#allocation1 + $0x1] ss:$9 sm:$0xff] %v10248_v46  ;;  %4940 = vmatpush.bf16.msrb.mxu2 %v7958_v2 }
 0x411   : > { %4069 = vst [vmem:[#allocation1 + $0x2] ss:$9 sm:$0xff] %v10225_v33  ;;  %4978 = vmatpush.bf16.msrb.mxu3 %v7966_v59 }
 0x412   : > { %4070 = vst [vmem:[#allocation1 + $0x3] ss:$9 sm:$0xff] %v11545_v27  ;;  %4214 = vmatmul.bf16.gmra.mxu0 %v4065_v53  ;;  %4252 = vmatmul.bf16.gmra.mxu1 %v4066_v10 }
 0x413   : > { %4071 = vst [vmem:[#allocation1 + $0x4] ss:$9 sm:$0xff] %v11546_v3 }
 0x414   : > { %4072 = vst [vmem:[#allocation1 + $0x5] ss:$9 sm:$0xff] %v11547_v60  ;;  %v3820_v30 = vpop.f32.mrf.mxu2  ;;  %v7957_v60 = vld [vmem:[%s8359_s26 + $0x398] sm:$0xff] }
 0x415   : > { %4073 = vst [vmem:[#allocation1 + $0x6] ss:$9 sm:$0xff] %v10269_v20  ;;  %v3858_v51 = vpop.f32.mrf.mxu3  ;;  %v11550_v20 = vld [vmem:[#allocation72_spill] sm:$0xff]  ;;  %4941 = vmatpush.bf16.msrb.mxu2 %v7957_v60 }
 0x416   : > { %4074 = vst [vmem:[#allocation1 + $0x7] ss:$9 sm:$0xff] %v10271_v8  ;;  %v3859_v22 = vadd.f32 %v3858_v51, %v3820_v30  ;;  %v7965_v30 = vld [vmem:[%s8359_s26 + $0x3d8] sm:$0xff] }
 0x417   : > { %4979 = vmatpush.bf16.msrb.mxu3 %v7965_v30  ;;  %v7955_v30 = vld [vmem:[%s8359_s26 + $0x388] sm:$0xff] }
 0x418   : > { %v10402_v46 = vadd.f32 %v3859_v22, %v10301_v4 }
 0x41c   : > { %v10404_v1 = vpop.f32.mrf.mxu2 }
 0x41d   : > { %v4075_v16 = vld [vmem:[#allocation1] sm:$0xff]  ;;  %v4076_v33 = vld [vmem:[#allocation1 + $0x9] sm:$0xff]  ;;  %11548 = vst [vmem:[#allocation28_spill] sm:$0xff] %v10404_v1  ;;  %v10407_v63 = vpop.f32.mrf.mxu3 }
 0x41e   : > { %4077 = vst [vmem:[#allocation1] ss:$9 sm:$0xff] %v10273_v35  ;;  %v7977_v1 = vld [vmem:[%s8359_s26 + $0x438] sm:$0xff] }
 0x41f   : > { %11549 = vst [vmem:[#allocation97_spill] sm:$0xff] %v10407_v63  ;;  %v8001_v63 = vld [vmem:[%s8359_s26 + $0x4f8] sm:$0xff]  ;;  %5428 = vmatpush.bf16.msra.mxu0 %v7977_v1 }
 0x420   : > { %4078 = vst [vmem:[#allocation1 + $0x1] ss:$9 sm:$0xff] %v10277_v31 }
 0x421   : > { %4079 = vst [vmem:[#allocation1 + $0x2] ss:$9 sm:$0xff] %v10263_v34 }
 0x422   : > { %4080 = vst [vmem:[#allocation1 + $0x3] ss:$9 sm:$0xff] %v10265_v55  ;;  %4219 = vmatmul.bf16.gmra.mxu0 %v4075_v16  ;;  %4257 = vmatmul.bf16.gmra.mxu1 %v4076_v33 }
 0x423   : > { %4297 = vst [vmem:[#allocation1 + $0x20] sm:$0xff] %v11550_v20 }
 0x424   : > { %v3825_v8 = vpop.f32.mrf.mxu2 }
 0x425   : > { %v3863_v4 = vpop.f32.mrf.mxu3 }
 0x426   : > { %v3864_v42 = vadd.f32 %v3863_v4, %v3825_v8  ;;  %v11556_v8 = vld [vmem:[#allocation56_spill] sm:$0xff]  ;;  %v7956_v4 = vld [vmem:[%s8359_s26 + $0x390] sm:$0xff] }
 0x427   : > { %4942 = vmatpush.bf16.msrb.mxu2 %v7956_v4 }
 0x428   : > { %v10420_v34 = vadd.f32 %v3864_v42, %v10333_v49  ;;  %v11552_v49 = vld [vmem:[#allocation85_spill] sm:$0xff] }
 0x429   : > { %v4081_v35 = vld [vmem:[#allocation1] sm:$0xff]  ;;  %v4082_v3 = vld [vmem:[#allocation1 + $0x9] sm:$0xff] }
 0x42a   : > { %v10413_v7 = vld [vmem:[#allocation1 + $0x20] ss:$4 sm:$0xff]  ;;  %v10415_v57 = vld [vmem:[#allocation1 + $0x21] ss:$4 sm:$0xff]  ;;  %v10417_v31 = vld [vmem:[#allocation1 + $0x22] ss:$4 sm:$0xff] }
 0x42b   : > { %11551 = vst [vmem:[#allocation98_spill] sm:$0xff] %v10420_v34  ;;  %v10422_v55 = vld [vmem:[#allocation1 + $0x23] ss:$4 sm:$0xff]  ;;  %4943 = vmatpush.bf16.msrb.mxu2 %v7955_v30  ;;  %v4392_v24 = vshll.u32 %v10415_v57, 16 }
 0x42c   : > { %4295 = vst [vmem:[#allocation1] sm:$0xff] %v4278_v48  ;;  %v10440_v52 = vpop.f32.mrf.mxu2  ;;  %v7964_v48 = vld [vmem:[%s8359_s26 + $0x3d0] sm:$0xff]  ;;  %v4290_v30 = vld [vmem:[#allocation2 + $0x60] sm:$0x88] }
 0x42d   : > { %4311 = vst [vmem:[#allocation1 + $0x20] sm:$0xff] %v4281_v14  ;;  %v10442_v21 = vpop.f32.mrf.mxu3  ;;  %4980 = vmatpush.bf16.msrb.mxu3 %v7964_v48 }
 0x42e   : > { %11554 = vst [vmem:[#allocation37_spill] sm:$0xff] %v10440_v52 }
 0x42f   : > { %11555 = vst [vmem:[#allocation89_spill] sm:$0xff] %v10442_v21  ;;  %4944 = vmatpush.bf16.msrb.mxu2 %v7954_v5 }
 0x432   : > { %4224 = vmatmul.bf16.gmra.mxu0 %v4081_v35  ;;  %4262 = vmatmul.bf16.gmra.mxu1 %v4082_v3  ;;  %v4289_v35 = vld [vmem:[#allocation2 + $0x20] sm:$0x77] }
 0x433   : > { %v10426_v54 = vld [vmem:[#allocation1 + $0x3] ss:$4 sm:$0xff]  ;;  %6287 = vmatpush.bf16.msra.mxu2 %v7993_v58 }
 0x434   : > { %v10428_v25 = vld [vmem:[#allocation1 + $0x20] ss:$4 sm:$0xff]  ;;  %v10430_v40 = vld [vmem:[#allocation1 + $0x21] ss:$4 sm:$0xff]  ;;  %v10432_v56 = vld [vmem:[#allocation1 + $0x22] ss:$4 sm:$0xff]  ;;  %v3830_v33 = vpop.f32.mrf.mxu2 }
 0x435   : > { %4324 = vst [vmem:[#allocation1 + $0x20] sm:$0xff] %v11552_v49  ;;  %v3868_v20 = vpop.f32.mrf.mxu3 }
 0x436   : > { %4309 = vst [vmem:[#allocation1] sm:$0xff] %v11553_v13  ;;  %v3869_v42 = vadd.f32 %v3868_v20, %v3830_v33  ;;  %v8074_v13 = vld [vmem:[#allocation2 + $0x78] sm:$0xff]  ;;  %v7963_v33 = vld [vmem:[%s8359_s26 + $0x3c8] sm:$0xff]  ;;  %v4293_v20 = vld [vmem:[#allocation2 + $0x10] sm:$0x77] }
 0x437   : > { %4981 = vmatpush.bf16.msrb.mxu3 %v7963_v33  ;;  %6288 = vmatpush.bf16.msra.mxu2 %v7992_v23  ;;  %v4381_v23 = vshrl.u32 %v10426_v54, 16 }
 0x438   : > { %v10474_v14 = vadd.f32 %v3869_v42, %v10358_v45 }
 0x43a   : > { %11557 = vst [vmem:[#allocation90_spill] sm:$0xff] %v10474_v14  ;;  %v4402_v14 = vshrl.u32 %v10417_v31, 16 }
 0x43b   : > { %4982 = vmatpush.bf16.msrb.mxu3 %v7962_v15  ;;  %v8000_v15 = vld [vmem:[%s8359_s26 + $0x4f0] sm:$0xff] }
 0x43c   : > { %v10444_v29 = vld [vmem:[#allocation1 + $0x20] ss:$4 sm:$0xff]  ;;  %v10446_v39 = vld [vmem:[#allocation1 + $0x21] ss:$4 sm:$0xff]  ;;  %v10448_v41 = vld [vmem:[#allocation1 + $0x22] ss:$4 sm:$0xff] }
 0x43d   : > { %v10450_v61 = vld [vmem:[#allocation1 + $0x23] ss:$4 sm:$0xff]  ;;  %v10452_v53 = vld [vmem:[#allocation1] ss:$4 sm:$0xff]  ;;  %v10454_v10 = vld [vmem:[#allocation1 + $0x1] ss:$4 sm:$0xff] }
 0x43e   : > { %4333 = vst [vmem:[#allocation1 + $0x20] sm:$0xff] %v4285_v26  ;;  %v10458_v47 = vld [vmem:[#allocation1 + $0x2] ss:$4 sm:$0xff]  ;;  %v10460_v27 = vld [vmem:[#allocation1 + $0x3] ss:$4 sm:$0xff] }
 0x43f   : > { %4322 = vst [vmem:[#allocation1] sm:$0xff] %v4282_v18  ;;  %v4286_v18 = vld [vmem:[#allocation2 + $0x30] sm:$0x88]  ;;  %v11558_v26 = vld [vmem:[#allocation49_spill] sm:$0xff]  ;;  %6325 = vmatpush.bf16.msra.mxu3 %v8001_v63  ;;  %v4385_v63 = vshll.u32 %v10413_v7, 16 }
 0x441   : > { %v4387_v34 = vsel %vm8484_vm4, %v4381_v23, %v4385_v63  ;;  %v4416_v23 = vshrl.u32 %v10452_v53, 16  ;;  %v4420_v63 = vshll.u32 %v10454_v10, 16 }
 0x443   : > { %6326 = vmatpush.bf16.msra.mxu3 %v8000_v15  ;;  %v4388_v15 = vshrl.u32 %v10413_v7, 16  ;;  %v4406_v7 = vshll.u32 %v10422_v55, 16 }
 0x445   : > { %v10464_v51 = vld [vmem:[#allocation1 + $0x20] ss:$4 sm:$0xff]  ;;  %v10466_v22 = vld [vmem:[#allocation1 + $0x21] ss:$4 sm:$0xff]  ;;  %v10468_v16 = vld [vmem:[#allocation1 + $0x22] ss:$4 sm:$0xff] }
 0x446   : > { %4344 = vst [vmem:[#allocation1 + $0x20] sm:$0xff] %v11556_v8  ;;  %v10476_v43 = vld [vmem:[#allocation1 + $0x3] ss:$4 sm:$0xff] }
 0x447   : > { %4331 = vst [vmem:[#allocation1] sm:$0xff] %v8074_v13  ;;  %v10513_v13 = vpop.f32.mrf.mxu3 }
 0x448   : > { %11560 = vst [vmem:[#allocation52_spill] sm:$0xff] %v10513_v13 }
 0x44d   : > { %v10478_v11 = vld [vmem:[#allocation1 + $0x20] ss:$4 sm:$0xff]  ;;  %v10480_v49 = vld [vmem:[#allocation1 + $0x21] ss:$4 sm:$0xff]  ;;  %v10482_v17 = vld [vmem:[#allocation1 + $0x22] ss:$4 sm:$0xff] }
 0x44e   : > { %v10484_v36 = vld [vmem:[#allocation1 + $0x23] ss:$4 sm:$0xff]  ;;  %v10493_v2 = vld [vmem:[#allocation1] ss:$4 sm:$0xff]  ;;  %v10495_v59 = vld [vmem:[#allocation1 + $0x1] ss:$4 sm:$0xff] }
 0x44f   : > { %4353 = vst [vmem:[#allocation1 + $0x20] sm:$0xff] %v4289_v35  ;;  %v10497_v3 = vld [vmem:[#allocation1 + $0x2] ss:$4 sm:$0xff]  ;;  %v10499_v60 = vld [vmem:[#allocation1 + $0x3] ss:$4 sm:$0xff]  ;;  %v10511_v35 = vpop.f32.mrf.mxu2  ;;  %v3873_v32 = vpop.f32.mrf.mxu3 }
 0x450   : > { %4342 = vst [vmem:[#allocation1] sm:$0xff] %v4286_v18 }
 0x451   : > { %11559 = vst [vmem:[#allocation99_spill] sm:$0xff] %v10511_v35 }
 0x456   : > { %v10486_v9 = vld [vmem:[#allocation1 + $0x20] ss:$4 sm:$0xff]  ;;  %v10488_v45 = vld [vmem:[#allocation1 + $0x21] ss:$4 sm:$0xff]  ;;  %v10490_v6 = vld [vmem:[#allocation1 + $0x22] ss:$4 sm:$0xff] }
 0x457   : > { %4364 = vst [vmem:[#allocation1 + $0x20] sm:$0xff] %v11558_v26  ;;  %v10515_v18 = vld [vmem:[#allocation1 + $0x3] ss:$4 sm:$0xff]  ;;  %v3835_v33 = vpop.f32.mrf.mxu2  ;;  %v3875_v13 = vpop.f32.mrf.mxu3 }
 0x458   : > { %v11561_v26 = vld [vmem:[#allocation51_spill] sm:$0xff]  ;;  %v3874_v28 = vadd.f32 %v3873_v32, %v3835_v33  ;;  %v4395_v32 = vshrl.u32 %v10415_v57, 16  ;;  %v4399_v33 = vshll.u32 %v10417_v31, 16  ;;  %v4413_v31 = vshll.u32 %v10452_v53, 16 }
 0x459   : > { %4351 = vst [vmem:[#allocation1] sm:$0xff] %v11561_v26 }
 0x45a   : > { %v10556_v0 = vadd.f32 %v3874_v28, %v10387_v50  ;;  %v7984_v50 = vld [vmem:[%s8359_s26 + $0x470] sm:$0xff] }
 0x45b   : > { %5467 = vmatpush.bf16.msra.mxu1 %v7984_v50 }
 0x45c   : > { %11569 = vst [vmem:[#allocation38_spill] sm:$0xff] %v10556_v0  ;;  %v7991_v0 = vld [vmem:[%s8359_s26 + $0x4a8] sm:$0xff] }
 0x45d   : > { %6289 = vmatpush.bf16.msra.mxu2 %v7991_v0 }
 0x45e   : > { %v10503_v8 = vld [vmem:[#allocation1 + $0x20] ss:$4 sm:$0xff]  ;;  %v10505_v4 = vld [vmem:[#allocation1 + $0x21] ss:$4 sm:$0xff]  ;;  %v10507_v48 = vld [vmem:[#allocation1 + $0x22] ss:$4 sm:$0xff] }
 0x45f   : > { %v10509_v42 = vld [vmem:[#allocation1 + $0x23] ss:$4 sm:$0xff]  ;;  %v3837_v26 = vpop.f32.mrf.mxu2  ;;  %v4200_v5 = vpop.f32.mrf.mxu0 }
 0x460   : > { %4373 = vst [vmem:[#allocation1 + $0x20] sm:$0xff] %v4293_v20  ;;  %v10520_v62 = vld [vmem:[#allocation1] ss:$4 sm:$0xff]  ;;  %v10522_v21 = vld [vmem:[#allocation1 + $0x1] ss:$4 sm:$0xff] }
 0x461   : > { %v10524_v35 = vld [vmem:[#allocation1 + $0x2] ss:$4 sm:$0xff]  ;;  %v10526_v20 = vld [vmem:[#allocation1 + $0x3] ss:$4 sm:$0xff] }
 0x462   : > { %4362 = vst [vmem:[#allocation1] sm:$0xff] %v4290_v30  ;;  %v4238_v30 = vpop.f32.mrf.mxu1 }
 0x467   : > { %v10537_v26 = vld [vmem:[#allocation1 + $0x20] ss:$4 sm:$0xff]  ;;  %v10539_v13 = vld [vmem:[#allocation1 + $0x21] ss:$4 sm:$0xff]  ;;  %v10541_v38 = vld [vmem:[#allocation1 + $0x22] ss:$4 sm:$0xff]  ;;  %v4202_v28 = vpop.f32.mrf.mxu0 }
 0x468   : > { %11563 = vst [vmem:[#allocation66_spill] sm:$0xff] %v10537_v26  ;;  %v7976_v26 = vld [vmem:[%s8359_s26 + $0x430] sm:$0xff] }
 0x469   : > { %v10528_v52 = vld [vmem:[#allocation1 + $0x3] ss:$4 sm:$0xff]  ;;  %11564 = vst [vmem:[#allocation54_spill] sm:$0xff] %v10539_v13  ;;  %v4409_v13 = vshrl.u32 %v10422_v55, 16  ;;  %v4408_v55 = vsel %vm8484_vm4, %v4402_v14, %v4406_v7  ;;  %5429 = vmatpush.bf16.msra.mxu0 %v7976_v26  ;;  %v4434_v14 = vshll.u32 %v10460_v27, 16  ;;  %v4444_v7 = vshrl.u32 %v10428_v25, 16 }
 0x46a   : > { %4371 = vst [vmem:[#allocation1] sm:$0xff] %v11562_v12  ;;  %v4240_v57 = vpop.f32.mrf.mxu1 }
 0x46b   : > { %11565 = vst [vmem:[#allocation55_spill] sm:$0xff] %v10541_v38  ;;  %v4394_v38 = vsel %vm8484_vm4, %v4388_v15, %v4392_v24  ;;  %v7999_v24 = vld [vmem:[%s8359_s26 + $0x4e8] sm:$0xff]  ;;  %v4423_v15 = vshrl.u32 %v10454_v10, 16  ;;  %v4415_v53 = vsel %vm8484_vm4, %v4409_v13, %v4413_v31  ;;  %v4239_v10 = vadd.f32 %v4238_v30, %v4200_v5  ;;  %v7974_v13 = vld [vmem:[%s8359_s26 + $0x420] sm:$0xff] }
 0x46c   : > { %6327 = vmatpush.bf16.msra.mxu3 %v7999_v24  ;;  %v4437_v30 = vshrl.u32 %v10460_v27, 16  ;;  %v10601_v50 = vadd.f32 %v4240_v57, %v4202_v28  ;;  %v4451_v31 = vshrl.u32 %v10430_v40, 16  ;;  %v4462_v24 = vshll.u32 %v10444_v29, 16 }
 0x46d   : > { %v10593_v26 = vadd.f32 %v4239_v10, %v10356_v44  ;;  %v4465_v28 = vshrl.u32 %v10444_v29, 16  ;;  %v4469_v57 = vshll.u32 %v10446_v39, 16  ;;  %v4479_v29 = vshrl.u32 %v10448_v41, 16 }
 0x46f   : > { %v4205_v0 = vpop.f32.mrf.mxu0 }
 0x471   : > { %v10543_v12 = vld [vmem:[#allocation1] ss:$4 sm:$0xff]  ;;  %v10545_v58 = vld [vmem:[#allocation1 + $0x1] ss:$4 sm:$0xff]  ;;  %v10547_v1 = vld [vmem:[#allocation1 + $0x2] ss:$4 sm:$0xff] }
 0x472   : > { %11566 = vst [vmem:[#allocation100_spill] sm:$0xff] %v10545_v58  ;;  %v10550_v19 = vld [vmem:[#allocation1 + $0x3] ss:$4 sm:$0xff]  ;;  %v4430_v58 = vshrl.u32 %v10458_v47, 16  ;;  %v4243_v5 = vpop.f32.mrf.mxu1 }
 0x473   : > { %11567 = vst [vmem:[#allocation72_spill] sm:$0xff] %v10547_v1  ;;  %v4427_v1 = vshll.u32 %v10458_v47, 16  ;;  %v4244_v44 = vadd.f32 %v4243_v5, %v4205_v0  ;;  %v7972_v0 = vld [vmem:[%s8359_s26 + $0x410] sm:$0xff] }
 0x474   : > { %11568 = vst [vmem:[#allocation85_spill] sm:$0xff] %v10550_v19  ;;  %v4401_v19 = vsel %vm8484_vm4, %v4395_v32, %v4399_v33  ;;  %v7975_v32 = vld [vmem:[%s8359_s26 + $0x428] sm:$0xff]  ;;  %v4436_v47 = vsel %vm8484_vm4, %v4430_v58, %v4434_v14  ;;  %v4448_v58 = vshll.u32 %v10430_v40, 16  ;;  %v7973_v14 = vld [vmem:[%s8359_s26 + $0x418] sm:$0xff] }
 0x475   : > { %4723 = vst [vmem:[#allocation1] ss:$9 sm:$0xff] %v4387_v34  ;;  %v4422_v34 = vsel %vm8484_vm4, %v4416_v23, %v4420_v63  ;;  %v7983_v33 = vld [vmem:[%s8359_s26 + $0x468] sm:$0xff]  ;;  %5430 = vmatpush.bf16.msra.mxu0 %v7975_v32  ;;  %v4455_v23 = vshll.u32 %v10432_v56, 16  ;;  %v4458_v63 = vshrl.u32 %v10476_v43, 16  ;;  %v10608_v27 = vadd.f32 %v4244_v44, %v10385_v37 }
 0x476   : > { %4726 = vst [vmem:[#allocation1 + $0x1] ss:$9 sm:$0xff] %v4394_v38  ;;  %v4429_v38 = vsel %vm8484_vm4, %v4423_v15, %v4427_v1  ;;  %5468 = vmatpush.bf16.msra.mxu1 %v7983_v33  ;;  %v4441_v1 = vshll.u32 %v10428_v25, 16  ;;  %v4450_v40 = vsel %vm8484_vm4, %v4444_v7, %v4448_v58  ;;  %v4472_v56 = vshrl.u32 %v10446_v39, 16  ;;  %v7971_v7 = vld [vmem:[%s8359_s26 + $0x408] sm:$0xff] }
 0x477   : > { %4729 = vst [vmem:[#allocation1 + $0x2] ss:$9 sm:$0xff] %v4401_v19  ;;  %v7982_v19 = vld [vmem:[%s8359_s26 + $0x460] sm:$0xff]  ;;  %v4476_v43 = vshll.u32 %v10448_v41, 16  ;;  %v4457_v37 = vsel %vm8484_vm4, %v4451_v31, %v4455_v23  ;;  %v4483_v32 = vshll.u32 %v10450_v61, 16  ;;  %v4486_v39 = vshrl.u32 %v10450_v61, 16  ;;  %v4207_v10 = vpop.f32.mrf.mxu0 }
 0x478   : > { %4732 = vst [vmem:[#allocation1 + $0x3] ss:$9 sm:$0xff] %v4408_v55  ;;  %v4443_v25 = vsel %vm8484_vm4, %v4437_v30, %v4441_v1  ;;  %v4471_v41 = vsel %vm8484_vm4, %v4465_v28, %v4469_v57  ;;  %v7980_v30 = vld [vmem:[%s8359_s26 + $0x450] sm:$0xff]  ;;  %v7979_v58 = vld [vmem:[%s8359_s26 + $0x448] sm:$0xff]  ;;  %v4493_v44 = vshrl.u32 %v10493_v2, 16  ;;  %v4497_v31 = vshll.u32 %v10495_v59, 16 }
 0x479   : > { %4735 = vst [vmem:[#allocation1 + $0x4] ss:$9 sm:$0xff] %v4415_v53  ;;  %5431 = vmatpush.bf16.msra.mxu0 %v7974_v13  ;;  %v4464_v53 = vsel %vm8484_vm4, %v4458_v63, %v4462_v24  ;;  %v7998_v13 = vld [vmem:[%s8359_s26 + $0x4e0] sm:$0xff]  ;;  %v4478_v61 = vsel %vm8484_vm4, %v4472_v56, %v4476_v43  ;;  %v4485_v5 = vsel %vm8484_vm4, %v4479_v29, %v4483_v32  ;;  %v4500_v24 = vshrl.u32 %v10495_v59, 16 }
 0x47a   : > { %4738 = vst [vmem:[#allocation1 + $0x5] ss:$9 sm:$0xff] %v4422_v34  ;;  %5469 = vmatpush.bf16.msra.mxu1 %v7982_v19  ;;  %v4490_v34 = vshll.u32 %v10493_v2, 16  ;;  %v4245_v33 = vpop.f32.mrf.mxu1  ;;  %6328 = vmatpush.bf16.msra.mxu3 %v7998_v13  ;;  %v4507_v57 = vshrl.u32 %v10497_v3, 16  ;;  %v7970_v56 = vld [vmem:[%s8359_s26 + $0x400] sm:$0xff]  ;;  %v4514_v43 = vshrl.u32 %v10499_v60, 16  ;;  %v4499_v59 = vsel %vm8484_vm4, %v4493_v44, %v4497_v31 }
 0x47b   : > { %4741 = vst [vmem:[#allocation1 + $0x6] ss:$9 sm:$0xff] %v4429_v38  ;;  %v7981_v38 = vld [vmem:[%s8359_s26 + $0x458] sm:$0xff]  ;;  %v10632_v19 = vadd.f32 %v4245_v33, %v4207_v10  ;;  %v4528_v32 = vshrl.u32 %v10466_v22, 16  ;;  %v4542_v10 = vshrl.u32 %v10478_v11, 16  ;;  %v4546_v33 = vshll.u32 %v10480_v49, 16 }
 0x47c   : > { %4744 = vst [vmem:[#allocation1 + $0x7] ss:$9 sm:$0xff] %v4436_v47  ;;  %v7990_v47 = vld [vmem:[%s8359_s26 + $0x4a0] sm:$0xff]  ;;  %v4492_v1 = vsel %vm8484_vm4, %v4486_v39, %v4490_v34  ;;  %v4535_v34 = vshrl.u32 %v10515_v18, 16  ;;  %v4560_v13 = vshll.u32 %v10484_v36, 16 }
 0x47d   : > { %5432 = vmatpush.bf16.msra.mxu0 %v7973_v14  ;;  %6290 = vmatpush.bf16.msra.mxu2 %v7990_v47  ;;  %v4539_v14 = vshll.u32 %v10478_v11, 16  ;;  %v4548_v11 = vsel %vm8484_vm4, %v4542_v10, %v4546_v33  ;;  %v4556_v47 = vshrl.u32 %v10482_v17, 16 }
 0x47e   : > { %5470 = vmatpush.bf16.msra.mxu1 %v7981_v38  ;;  %v4553_v38 = vshll.u32 %v10482_v17, 16 }
 0x47f   : > { %v4210_v23 = vpop.f32.mrf.mxu0  ;;  %v4541_v18 = vsel %vm8484_vm4, %v4535_v34, %v4539_v14  ;;  %v4562_v17 = vsel %vm8484_vm4, %v4556_v47, %v4560_v13  ;;  %v11572_v14 = vld [vmem:[#allocation72_spill] sm:$0xff]  ;;  %v11575_v13 = vld [vmem:[#allocation54_spill] sm:$0xff] }
 0x481   : > { %5433 = vmatpush.bf16.msra.mxu0 %v7972_v0  ;;  %v4567_v0 = vshll.u32 %v10520_v62, 16 }
 0x482   : > { %5471 = vmatpush.bf16.msra.mxu1 %v7980_v30  ;;  %v4248_v63 = vpop.f32.mrf.mxu1  ;;  %v4574_v30 = vshll.u32 %v10522_v21, 16 }
 0x483   : > { %v4745_v55 = vld [vmem:[#allocation1] sm:$0xff]  ;;  %v4746_v15 = vld [vmem:[#allocation1 + $0x9] sm:$0xff]  ;;  %v4249_v28 = vadd.f32 %v4248_v63, %v4210_v23  ;;  %v4591_v23 = vshrl.u32 %v10526_v20, 16  ;;  %v4595_v63 = vshll.u32 %v10486_v9, 16 }
 0x484   : > { %4945 = vmatmul.bf16.vlgmr.msrb.gmra.mxu2 %v4745_v55  ;;  %4983 = vmatmul.bf16.vlgmr.msrb.gmra.mxu3 %v4746_v15  ;;  %4748 = vst [vmem:[#allocation1] ss:$9 sm:$0xff] %v4443_v25  ;;  %v4504_v25 = vshll.u32 %v10497_v3, 16  ;;  %v4518_v55 = vshll.u32 %v10464_v51, 16  ;;  %v7978_v15 = vld [vmem:[%s8359_s26 + $0x440] sm:$0xff]  ;;  %v4525_v3 = vshll.u32 %v10466_v22, 16 }
 0x485   : > { %4750 = vst [vmem:[#allocation1 + $0x1] ss:$9 sm:$0xff] %v4450_v40  ;;  %v4511_v40 = vshll.u32 %v10499_v60, 16  ;;  %5434 = vmatpush.bf16.msra.mxu0 %v7971_v7  ;;  %v10654_v2 = vadd.f32 %v4249_v28, %v10402_v46  ;;  %v4532_v60 = vshll.u32 %v10468_v16, 16  ;;  %v4577_v7 = vshrl.u32 %v10522_v21, 16 }
 0x486   : > { %4752 = vst [vmem:[#allocation1 + $0x2] ss:$9 sm:$0xff] %v4457_v37  ;;  %5472 = vmatpush.bf16.msra.mxu1 %v7979_v58  ;;  %v4521_v37 = vshrl.u32 %v10464_v51, 16  ;;  %v4506_v29 = vsel %vm8484_vm4, %v4500_v24, %v4504_v25  ;;  %v4520_v51 = vsel %vm8484_vm4, %v4514_v43, %v4518_v55  ;;  %v4584_v58 = vshrl.u32 %v10524_v35, 16 }
 0x487   : > { %4754 = vst [vmem:[#allocation1 + $0x3] ss:$9 sm:$0xff] %v4464_v53  ;;  %v4513_v46 = vsel %vm8484_vm4, %v4507_v57, %v4511_v40  ;;  %v4534_v16 = vsel %vm8484_vm4, %v4528_v32, %v4532_v60  ;;  %v4598_v24 = vshrl.u32 %v10486_v9, 16  ;;  %v4602_v25 = vshll.u32 %v10488_v45, 16 }
 0x488   : > { %4756 = vst [vmem:[#allocation1 + $0x4] ss:$9 sm:$0xff] %v4471_v41  ;;  %v4527_v22 = vsel %vm8484_vm4, %v4521_v37, %v4525_v3  ;;  %v4549_v41 = vshrl.u32 %v10480_v49, 16  ;;  %v4581_v49 = vshll.u32 %v10524_v35, 16  ;;  %v4605_v57 = vshrl.u32 %v10488_v45, 16 }
 0x489   : > { %4758 = vst [vmem:[#allocation1 + $0x5] ss:$9 sm:$0xff] %v4478_v61  ;;  %5435 = vmatpush.bf16.msra.mxu0 %v7970_v56  ;;  %v4563_v61 = vshrl.u32 %v10484_v36, 16  ;;  %v4588_v36 = vshll.u32 %v10526_v20, 16  ;;  %v4597_v20 = vsel %vm8484_vm4, %v4591_v23, %v4595_v63  ;;  %v4604_v9 = vsel %vm8484_vm4, %v4598_v24, %v4602_v25  ;;  %v7996_v24 = vld [vmem:[%s8359_s26 + $0x4d0] sm:$0xff] }
 0x48a   : > { %4760 = vst [vmem:[#allocation1 + $0x6] ss:$9 sm:$0xff] %v4485_v5  ;;  %5473 = vmatpush.bf16.msra.mxu1 %v7978_v15  ;;  %v4570_v5 = vshrl.u32 %v10520_v62, 16  ;;  %v4583_v35 = vsel %vm8484_vm4, %v4577_v7, %v4581_v49  ;;  %v4609_v40 = vshll.u32 %v10490_v6, 16  ;;  %v4612_v56 = vshrl.u32 %v10528_v52, 16  ;;  %v4250_v23 = vpop.f32.mrf.mxu1 }
 0x48b   : > { %4762 = vst [vmem:[#allocation1 + $0x7] ss:$9 sm:$0xff] %v4492_v1  ;;  %v4555_v1 = vsel %vm8484_vm4, %v4549_v41, %v4553_v38  ;;  %v4569_v62 = vsel %vm8484_vm4, %v4563_v61, %v4567_v0  ;;  %v4590_v28 = vsel %vm8484_vm4, %v4584_v58, %v4588_v36  ;;  %v4616_v43 = vshll.u32 %v10503_v8, 16  ;;  %v11574_v41 = vld [vmem:[#allocation66_spill] sm:$0xff] }
 0x48c   : > { %v4576_v21 = vsel %vm8484_vm4, %v4570_v5, %v4574_v30  ;;  %v4619_v55 = vshrl.u32 %v10503_v8, 16  ;;  %v4623_v15 = vshll.u32 %v10505_v4, 16  ;;  %v4630_v37 = vshll.u32 %v10507_v48, 16  ;;  %v11576_v5 = vld [vmem:[#allocation55_spill] sm:$0xff] }
 0x48d   : > { %v4611_v3 = vsel %vm8484_vm4, %v4605_v57, %v4609_v40  ;;  %v4637_v45 = vshll.u32 %v10509_v42, 16  ;;  %v4618_v52 = vsel %vm8484_vm4, %v4612_v56, %v4616_v43  ;;  %v4640_v6 = vshrl.u32 %v10509_v42, 16  ;;  %v11577_v57 = vld [vmem:[#allocation11_spill] sm:$0xff]  ;;  %v11578_v40 = vld [vmem:[#allocation12_spill] sm:$0xff]  ;;  %v11579_v56 = vld [vmem:[#allocation98_spill] sm:$0xff] }
 0x48e   : > { %v4644_v8 = vshll.u32 %v10543_v12, 16  ;;  %v4672_v38 = vshll.u32 %v11574_v41, 16  ;;  %v4675_v47 = vshrl.u32 %v11574_v41, 16  ;;  %v4679_v61 = vshll.u32 %v11575_v13, 16  ;;  %v5029_v41 = vld [vmem:[#allocation2 + $0x50] sm:$0x77] }
 0x48f   : > { %v4682_v0 = vshrl.u32 %v11575_v13, 16  ;;  %v4686_v30 = vshll.u32 %v11576_v5, 16  ;;  %v7994_v13 = vld [vmem:[%s8359_s26 + $0x4c0] sm:$0xff] }
 0x490   : > { %v4646_v10 = vsel %vm8484_vm4, %v4640_v6, %v4644_v8  ;;  %v4681_v49 = vsel %vm8484_vm4, %v4675_v47, %v4679_v61  ;;  %v11584_v6 = vld [vmem:[#allocation19_spill] sm:$0xff]  ;;  %v7986_v47 = vld [vmem:[%s8359_s26 + $0x480] sm:$0xff] }
 0x491   : > { %v4688_v36 = vsel %vm8484_vm4, %v4682_v0, %v4686_v30  ;;  %v11591_v61 = vld [vmem:[#allocation23_spill] sm:$0xff]  ;;  %v11592_v0 = vld [vmem:[#allocation26_spill] sm:$0xff] }
 0x492   : > { %v4763_v53 = vld [vmem:[#allocation1] sm:$0xff]  ;;  %v4764_v39 = vld [vmem:[#allocation1 + $0x9] sm:$0xff] }
 0x493   : > { %4766 = vst [vmem:[#allocation1] ss:$9 sm:$0xff] %v4499_v59  ;;  %v4626_v59 = vshrl.u32 %v10505_v4, 16  ;;  %v4625_v4 = vsel %vm8484_vm4, %v4619_v55, %v4623_v15  ;;  %v5026_v55 = vld [vmem:[#allocation2 + $0x28] sm:$0x77] }
 0x494   : > { %4950 = vmatmul.bf16.gmra.mxu2 %v4763_v53  ;;  %4988 = vmatmul.bf16.gmra.mxu3 %v4764_v39  ;;  %4768 = vst [vmem:[#allocation1 + $0x1] ss:$9 sm:$0xff] %v4506_v29  ;;  %v4633_v29 = vshrl.u32 %v10507_v48, 16  ;;  %v4647_v53 = vshrl.u32 %v10543_v12, 16  ;;  %v11571_v39 = vld [vmem:[#allocation100_spill] sm:$0xff]  ;;  %v11580_v15 = vld [vmem:[#allocation13_spill] sm:$0xff] }
 0x495   : > { %4770 = vst [vmem:[#allocation1 + $0x2] ss:$9 sm:$0xff] %v4513_v46  ;;  %v4651_v46 = vshll.u32 %v11571_v39, 16  ;;  %v4632_v48 = vsel %vm8484_vm4, %v4626_v59, %v4630_v37  ;;  %v4654_v34 = vshrl.u32 %v11571_v39, 16  ;;  %v11581_v59 = vld [vmem:[#allocation14_spill] sm:$0xff]  ;;  %v11582_v37 = vld [vmem:[#allocation15_spill] sm:$0xff] }
 0x496   : > { %4772 = vst [vmem:[#allocation1 + $0x3] ss:$9 sm:$0xff] %v4520_v51  ;;  %v4658_v51 = vshll.u32 %v11572_v14, 16  ;;  %v4639_v42 = vsel %vm8484_vm4, %v4633_v29, %v4637_v45  ;;  %v11583_v29 = vld [vmem:[#allocation17_spill] sm:$0xff] }
 0x497   : > { %4774 = vst [vmem:[#allocation1 + $0x4] ss:$9 sm:$0xff] %v4527_v22  ;;  %v4653_v12 = vsel %vm8484_vm4, %v4647_v53, %v4651_v46  ;;  %v4661_v22 = vshrl.u32 %v11572_v14, 16  ;;  %v7987_v45 = vld [vmem:[%s8359_s26 + $0x488] sm:$0xff] }
 0x498   : > { %4776 = vst [vmem:[#allocation1 + $0x5] ss:$9 sm:$0xff] %v4534_v16  ;;  %v4660_v33 = vsel %vm8484_vm4, %v4654_v34, %v4658_v51  ;;  %v11573_v16 = vld [vmem:[#allocation85_spill] sm:$0xff] }
 0x499   : > { %4778 = vst [vmem:[#allocation1 + $0x6] ss:$9 sm:$0xff] %v4541_v18  ;;  %v4665_v18 = vshll.u32 %v11573_v16, 16 }
 0x49a   : > { %4780 = vst [vmem:[#allocation1 + $0x7] ss:$9 sm:$0xff] %v4548_v11  ;;  %v4668_v11 = vshrl.u32 %v11573_v16, 16 }
 0x49c   : > { %v4674_v7 = vsel %vm8484_vm4, %v4668_v11, %v4672_v38  ;;  %v11589_v11 = vld [vmem:[#allocation21_spill] sm:$0xff]  ;;  %v11590_v38 = vld [vmem:[#allocation22_spill] sm:$0xff] }
 0x4a1   : > { %v4781_v44 = vld [vmem:[#allocation1] sm:$0xff]  ;;  %v4782_v31 = vld [vmem:[#allocation1 + $0x9] sm:$0xff] }
 0x4a2   : > { %4784 = vst [vmem:[#allocation1] ss:$9 sm:$0xff] %v4555_v1  ;;  %v4667_v1 = vsel %vm8484_vm4, %v4661_v22, %v4665_v18  ;;  %v11587_v22 = vld [vmem:[#allocation90_spill] sm:$0xff]  ;;  %v11588_v18 = vld [vmem:[#allocation20_spill] sm:$0xff] }
 0x4a3   : > { %4786 = vst [vmem:[#allocation1 + $0x1] ss:$9 sm:$0xff] %v4562_v17 }
 0x4a4   : > { %4955 = vmatmul.bf16.gmra.mxu2 %v4781_v44  ;;  %4993 = vmatmul.bf16.gmra.mxu3 %v4782_v31  ;;  %4788 = vst [vmem:[#allocation1 + $0x2] ss:$9 sm:$0xff] %v4569_v62  ;;  %v7989_v44 = vld [vmem:[%s8359_s26 + $0x498] sm:$0xff]  ;;  %v4212_v62 = vpop.f32.mrf.mxu0 }
 0x4a5   : > { %4790 = vst [vmem:[#allocation1 + $0x3] ss:$9 sm:$0xff] %v4576_v21  ;;  %v7997_v31 = vld [vmem:[%s8359_s26 + $0x4d8] sm:$0xff]  ;;  %v10763_v63 = vadd.f32 %v4250_v23, %v4212_v62  ;;  %6291 = vmatpush.bf16.msra.mxu2 %v7989_v44  ;;  %v7988_v21 = vld [vmem:[%s8359_s26 + $0x490] sm:$0xff] }
 0x4a6   : > { %4792 = vst [vmem:[#allocation1 + $0x4] ss:$9 sm:$0xff] %v4583_v35  ;;  %6329 = vmatpush.bf16.msra.mxu3 %v7997_v31  ;;  %v4253_v35 = vpop.f32.mrf.mxu1  ;;  %v11593_v62 = vld [vmem:[#allocation24_spill] sm:$0xff] }
 0x4a7   : > { %4794 = vst [vmem:[#allocation1 + $0x5] ss:$9 sm:$0xff] %v4590_v28 }
 0x4a8   : > { %4796 = vst [vmem:[#allocation1 + $0x6] ss:$9 sm:$0xff] %v4597_v20 }
 0x4a9   : > { %4798 = vst [vmem:[#allocation1 + $0x7] ss:$9 sm:$0xff] %v4604_v9  ;;  %6292 = vmatpush.bf16.msra.mxu2 %v7988_v21 }
 0x4aa   : > { %6330 = vmatpush.bf16.msra.mxu3 %v7996_v24 }
 0x4ac   : > { %v4215_v25 = vpop.f32.mrf.mxu0 }
 0x4ad   : > { %v4254_v9 = vadd.f32 %v4253_v35, %v4215_v25  ;;  %6293 = vmatpush.bf16.msra.mxu2 %v7987_v45  ;;  %v11594_v25 = vld [vmem:[#allocation27_spill] sm:$0xff] }
 0x4af   : > { %v10770_v43 = vadd.f32 %v4254_v9, %v11579_v56  ;;  %v11597_v9 = vld [vmem:[#allocation38_spill] sm:$0xff] }
 0x4b0   : > { %v4799_v32 = vld [vmem:[#allocation1] sm:$0xff]  ;;  %v4800_v60 = vld [vmem:[#allocation1 + $0x9] sm:$0xff]  ;;  %v11599_v56 = vld [vmem:[#allocation30_spill] sm:$0xff] }
 0x4b1   : > { %4802 = vst [vmem:[#allocation1] ss:$9 sm:$0xff] %v4611_v3  ;;  %v5050_v3 = vrot.slane %v5026_v55, 3  ;;  %6294 = vmatpush.bf16.msra.mxu2 %v7986_v47 }
 0x4b2   : > { %4804 = vst [vmem:[#allocation1 + $0x1] ss:$9 sm:$0xff] %v4618_v52  ;;  %v7995_v52 = vld [vmem:[%s8359_s26 + $0x4c8] sm:$0xff]  ;;  %s247_s26 = scalar_lea.vmem [#allocation7], %s8355_s2  ;;  %s11223_s2 = scalar_lea.vmem [#allocation8], %s8004_s13 }
 0x4b3   : > { %4806 = vst [vmem:[#allocation1 + $0x2] ss:$9 sm:$0xff] %v4625_v4  ;;  %6331 = vmatpush.bf16.msra.mxu3 %v7995_v52  ;;  %v5087_v39 = vsel %vm466_vm13, %v5026_v55, %v5050_v3  ;;  %v5090_v46 = vsel %vm470_vm14, %v5026_v55, %v5050_v3  ;;  %v11600_v52 = vld [vmem:[#allocation31_spill] sm:$0xff] }
 0x4b4   : > { %4960 = vmatmul.bf16.gmra.mxu2 %v4799_v32  ;;  %4998 = vmatmul.bf16.gmra.mxu3 %v4800_v60  ;;  %4808 = vst [vmem:[#allocation1 + $0x3] ss:$9 sm:$0xff] %v4632_v48  ;;  %v4217_v8 = vpop.f32.mrf.mxu0  ;;  %v4255_v32 = vpop.f32.mrf.mxu1  ;;  %v11585_v60 = vld [vmem:[#allocation18_spill] sm:$0xff]  ;;  %v5086_v48 = vsel %vm336_vm6, %v5026_v55, %v5050_v3  ;;  %v5089_v34 = vrot.slane %v5087_v39, 1  ;;  %v5092_v14 = vrot.slane %v5090_v46, 2  ;;  %v11604_v46 = vld [vmem:[#allocation35_spill] sm:$0xff] }
 0x4b5   : > { %4810 = vst [vmem:[#allocation1 + $0x4] ss:$9 sm:$0xff] %v4639_v42  ;;  %v11586_v4 = vrot.slane %v11585_v60, 3  ;;  %v10781_v53 = vadd.f32 %v4255_v32, %v4217_v8  ;;  %v5032_v55 = vld [vmem:[#allocation2 + $0x20] sm:$0x77]  ;;  %v5033_v32 = vld [vmem:[#allocation2 + $0x70] sm:$0xff] }
 0x4b6   : > { %4812 = vst [vmem:[#allocation1 + $0x5] ss:$9 sm:$0xff] %v4646_v10  ;;  %v11602_v8 = vld [vmem:[#allocation33_spill] sm:$0xff]  ;;  %v11603_v39 = vld [vmem:[#allocation34_spill] sm:$0xff] }
 0x4b7   : > { %4814 = vst [vmem:[#allocation1 + $0x6] ss:$9 sm:$0xff] %v4653_v12  ;;  %6332 = vmatpush.bf16.msra.mxu3 %v7994_v13 }
 0x4b8   : > { %4816 = vst [vmem:[#allocation1 + $0x7] ss:$9 sm:$0xff] %v4660_v33 }
 0x4bc   : > { %v4220_v10 = vpop.f32.mrf.mxu0  ;;  %v4258_v12 = vpop.f32.mrf.mxu1 }
 0x4bd   : > { %v4259_v33 = vadd.f32 %v4258_v12, %v4220_v10 }
 0x4bf   : > { %v4817_v17 = vld [vmem:[#allocation1] sm:$0xff]  ;;  %v4818_v58 = vld [vmem:[#allocation1 + $0x9] sm:$0xff]  ;;  %v10787_v16 = vadd.f32 %v4259_v33, %v11587_v22 }
 0x4c0   : > { %4820 = vst [vmem:[#allocation1] ss:$9 sm:$0xff] %v4667_v1  ;;  %v5053_v1 = vrot.slane %v5029_v41, 3 }
 0x4c1   : > { %4822 = vst [vmem:[#allocation1 + $0x1] ss:$9 sm:$0xff] %v4674_v7 }
 0x4c2   : > { %4824 = vst [vmem:[#allocation1 + $0x2] ss:$9 sm:$0xff] %v4681_v49  ;;  %v5120_v49 = vsel %vm466_vm13, %v5029_v41, %v5053_v1  ;;  %v5119_v44 = vsel %vm336_vm6, %v5029_v41, %v5053_v1 }
 0x4c3   : > { %4826 = vst [vmem:[#allocation1 + $0x3] ss:$9 sm:$0xff] %v4688_v36  ;;  %v5122_v31 = vrot.slane %v5120_v49, 1  ;;  %v5035_v49 = vld [vmem:[#allocation2 + $0x10] sm:$0x77] }
 0x4c4   : > { %4965 = vmatmul.bf16.gmra.mxu2 %v4817_v17  ;;  %5003 = vmatmul.bf16.gmra.mxu3 %v4818_v58  ;;  %v4222_v5 = vpop.f32.mrf.mxu0  ;;  %v4260_v30 = vpop.f32.mrf.mxu1  ;;  %v5123_v17 = vsel %vm470_vm14, %v5029_v41, %v5053_v1 }
 0x4c5   : > { %v10796_v7 = vadd.f32 %v4260_v30, %v4222_v5  ;;  %v5125_v24 = vrot.slane %v5123_v17, 2 }
 0x4ca   : > { %v4827_v28 = vld [vmem:[#allocation1] sm:$0xff]  ;;  %v4828_v20 = vld [vmem:[#allocation1 + $0x9] sm:$0xff] }
 0x4cb   : > { %5225 = vst [vmem:[#allocation1] ss:$9 sm:$0xff] %v11577_v57 }
 0x4cc   : > { %5228 = vst [vmem:[#allocation1 + $0x1] ss:$9 sm:$0xff] %v11578_v40  ;;  %v4225_v23 = vpop.f32.mrf.mxu0  ;;  %v4263_v21 = vpop.f32.mrf.mxu1  ;;  %v11598_v40 = vld [vmem:[#allocation29_spill] sm:$0xff] }
 0x4cd   : > { %5231 = vst [vmem:[#allocation1 + $0x2] ss:$9 sm:$0xff] %v11580_v15  ;;  %v4264_v35 = vadd.f32 %v4263_v21, %v4225_v23 }
 0x4ce   : > { %5234 = vst [vmem:[#allocation1 + $0x3] ss:$9 sm:$0xff] %v11581_v59 }
 0x4cf   : > { %5236 = vst [vmem:[#allocation1 + $0x4] ss:$9 sm:$0xff] %v11582_v37  ;;  %v10806_v57 = vadd.f32 %v4264_v35, %v11597_v9  ;;  %v5056_v37 = vrot.slane %v5032_v55, 3 }
 0x4d0   : > { %5239 = vst [vmem:[#allocation1 + $0x5] ss:$9 sm:$0xff] %v11583_v29 }
 0x4d1   : > { %5242 = vst [vmem:[#allocation1 + $0x6] ss:$9 sm:$0xff] %v11584_v6  ;;  %v5153_v45 = vsel %vm466_vm13, %v5032_v55, %v5056_v37  ;;  %v11601_v6 = vld [vmem:[#allocation32_spill] sm:$0xff]  ;;  %v5152_v60 = vsel %vm336_vm6, %v5032_v55, %v5056_v37 }
 0x4d2   : > { %5245 = vst [vmem:[#allocation1 + $0x7] ss:$9 sm:$0xff] %v11586_v4  ;;  %v5155_v4 = vrot.slane %v5153_v45, 1 }
 0x4d4   : > { %4970 = vmatmul.bf16.gmra.mxu2 %v4827_v28  ;;  %5008 = vmatmul.bf16.gmra.mxu3 %v4828_v20  ;;  %v11595_v28 = vld [vmem:[#allocation25_spill] sm:$0xff]  ;;  %v4227_v15 = vpop.f32.mrf.mxu0  ;;  %v4265_v59 = vpop.f32.mrf.mxu1 }
 0x4d5   : > { %v11596_v20 = vrot.slane %v11595_v28, 3  ;;  %v5517_v59 = vld [vmem:[#allocation2 + $0x28] sm:$0xff] }
 0x4d9   : > { %v5246_v51 = vld [vmem:[#allocation1] sm:$0xff]  ;;  %v5247_v42 = vld [vmem:[#allocation1 + $0x9] sm:$0xff] }
 0x4da   : > { %5436 = vmatmul.bf16.vlgmr.msra.gmra.mxu0 %v5246_v51  ;;  %5474 = vmatmul.bf16.vlgmr.msra.gmra.mxu1 %v5247_v42  ;;  %5248 = vst [vmem:[#allocation1] ss:$9 sm:$0xff] %v5086_v48  ;;  %v11605_v48 = vld [vmem:[#allocation36_spill] sm:$0xff]  ;;  %v5156_v42 = vsel %vm470_vm14, %v5032_v55, %v5056_v37 }
 0x4db   : > { %5250 = vst [vmem:[#allocation1 + $0x1] ss:$9 sm:$0xff] %v5089_v34  ;;  %v11606_v34 = vrot.slane %v11605_v48, 3  ;;  %v5034_v51 = vld [vmem:[#allocation2 + $0x38] sm:$0xff]  ;;  %v5158_v33 = vrot.slane %v5156_v42, 2 }
 0x4dc   : > { %5252 = vst [vmem:[#allocation1 + $0x2] ss:$9 sm:$0xff] %v5092_v14  ;;  %v5057_v14 = vrot.slane %v5033_v32, 3  ;;  %v5058_v10 = vrot.slane %v5034_v51, 3 }
 0x4dd   : > { %5253 = vst [vmem:[#allocation1 + $0x3] ss:$9 sm:$0xff] %v11588_v18 }
 0x4de   : > { %5255 = vst [vmem:[#allocation1 + $0x4] ss:$9 sm:$0xff] %v11589_v11  ;;  %v5162_v12 = vsel %vm466_vm13, %v5033_v32, %v5057_v14  ;;  %v5165_v22 = vsel %vm470_vm14, %v5033_v32, %v5057_v14  ;;  %v5168_v18 = vsel %vm474_vm15, %v5033_v32, %v5057_v14  ;;  %v10824_v11 = vsel %vm336_vm6, %v5033_v32, %v5057_v14 }
 0x4df   : > { %5257 = vst [vmem:[#allocation1 + $0x5] ss:$9 sm:$0xff] %v11590_v38  ;;  %v10826_v41 = vrot.slane %v5162_v12, 1  ;;  %v10828_v38 = vrot.slane %v5165_v22, 2  ;;  %v5174_v47 = vsel %vm466_vm13, %v5034_v51, %v5058_v10  ;;  %v5177_v5 = vsel %vm470_vm14, %v5034_v51, %v5058_v10  ;;  %v5518_v22 = vld [vmem:[#allocation2 + $0x40] sm:$0xff] }
 0x4e0   : > { %5259 = vst [vmem:[#allocation1 + $0x6] ss:$9 sm:$0xff] %v11591_v61  ;;  %v10836_v30 = vsel %vm336_vm6, %v5034_v51, %v5058_v10  ;;  %v10838_v1 = vrot.slane %v5174_v47, 1  ;;  %v10841_v17 = vrot.slane %v5177_v5, 2 }
 0x4e1   : > { %5260 = vst [vmem:[#allocation1 + $0x7] ss:$9 sm:$0xff] %v11592_v0  ;;  %v10831_v0 = vrot.slane %v5168_v18, 3 }
 0x4e8   : > { %v5261_v58 = vld [vmem:[#allocation1] sm:$0xff]  ;;  %v5262_v36 = vld [vmem:[#allocation1 + $0x9] sm:$0xff] }
 0x4e9   : > { %5264 = vst [vmem:[#allocation1] ss:$9 sm:$0xff] %v11593_v62  ;;  %v5516_v62 = vld [vmem:[#allocation2 + $0x18] sm:$0xff] }
 0x4ea   : > { %5441 = vmatmul.bf16.gmra.mxu0 %v5261_v58  ;;  %5479 = vmatmul.bf16.gmra.mxu1 %v5262_v36  ;;  %5266 = vst [vmem:[#allocation1 + $0x1] ss:$9 sm:$0xff] %v11594_v25  ;;  %v5515_v58 = vld [vmem:[#allocation2 + $0x8] sm:$0xff]  ;;  %v5059_v36 = vrot.slane %v5035_v49, 3  ;;  %v5540_v25 = vrot.slane %v5516_v62, 3 }
 0x4eb   : > { %5268 = vst [vmem:[#allocation1 + $0x2] ss:$9 sm:$0xff] %v11596_v20 }
 0x4ec   : > { %5269 = vst [vmem:[#allocation1 + $0x3] ss:$9 sm:$0xff] %v5119_v44  ;;  %v5180_v44 = vsel %vm474_vm15, %v5034_v51, %v5058_v10  ;;  %v5186_v23 = vsel %vm466_vm13, %v5035_v49, %v5059_v36  ;;  %v5185_v28 = vsel %vm336_vm6, %v5035_v49, %v5059_v36  ;;  %v5566_v45 = vsel %vm466_vm13, %v5516_v62, %v5540_v25 }
 0x4ed   : > { %5271 = vst [vmem:[#allocation1 + $0x4] ss:$9 sm:$0xff] %v5122_v31  ;;  %v5539_v31 = vrot.slane %v5515_v58, 3  ;;  %v10850_v21 = vrot.slane %v5180_v44, 3  ;;  %v5188_v20 = vrot.slane %v5186_v23, 1  ;;  %v5572_v32 = vsel %vm474_vm15, %v5516_v62, %v5540_v25  ;;  %v11608_v44 = vld [vmem:[#allocation53_spill] sm:$0xff] }
 0x4ee   : > { %5273 = vst [vmem:[#allocation1 + $0x5] ss:$9 sm:$0xff] %v5125_v24  ;;  %v5189_v24 = vsel %vm470_vm14, %v5035_v49, %v5059_v36  ;;  %v5574_v51 = vrot.slane %v5572_v32, 3  ;;  %v11607_v36 = vld [vmem:[#allocation39_spill] sm:$0xff] }
 0x4ef   : > { %5274 = vst [vmem:[#allocation1 + $0x6] ss:$9 sm:$0xff] %v11598_v40  ;;  %v5554_v35 = vsel %vm466_vm13, %v5515_v58, %v5539_v31  ;;  %v5557_v9 = vsel %vm470_vm14, %v5515_v58, %v5539_v31  ;;  %v5191_v40 = vrot.slane %v5189_v24, 2 }
 0x4f0   : > { %5276 = vst [vmem:[#allocation1 + $0x7] ss:$9 sm:$0xff] %v11599_v56  ;;  %v5560_v56 = vsel %vm474_vm15, %v5515_v58, %v5539_v31  ;;  %v5556_v37 = vrot.slane %v5554_v35, 1  ;;  %v5747_v24 = vshll.u32 %v5574_v51, 16 }
 0x4f7   : > { %v5277_v3 = vld [vmem:[#allocation1] sm:$0xff]  ;;  %v5278_v29 = vld [vmem:[#allocation1 + $0x9] sm:$0xff] }
 0x4f8   : > { %5280 = vst [vmem:[#allocation1] ss:$9 sm:$0xff] %v11600_v52  ;;  %v5562_v52 = vrot.slane %v5560_v56, 3  ;;  %v10877_v56 = vld [vmem:[#allocation2 + $0x78] sm:$0xff] }
 0x4f9   : > { %5282 = vst [vmem:[#allocation1 + $0x1] ss:$9 sm:$0xff] %v11601_v6  ;;  %v5569_v6 = vsel %vm470_vm14, %v5516_v62, %v5540_v25  ;;  %v5543_v32 = vrot.slane %v10877_v56, 3 }
 0x4fa   : > { %5446 = vmatmul.bf16.gmra.mxu0 %v5277_v3  ;;  %5484 = vmatmul.bf16.gmra.mxu1 %v5278_v29  ;;  %5283 = vst [vmem:[#allocation1 + $0x2] ss:$9 sm:$0xff] %v11602_v8  ;;  %v5553_v3 = vsel %vm336_vm6, %v5515_v58, %v5539_v31  ;;  %v5559_v29 = vrot.slane %v5557_v9, 2  ;;  %v5541_v8 = vrot.slane %v5517_v59, 3  ;;  %v5571_v48 = vrot.slane %v5569_v6, 2 }
 0x4fb   : > { %5285 = vst [vmem:[#allocation1 + $0x3] ss:$9 sm:$0xff] %v11603_v39  ;;  %v5695_v39 = vshrl.u32 %v5553_v3, 16  ;;  %v5716_v10 = vshll.u32 %v5562_v52, 16  ;;  %v5719_v12 = vshrl.u32 %v5562_v52, 16  ;;  %v1347_v31 = vadd.f32 %v11608_v44, %v11607_v36  ;;  %v11613_v44 = vld [vmem:[#allocation40_spill] sm:$0xff] }
 0x4fc   : > { %5287 = vst [vmem:[#allocation1 + $0x4] ss:$9 sm:$0xff] %v11604_v46  ;;  %v5700_v46 = vshll.u32 %v5556_v37, 16  ;;  %v5708_v14 = vshll.u32 %v5559_v29, 16  ;;  %v5711_v42 = vshrl.u32 %v5559_v29, 16  ;;  %v10864_v18 = vsel %vm336_vm6, %v5517_v59, %v5541_v8  ;;  %v11609_v29 = vld [vmem:[#allocation75_spill] sm:$0xff] }
 0x4fd   : > { %5289 = vst [vmem:[#allocation1 + $0x5] ss:$9 sm:$0xff] %v11606_v34  ;;  %v5703_v34 = vshrl.u32 %v5556_v37, 16  ;;  %v5739_v58 = vshll.u32 %v5571_v48, 16  ;;  %v5742_v23 = vshrl.u32 %v5571_v48, 16  ;;  %v5750_v9 = vshrl.u32 %v5574_v51, 16 }
 0x4fe   : > { %5290 = vst [vmem:[#allocation1 + $0x6] ss:$9 sm:$0xff] %v5152_v60  ;;  %v5565_v60 = vsel %vm336_vm6, %v5516_v62, %v5540_v25  ;;  %v5702_v47 = vsel %vm8484_vm4, %v5695_v39, %v5700_v46  ;;  %v5718_v62 = vsel %vm8484_vm4, %v5711_v42, %v5716_v10  ;;  %v5581_v37 = vsel %vm470_vm14, %v5517_v59, %v5541_v8  ;;  %v11611_v51 = vld [vmem:[#allocation46_spill] sm:$0xff]  ;;  %v11612_v42 = vld [vmem:[#allocation47_spill] sm:$0xff] }
 0x4ff   : > { %5292 = vst [vmem:[#allocation1 + $0x7] ss:$9 sm:$0xff] %v5155_v4  ;;  %v5568_v4 = vrot.slane %v5566_v45, 1  ;;  %v5710_v5 = vsel %vm8484_vm4, %v5703_v34, %v5708_v14  ;;  %v1564_v45 = vadd.f32 %v11609_v29, %v1347_v31  ;;  %v5584_v52 = vsel %vm474_vm15, %v5517_v59, %v5541_v8  ;;  %v11614_v31 = vld [vmem:[#allocation41_spill] sm:$0xff]  ;;  %v11616_v29 = vld [vmem:[#allocation88_spill] sm:$0xff] }
 0x500   : > { %v5749_v6 = vsel %vm8484_vm4, %v5742_v23, %v5747_v24  ;;  %v5583_v46 = vrot.slane %v5581_v37, 2  ;;  %v5586_v34 = vrot.slane %v5584_v52, 3  ;;  %v1969_v10 = vadd.f32 %v11612_v42, %v11611_v51 }
 0x501   : > { %v5734_v49 = vshrl.u32 %v5568_v4, 16 }
 0x502   : > { %v5770_v36 = vshll.u32 %v5583_v46, 16  ;;  %v5773_v23 = vshrl.u32 %v5583_v46, 16 }
 0x503   : > { %v5741_v3 = vsel %vm8484_vm4, %v5734_v49, %v5739_v58 }
 0x506   : > { %v5293_v13 = vld [vmem:[#allocation1] sm:$0xff]  ;;  %v5294_v61 = vld [vmem:[#allocation1 + $0x9] sm:$0xff] }
 0x507   : > { %5296 = vst [vmem:[#allocation1] ss:$9 sm:$0xff] %v5158_v33  ;;  %v5723_v33 = vshll.u32 %v5565_v60, 16 }
 0x508   : > { %5297 = vst [vmem:[#allocation1 + $0x1] ss:$9 sm:$0xff] %v10824_v11 }
 0x509   : > { %5299 = vst [vmem:[#allocation1 + $0x2] ss:$9 sm:$0xff] %v10826_v41 }
 0x50a   : > { %5301 = vst [vmem:[#allocation1 + $0x3] ss:$9 sm:$0xff] %v10828_v38  ;;  %5451 = vmatmul.bf16.gmra.mxu0 %v5293_v13  ;;  %5489 = vmatmul.bf16.gmra.mxu1 %v5294_v61  ;;  %v5726_v13 = vshrl.u32 %v5565_v60, 16  ;;  %v5731_v61 = vshll.u32 %v5568_v4, 16 }
 0x50b   : > { %5303 = vst [vmem:[#allocation1 + $0x4] ss:$9 sm:$0xff] %v10831_v0 }
 0x50c   : > { %5304 = vst [vmem:[#allocation1 + $0x5] ss:$9 sm:$0xff] %v10836_v30 }
 0x50d   : > { %5306 = vst [vmem:[#allocation1 + $0x6] ss:$9 sm:$0xff] %v10838_v1 }
 0x50e   : > { %5308 = vst [vmem:[#allocation1 + $0x7] ss:$9 sm:$0xff] %v10841_v17 }
 0x515   : > { %v5309_v55 = vld [vmem:[#allocation1] sm:$0xff]  ;;  %v5310_v15 = vld [vmem:[#allocation1 + $0x9] sm:$0xff] }
 0x516   : > { %5312 = vst [vmem:[#allocation1] ss:$9 sm:$0xff] %v10850_v21 }
 0x517   : > { %5313 = vst [vmem:[#allocation1 + $0x1] ss:$9 sm:$0xff] %v5185_v28  ;;  %v5542_v28 = vrot.slane %v5518_v22, 3 }
 0x518   : > { %5315 = vst [vmem:[#allocation1 + $0x2] ss:$9 sm:$0xff] %v5188_v20  ;;  %v5725_v20 = vsel %vm8484_vm4, %v5719_v12, %v5723_v33 }
 0x519   : > { %5317 = vst [vmem:[#allocation1 + $0x3] ss:$9 sm:$0xff] %v5191_v40  ;;  %v5754_v40 = vshll.u32 %v10864_v18, 16  ;;  %v5590_v4 = vsel %vm466_vm13, %v5518_v22, %v5542_v28  ;;  %v5593_v48 = vsel %vm470_vm14, %v5518_v22, %v5542_v28  ;;  %v5589_v12 = vsel %vm336_vm6, %v5518_v22, %v5542_v28 }
 0x51a   : > { %5456 = vmatmul.bf16.gmra.mxu0 %v5309_v55  ;;  %5494 = vmatmul.bf16.gmra.mxu1 %v5310_v15  ;;  %v5578_v55 = vsel %vm466_vm13, %v5517_v59, %v5541_v8  ;;  %v5733_v15 = vsel %vm8484_vm4, %v5726_v13, %v5731_v61  ;;  %v5596_v59 = vsel %vm474_vm15, %v5518_v22, %v5542_v28  ;;  %v11610_v8 = vld [vmem:[#allocation76_spill] sm:$0xff]  ;;  %v5592_v33 = vrot.slane %v5590_v4, 1  ;;  %v5520_v28 = vld [vmem:[#allocation2 + $0x50] sm:$0xff] }
 0x51b   : > { %v5580_v60 = vrot.slane %v5578_v55, 1  ;;  %v5756_v39 = vsel %vm8484_vm4, %v5750_v9, %v5754_v40  ;;  %v1602_v14 = vadd.f32 %v11610_v8, %v1564_v45  ;;  %v10901_v13 = vsel %vm466_vm13, %v10877_v56, %v5543_v32  ;;  %v10918_v8 = vld [vmem:[#allocation2 + $0x48] sm:$0xff] }
 0x51c   : > { %v5757_v61 = vshrl.u32 %v10864_v18, 16  ;;  %v5598_v49 = vrot.slane %v5596_v59, 3  ;;  %v5778_v22 = vshll.u32 %v5586_v34, 16  ;;  %v5604_v9 = vrot.slane %v10901_v13, 1  ;;  %v11619_v13 = vld [vmem:[#allocation93_spill] sm:$0xff] }
 0x51d   : > { %v5765_v58 = vshrl.u32 %v5580_v60, 16  ;;  %v1996_v24 = vadd.f32 %v1969_v10, %v1602_v14  ;;  %v5781_v40 = vshrl.u32 %v5589_v12, 16  ;;  %v5786_v18 = vshll.u32 %v5592_v33, 16 }
 0x51e   : > { %v5802_v52 = vshll.u32 %v5598_v49, 16  ;;  %v5544_v4 = vrot.slane %v5520_v28, 3  ;;  %v5805_v46 = vshrl.u32 %v5598_v49, 16  ;;  %v5605_v14 = vsel %vm470_vm14, %v10877_v56, %v5543_v32 }
 0x51f   : > { %v5788_v51 = vsel %vm8484_vm4, %v5781_v40, %v5786_v18  ;;  %v5817_v10 = vshll.u32 %v5604_v9, 16  ;;  %v4984_v40 = vpop.f32.mrf.mxu3 }
 0x520   : > { %v5318_v25 = vld [vmem:[#allocation1] sm:$0xff]  ;;  %v5319_v35 = vld [vmem:[#allocation1 + $0x9] sm:$0xff] }
 0x521   : > { %6073 = vst [vmem:[#allocation1] ss:$9 sm:$0xff] %v5702_v47  ;;  %v5595_v47 = vrot.slane %v5593_v48, 2 }
 0x522   : > { %6076 = vst [vmem:[#allocation1 + $0x1] ss:$9 sm:$0xff] %v5710_v5  ;;  %v5762_v5 = vshll.u32 %v5580_v60, 16 }
 0x523   : > { %6079 = vst [vmem:[#allocation1 + $0x2] ss:$9 sm:$0xff] %v5718_v62  ;;  %v1352_v62 = vadd.f32 %v11614_v31, %v11613_v44  ;;  %v5794_v37 = vshll.u32 %v5595_v47, 16  ;;  %v5797_v45 = vshrl.u32 %v5595_v47, 16  ;;  %v11618_v47 = vld [vmem:[#allocation67_spill] sm:$0xff]  ;;  %v11621_v44 = vld [vmem:[#allocation48_spill] sm:$0xff] }
 0x524   : > { %6082 = vst [vmem:[#allocation1 + $0x3] ss:$9 sm:$0xff] %v5725_v20  ;;  %v5601_v20 = vsel %vm336_vm6, %v10877_v56, %v5543_v32  ;;  %v5764_v55 = vsel %vm8484_vm4, %v5757_v61, %v5762_v5  ;;  %v3105_v61 = vadd.f32 %v11619_v13, %v11618_v47  ;;  %v5608_v5 = vsel %vm474_vm15, %v10877_v56, %v5543_v32  ;;  %v11622_v31 = vld [vmem:[#allocation82_spill] sm:$0xff] }
 0x525   : > { %6085 = vst [vmem:[#allocation1 + $0x4] ss:$9 sm:$0xff] %v5733_v15  ;;  %v5789_v15 = vshrl.u32 %v5592_v33, 16  ;;  %v5809_v48 = vshll.u32 %v5601_v20, 16  ;;  %v5812_v42 = vshrl.u32 %v5601_v20, 16  ;;  %v5804_v49 = vsel %vm8484_vm4, %v5797_v45, %v5802_v52  ;;  %v4946_v20 = vpop.f32.mrf.mxu2  ;;  %v5522_v13 = vld [vmem:[#allocation2 + $0x68] sm:$0xff] }
 0x526   : > { %6088 = vst [vmem:[#allocation1 + $0x5] ss:$9 sm:$0xff] %v5741_v3  ;;  %v11615_v3 = vld [vmem:[#allocation87_spill] sm:$0xff]  ;;  %v5614_v56 = vsel %vm466_vm13, %v5520_v28, %v5544_v4  ;;  %v4985_v18 = vadd.f32 %v4984_v40, %v4946_v20  ;;  %v5620_v45 = vsel %vm474_vm15, %v5520_v28, %v5544_v4 }
 0x527   : > { %6091 = vst [vmem:[#allocation1 + $0x6] ss:$9 sm:$0xff] %v5749_v6  ;;  %v11617_v6 = vld [vmem:[#allocation78_spill] sm:$0xff]  ;;  %v5796_v12 = vsel %vm8484_vm4, %v5789_v15, %v5794_v37  ;;  %v5819_v32 = vsel %vm8484_vm4, %v5812_v42, %v5817_v10  ;;  %v5617_v15 = vsel %vm470_vm14, %v5520_v28, %v5544_v4  ;;  %v5622_v10 = vrot.slane %v5620_v45, 3 }
 0x528   : > { %6094 = vst [vmem:[#allocation1 + $0x7] ss:$9 sm:$0xff] %v5756_v39  ;;  %v1569_v60 = vadd.f32 %v11617_v6, %v1352_v62  ;;  %v5780_v39 = vsel %vm8484_vm4, %v5773_v23, %v5778_v22  ;;  %v1974_v62 = vadd.f32 %v11622_v31, %v11621_v44  ;;  %v10936_v23 = vrot.slane %v10918_v8, 3 }
 0x529   : > { %v5607_v22 = vrot.slane %v5605_v14, 2  ;;  %v10949_v6 = vadd.f32 %v4985_v18, %v10593_v26  ;;  %v11628_v26 = vld [vmem:[#allocation92_spill] sm:$0xff] }
 0x52a   : > { %5461 = vmatmul.bf16.gmra.mxu0 %v5318_v25  ;;  %5499 = vmatmul.bf16.gmra.mxu1 %v5319_v35  ;;  %v2715_v25 = vadd.f32 %v11616_v29, %v11615_v3  ;;  %v5772_v35 = vsel %vm8484_vm4, %v5765_v58, %v5770_v36  ;;  %v11620_v58 = vld [vmem:[#allocation79_spill] sm:$0xff]  ;;  %v11623_v3 = vld [vmem:[#allocation64_spill] sm:$0xff]  ;;  %v11624_v29 = vld [vmem:[#allocation65_spill] sm:$0xff] }
 0x52b   : > { %v1607_v36 = vadd.f32 %v11620_v58, %v1569_v60  ;;  %v5616_v60 = vrot.slane %v5614_v56, 1 }
 0x52c   : > { %v2742_v33 = vadd.f32 %v2715_v25, %v1996_v24  ;;  %v5811_v24 = vsel %vm8484_vm4, %v5805_v46, %v5809_v48  ;;  %v3851_v25 = vadd.f32 %v11624_v29, %v11623_v3  ;;  %v5820_v46 = vshrl.u32 %v5604_v9, 16 }
 0x52d   : > { %v1998_v52 = vadd.f32 %v1974_v62, %v1607_v36  ;;  %v5825_v48 = vshll.u32 %v5607_v22, 16  ;;  %v5625_v9 = vsel %vm336_vm6, %v10918_v8, %v10936_v23  ;;  %v5848_v31 = vshll.u32 %v5616_v60, 16  ;;  %v4948_v62 = vpop.f32.mrf.mxu2 }
 0x52e   : > { %v3132_v37 = vadd.f32 %v3105_v61, %v2742_v33  ;;  %v5867_v3 = vshrl.u32 %v5625_v9, 16  ;;  %v11631_v9 = vld [vmem:[#allocation102_spill] sm:$0xff] }
 0x52f   : > { %v6095_v34 = vld [vmem:[#allocation1] sm:$0xff]  ;;  %v6096_v59 = vld [vmem:[#allocation1 + $0x9] sm:$0xff]  ;;  %v5827_v36 = vsel %vm8484_vm4, %v5820_v46, %v5825_v48  ;;  %v5632_v48 = vsel %vm474_vm15, %v10918_v8, %v10936_v23 }
 0x530   : > { %6295 = vmatmul.bf16.vlgmr.msra.gmra.mxu2 %v6095_v34  ;;  %6333 = vmatmul.bf16.vlgmr.msra.gmra.mxu3 %v6096_v59  ;;  %6098 = vst [vmem:[#allocation1] ss:$9 sm:$0xff] %v5764_v55  ;;  %v5610_v55 = vrot.slane %v5608_v5, 3  ;;  %v5619_v34 = vrot.slane %v5617_v15, 2  ;;  %v10957_v59 = vsel %vm470_vm14, %v10918_v8, %v10936_v23  ;;  %v3878_v47 = vadd.f32 %v3851_v25, %v3132_v37 }
 0x531   : > { %6100 = vst [vmem:[#allocation1 + $0x1] ss:$9 sm:$0xff] %v5772_v35  ;;  %v5613_v35 = vsel %vm336_vm6, %v5520_v28, %v5544_v4  ;;  %v11625_v28 = vld [vmem:[#allocation42_spill] sm:$0xff]  ;;  %v11626_v4 = vld [vmem:[#allocation43_spill] sm:$0xff]  ;;  %v5631_v58 = vrot.slane %v10957_v59, 2  ;;  %v5864_v15 = vshll.u32 %v5622_v10, 16 }
 0x532   : > { %6102 = vst [vmem:[#allocation1 + $0x2] ss:$9 sm:$0xff] %v5780_v39  ;;  %v5626_v39 = vsel %vm466_vm13, %v10918_v8, %v10936_v23  ;;  %v1357_v14 = vadd.f32 %v11626_v4, %v11625_v28  ;;  %v5833_v33 = vshll.u32 %v5610_v55, 16  ;;  %v5836_v5 = vshrl.u32 %v5610_v55, 16  ;;  %v11629_v59 = vld [vmem:[#allocation80_spill] sm:$0xff] }
 0x533   : > { %6104 = vst [vmem:[#allocation1 + $0x3] ss:$9 sm:$0xff] %v5788_v51  ;;  %v11627_v51 = vld [vmem:[#allocation91_spill] sm:$0xff]  ;;  %v5628_v61 = vrot.slane %v5626_v39, 1  ;;  %v5843_v44 = vshrl.u32 %v5613_v35, 16  ;;  %v5856_v20 = vshll.u32 %v5619_v34, 16  ;;  %v4268_v40 = vadd.f32 %v10601_v50, %v3878_v47 }
 0x534   : > { %6106 = vst [vmem:[#allocation1 + $0x4] ss:$9 sm:$0xff] %v5796_v12  ;;  %v2720_v42 = vadd.f32 %v11628_v26, %v11627_v51  ;;  %v5828_v12 = vshrl.u32 %v5607_v22, 16  ;;  %v5851_v22 = vshrl.u32 %v5616_v60, 16  ;;  %v5859_v55 = vshrl.u32 %v5619_v34, 16  ;;  %v10976_v60 = vld [vmem:[#allocation2 + $0x20] sm:$0xff] }
 0x535   : > { %6108 = vst [vmem:[#allocation1 + $0x5] ss:$9 sm:$0xff] %v5804_v49  ;;  %v5840_v49 = vshll.u32 %v5613_v35, 16  ;;  %v5872_v29 = vshll.u32 %v5628_v61, 16  ;;  %v5850_v50 = vsel %vm8484_vm4, %v5843_v44, %v5848_v31  ;;  %v5875_v39 = vshrl.u32 %v5628_v61, 16  ;;  %v11630_v47 = vld [vmem:[#allocation101_spill] sm:$0xff] }
 0x536   : > { %6110 = vst [vmem:[#allocation1 + $0x6] ss:$9 sm:$0xff] %v5811_v24  ;;  %v4986_v24 = vpop.f32.mrf.mxu3  ;;  %v5835_v18 = vsel %vm8484_vm4, %v5828_v12, %v5833_v33  ;;  %v5880_v46 = vshll.u32 %v5631_v58, 16  ;;  %v5858_v34 = vsel %vm8484_vm4, %v5851_v22, %v5856_v20  ;;  %v1574_v28 = vadd.f32 %v11629_v59, %v1357_v14  ;;  %v11633_v44 = vld [vmem:[#allocation44_spill] sm:$0xff]  ;;  %v11634_v31 = vld [vmem:[#allocation62_spill] sm:$0xff] }
 0x537   : > { %6112 = vst [vmem:[#allocation1 + $0x7] ss:$9 sm:$0xff] %v5819_v32  ;;  %v4987_v56 = vadd.f32 %v4986_v24, %v4948_v62  ;;  %v5546_v32 = vrot.slane %v5522_v13, 3  ;;  %v5842_v37 = vsel %vm8484_vm4, %v5836_v5, %v5840_v49  ;;  %v5866_v4 = vsel %vm8484_vm4, %v5859_v55, %v5864_v15  ;;  %v11632_v49 = vld [vmem:[#allocation81_spill] sm:$0xff] }
 0x538   : > { %v2744_v51 = vadd.f32 %v2720_v42, %v1998_v52  ;;  %v5547_v26 = vrot.slane %v10976_v60, 3  ;;  %v5874_v8 = vsel %vm8484_vm4, %v5867_v3, %v5872_v29  ;;  %v5634_v23 = vrot.slane %v5632_v48, 3  ;;  %v4951_v42 = vpop.f32.mrf.mxu2 }
 0x539   : > { %v10974_v45 = vadd.f32 %v4987_v56, %v4268_v40  ;;  %v5638_v10 = vsel %vm466_vm13, %v5522_v13, %v5546_v32  ;;  %v5641_v12 = vsel %vm470_vm14, %v5522_v13, %v5546_v32  ;;  %v5644_v14 = vsel %vm474_vm15, %v5522_v13, %v5546_v32  ;;  %v11635_v40 = vld [vmem:[#allocation77_spill] sm:$0xff]  ;;  %v11636_v56 = vld [vmem:[#allocation96_spill] sm:$0xff] }
 0x53a   : > { %v5882_v33 = vsel %vm8484_vm4, %v5875_v39, %v5880_v46  ;;  %v3110_v52 = vadd.f32 %v11631_v9, %v11630_v47  ;;  %v5637_v5 = vsel %vm336_vm6, %v5522_v13, %v5546_v32  ;;  %v1979_v62 = vadd.f32 %v11634_v31, %v11633_v44 }
 0x53b   : > { %v5640_v22 = vrot.slane %v5638_v10, 1  ;;  %v5643_v20 = vrot.slane %v5641_v12, 2  ;;  %v5646_v55 = vrot.slane %v5644_v14, 3  ;;  %v5650_v15 = vsel %vm466_vm13, %v10976_v60, %v5547_v26 }
 0x53c   : > { %v5653_v13 = vsel %vm470_vm14, %v10976_v60, %v5547_v26  ;;  %v5888_v3 = vshll.u32 %v5634_v23, 16  ;;  %v5891_v29 = vshrl.u32 %v5634_v23, 16  ;;  %v5649_v39 = vsel %vm336_vm6, %v10976_v60, %v5547_v26 }
 0x53d   : > { %v5652_v46 = vrot.slane %v5650_v15, 1  ;;  %v5898_v48 = vshrl.u32 %v5637_v5, 16  ;;  %v5655_v59 = vrot.slane %v5653_v13, 2  ;;  %v5914_v12 = vshrl.u32 %v5643_v20, 16 }
 0x53e   : > { %v6113_v25 = vld [vmem:[#allocation1] sm:$0xff]  ;;  %v6114_v35 = vld [vmem:[#allocation1 + $0x9] sm:$0xff]  ;;  %v4989_v61 = vpop.f32.mrf.mxu3  ;;  %v5922_v14 = vshrl.u32 %v5646_v55, 16 }
 0x53f   : > { %6116 = vst [vmem:[#allocation1] ss:$9 sm:$0xff] %v5827_v36  ;;  %v1612_v36 = vadd.f32 %v11632_v49, %v1574_v28  ;;  %v4990_v24 = vadd.f32 %v4989_v61, %v4951_v42  ;;  %v5906_v28 = vshrl.u32 %v5640_v22, 16  ;;  %v5929_v42 = vshrl.u32 %v5649_v39, 16  ;;  %v11638_v49 = vld [vmem:[#allocation95_spill] sm:$0xff] }
 0x540   : > { %6300 = vmatmul.bf16.gmra.mxu2 %v6113_v25  ;;  %6338 = vmatmul.bf16.gmra.mxu3 %v6114_v35  ;;  %6118 = vst [vmem:[#allocation1 + $0x1] ss:$9 sm:$0xff] %v5835_v18  ;;  %v3856_v18 = vadd.f32 %v11636_v56, %v11635_v40  ;;  %v5895_v25 = vshll.u32 %v5637_v5, 16  ;;  %v4953_v23 = vpop.f32.mrf.mxu2  ;;  %v5934_v61 = vshll.u32 %v5652_v46, 16  ;;  %v11637_v5 = vld [vmem:[#allocation94_spill] sm:$0xff] }
 0x541   : > { %6120 = vst [vmem:[#allocation1 + $0x2] ss:$9 sm:$0xff] %v5842_v37  ;;  %v11009_v32 = vadd.f32 %v4990_v24, %v10608_v27  ;;  %v5883_v37 = vshrl.u32 %v5631_v58, 16  ;;  %v2000_v35 = vadd.f32 %v1979_v62, %v1612_v36  ;;  %v2725_v36 = vadd.f32 %v11638_v49, %v11637_v5  ;;  %v11648_v5 = vld [vmem:[#allocation70_spill] sm:$0xff] }
 0x542   : > { %6122 = vst [vmem:[#allocation1 + $0x3] ss:$9 sm:$0xff] %v5850_v50  ;;  %v3134_v50 = vadd.f32 %v3110_v52, %v2744_v51  ;;  %v5897_v58 = vsel %vm8484_vm4, %v5891_v29, %v5895_v25  ;;  %v5937_v24 = vshrl.u32 %v5652_v46, 16  ;;  %v5936_v13 = vsel %vm8484_vm4, %v5929_v42, %v5934_v61  ;;  %v11642_v29 = vld [vmem:[#allocation58_spill] sm:$0xff]  ;;  %v11643_v46 = vld [vmem:[#allocation83_spill] sm:$0xff]  ;;  %v11647_v61 = vld [vmem:[#allocation69_spill] sm:$0xff] }
 0x543   : > { %6124 = vst [vmem:[#allocation1 + $0x4] ss:$9 sm:$0xff] %v5858_v34  ;;  %v5903_v34 = vshll.u32 %v5640_v22, 16  ;;  %v5890_v27 = vsel %vm8484_vm4, %v5883_v37, %v5888_v3  ;;  %v5942_v22 = vshll.u32 %v5655_v59, 16  ;;  %v11641_v3 = vld [vmem:[#allocation57_spill] sm:$0xff] }
 0x544   : > { %6126 = vst [vmem:[#allocation1 + $0x5] ss:$9 sm:$0xff] %v5866_v4  ;;  %v5911_v4 = vshll.u32 %v5643_v20, 16  ;;  %v3880_v10 = vadd.f32 %v3856_v18, %v3134_v50  ;;  %v11639_v18 = vld [vmem:[#allocation45_spill] sm:$0xff]  ;;  %v3115_v25 = vadd.f32 %v11642_v29, %v11641_v3 }
 0x545   : > { %6128 = vst [vmem:[#allocation1 + $0x6] ss:$9 sm:$0xff] %v5874_v8  ;;  %v5919_v8 = vshll.u32 %v5646_v55, 16  ;;  %v5905_v52 = vsel %vm8484_vm4, %v5898_v48, %v5903_v34  ;;  %v11640_v55 = vld [vmem:[#allocation61_spill] sm:$0xff] }
 0x546   : > { %6130 = vst [vmem:[#allocation1 + $0x7] ss:$9 sm:$0xff] %v5882_v33  ;;  %v4991_v51 = vpop.f32.mrf.mxu3  ;;  %v5926_v33 = vshll.u32 %v5649_v39, 16  ;;  %v4270_v47 = vadd.f32 %v10632_v19, %v3880_v10  ;;  %v5913_v62 = vsel %vm8484_vm4, %v5906_v28, %v5911_v4  ;;  %v5656_v19 = vsel %vm474_vm15, %v10976_v60, %v5547_v26  ;;  %v11644_v28 = vld [vmem:[#allocation28_spill] sm:$0xff]  ;;  %v11645_v4 = vld [vmem:[#allocation97_spill] sm:$0xff] }
 0x547   : > { %v4992_v9 = vadd.f32 %v4991_v51, %v4953_v23  ;;  %v5921_v40 = vsel %vm8484_vm4, %v5914_v12, %v5919_v8  ;;  %v1362_v15 = vadd.f32 %v11640_v55, %v11639_v18  ;;  %v5658_v37 = vrot.slane %v5656_v19, 3 }
 0x548   : > { %v5928_v56 = vsel %vm8484_vm4, %v5922_v14, %v5926_v33  ;;  %v5944_v60 = vsel %vm8484_vm4, %v5937_v24, %v5942_v22  ;;  %v2746_v26 = vadd.f32 %v2725_v36, %v2000_v35  ;;  %v4956_v50 = vpop.f32.mrf.mxu2  ;;  %v3861_v10 = vadd.f32 %v11645_v4, %v11644_v28 }
 0x549   : > { %v11024_v20 = vadd.f32 %v4992_v9, %v4270_v47  ;;  %v1579_v48 = vadd.f32 %v11643_v46, %v1362_v15  ;;  %v5950_v12 = vshll.u32 %v5658_v37, 16  ;;  %v5953_v23 = vshrl.u32 %v10824_v11, 16  ;;  %v11650_v46 = vld [vmem:[#allocation104_spill] sm:$0xff] }
 0x54a   : > { %v3136_v8 = vadd.f32 %v3115_v25, %v2746_v26  ;;  %v5958_v51 = vshll.u32 %v10826_v41, 16  ;;  %v5961_v14 = vshrl.u32 %v10826_v41, 16  ;;  %v5966_v33 = vshll.u32 %v10828_v38, 16 }
 0x54b   : > { %v5977_v41 = vshrl.u32 %v10831_v0, 16  ;;  %v5992_v55 = vshrl.u32 %v10838_v1, 16  ;;  %v6000_v26 = vshrl.u32 %v10841_v17, 16 }
 0x54c   : > { %v3882_v11 = vadd.f32 %v3861_v10, %v3136_v8  ;;  %v5960_v22 = vsel %vm8484_vm4, %v5953_v23, %v5958_v51  ;;  %v5968_v19 = vsel %vm8484_vm4, %v5961_v14, %v5966_v33  ;;  %v11651_v51 = vld [vmem:[#allocation73_spill] sm:$0xff]  ;;  %v11652_v14 = vld [vmem:[#allocation74_spill] sm:$0xff] }
 0x54d   : > { %v6131_v44 = vld [vmem:[#allocation1] sm:$0xff]  ;;  %v6132_v31 = vld [vmem:[#allocation1 + $0x9] sm:$0xff]  ;;  %v1367_v33 = vadd.f32 %v11652_v14, %v11651_v51 }
 0x54e   : > { %6134 = vst [vmem:[#allocation1] ss:$9 sm:$0xff] %v5890_v27  ;;  %v4994_v39 = vpop.f32.mrf.mxu3  ;;  %v5526_v27 = vld [vmem:[#allocation2 + $0x10] sm:$0xff]  ;;  %v4272_v15 = vadd.f32 %v10763_v63, %v3882_v11 }
 0x54f   : > { %6136 = vst [vmem:[#allocation1 + $0x1] ss:$9 sm:$0xff] %v5897_v58  ;;  %v4995_v34 = vadd.f32 %v4994_v39, %v4956_v50  ;;  %v5945_v58 = vshrl.u32 %v5655_v59, 16  ;;  %v1984_v59 = vadd.f32 %v11648_v5, %v11647_v61  ;;  %v5550_v36 = vrot.slane %v5526_v27, 3  ;;  %v11649_v39 = vld [vmem:[#allocation103_spill] sm:$0xff] }
 0x550   : > { %6305 = vmatmul.bf16.gmra.mxu2 %v6131_v44  ;;  %6343 = vmatmul.bf16.gmra.mxu3 %v6132_v31  ;;  %6138 = vst [vmem:[#allocation1 + $0x2] ss:$9 sm:$0xff] %v5905_v52  ;;  %v11646_v52 = vld [vmem:[#allocation84_spill] sm:$0xff]  ;;  %v5974_v44 = vshll.u32 %v10831_v0, 16  ;;  %v5997_v0 = vshll.u32 %v10841_v17, 16  ;;  %v11653_v5 = vld [vmem:[#allocation59_spill] sm:$0xff] }
 0x551   : > { %6140 = vst [vmem:[#allocation1 + $0x3] ss:$9 sm:$0xff] %v5913_v62  ;;  %v11044_v35 = vadd.f32 %v4995_v34, %v10654_v2  ;;  %v1617_v42 = vadd.f32 %v11646_v52, %v1579_v48  ;;  %v5969_v2 = vshrl.u32 %v10828_v38, 16  ;;  %v5952_v31 = vsel %vm8484_vm4, %v5945_v58, %v5950_v12 }
 0x552   : > { %6142 = vst [vmem:[#allocation1 + $0x4] ss:$9 sm:$0xff] %v5921_v40  ;;  %v5981_v62 = vshll.u32 %v10836_v30, 16  ;;  %v5984_v38 = vshrl.u32 %v10836_v30, 16  ;;  %v5989_v40 = vshll.u32 %v10838_v1, 16  ;;  %v6005_v30 = vshll.u32 %v10850_v21, 16 }
 0x553   : > { %6144 = vst [vmem:[#allocation1 + $0x5] ss:$9 sm:$0xff] %v5928_v56  ;;  %v4958_v56 = vpop.f32.mrf.mxu2  ;;  %v5686_v29 = vsel %vm466_vm13, %v5526_v27, %v5550_v36  ;;  %v2002_v25 = vadd.f32 %v1984_v59, %v1617_v42  ;;  %v5689_v50 = vsel %vm470_vm14, %v5526_v27, %v5550_v36  ;;  %v5999_v17 = vsel %vm8484_vm4, %v5992_v55, %v5997_v0  ;;  %v11654_v59 = vld [vmem:[#allocation60_spill] sm:$0xff] }
 0x554   : > { %6146 = vst [vmem:[#allocation1 + $0x6] ss:$9 sm:$0xff] %v5936_v13  ;;  %v5983_v3 = vsel %vm8484_vm4, %v5977_v41, %v5981_v62  ;;  %v5991_v63 = vsel %vm8484_vm4, %v5984_v38, %v5989_v40  ;;  %v2730_v48 = vadd.f32 %v11650_v46, %v11649_v39  ;;  %v5692_v4 = vsel %vm474_vm15, %v5526_v27, %v5550_v36  ;;  %v11656_v41 = vld [vmem:[#allocation89_spill] sm:$0xff]  ;;  %v11657_v38 = vld [vmem:[#allocation63_spill] sm:$0xff]  ;;  %v11660_v39 = vld [vmem:[#allocation86_spill] sm:$0xff] }
 0x555   : > { %6148 = vst [vmem:[#allocation1 + $0x7] ss:$9 sm:$0xff] %v5944_v60  ;;  %v5976_v60 = vsel %vm8484_vm4, %v5969_v2, %v5974_v44  ;;  %v6007_v10 = vsel %vm8484_vm4, %v6000_v26, %v6005_v30  ;;  %v5685_v12 = vsel %vm336_vm6, %v5526_v27, %v5550_v36  ;;  %v5688_v8 = vrot.slane %v5686_v29, 1 }
 0x556   : > { %v4996_v18 = vpop.f32.mrf.mxu3  ;;  %v5691_v23 = vrot.slane %v5689_v50, 2  ;;  %v5694_v42 = vrot.slane %v5692_v4, 3  ;;  %v2748_v61 = vadd.f32 %v2730_v48, %v2002_v25  ;;  %v6008_v27 = vshrl.u32 %v10850_v21, 16 }
 0x557   : > { %v5437_v47 = vpop.f32.mrf.mxu0  ;;  %v5475_v9 = vpop.f32.mrf.mxu1  ;;  %v4997_v37 = vadd.f32 %v4996_v18, %v4958_v56  ;;  %v6012_v36 = vshll.u32 %v5685_v12, 16  ;;  %v6015_v44 = vshrl.u32 %v5685_v12, 16  ;;  %v6020_v11 = vshll.u32 %v5688_v8, 16 }
 0x558   : > { %v5476_v49 = vadd.f32 %v5475_v9, %v5437_v47  ;;  %v1584_v40 = vadd.f32 %v11657_v38, %v1367_v33  ;;  %v6031_v56 = vshrl.u32 %v5691_v23, 16  ;;  %v6036_v18 = vshll.u32 %v5694_v42, 16  ;;  %v11663_v33 = vld [vmem:[#allocation107_spill] sm:$0xff] }
 0x559   : > { %v11077_v1 = vadd.f32 %v4997_v37, %v4272_v15  ;;  %v6014_v21 = vsel %vm8484_vm4, %v6008_v27, %v6012_v36 }
 0x55a   : > { %v11060_v24 = vadd.f32 %v5476_v49, %v10949_v6  ;;  %v3120_v49 = vadd.f32 %v11654_v59, %v11653_v5  ;;  %v6038_v50 = vsel %vm8484_vm4, %v6031_v56, %v6036_v18  ;;  %v11666_v5 = vld [vmem:[#allocation52_spill] sm:$0xff] }
 0x55b   : > { %v4961_v47 = vpop.f32.mrf.mxu2 }
 0x55c   : > { %v6149_v6 = vld [vmem:[#allocation1] sm:$0xff]  ;;  %v6150_v13 = vld [vmem:[#allocation1 + $0x9] sm:$0xff]  ;;  %v3138_v55 = vadd.f32 %v3120_v49, %v2748_v61 }
 0x55d   : > { %6152 = vst [vmem:[#allocation1] ss:$9 sm:$0xff] %v5952_v31  ;;  %v11655_v31 = vld [vmem:[#allocation37_spill] sm:$0xff]  ;;  %v11665_v61 = vld [vmem:[#allocation99_spill] sm:$0xff] }
 0x55e   : > { %6154 = vst [vmem:[#allocation1 + $0x1] ss:$9 sm:$0xff] %v5960_v22  ;;  %v4999_v9 = vpop.f32.mrf.mxu3  ;;  %v3866_v62 = vadd.f32 %v11656_v41, %v11655_v31  ;;  %v3871_v59 = vadd.f32 %v11666_v5, %v11665_v61 }
 0x55f   : > { %6156 = vst [vmem:[#allocation1 + $0x2] ss:$9 sm:$0xff] %v5968_v19  ;;  %v5439_v34 = vpop.f32.mrf.mxu0  ;;  %v5477_v28 = vpop.f32.mrf.mxu1  ;;  %v5000_v2 = vadd.f32 %v4999_v9, %v4961_v47  ;;  %v6028_v19 = vshll.u32 %v5691_v23, 16  ;;  %v11664_v47 = vld [vmem:[#allocation108_spill] sm:$0xff] }
 0x560   : > { %6310 = vmatmul.bf16.gmra.mxu2 %v6149_v6  ;;  %6348 = vmatmul.bf16.gmra.mxu3 %v6150_v13  ;;  %6158 = vst [vmem:[#allocation1 + $0x3] ss:$9 sm:$0xff] %v5976_v60  ;;  %v5478_v58 = vadd.f32 %v5477_v28, %v5439_v34  ;;  %v6022_v13 = vsel %vm8484_vm4, %v6015_v44, %v6020_v11  ;;  %v11658_v60 = vld [vmem:[#allocation71_spill] sm:$0xff] }
 0x561   : > { %6160 = vst [vmem:[#allocation1 + $0x4] ss:$9 sm:$0xff] %v5983_v3  ;;  %v11102_v22 = vadd.f32 %v5000_v2, %v10770_v43  ;;  %v3884_v37 = vadd.f32 %v3866_v62, %v3138_v55  ;;  %v1622_v26 = vadd.f32 %v11658_v60, %v1584_v40  ;;  %v3125_v9 = vadd.f32 %v11664_v47, %v11663_v33 }
 0x562   : > { %6162 = vst [vmem:[#allocation1 + $0x5] ss:$9 sm:$0xff] %v5991_v63  ;;  %v11094_v52 = vadd.f32 %v5478_v58, %v10974_v45  ;;  %v6023_v45 = vshrl.u32 %v5688_v8, 16  ;;  %v11662_v58 = vld [vmem:[#allocation106_spill] sm:$0xff] }
 0x563   : > { %6164 = vst [vmem:[#allocation1 + $0x6] ss:$9 sm:$0xff] %v5999_v17  ;;  %v4963_v29 = vpop.f32.mrf.mxu2  ;;  %v11659_v17 = vld [vmem:[#allocation68_spill] sm:$0xff]  ;;  %v4274_v48 = vadd.f32 %v10781_v53, %v3884_v37 }
 0x564   : > { %6166 = vst [vmem:[#allocation1 + $0x7] ss:$9 sm:$0xff] %v6007_v10  ;;  %v6030_v43 = vsel %vm8484_vm4, %v6023_v45, %v6028_v19  ;;  %v1989_v46 = vadd.f32 %v11660_v39, %v11659_v17  ;;  %v11661_v10 = vld [vmem:[#allocation105_spill] sm:$0xff] }
 0x565   : > { %v2735_v12 = vadd.f32 %v11662_v58, %v11661_v10 }
 0x566   : > { %v5001_v63 = vpop.f32.mrf.mxu3  ;;  %v2004_v4 = vadd.f32 %v1989_v46, %v1622_v26 }
 0x567   : > { %v5442_v0 = vpop.f32.mrf.mxu0  ;;  %v5480_v15 = vpop.f32.mrf.mxu1  ;;  %v5002_v34 = vadd.f32 %v5001_v63, %v4963_v29 }
 0x568   : > { %v5481_v6 = vadd.f32 %v5480_v15, %v5442_v0  ;;  %v2750_v53 = vadd.f32 %v2735_v12, %v2004_v4 }
 0x569   : > { %v5020_v28 = vadd.f32 %v5002_v34, %v4274_v48 }
 0x56a   : > { %v11113_v25 = vadd.f32 %v5481_v6, %v11009_v32  ;;  %v3140_v2 = vadd.f32 %v3125_v9, %v2750_v53 }
 0x56b   : > { %v6167_v30 = vld [vmem:[#allocation1] sm:$0xff]  ;;  %v6168_v3 = vld [vmem:[#allocation1 + $0x9] sm:$0xff]  ;;  %v4966_v23 = vpop.f32.mrf.mxu2 }
 0x56c   : > { %6170 = vst [vmem:[#allocation1] ss:$9 sm:$0xff] %v6014_v21  ;;  %v3886_v11 = vadd.f32 %v3871_v59, %v3140_v2 }
 0x56d   : > { %6172 = vst [vmem:[#allocation1 + $0x1] ss:$9 sm:$0xff] %v6022_v13 }
 0x56e   : > { %6174 = vst [vmem:[#allocation1 + $0x2] ss:$9 sm:$0xff] %v6030_v43  ;;  %v5004_v51 = vpop.f32.mrf.mxu3  ;;  %v4276_v62 = vadd.f32 %v10796_v7, %v3886_v11 }
 0x56f   : > { %6176 = vst [vmem:[#allocation1 + $0x3] ss:$9 sm:$0xff] %v6038_v50  ;;  %v5444_v32 = vpop.f32.mrf.mxu0  ;;  %v5482_v54 = vpop.f32.mrf.mxu1  ;;  %v5005_v42 = vadd.f32 %v5004_v51, %v4966_v23 }
 0x570   : > { %6315 = vmatmul.bf16.gmra.mxu2 %v6167_v30  ;;  %6353 = vmatmul.bf16.gmra.mxu3 %v6168_v3  ;;  %v5483_v8 = vadd.f32 %v5482_v54, %v5444_v32 }
 0x571   : > { %v5021_v49 = vadd.f32 %v5005_v42, %v10787_v16 }
 0x572   : > { %v11123_v14 = vadd.f32 %v5483_v8, %v11024_v20 }
 0x573   : > { %v4968_v31 = vpop.f32.mrf.mxu2 }
 0x576   : > { %v5006_v41 = vpop.f32.mrf.mxu3  ;;  %v6177_v19 = vld [vmem:[#allocation1] sm:$0xff]  ;;  %v6178_v38 = vld [vmem:[#allocation1 + $0x9] sm:$0xff] }
 0x577   : > { %v5447_v27 = vpop.f32.mrf.mxu0  ;;  %v5485_v36 = vpop.f32.mrf.mxu1  ;;  %v5007_v45 = vadd.f32 %v5006_v41, %v4968_v31 }
 0x578   : > { %v5486_v44 = vadd.f32 %v5485_v36, %v5447_v27 }
 0x579   : > { %v5022_v40 = vadd.f32 %v5007_v45, %v4276_v62 }
 0x57a   : > { %v11131_v20 = vadd.f32 %v5486_v44, %v11044_v35 }
 0x57b   : > { %v4971_v55 = vpop.f32.mrf.mxu2 }
 0x57e   : > { %v5009_v0 = vpop.f32.mrf.mxu3 }
 0x57f   : > { %v5449_v16 = vpop.f32.mrf.mxu0  ;;  %v5487_v56 = vpop.f32.mrf.mxu1  ;;  %v5010_v21 = vadd.f32 %v5009_v0, %v4971_v55 }
 0x580   : > { %6320 = vmatmul.bf16.gmra.mxu2 %v6177_v19  ;;  %6358 = vmatmul.bf16.gmra.mxu3 %v6178_v38  ;;  %v5488_v18 = vadd.f32 %v5487_v56, %v5449_v16 }
 0x581   : > { %v5023_v35 = vadd.f32 %v5010_v21, %v10806_v57 }
 0x582   : > { %v11135_v15 = vadd.f32 %v5488_v18, %v11077_v1 }
 0x583   : > { %v4973_v37 = vpop.f32.mrf.mxu2 }
 0x586   : > { %v5011_v43 = vpop.f32.mrf.mxu3 }
 0x587   : > { %v5452_v6 = vpop.f32.mrf.mxu0  ;;  %v5490_v7 = vpop.f32.mrf.mxu1 }
 0x588   : > { %v5491_v13 = vadd.f32 %v5490_v7, %v5452_v6 }
 0x58a   : > { %v5510_v60 = vadd.f32 %v5491_v13, %v11102_v22 }
 0x58f   : > { %v5454_v26 = vpop.f32.mrf.mxu0  ;;  %v5492_v30 = vpop.f32.mrf.mxu1 }
 0x590   : > { %v5493_v3 = vadd.f32 %v5492_v30, %v5454_v26 }
 0x592   : > { %v11140_v29 = vadd.f32 %v5493_v3, %v5020_v28 }
 0x597   : > { %v5457_v63 = vpop.f32.mrf.mxu0  ;;  %v5495_v50 = vpop.f32.mrf.mxu1 }
 0x598   : > { %v5496_v1 = vadd.f32 %v5495_v50, %v5457_v63 }
 0x59a   : > { %v11142_v17 = vadd.f32 %v5496_v1, %v5021_v49 }
 0x59f   : > { %v5459_v39 = vpop.f32.mrf.mxu0  ;;  %v5497_v46 = vpop.f32.mrf.mxu1 }
 0x5a0   : > { %v5498_v57 = vadd.f32 %v5497_v46, %v5459_v39 }
 0x5a2   : > { %v11144_v48 = vadd.f32 %v5498_v57, %v5022_v40 }
 0x5a7   : > { %v5462_v34 = vpop.f32.mrf.mxu0  ;;  %v5500_v4 = vpop.f32.mrf.mxu1 }
 0x5a8   : > { %v5501_v10 = vadd.f32 %v5500_v4, %v5462_v34 }
 0x5aa   : > { %v11146_v58 = vadd.f32 %v5501_v10, %v5023_v35 }
 0x5af   : > { %v5464_v28 = vpop.f32.mrf.mxu0  ;;  %v5502_v54 = vpop.f32.mrf.mxu1 }
 0x5b3   : > { %v6296_v22 = vpop.f32.mrf.mxu2  ;;  %v6334_v12 = vpop.f32.mrf.mxu3 }
 0x5b4   : > { %v6335_v32 = vadd.f32 %v6334_v12, %v6296_v22 }
 0x5b6   : > { %v11149_v8 = vadd.f32 %v6335_v32, %v11060_v24 }
 0x5b8   : > { %v6390_v47 = vmul.f32 %v11149_v8, %v11149_v8 }
 0x5bb   : > { %v6298_v23 = vpop.f32.mrf.mxu2  ;;  %v6336_v51 = vpop.f32.mrf.mxu3 }
 0x5bc   : > { %v6337_v53 = vadd.f32 %v6336_v51, %v6298_v23 }
 0x5be   : > { %v11152_v33 = vadd.f32 %v6337_v53, %v11094_v52 }
 0x5c0   : > { %v6374_v9 = vadd.f32 %v11152_v33, %v11149_v8  ;;  %v6391_v42 = vmul.f32 %v11152_v33, %v11152_v33 }
 0x5c2   : > { %v6401_v61 = vadd.f32 %v6391_v42, %v6390_v47 }
 0x5c3   : > { %v6301_v5 = vpop.f32.mrf.mxu2  ;;  %v6339_v59 = vpop.f32.mrf.mxu3 }
 0x5c4   : > { %v6340_v24 = vadd.f32 %v6339_v59, %v6301_v5 }
 0x5c6   : > { %v11161_v49 = vadd.f32 %v6340_v24, %v11113_v25 }
 0x5c8   : > { %v6375_v2 = vadd.f32 %v6374_v9, %v11161_v49  ;;  %v6392_v52 = vmul.f32 %v11161_v49, %v11161_v49 }
 0x5ca   : > { %v6402_v27 = vadd.f32 %v6401_v61, %v6392_v52 }
 0x5cb   : > { %v6303_v36 = vpop.f32.mrf.mxu2  ;;  %v6341_v44 = vpop.f32.mrf.mxu3 }
 0x5cc   : > { %v6342_v11 = vadd.f32 %v6341_v44, %v6303_v36 }
 0x5ce   : > { %v11167_v31 = vadd.f32 %v6342_v11, %v11123_v14 }
 0x5d0   : > { %v6376_v41 = vadd.f32 %v6375_v2, %v11167_v31  ;;  %v6393_v62 = vmul.f32 %v11167_v31, %v11167_v31 }
 0x5d2   : > { %v6403_v45 = vadd.f32 %v6402_v27, %v6393_v62 }
 0x5d3   : > { %v6306_v25 = vpop.f32.mrf.mxu2  ;;  %v6344_v19 = vpop.f32.mrf.mxu3 }
 0x5d4   : > { %v6345_v38 = vadd.f32 %v6344_v19, %v6306_v25 }
 0x5d6   : > { %v11173_v40 = vadd.f32 %v6345_v38, %v11131_v20 }
 0x5d8   : > { %v6377_v16 = vadd.f32 %v6376_v41, %v11173_v40  ;;  %v6394_v56 = vmul.f32 %v11173_v40, %v11173_v40 }
 0x5da   : > { %v6404_v18 = vadd.f32 %v6403_v45, %v6394_v56 }
 0x5db   : > { %v6308_v14 = vpop.f32.mrf.mxu2  ;;  %v6346_v55 = vpop.f32.mrf.mxu3 }
 0x5dc   : > { %v6347_v0 = vadd.f32 %v6346_v55, %v6308_v14 }
 0x5de   : > { %v11179_v21 = vadd.f32 %v6347_v0, %v11135_v15 }
 0x5e0   : > { %v6378_v35 = vadd.f32 %v6377_v16, %v11179_v21  ;;  %v6395_v6 = vmul.f32 %v11179_v21, %v11179_v21 }
 0x5e2   : > { %v6405_v7 = vadd.f32 %v6404_v18, %v6395_v6 }
 0x5e3   : > { %v6311_v20 = vpop.f32.mrf.mxu2  ;;  %v6349_v13 = vpop.f32.mrf.mxu3 }
 0x5e4   : > { %v6350_v37 = vadd.f32 %v6349_v13, %v6311_v20 }
 0x5e6   : > { %v11184_v43 = vadd.f32 %v6350_v37, %v5510_v60 }
 0x5e8   : > { %v6379_v26 = vadd.f32 %v6378_v35, %v11184_v43  ;;  %v6396_v30 = vmul.f32 %v11184_v43, %v11184_v43 }
 0x5ea   : > { %v6406_v3 = vadd.f32 %v6405_v7, %v6396_v30 }
 0x5eb   : > { %v6313_v63 = vpop.f32.mrf.mxu2  ;;  %v6351_v15 = vpop.f32.mrf.mxu3 }
 0x5ec   : > { %v6352_v50 = vadd.f32 %v6351_v15, %v6313_v63 }
 0x5ee   : > { %v11190_v1 = vadd.f32 %v6352_v50, %v11140_v29 }
 0x5f0   : > { %v6380_v39 = vadd.f32 %v6379_v26, %v11190_v1  ;;  %v6397_v46 = vmul.f32 %v11190_v1, %v11190_v1 }
 0x5f2   : > { %v6407_v57 = vadd.f32 %v6406_v3, %v6397_v46 }
 0x5f3   : > { %v6316_v60 = vpop.f32.mrf.mxu2  ;;  %v6354_v34 = vpop.f32.mrf.mxu3 }
 0x5f4   : > { %v6355_v4 = vadd.f32 %v6354_v34, %v6316_v60 }
 0x5f6   : > { %v11196_v10 = vadd.f32 %v6355_v4, %v11142_v17 }
 0x5f8   : > { %v6381_v22 = vadd.f32 %v6380_v39, %v11196_v10  ;;  %v6398_v12 = vmul.f32 %v11196_v10, %v11196_v10 }
 0x5fa   : > { %v6408_v32 = vadd.f32 %v6407_v57, %v6398_v12 }
 0x5fb   : > { %v6318_v29 = vpop.f32.mrf.mxu2  ;;  %v6356_v28 = vpop.f32.mrf.mxu3 }
 0x5fc   : > { %v6357_v54 = vadd.f32 %v6356_v28, %v6318_v29 }
 0x5fe   : > { %v11202_v23 = vadd.f32 %v6357_v54, %v11144_v48 }
 0x600   : > { %v6382_v51 = vadd.f32 %v6381_v22, %v11202_v23  ;;  %v6399_v53 = vmul.f32 %v11202_v23, %v11202_v23  ;;  %v8059_v22 = vld [vmem:[%s247_s26] ss:$0 sm:$0xff] }
 0x602   : > { %v6409_v47 = vadd.f32 %v6408_v32, %v6399_v53 }
 0x603   : > { %v6321_v17 = vpop.f32.mrf.mxu2  ;;  %v6359_v9 = vpop.f32.mrf.mxu3 }
 0x604   : > { %v6360_v42 = vadd.f32 %v6359_v9, %v6321_v17 }
 0x606   : > { %v6373_v61 = vadd.f32 %v6360_v42, %v11146_v58 }
 0x608   : > { %v6383_v5 = vadd.f32 %v6382_v51, %v6373_v61  ;;  %v6400_v59 = vmul.f32 %v6373_v61, %v6373_v61 }
 0x60a   : > { %v6384_v24 = vrot.slane %v6383_v5, 4  ;;  %v6410_v2 = vadd.f32 %v6409_v47, %v6400_v59 }
 0x60b   : > { %v6323_v52 = vpop.f32.mrf.mxu2  ;;  %v6361_v27 = vpop.f32.mrf.mxu3 }
 0x60c   : > { %v6385_v36 = vadd.f32 %v6384_v24, %v6383_v5  ;;  %v6411_v48 = vrot.slane %v6410_v2, 4 }
 0x60e   : > { %v6386_v44 = vrot.slane %v6385_v36, 2  ;;  %v6412_v11 = vadd.f32 %v6411_v48, %v6410_v2 }
 0x610   : > { %v6387_v41 = vadd.f32 %v6386_v44, %v6385_v36  ;;  %v6413_v62 = vrot.slane %v6412_v11, 2 }
 0x612   : > { %v6388_v45 = vrot.slane %v6387_v41, 1  ;;  %v6414_v25 = vadd.f32 %v6413_v62, %v6412_v11 }
 0x614   : > { %v6389_v19 = vadd.f32 %v6388_v45, %v6387_v41  ;;  %v6415_v38 = vrot.slane %v6414_v25, 1 }
 0x616   : > { %v6416_v16 = vadd.f32 %v6415_v38, %v6414_v25  ;;  %v6417_v56 = vmul.f32 0.011363637, %v6389_v19 }
 0x618   : > { %v6418_v18 = vmul.f32 0.011363637, %v6416_v16  ;;  %v6419_v58 = vmul.f32 %v6417_v56, %v6417_v56  ;;  %v6422_v14 = vsub.f32 %v11149_v8, %v6417_v56  ;;  %v6423_v55 = vsub.f32 %v11152_v33, %v6417_v56 }
 0x619   : > { %v6424_v0 = vsub.f32 %v11161_v49, %v6417_v56  ;;  %v6425_v35 = vsub.f32 %v11167_v31, %v6417_v56  ;;  %v6426_v6 = vsub.f32 %v11173_v40, %v6417_v56  ;;  %v6427_v7 = vsub.f32 %v11179_v21, %v6417_v56 }
 0x61a   : > { %v6420_v20 = vsub.f32 %v6418_v18, %v6419_v58  ;;  %v6428_v13 = vsub.f32 %v11184_v43, %v6417_v56  ;;  %v6429_v37 = vsub.f32 %v11190_v1, %v6417_v56  ;;  %v6430_v26 = vsub.f32 %v11196_v10, %v6417_v56  ;;  %v8058_v43 = vld [vmem:[%s238_s30] ss:$0 sm:$0xff]  ;;  %s7839_s30 = sshll.u32 (%p8275_p9), %s8253_s19, 3 }
 0x61b   : > { %v6431_v8 = vsub.f32 %v11202_v23, %v6417_v56  ;;  %v6432_v30 = vsub.f32 %v6373_v61, %v6417_v56  ;;  %s6515_s18 = scalar_lea.vmem (%p8275_p9), %s11270_s4, %s7839_s30 }
 0x61c   : > { %v6421_v33 = vmax.f32 %v6420_v20, 0.0 }
 0x61e   : > { %v6433_v3 = vadd.f32 1e-05, %v6421_v33 }
 0x620   : > { %8060 = vrsqrt.f32 %v6433_v3  ;;  %vm6440_vm10 = vweird.f32 %v6433_v3 }
 0x626   : > { %v8061_v49 = vpop.eup %8060 }
 0x627   : > { %v6435_v31 = vmul.f32 %v8061_v49, %v6433_v3  ;;  %vm6441_vm6 = vweird.f32 %v8061_v49 }
 0x628   : > { %vm6442_vm13 = vmor %vm6440_vm10, %vm6441_vm6 }
 0x629   : > { %v6436_v63 = vmul.f32 %v8061_v49, %v6435_v31 }
 0x62b   : > { %v6437_v40 = vmul.f32 0.5, %v6436_v63 }
 0x62d   : > { %v6438_v21 = vsub.f32 1.5, %v6437_v40 }
 0x62f   : > { %v6439_v15 = vmul.f32 %v8061_v49, %v6438_v21 }
 0x631   : > { %v6443_v50 = vsel %vm6442_vm13, %v8061_v49, %v6439_v15 }
 0x632   : > { %v6444_v1 = vmul.f32 %v6443_v50, %v6422_v14  ;;  %v6445_v39 = vmul.f32 %v6443_v50, %v6423_v55  ;;  %v6446_v46 = vmul.f32 %v6443_v50, %v6424_v0  ;;  %v6447_v57 = vmul.f32 %v6443_v50, %v6425_v35 }
 0x633   : > { %v6448_v60 = vmul.f32 %v6443_v50, %v6426_v6  ;;  %v6449_v34 = vmul.f32 %v6443_v50, %v6427_v7  ;;  %v6450_v4 = vmul.f32 %v6443_v50, %v6428_v13  ;;  %v6451_v10 = vmul.f32 %v6443_v50, %v6429_v37 }
 0x634   : > { %v6452_v12 = vmul.f32 %v6443_v50, %v6430_v26  ;;  %v6453_v32 = vmul.f32 %v6443_v50, %v6431_v8  ;;  %v6454_v29 = vmul.f32 %v6443_v50, %v6432_v30  ;;  %v6459_v28 = vmul.f32 %v8058_v43, %v6444_v1 }
 0x635   : > { %v6460_v54 = vmul.f32 %v8058_v43, %v6445_v39  ;;  %v6461_v23 = vmul.f32 %v8058_v43, %v6446_v46  ;;  %v6462_v51 = vmul.f32 %v8058_v43, %v6447_v57  ;;  %v6463_v53 = vmul.f32 %v8058_v43, %v6448_v60 }
 0x636   : > { %v6464_v47 = vmul.f32 %v8058_v43, %v6449_v34  ;;  %v6465_v17 = vmul.f32 %v8058_v43, %v6450_v4  ;;  %v6466_v9 = vmul.f32 %v8058_v43, %v6451_v10  ;;  %v6474_v42 = vadd.f32 %v8059_v22, %v6459_v28 }
 0x637   : > { %v6475_v61 = vadd.f32 %v8059_v22, %v6460_v54  ;;  %v6467_v5 = vmul.f32 %v8058_v43, %v6452_v12  ;;  %v6476_v59 = vadd.f32 %v8059_v22, %v6461_v23  ;;  %v6477_v24 = vadd.f32 %v8059_v22, %v6462_v51 }
 0x638   : > { %v6478_v2 = vadd.f32 %v8059_v22, %v6463_v53  ;;  %v6468_v52 = vmul.f32 %v8058_v43, %v6453_v32  ;;  %v6469_v27 = vmul.f32 %v8058_v43, %v6454_v29  ;;  %v6479_v36 = vadd.f32 %v8059_v22, %v6464_v47 }
 0x639   : > { %v6480_v48 = vadd.f32 %v8059_v22, %v6465_v17  ;;  %v6485_v44 = vmax.f32 %v6474_v42, 0.0  ;;  %v6486_v11 = vmax.f32 %v6475_v61, 0.0  ;;  %v6487_v41 = vmax.f32 %v6476_v59, 0.0 }
 0x63a   : > { %v6481_v62 = vadd.f32 %v8059_v22, %v6466_v9  ;;  %v6488_v45 = vmax.f32 %v6477_v24, 0.0  ;;  %v6482_v25 = vadd.f32 %v8059_v22, %v6467_v5  ;;  %v6489_v19 = vmax.f32 %v6478_v2, 0.0 }
 0x63b   : > { %6496 = vst [vmem:[%s11223_s2] sm:$0xff] %v6485_v44  ;;  %v6483_v38 = vadd.f32 %v8059_v22, %v6468_v52  ;;  %v6490_v16 = vmax.f32 %v6479_v36, 0.0  ;;  %v6484_v56 = vadd.f32 %v8059_v22, %v6469_v27  ;;  %v6491_v18 = vmax.f32 %v6480_v48, 0.0 }
 0x63c   : > { %6497 = vst [vmem:[%s11223_s2 + $0x8] sm:$0xff] %v6486_v11  ;;  %v6492_v58 = vmax.f32 %v6481_v62, 0.0  ;;  %v6493_v14 = vmax.f32 %v6482_v25, 0.0 }
 0x63d   : > { %6498 = vst [vmem:[%s11223_s2 + $0x10] sm:$0xff] %v6487_v41  ;;  %v6494_v55 = vmax.f32 %v6483_v38, 0.0  ;;  %v6495_v0 = vmax.f32 %v6484_v56, 0.0 }
 0x63e   : > { %6499 = vst [vmem:[%s11223_s2 + $0x18] sm:$0xff] %v6488_v45 }
 0x63f   : > { %6500 = vst [vmem:[%s11223_s2 + $0x20] sm:$0xff] %v6489_v19 }
 0x640   : > { %6501 = vst [vmem:[%s11223_s2 + $0x28] sm:$0xff] %v6490_v16 }
 0x641   : > { %6502 = vst [vmem:[%s11223_s2 + $0x30] sm:$0xff] %v6491_v18  ;;  %6513 = sbr.rel (!%p8275_p9) target bundleno = 1617 (0x651), region = 52 }
 0x642   : > { %6503 = vst [vmem:[%s11223_s2 + $0x38] sm:$0xff] %v6492_v58  ;;  %v6564_v35 = vld [vmem:[%s11223_s2] sm:$0xff] (%p8275_p9) }
 0x643   : > { %6504 = vst [vmem:[%s11223_s2 + $0x40] sm:$0xff] %v6493_v14  ;;  %v6566_v6 = vld [vmem:[%s11223_s2 + $0x8] sm:$0xff] (%p8275_p9) }
 0x644   : > { %6505 = vst [vmem:[%s11223_s2 + $0x48] sm:$0xff] %v6494_v55  ;;  %v6568_v7 = vld [vmem:[%s11223_s2 + $0x10] sm:$0xff] (%p8275_p9) }
 0x645   : > { %6506 = vst [vmem:[%s11223_s2 + $0x50] sm:$0xff] %v6495_v0  ;;  %v6570_v20 = vld [vmem:[%s11223_s2 + $0x18] sm:$0xff] (%p8275_p9) }
 0x646   : > { %6565 = vst [vmem:[%s6515_s18] sm:$0xff] %v6564_v35  ;;  %v6572_v13 = vld [vmem:[%s11223_s2 + $0x20] sm:$0xff] }
 0x647   : > { %6567 = vst [vmem:[%s6515_s18 + $0x10] sm:$0xff] %v6566_v6  ;;  %v6574_v37 = vld [vmem:[%s11223_s2 + $0x28] sm:$0xff] }
 0x648   : > { %6569 = vst [vmem:[%s6515_s18 + $0x20] sm:$0xff] %v6568_v7  ;;  %v6576_v26 = vld [vmem:[%s11223_s2 + $0x30] sm:$0xff] }
 0x649   : > { %6571 = vst [vmem:[%s6515_s18 + $0x30] sm:$0xff] %v6570_v20  ;;  %v6578_v8 = vld [vmem:[%s11223_s2 + $0x38] sm:$0xff] }
 0x64a   : > { %6573 = vst [vmem:[%s6515_s18 + $0x40] sm:$0xff] %v6572_v13  ;;  %v6580_v30 = vld [vmem:[%s11223_s2 + $0x40] sm:$0xff] }
 0x64b   : > { %6575 = vst [vmem:[%s6515_s18 + $0x50] sm:$0xff] %v6574_v37  ;;  %v6582_v33 = vld [vmem:[%s11223_s2 + $0x48] sm:$0xff] }
 0x64c   : > { %6577 = vst [vmem:[%s6515_s18 + $0x60] sm:$0xff] %v6576_v26  ;;  %v6584_v3 = vld [vmem:[%s11223_s2 + $0x50] sm:$0xff] }
 0x64d   : > { %6579 = vst [vmem:[%s6515_s18 + $0x70] sm:$0xff] %v6578_v8 }
 0x64e   : > { %6581 = vst [vmem:[%s6515_s18 + $0x80] sm:$0xff] %v6580_v30 }
 0x64f   : > { %6583 = vst [vmem:[%s6515_s18 + $0x90] sm:$0xff] %v6582_v33 }
 0x650   : > { %6585 = vst [vmem:[%s6515_s18 + $0xa0] sm:$0xff] %v6584_v3 }
 0x651 PF: > { %p17_p7 = scmp.ge.s32.totalorder %s8256_s20, 4   ;;  %s11667_s15 = smov %s8195_s16 }
 0x652   : > { %s11668_s16 = smov %s8199_s17  ;;  %s11669_s17 = smov %s8266_s23 }
 0x653   : > { %s11670_s18 = smov %s8256_s20  ;;  %19 = sbr.rel (!%p17_p7) target bundleno = 8 (0x8), region = 259 }
 0x658   :  { %6601 = vsyncpa [#allocation4], 1 }
 0x659   :  { %6603 = vsyncpa [#allocation4 + $0x1], 1 }
 0x65a   :  { %6604 = vsyncpa [#allocation6], 1 }
 0x65b   :  { %6606 = vsyncpa [#allocation6 + $0x1], 1 }

</bundles_post_ra>
